<compile_context>
chip_gen: v7x
topology: tpu7x:2x2x1
jax: 0.10.0
libtpu: 0.0.40
codegen_flags: <defaults>
</compile_context>

<pallas_src>
import jax
import jax.numpy as jnp
from jax.experimental import pallas as pl
from jax.experimental.pallas import tpu as pltpu


def _round_up(a, b):
    return -(-a // b) * b


def _vmem_limit_bytes():
    """Generation-aware scoped-VMEM limit (v5e/v6e: ~100 MiB, v7x: ~48 MiB)."""
    try:
        cap = int(pltpu.get_tpu_info().vmem_capacity_bytes)
    except Exception:  # query unavailable -> conservative limit, safe on every gen
        return 48 * 1024 * 1024
    if cap >= 128 * 1024 * 1024:          # v5e / v6e
        return 100 * 1024 * 1024
    # v7x (64 MiB physical): leave headroom for compiler-internal scratch
    return max(32 * 1024 * 1024, min(cap - 16 * 1024 * 1024, 48 * 1024 * 1024))


def _pick_tiles(N, H, C, vmem_limit, tile_n, tile_c):
    """Pick large, lane-dense tiles that fit the per-generation VMEM budget."""
    if tile_c is None:
        tile_c = 512                       # multiple of 256 for the v6e/v7x MXU width
    if tile_n is None:
        tile_n = 1024 if vmem_limit >= 96 * 1024 * 1024 else 512

    # Clamp to the problem size; keep bf16 sublane packing (multiple of 16 rows).
    tile_n = min(tile_n, _round_up(N, 16))
    tile_n = max(16, (tile_n // 16) * 16)
    tile_c = min(tile_c, _round_up(C, 128))
    tile_c = max(128, (tile_c // 128) * 128)

    # Conservative footprint: double-buffered bf16 x + W tiles, f32 logits temp, scratch.
    def footprint(tn, tc):
        return 2 * tn * H * 2 + 2 * H * tc * 2 + tn * tc * 4 + 4 * tn * 4

    budget = int(0.75 * vmem_limit)
    while footprint(tile_n, tile_c) > budget and tile_n > 256:
        tile_n //= 2
    while footprint(tile_n, tile_c) > budget and tile_c > 256:
        tile_c //= 2
    tile_n = max(16, (tile_n // 16) * 16)
    tile_c = max(128, (tile_c // 128) * 128)
    return tile_n, tile_c


def _make_lse_kernel(c_true, tile_c, c_padded):
    """Fused (x @ W) + online log-sum-exp over class tiles.

    x_ref : [tile_n, H]   bf16 features
    w_ref : [H, tile_c]   bf16 classifier weight tile
    lse_ref : [tile_n, 1] f32 per-row logsumexp (written once, at the last class tile)
    m_scr / l_scr : [tile_n, 1] f32 running max / running sum-exp
    """
    n_class_tiles = c_padded // tile_c
    mask_padded_classes = c_padded > c_true
    valid_in_last = c_true - (n_class_tiles - 1) * tile_c  # static python int >= 1

    def kernel(x_ref, w_ref, lse_ref, m_scr, l_scr):
        c = pl.program_id(1)
        nc = pl.num_programs(1)

        @pl.when(c == 0)
        def _():
            m_scr[...] = jnp.full(m_scr.shape, -jnp.inf, dtype=jnp.float32)
            l_scr[...] = jnp.zeros(l_scr.shape, dtype=jnp.float32)

        # [tile_n, tile_c] logits tile: bf16 operands on the MXU, f32 accumulation.
        logits = jnp.dot(x_ref[...], w_ref[...], preferred_element_type=jnp.float32)

        if mask_padded_classes:
            # Padded class columns (only present in the last class tile) must not bias
            # the log-sum-exp. Static local iota (no per-step +c*tile_c full-tile add).
            lane = jax.lax.broadcasted_iota(jnp.int32, logits.shape, 1)
            is_valid = jnp.logical_or(c < nc - 1, lane < valid_in_last)
            logits = jnp.where(is_valid, logits, -jnp.inf)

        # Online (flash-style) log-sum-exp update across class tiles.
        m_prev = m_scr[...]
        m_new = jnp.maximum(m_prev, jnp.max(logits, axis=-1, keepdims=True))
        alpha = jnp.exp(m_prev - m_new)                      # 0 at c == 0 (m_prev = -inf)
        l_scr[...] = alpha * l_scr[...] + jnp.sum(
            jnp.exp(logits - m_new), axis=-1, keepdims=True)
        m_scr[...] = m_new

        @pl.when(c == nc - 1)
        def _():
            lse_ref[...] = m_scr[...] + jnp.log(l_scr[...])

    return kernel


def ce_loss_pallas(x, w, targets, *, tile_n=None, tile_c=None):
    """CrossEntropyLoss(mean) of logits = x @ w vs. integer class targets.

    x: [N, H] (bf16 preferred), w: [H, C] (bf16 preferred), targets: [N] int in [0, C).
    """
    N, H = x.shape
    H2, C = w.shape
    assert H == H2
    t = targets.astype(jnp.int32)

    # Keep MXU operands bf16 at rest; only cast if the caller supplied a wider dtype.
    xb = x if x.dtype == jnp.bfloat16 else x.astype(jnp.bfloat16)
    wb = w if w.dtype == jnp.bfloat16 else w.astype(jnp.bfloat16)

    vmem_limit = _vmem_limit_bytes()
    tile_n, tile_c = _pick_tiles(N, H, C, vmem_limit, tile_n, tile_c)

    n_padded = _round_up(N, tile_n)
    c_padded = _round_up(C, tile_c)

    # TODO(synk): for very large ragged N / C, handle the partial tiles fully in-kernel
    # (actual-N scalar + masked store) instead of materializing padded copies here.
    x_in = xb if n_padded == N else jnp.pad(xb, ((0, n_padded - N), (0, 0)))
    w_in = wb if c_padded == C else jnp.pad(wb, ((0, 0), (0, c_padded - C)))

    grid = (n_padded // tile_n, c_padded // tile_c)

    lse = pl.pallas_call(
        _make_lse_kernel(C, tile_c, c_padded),
        out_shape=jax.ShapeDtypeStruct((n_padded, 1), jnp.float32),
        grid_spec=pltpu.PrefetchScalarGridSpec(
            num_scalar_prefetch=0,
            grid=grid,
            in_specs=[
                pl.BlockSpec((tile_n, H), lambda i, c: (i, 0)),   # feature row tile
                pl.BlockSpec((H, tile_c), lambda i, c: (0, c)),   # weight class tile
            ],
            out_specs=pl.BlockSpec((tile_n, 1), lambda i, c: (i, 0)),  # per-row LSE
            scratch_shapes=[
                pltpu.VMEM((tile_n, 1), jnp.float32),   # running max
                pltpu.VMEM((tile_n, 1), jnp.float32),   # running sum-exp
            ],
        ),
        compiler_params=pltpu.CompilerParams(
            dimension_semantics=("parallel", "arbitrary"),
            vmem_limit_bytes=vmem_limit,
        ),
    )(x_in, w_in)

    # Target-logit gather hoisted out of the inner class loop (perf review): one cheap
    # plain-JAX pass instead of an iota/compare/select + extra cross-lane reduce on every
    # (row_tile, class_tile) grid step.
    w_t = jnp.take(wb, t, axis=1)                                  # [H, N]
    g = jnp.einsum('nh,hn->n', xb, w_t,
                   preferred_element_type=jnp.float32)             # [N] target logits

    # NLL = logsumexp(logits) - logit[target]; mean over the real (unpadded) rows.
    return jnp.mean(lse[:N, 0] - g)


def model_apply(embedding, input_indices):
    """Glue 'model': deterministic embedding lookup producing features [N, H]."""
    return embedding[input_indices]


def ce_loss_reference(x, w, targets):
    # Reference with the same bf16 operands / f32 accumulation as the kernel.
    # (Exact parity with an f32 PyTorch CrossEntropyLoss would need f32 operands.)
    logits = jnp.dot(x.astype(jnp.bfloat16), w.astype(jnp.bfloat16),
                     preferred_element_type=jnp.float32)
    lse = jax.nn.logsumexp(logits, axis=-1)
    tgt = jnp.take_along_axis(logits, targets[:, None], axis=-1)[:, 0]
    return jnp.mean(lse - tgt)


if __name__ == "__main__":
    key = jax.random.PRNGKey(0)
    k_emb, k_w, k_in, k_tgt = jax.random.split(key, 4)

    # Small demo shapes. C is deliberately NOT a multiple of 128 to exercise the
    # in-kernel masking of padded classes, and N is ragged w.r.t. the row tile.
    VOCAB, H, C, N = 64, 128, 1000, 1000

    # Parameters kept bf16 at rest (no wrapper-side cast passes).
    embedding = (jax.random.normal(k_emb, (VOCAB, H), dtype=jnp.float32)
                 * 0.1).astype(jnp.bfloat16)
    w_head = (jax.random.normal(k_w, (H, C), dtype=jnp.float32)
              * 0.1).astype(jnp.bfloat16)

    input_indices = jax.random.randint(k_in, (N,), 0, VOCAB, dtype=jnp.int32)
    target_indices = jax.random.randint(k_tgt, (N,), 0, C, dtype=jnp.int32)

    # forward(model, input_indices, target_indices):
    features = model_apply(embedding, input_indices)      # [N, H] bf16 (plain-JAX glue)
    # tile_n=512 / tile_c=512 are inside the recommended ranges and make the demo
    # grid (2, 2) so both the parallel row axis and the class reduction are exercised;
    # production callers can rely on the generation-aware defaults (tile_n up to 1024).
    loss = ce_loss_pallas(features, w_head, target_indices, tile_n=512, tile_c=512)
    loss = jax.block_until_ready(loss)

    ref = ce_loss_reference(features, w_head, target_indices)
    assert jnp.allclose(loss, ref, atol=1e-3, rtol=1e-3), (loss, ref)

    # TODO(synk): PyTorch's ignore_index / class-weight / label-smoothing options of
    # nn.CrossEntropyLoss are not implemented (defaults only); targets assumed in [0, C).
    print("KERNEL_OK")
</pallas_src>

<mosaic_0001>
module attributes {stable_mosaic.version = 11 : i64} {
  func.func @kernel(%arg0: i32, %arg1: i32, %arg2: memref<512x128xbf16, #tpu.memory_space<vmem>>, %arg3: memref<128x512xbf16, #tpu.memory_space<vmem>>, %arg4: memref<512x1xf32, #tpu.memory_space<vmem>>, %arg5: memref<512x1xf32, #tpu.memory_space<vmem>>, %arg6: memref<512x1xf32, #tpu.memory_space<vmem>>) attributes {dimension_semantics = [#tpu.dimension_semantics<parallel>, #tpu.dimension_semantics<arbitrary>], iteration_bounds = array<i64: 2, 2>, scalar_prefetch = 0 : i64, scratch_operands = 2 : i64, tpu.core_type = #tpu.core_type<tc>, window_params = [{transform_indices = @transform_0, window_bounds = array<i64: 512, 128>}, {transform_indices = @transform_1, window_bounds = array<i64: 128, 512>}, {transform_indices = @transform_2, window_bounds = array<i64: 512, 1>}]} {
    %c0_i32 = arith.constant 0 : i32
    %0 = arith.cmpi eq, %arg1, %c0_i32 : i32
    %1 = arith.extui %0 : i1 to i32
    %c0_i32_0 = arith.constant 0 : i32
    %2 = arith.cmpi ne, %1, %c0_i32_0 : i32
    scf.if %2 {
      %cst_17 = arith.constant 0xFF800000 : f32
      %33 = vector.broadcast %cst_17 : f32 to vector<512x1xf32>
      %c0_18 = arith.constant 0 : index
      %c0_19 = arith.constant 0 : index
      %34 = vector.load %arg5[%c0_18, %c0_19] : memref<512x1xf32, #tpu.memory_space<vmem>>, vector<512x1xf32>
      tpu.vector_store %arg5[%c0_18, %c0_19], %33 {strides = array<i32>} : memref<512x1xf32, #tpu.memory_space<vmem>>, vector<512x1xf32>,
      %cst_20 = arith.constant 0.000000e+00 : f32
      %35 = vector.broadcast %cst_20 : f32 to vector<512x1xf32>
      %c0_21 = arith.constant 0 : index
      %c0_22 = arith.constant 0 : index
      %36 = vector.load %arg6[%c0_21, %c0_22] : memref<512x1xf32, #tpu.memory_space<vmem>>, vector<512x1xf32>
      tpu.vector_store %arg6[%c0_21, %c0_22], %35 {strides = array<i32>} : memref<512x1xf32, #tpu.memory_space<vmem>>, vector<512x1xf32>,
    } else {
    }
    %c0 = arith.constant 0 : index
    %c0_1 = arith.constant 0 : index
    %3 = vector.load %arg2[%c0, %c0_1] : memref<512x128xbf16, #tpu.memory_space<vmem>>, vector<512x128xbf16>
    %c0_2 = arith.constant 0 : index
    %c0_3 = arith.constant 0 : index
    %4 = vector.load %arg3[%c0_2, %c0_3] : memref<128x512xbf16, #tpu.memory_space<vmem>>, vector<128x512xbf16>
    %cst = arith.constant dense<0.000000e+00> : vector<512x512xf32>
    %5 = tpu.matmul %3, %4, %cst {dimension_numbers = #tpu.dot_dimension_numbers<[1], [0], [0], [1], [0, 0, 1, 1], [], []>} : vector<512x128xbf16>, vector<128x512xbf16>, vector<512x512xf32> -> vector<512x512xf32>
    %6 = tpu.iota {dimensions = array<i32: 1>} : vector<512x512xi32>
    %c1_i32 = arith.constant 1 : i32
    %7 = arith.cmpi slt, %arg1, %c1_i32 : i32
    %c488_i32 = arith.constant 488 : i32
    %8 = vector.broadcast %c488_i32 : i32 to vector<512x512xi32>
    %9 = arith.cmpi slt, %6, %8 : vector<512x512xi32>
    %10 = vector.broadcast %7 : i1 to vector<512x512xi1>
    %11 = arith.ori %10, %9 : vector<512x512xi1>
    %cst_4 = arith.constant 0xFF800000 : f32
    %12 = vector.broadcast %cst_4 : f32 to vector<512x512xf32>
    %13 = arith.select %11, %5, %12 : vector<512x512xi1>, vector<512x512xf32>
    %c0_5 = arith.constant 0 : index
    %c0_6 = arith.constant 0 : index
    %14 = vector.load %arg5[%c0_5, %c0_6] : memref<512x1xf32, #tpu.memory_space<vmem>>, vector<512x1xf32>
    %cst_7 = arith.constant dense<0xFF800000> : vector<512xf32>
    %15 = vector.multi_reduction <maximumf>, %13, %cst_7 [1] : vector<512x512xf32> to vector<512xf32>
    %16 = vector.shape_cast %15 : vector<512xf32> to vector<512x1xf32>
    %17 = arith.maximumf %14, %16 : vector<512x1xf32>
    %18 = arith.subf %14, %17 : vector<512x1xf32>
    %19 = math.exp %18 : vector<512x1xf32>
    %c0_8 = arith.constant 0 : index
    %c0_9 = arith.constant 0 : index
    %20 = vector.load %arg6[%c0_8, %c0_9] : memref<512x1xf32, #tpu.memory_space<vmem>>, vector<512x1xf32>
    %21 = arith.mulf %19, %20 : vector<512x1xf32>
    %22 = vector.broadcast %17 : vector<512x1xf32> to vector<512x512xf32>
    %23 = arith.subf %13, %22 : vector<512x512xf32>
    %24 = math.exp %23 : vector<512x512xf32>
    %cst_10 = arith.constant dense<0.000000e+00> : vector<512xf32>
    %25 = vector.multi_reduction <add>, %24, %cst_10 [1] : vector<512x512xf32> to vector<512xf32>
    %26 = vector.shape_cast %25 : vector<512xf32> to vector<512x1xf32>
    %27 = arith.addf %21, %26 : vector<512x1xf32>
    %c0_11 = arith.constant 0 : index
    %c0_12 = arith.constant 0 : index
    %28 = vector.load %arg6[%c0_11, %c0_12] : memref<512x1xf32, #tpu.memory_space<vmem>>, vector<512x1xf32>
    tpu.vector_store %arg6[%c0_11, %c0_12], %27 {strides = array<i32>} : memref<512x1xf32, #tpu.memory_space<vmem>>, vector<512x1xf32>,
    %c0_13 = arith.constant 0 : index
    %c0_14 = arith.constant 0 : index
    %29 = vector.load %arg5[%c0_13, %c0_14] : memref<512x1xf32, #tpu.memory_space<vmem>>, vector<512x1xf32>
    tpu.vector_store %arg5[%c0_13, %c0_14], %17 {strides = array<i32>} : memref<512x1xf32, #tpu.memory_space<vmem>>, vector<512x1xf32>,
    %c1_i32_15 = arith.constant 1 : i32
    %30 = arith.cmpi eq, %arg1, %c1_i32_15 : i32
    %31 = arith.extui %30 : i1 to i32
    %c0_i32_16 = arith.constant 0 : i32
    %32 = arith.cmpi ne, %31, %c0_i32_16 : i32
    scf.if %32 {
      %c0_17 = arith.constant 0 : index
      %c0_18 = arith.constant 0 : index
      %33 = vector.load %arg5[%c0_17, %c0_18] : memref<512x1xf32, #tpu.memory_space<vmem>>, vector<512x1xf32>
      %c0_19 = arith.constant 0 : index
      %c0_20 = arith.constant 0 : index
      %34 = vector.load %arg6[%c0_19, %c0_20] : memref<512x1xf32, #tpu.memory_space<vmem>>, vector<512x1xf32>
      %35 = math.log %34 : vector<512x1xf32>
      %36 = arith.addf %33, %35 : vector<512x1xf32>
      %c0_21 = arith.constant 0 : index
      %c0_22 = arith.constant 0 : index
      %37 = vector.load %arg4[%c0_21, %c0_22] : memref<512x1xf32, #tpu.memory_space<vmem>>, vector<512x1xf32>
      tpu.vector_store %arg4[%c0_21, %c0_22], %36 {strides = array<i32>} : memref<512x1xf32, #tpu.memory_space<vmem>>, vector<512x1xf32>,
    } else {
    }
    return
  }
  func.func @transform_0(%arg0: i32, %arg1: i32) -> (i32, i32) {
    %c0_i32 = arith.constant 0 : i32
    %c0_i32_0 = arith.constant 0 : i32
    return %arg0, %c0_i32 : i32, i32
  }
  func.func @transform_1(%arg0: i32, %arg1: i32) -> (i32, i32) {
    %c0_i32 = arith.constant 0 : i32
    %c0_i32_0 = arith.constant 0 : i32
    return %c0_i32, %arg1 : i32, i32
  }
  func.func @transform_2(%arg0: i32, %arg1: i32) -> (i32, i32) {
    %c0_i32 = arith.constant 0 : i32
    %c0_i32_0 = arith.constant 0 : i32
    return %arg0, %c0_i32 : i32, i32
  }
}

</mosaic_0001>

<bundles_post_ra>
// kernel: tpu_custom_call.1
= control target key start
LH: loop header
LB: loop body
LE: loop exit
PB: predicated region body
PF: predicated region fallthrough
CT: control target
= control target key end

     0   :  { %7 = vsyncpa [#allocation5], 0  ;;  %s9044_s0 = inlined_call_operand.hbm [shape: bf16[1024,128], index: 0, kind: input, shape index: {}]   ;;  %s9045_s1 = inlined_call_operand.hbm [shape: bf16[128,1024], index: 1, kind: input, shape index: {}]   ;;  %s9046_s2 = inlined_call_operand.vmem [shape: f32[1024,1], index: 2, kind: output, shape index: {}]  }
   0x1   :  { %9 = vsyncpa [#allocation5 + $0x1], 0 }
   0x2   :  { %10 = vsyncpa [#allocation7], 0 }
   0x3   :  { %12 = vsyncpa [#allocation7 + $0x1], 0  ;;  %s5863_s9 = smov 0   ;;  %s5865_s10 = smov 0  }
   0x4   :  { %s5867_s11 = smov 0   ;;  %s5869_s12 = smov 0  }
   0x5   :  { %s5871_s13 = smov 0   ;;  %s5873_s14 = smov 0  }
   0x6   :  { %s5875_s15 = smov 0   ;;  %s5877_s16 = smov 0  }
   0x7   :  { %s5879_s17 = smov 0   ;;  %s5881_s18 = smov 0  }
   0x8   :  { %s5883_s19 = smov 0  }
   0x9 LB: > { %s4639_s20 = sadd.s32 4294967295, %s5836_s19   ;;  %s30_s21 = sadd.s32 1, %s5832_s18  ;;  %s5836_s19 = sphi %s5883_s19, %s18_s19   ;;  %s5832_s18 = sphi %s5881_s18, %s10250_s18   ;;  %s5828_s17 = sphi %s5879_s17, %s10249_s17   ;;  %s5824_s16 = sphi %s5877_s16, %s10248_s16   ;;  %s5820_s15 = sphi %s5875_s15, %s10247_s15   ;;  %s5816_s14 = sphi %s5873_s14, %s10246_s14   ;;  %s5812_s13 = sphi %s5871_s13, %s10245_s13   ;;  %s5808_s12 = sphi %s5869_s12, %s10244_s12   ;;  %s5804_s11 = sphi %s5867_s11, %s10243_s11   ;;  %s5800_s10 = sphi %s5865_s10, %s10242_s10   ;;  %s5796_s9 = sphi %s5863_s9, %s10241_s9  }
   0xa   : > { %s37_s22 = sadd.s32 1, %s5816_s14  ;;  %p44_p0 = scmp.ne.s32.totalorder %s5816_s14, %s5812_s13 }
   0xb   : > { %p9048_p1 = scmp.eq.s32.totalorder %s5836_s19, 0  ;;  %p50_p2 = scmp.ne.s32.totalorder %s5812_s13, %s5808_s12 }
   0xc   : > { %p5923_p3 = scmp.eq.s32.totalorder %s4639_s20, 0  ;;  %p9047_p5 = scmp.lt.s32.totalorder %s5836_s19, 4 }
   0xd   : > { %p46_p4 = por %p9048_p1, %p44_p0  ;;  %s126_s25 = sand.u32 1, %s5816_s14  }
   0xe   : > { %p5932_p6 = por %p5923_p3, %p50_p2  ;;  %s4643_s26 = sshll.u32 %s126_s25, 8 }
   0xf   : > { %s4722_s27 = sshll.u32 %s5832_s18, 12  ;;  %s130_s3 = scalar_lea.vmem [#allocation4], %s4643_s26 }
  0x10   : > { %s9442_s24 = scalar_select %p5932_p6, 1, 0 }
  0x11   : > { %s5941_s30 = scalar_lea.hbm %s9044_s0, %s4722_s27  ;;  %s137_s4 = sshll.u32 %s130_s3, 4  ;;  %s5943_s4 = int_to_ptr.vmem [resolvable:$true] %s137_s4 }
  0x12   : > { %p5947_p7 = pnand %p9047_p5, %p46_p4  ;;  %s5952_s6 = scalar_lea.sflag [#allocation5], %s126_s25 }
  0x13   : > { %s5682_s7 = scalar_lea.hbm %s5941_s30, 4096  ;;  %s5687_s20 = scalar_lea.hbm %s9044_s0, 8192 }
  0x14   : > { %p5683_p9 = scmp.ne.s32.totalorder %s5941_s30, %s5682_s7  ;;  %p5684_p10 = pneg %p5947_p7 }
  0x15   : > { %p5688_p13 = scmp.lt.u32.totalorder %s5941_s30, %s9044_s0  ;;  %p5689_p0 = scmp.lt.u32.totalorder %s5687_s20, %s5682_s7 }
  0x16   : > { %p5685_p11 = pnand %p5684_p10, %p5683_p9  ;;  %p5691_p4 = scmp.lt.u32.totalorder %s5682_s7, %s5941_s30 }
  0x17   : > { %p5690_p2 = por %p5689_p0, %p5688_p13 }
  0x18   : > { %p5686_p12 = pneg %p5685_p11 }
  0x19   : > { %p5692_p5 = por %p5691_p4, %p5690_p2 }
  0x1b   : > { %p5693_p1 = pnand %p5692_p5, %p5686_p12 }
  0x1d   : > { %5696 = shalt.err (!%p5693_p1)
}
  0x1e   : > { %s5697_s25 = scalar_lea.vmem %s5943_s4, 4096  ;;  %s5838_s28 = smov [#allocation4]  }
  0x1f   : > { %p5698_p9 = scmp.ne.s32.totalorder %s5943_s4, %s5697_s25  ;;  %s5702_s29 = sshll.u32 %s5838_s28, 4  ;;  %s5703_s29 = int_to_ptr.vmem [resolvable:$false] %s5702_s29 }
  0x20   : > { %s5704_s3 = scalar_lea.vmem %s5703_s29, 8192  ;;  %p5705_p6 = scmp.lt.s32.totalorder %s5943_s4, %s5703_s29 }
  0x21   : > { %p5700_p11 = pnand %p5698_p9, %p5684_p10  ;;  %p5706_p13 = scmp.lt.s32.totalorder %s5704_s3, %s5697_s25 }
  0x23   : > { %p5701_p8 = pneg %p5700_p11  ;;  %p5707_p0 = por %p5706_p13, %p5705_p6 }
  0x25   : > { %p5708_p2 = pnand %p5707_p0, %p5701_p8 }
  0x27   : > { %5711 = shalt.err (!%p5708_p2)
}
  0x28   : > { %s5839_s7 = smov 64   ;;  %s5840_s8 = smov 4  }
  0x29   : > { %4731 = dma.hbm_to_vmem [thread:$0]  (!%p5947_p7), %s5941_s30, 4096, %s5943_s4, %s5952_s6, %s5839_s7, %s5839_s7, %s5840_s8  }
  0x2a   : > { %p166_p1 = scmp.lt.s32.totalorder %s5836_s19, 5  ;;  %p9444_p5 = scmp.ge.s32.totalorder %s5836_s19, 1 }
  0x2b   : > { %s27_s20 = sadd.s32 1, %s5828_s17  ;;  %s63_s26 = sadd.s32 1, %s5804_s11 }
  0x2c   : > { %p5983_p6 = pnand %p9444_p5, %p166_p1  ;;  %p28_p8 = scmp.ge.s32.totalorder %s27_s20, 2 }
  0x2d   : > { %p70_p10 = scmp.ne.s32.totalorder %s5804_s11, %s5800_s10  ;;  %p76_p12 = scmp.ne.s32.totalorder %s5800_s10, %s5796_s9 }
  0x2e   : > { %s147_s27 = sand.u32 1, %s5804_s11   ;;  %s10252_s20 = smov (%p28_p8, %s27_s20), 0 }
  0x2f   : > { %s10254_s21 = smov (!%p28_p8, %s30_s21), %s5832_s18  ;;  %s60_s30 = ssub.s32 %s5828_s17, %s10252_s20 }
  0x30   : > { %p9446_p7 = scmp.eq.s32.totalorder %s5836_s19, 0  ;;  %p32_p9 = scmp.ge.s32.totalorder %s10254_s21, 2 }
  0x31   : > { %p61_p11 = scmp.eq.s32.totalorder %s60_s30, 0  ;;  %p6009_p13 = por %p76_p12, %p5923_p3 }
  0x32   : > { %p6003_p4 = por %p70_p10, %p9446_p7  ;;  %s10256_s21 = smov (%p32_p9, %s10254_s21), 0 }
  0x33   : > { %s9448_s9 = scalar_select %p6009_p13, 1, 0 }
  0x34   : > { %s6016_s5 = scalar_select %p61_p11, %s5804_s11, %s63_s26  }
  0x35   : > { %s34_s6 = ssub.s32 %s5832_s18, %s10256_s21  ;;  %s4646_s25 = sshll.u32 %s147_s27, 8 }
  0x36   : > { %p35_p0 = scmp.eq.s32.totalorder %s34_s6, 0  ;;  %s4723_s28 = sshll.u32 %s5828_s17, 8 }
  0x37   : > { %s151_s29 = scalar_lea.vmem [#allocation6], %s4646_s25  ;;  %s6029_s30 = scalar_lea.hbm %s9045_s1, %s4723_s28 }
  0x38   : > { %s158_s3 = sshll.u32 %s151_s29, 4  ;;  %p9449_p3 = scmp.lt.s32.totalorder %s5836_s19, 4  ;;  %s6031_s3 = int_to_ptr.vmem [resolvable:$true] %s158_s3 }
  0x39   : > { %s6024_s7 = scalar_select %p35_p0, %s5816_s14, %s37_s22  }
  0x3a   : > { %p6037_p2 = pnand %p9449_p3, %p6003_p4  ;;  %s6041_s22 = scalar_lea.sflag [#allocation7], %s147_s27 }
  0x3b   : > { %s5712_s6 = scalar_lea.hbm %s6029_s30, 4096  ;;  %s5717_s4 = scalar_lea.hbm %s9045_s1, 8192 }
  0x3c   : > { %p5713_p1 = scmp.ne.s32.totalorder %s6029_s30, %s5712_s6  ;;  %p5714_p5 = pneg %p6037_p2 }
  0x3d   : > { %p5718_p12 = scmp.lt.u32.totalorder %s6029_s30, %s9045_s1  ;;  %p5719_p7 = scmp.lt.u32.totalorder %s5717_s4, %s5712_s6 }
  0x3e   : > { %p5715_p8 = pnand %p5714_p5, %p5713_p1  ;;  %p5721_p9 = scmp.lt.u32.totalorder %s5712_s6, %s6029_s30 }
  0x3f   : > { %p5720_p4 = por %p5719_p7, %p5718_p12 }
  0x40   : > { %p5716_p10 = pneg %p5715_p8 }
  0x41   : > { %p5722_p11 = por %p5721_p9, %p5720_p4 }
  0x43   : > { %p5723_p0 = pnand %p5722_p11, %p5716_p10 }
  0x45   : > { %5726 = shalt.err (!%p5723_p0)
}
  0x46   : > { %s5727_s27 = scalar_lea.vmem %s6031_s3, 4096  ;;  %s5841_s23 = smov [#allocation6]  }
  0x47   : > { %p5728_p3 = scmp.ne.s32.totalorder %s6031_s3, %s5727_s27  ;;  %s5732_s25 = sshll.u32 %s5841_s23, 4  ;;  %s5733_s25 = int_to_ptr.vmem [resolvable:$false] %s5732_s25 }
  0x48   : > { %s5734_s28 = scalar_lea.vmem %s5733_s25, 8192  ;;  %p5735_p13 = scmp.lt.s32.totalorder %s6031_s3, %s5733_s25 }
  0x49   : > { %p5730_p1 = pnand %p5728_p3, %p5714_p5  ;;  %p5736_p12 = scmp.lt.s32.totalorder %s5734_s28, %s5727_s27 }
  0x4b   : > { %p5731_p8 = pneg %p5730_p1  ;;  %p5737_p7 = por %p5736_p12, %p5735_p13 }
  0x4d   : > { %p5738_p4 = pnand %p5737_p7, %p5731_p8 }
  0x4f   : > { %5741 = shalt.err (!%p5738_p4)
}
  0x50   : > { %s5842_s6 = smov 512   ;;  %s5843_s4 = smov 256  }
  0x51   : > { %s5844_s29 = smov 16   ;;  %170 = sbr.rel (%p5983_p6) target bundleno = 2341 (0x925), region = 28 }
  0x52   : > { %4734 = dma.hbm_to_vmem [thread:$0]  (!%p6037_p2), %s6029_s30, 4096, %s6031_s3, %s6041_s22, %s5842_s6, %s5843_s4, %s5844_s29  }
  0x58   : > { %s172_s8 = sand.u32 1, %s5812_s13   ;;  %p9451_p13 = scmp.ne.s32.totalorder %s9442_s24, 0 }
  0x59   : > { %s4650_s23 = sshll.u32 %s172_s8, 8  ;;  %s173_s27 = scalar_lea.sflag [#allocation5], %s172_s8 }
  0x5a   : > { %s6072_s25 = scalar_lea.vmem [#allocation4], %s4650_s23 }
  0x5b   : > { %5787 = dma.done.wait (%p9451_p13), %s173_s27, 4096  }
  0x5c   : > { %5789 = vsyncadd (%p9451_p13), %s173_s27, 4294963200  ;;  %s181_s28 = sand.u32 1, %s5800_s10   ;;  %p9452_p6 = scmp.ne.s32.totalorder %s9448_s9, 0 }
  0x5d   : > { %s4651_s26 = sshll.u32 %s181_s28, 8  ;;  %s182_s3 = scalar_lea.sflag [#allocation7], %s181_s28 }
  0x5e   : > { %s6079_s30 = scalar_lea.vmem [#allocation6], %s4651_s26 }
  0x5f   : > { %5791 = dma.done.wait (%p9452_p6), %s182_s3, 4096  }
  0x60   : > { %5793 = vsyncadd (%p9452_p6), %s182_s3, 4294963200  ;;  %s4652_s12 = sshll.u32 %s5824_s16, 6  ;;  %p4654_p5 = scmp.ne.s32.totalorder %s5820_s15, 0 }
  0x61   : > { %p214_p2 = scmp.lt.s32.totalorder %s4652_s12, 127  ;;  %vm224_vm0 = vcmask (!%p4654_p5), 7168   ;;  %v5845_v0 = vmov (!%p4654_p5), -inf   ;;  %v5846_v1 = vmov (!%p4654_p5), 0.0  }
  0x62   : > { %223 = sbr.rel (%p4654_p5) target bundleno = 162 (0xa2), region = 40  ;;  %225 = vst.msk [vmem:[#allocation2] sm:$0xff] (!%p4654_p5), %vm224_vm0, %v5845_v0  ;;  %226 = vst.msk [vmem:[#allocation2 + $0x8] sm:$0xff] (!%p4654_p5), %vm224_vm0, %v5845_v0 }
  0x63   : > { %s10258_s12 = smov (!%p214_p2, %s4652_s12), 127  ;;  %227 = vst.msk [vmem:[#allocation2 + $0x10] sm:$0xff] (!%p4654_p5), %vm224_vm0, %v5845_v0  ;;  %228 = vst.msk [vmem:[#allocation2 + $0x18] sm:$0xff] (!%p4654_p5), %vm224_vm0, %v5845_v0 }
  0x64   : > { %s4653_s22 = sshll.u32 %s10258_s12, 3  ;;  %229 = vst.msk [vmem:[#allocation2 + $0x20] sm:$0xff] (!%p4654_p5), %vm224_vm0, %v5845_v0  ;;  %230 = vst.msk [vmem:[#allocation2 + $0x28] sm:$0xff] (!%p4654_p5), %vm224_vm0, %v5845_v0 }
  0x65   : > { %s6089_s4 = scalar_lea.vmem %s9046_s2, %s4653_s22  ;;  %231 = vst.msk [vmem:[#allocation2 + $0x30] sm:$0xff] (!%p4654_p5), %vm224_vm0, %v5845_v0  ;;  %232 = vst.msk [vmem:[#allocation2 + $0x38] sm:$0xff] (!%p4654_p5), %vm224_vm0, %v5845_v0 }
  0x66   : > { %233 = vst.msk [vmem:[#allocation2 + $0x40] sm:$0xff] (!%p4654_p5), %vm224_vm0, %v5845_v0  ;;  %234 = vst.msk [vmem:[#allocation2 + $0x48] sm:$0xff] (!%p4654_p5), %vm224_vm0, %v5845_v0 }
  0x67   : > { %235 = vst.msk [vmem:[#allocation2 + $0x50] sm:$0xff] (!%p4654_p5), %vm224_vm0, %v5845_v0  ;;  %236 = vst.msk [vmem:[#allocation2 + $0x58] sm:$0xff] (!%p4654_p5), %vm224_vm0, %v5845_v0 }
  0x68   : > { %237 = vst.msk [vmem:[#allocation2 + $0x60] sm:$0xff] (!%p4654_p5), %vm224_vm0, %v5845_v0  ;;  %238 = vst.msk [vmem:[#allocation2 + $0x68] sm:$0xff] (!%p4654_p5), %vm224_vm0, %v5845_v0 }
  0x69   : > { %239 = vst.msk [vmem:[#allocation2 + $0x70] sm:$0xff] %vm224_vm0, %v5845_v0  ;;  %240 = vst.msk [vmem:[#allocation2 + $0x78] sm:$0xff] %vm224_vm0, %v5845_v0 }
  0x6a   : > { %241 = vst.msk [vmem:[#allocation2 + $0x80] sm:$0xff] %vm224_vm0, %v5845_v0  ;;  %242 = vst.msk [vmem:[#allocation2 + $0x88] sm:$0xff] %vm224_vm0, %v5845_v0 }
  0x6b   : > { %243 = vst.msk [vmem:[#allocation2 + $0x90] sm:$0xff] %vm224_vm0, %v5845_v0  ;;  %244 = vst.msk [vmem:[#allocation2 + $0x98] sm:$0xff] %vm224_vm0, %v5845_v0 }
  0x6c   : > { %245 = vst.msk [vmem:[#allocation2 + $0xa0] sm:$0xff] %vm224_vm0, %v5845_v0  ;;  %246 = vst.msk [vmem:[#allocation2 + $0xa8] sm:$0xff] %vm224_vm0, %v5845_v0 }
  0x6d   : > { %247 = vst.msk [vmem:[#allocation2 + $0xb0] sm:$0xff] %vm224_vm0, %v5845_v0  ;;  %248 = vst.msk [vmem:[#allocation2 + $0xb8] sm:$0xff] %vm224_vm0, %v5845_v0 }
  0x6e   : > { %249 = vst.msk [vmem:[#allocation2 + $0xc0] sm:$0xff] %vm224_vm0, %v5845_v0  ;;  %250 = vst.msk [vmem:[#allocation2 + $0xc8] sm:$0xff] %vm224_vm0, %v5845_v0 }
  0x6f   : > { %251 = vst.msk [vmem:[#allocation2 + $0xd0] sm:$0xff] %vm224_vm0, %v5845_v0  ;;  %252 = vst.msk [vmem:[#allocation2 + $0xd8] sm:$0xff] %vm224_vm0, %v5845_v0 }
  0x70   : > { %253 = vst.msk [vmem:[#allocation2 + $0xe0] sm:$0xff] %vm224_vm0, %v5845_v0  ;;  %254 = vst.msk [vmem:[#allocation2 + $0xe8] sm:$0xff] %vm224_vm0, %v5845_v0 }
  0x71   : > { %255 = vst.msk [vmem:[#allocation2 + $0xf0] sm:$0xff] %vm224_vm0, %v5845_v0  ;;  %256 = vst.msk [vmem:[#allocation2 + $0xf8] sm:$0xff] %vm224_vm0, %v5845_v0 }
  0x72   : > { %257 = vst.msk [vmem:[#allocation2 + $0x100] sm:$0xff] %vm224_vm0, %v5845_v0  ;;  %258 = vst.msk [vmem:[#allocation2 + $0x108] sm:$0xff] %vm224_vm0, %v5845_v0 }
  0x73   : > { %259 = vst.msk [vmem:[#allocation2 + $0x110] sm:$0xff] %vm224_vm0, %v5845_v0  ;;  %260 = vst.msk [vmem:[#allocation2 + $0x118] sm:$0xff] %vm224_vm0, %v5845_v0 }
  0x74   : > { %261 = vst.msk [vmem:[#allocation2 + $0x120] sm:$0xff] %vm224_vm0, %v5845_v0  ;;  %262 = vst.msk [vmem:[#allocation2 + $0x128] sm:$0xff] %vm224_vm0, %v5845_v0 }
  0x75   : > { %263 = vst.msk [vmem:[#allocation2 + $0x130] sm:$0xff] %vm224_vm0, %v5845_v0  ;;  %264 = vst.msk [vmem:[#allocation2 + $0x138] sm:$0xff] %vm224_vm0, %v5845_v0 }
  0x76   : > { %265 = vst.msk [vmem:[#allocation2 + $0x140] sm:$0xff] %vm224_vm0, %v5845_v0  ;;  %266 = vst.msk [vmem:[#allocation2 + $0x148] sm:$0xff] %vm224_vm0, %v5845_v0 }
  0x77   : > { %267 = vst.msk [vmem:[#allocation2 + $0x150] sm:$0xff] %vm224_vm0, %v5845_v0  ;;  %268 = vst.msk [vmem:[#allocation2 + $0x158] sm:$0xff] %vm224_vm0, %v5845_v0 }
  0x78   : > { %269 = vst.msk [vmem:[#allocation2 + $0x160] sm:$0xff] %vm224_vm0, %v5845_v0  ;;  %270 = vst.msk [vmem:[#allocation2 + $0x168] sm:$0xff] %vm224_vm0, %v5845_v0 }
  0x79   : > { %271 = vst.msk [vmem:[#allocation2 + $0x170] sm:$0xff] %vm224_vm0, %v5845_v0  ;;  %272 = vst.msk [vmem:[#allocation2 + $0x178] sm:$0xff] %vm224_vm0, %v5845_v0 }
  0x7a   : > { %273 = vst.msk [vmem:[#allocation2 + $0x180] sm:$0xff] %vm224_vm0, %v5845_v0  ;;  %274 = vst.msk [vmem:[#allocation2 + $0x188] sm:$0xff] %vm224_vm0, %v5845_v0 }
  0x7b   : > { %275 = vst.msk [vmem:[#allocation2 + $0x190] sm:$0xff] %vm224_vm0, %v5845_v0  ;;  %276 = vst.msk [vmem:[#allocation2 + $0x198] sm:$0xff] %vm224_vm0, %v5845_v0 }
  0x7c   : > { %277 = vst.msk [vmem:[#allocation2 + $0x1a0] sm:$0xff] %vm224_vm0, %v5845_v0  ;;  %278 = vst.msk [vmem:[#allocation2 + $0x1a8] sm:$0xff] %vm224_vm0, %v5845_v0 }
  0x7d   : > { %279 = vst.msk [vmem:[#allocation2 + $0x1b0] sm:$0xff] %vm224_vm0, %v5845_v0  ;;  %280 = vst.msk [vmem:[#allocation2 + $0x1b8] sm:$0xff] %vm224_vm0, %v5845_v0 }
  0x7e   : > { %281 = vst.msk [vmem:[#allocation2 + $0x1c0] sm:$0xff] %vm224_vm0, %v5845_v0  ;;  %282 = vst.msk [vmem:[#allocation2 + $0x1c8] sm:$0xff] %vm224_vm0, %v5845_v0 }
  0x7f   : > { %283 = vst.msk [vmem:[#allocation2 + $0x1d0] sm:$0xff] %vm224_vm0, %v5845_v0  ;;  %284 = vst.msk [vmem:[#allocation2 + $0x1d8] sm:$0xff] %vm224_vm0, %v5845_v0 }
  0x80   : > { %285 = vst.msk [vmem:[#allocation2 + $0x1e0] sm:$0xff] %vm224_vm0, %v5845_v0  ;;  %286 = vst.msk [vmem:[#allocation2 + $0x1e8] sm:$0xff] %vm224_vm0, %v5845_v0 }
  0x81   : > { %287 = vst.msk [vmem:[#allocation2 + $0x1f0] sm:$0xff] %vm224_vm0, %v5845_v0  ;;  %288 = vst.msk [vmem:[#allocation2 + $0x1f8] sm:$0xff] %vm224_vm0, %v5845_v0 }
  0x82   : > { %289 = vst.msk [vmem:[#allocation3] sm:$0xff] %vm224_vm0, %v5846_v1  ;;  %290 = vst.msk [vmem:[#allocation3 + $0x8] sm:$0xff] %vm224_vm0, %v5846_v1 }
  0x83   : > { %291 = vst.msk [vmem:[#allocation3 + $0x10] sm:$0xff] %vm224_vm0, %v5846_v1  ;;  %292 = vst.msk [vmem:[#allocation3 + $0x18] sm:$0xff] %vm224_vm0, %v5846_v1 }
  0x84   : > { %293 = vst.msk [vmem:[#allocation3 + $0x20] sm:$0xff] %vm224_vm0, %v5846_v1  ;;  %294 = vst.msk [vmem:[#allocation3 + $0x28] sm:$0xff] %vm224_vm0, %v5846_v1 }
  0x85   : > { %295 = vst.msk [vmem:[#allocation3 + $0x30] sm:$0xff] %vm224_vm0, %v5846_v1  ;;  %296 = vst.msk [vmem:[#allocation3 + $0x38] sm:$0xff] %vm224_vm0, %v5846_v1 }
  0x86   : > { %297 = vst.msk [vmem:[#allocation3 + $0x40] sm:$0xff] %vm224_vm0, %v5846_v1  ;;  %298 = vst.msk [vmem:[#allocation3 + $0x48] sm:$0xff] %vm224_vm0, %v5846_v1 }
  0x87   : > { %299 = vst.msk [vmem:[#allocation3 + $0x50] sm:$0xff] %vm224_vm0, %v5846_v1  ;;  %300 = vst.msk [vmem:[#allocation3 + $0x58] sm:$0xff] %vm224_vm0, %v5846_v1 }
  0x88   : > { %301 = vst.msk [vmem:[#allocation3 + $0x60] sm:$0xff] %vm224_vm0, %v5846_v1  ;;  %302 = vst.msk [vmem:[#allocation3 + $0x68] sm:$0xff] %vm224_vm0, %v5846_v1 }
  0x89   : > { %303 = vst.msk [vmem:[#allocation3 + $0x70] sm:$0xff] %vm224_vm0, %v5846_v1  ;;  %304 = vst.msk [vmem:[#allocation3 + $0x78] sm:$0xff] %vm224_vm0, %v5846_v1 }
  0x8a   : > { %305 = vst.msk [vmem:[#allocation3 + $0x80] sm:$0xff] %vm224_vm0, %v5846_v1  ;;  %306 = vst.msk [vmem:[#allocation3 + $0x88] sm:$0xff] %vm224_vm0, %v5846_v1 }
  0x8b   : > { %307 = vst.msk [vmem:[#allocation3 + $0x90] sm:$0xff] %vm224_vm0, %v5846_v1  ;;  %308 = vst.msk [vmem:[#allocation3 + $0x98] sm:$0xff] %vm224_vm0, %v5846_v1 }
  0x8c   : > { %309 = vst.msk [vmem:[#allocation3 + $0xa0] sm:$0xff] %vm224_vm0, %v5846_v1  ;;  %310 = vst.msk [vmem:[#allocation3 + $0xa8] sm:$0xff] %vm224_vm0, %v5846_v1 }
  0x8d   : > { %311 = vst.msk [vmem:[#allocation3 + $0xb0] sm:$0xff] %vm224_vm0, %v5846_v1  ;;  %312 = vst.msk [vmem:[#allocation3 + $0xb8] sm:$0xff] %vm224_vm0, %v5846_v1 }
  0x8e   : > { %313 = vst.msk [vmem:[#allocation3 + $0xc0] sm:$0xff] %vm224_vm0, %v5846_v1  ;;  %314 = vst.msk [vmem:[#allocation3 + $0xc8] sm:$0xff] %vm224_vm0, %v5846_v1 }
  0x8f   : > { %315 = vst.msk [vmem:[#allocation3 + $0xd0] sm:$0xff] %vm224_vm0, %v5846_v1  ;;  %316 = vst.msk [vmem:[#allocation3 + $0xd8] sm:$0xff] %vm224_vm0, %v5846_v1 }
  0x90   : > { %317 = vst.msk [vmem:[#allocation3 + $0xe0] sm:$0xff] %vm224_vm0, %v5846_v1  ;;  %318 = vst.msk [vmem:[#allocation3 + $0xe8] sm:$0xff] %vm224_vm0, %v5846_v1 }
  0x91   : > { %319 = vst.msk [vmem:[#allocation3 + $0xf0] sm:$0xff] %vm224_vm0, %v5846_v1  ;;  %320 = vst.msk [vmem:[#allocation3 + $0xf8] sm:$0xff] %vm224_vm0, %v5846_v1 }
  0x92   : > { %321 = vst.msk [vmem:[#allocation3 + $0x100] sm:$0xff] %vm224_vm0, %v5846_v1  ;;  %322 = vst.msk [vmem:[#allocation3 + $0x108] sm:$0xff] %vm224_vm0, %v5846_v1 }
  0x93   : > { %323 = vst.msk [vmem:[#allocation3 + $0x110] sm:$0xff] %vm224_vm0, %v5846_v1  ;;  %324 = vst.msk [vmem:[#allocation3 + $0x118] sm:$0xff] %vm224_vm0, %v5846_v1 }
  0x94   : > { %325 = vst.msk [vmem:[#allocation3 + $0x120] sm:$0xff] %vm224_vm0, %v5846_v1  ;;  %326 = vst.msk [vmem:[#allocation3 + $0x128] sm:$0xff] %vm224_vm0, %v5846_v1 }
  0x95   : > { %327 = vst.msk [vmem:[#allocation3 + $0x130] sm:$0xff] %vm224_vm0, %v5846_v1  ;;  %328 = vst.msk [vmem:[#allocation3 + $0x138] sm:$0xff] %vm224_vm0, %v5846_v1 }
  0x96   : > { %329 = vst.msk [vmem:[#allocation3 + $0x140] sm:$0xff] %vm224_vm0, %v5846_v1  ;;  %330 = vst.msk [vmem:[#allocation3 + $0x148] sm:$0xff] %vm224_vm0, %v5846_v1 }
  0x97   : > { %331 = vst.msk [vmem:[#allocation3 + $0x150] sm:$0xff] %vm224_vm0, %v5846_v1  ;;  %332 = vst.msk [vmem:[#allocation3 + $0x158] sm:$0xff] %vm224_vm0, %v5846_v1 }
  0x98   : > { %333 = vst.msk [vmem:[#allocation3 + $0x160] sm:$0xff] %vm224_vm0, %v5846_v1  ;;  %334 = vst.msk [vmem:[#allocation3 + $0x168] sm:$0xff] %vm224_vm0, %v5846_v1 }
  0x99   : > { %335 = vst.msk [vmem:[#allocation3 + $0x170] sm:$0xff] %vm224_vm0, %v5846_v1  ;;  %336 = vst.msk [vmem:[#allocation3 + $0x178] sm:$0xff] %vm224_vm0, %v5846_v1 }
  0x9a   : > { %337 = vst.msk [vmem:[#allocation3 + $0x180] sm:$0xff] %vm224_vm0, %v5846_v1  ;;  %338 = vst.msk [vmem:[#allocation3 + $0x188] sm:$0xff] %vm224_vm0, %v5846_v1 }
  0x9b   : > { %339 = vst.msk [vmem:[#allocation3 + $0x190] sm:$0xff] %vm224_vm0, %v5846_v1  ;;  %340 = vst.msk [vmem:[#allocation3 + $0x198] sm:$0xff] %vm224_vm0, %v5846_v1 }
  0x9c   : > { %341 = vst.msk [vmem:[#allocation3 + $0x1a0] sm:$0xff] %vm224_vm0, %v5846_v1  ;;  %342 = vst.msk [vmem:[#allocation3 + $0x1a8] sm:$0xff] %vm224_vm0, %v5846_v1 }
  0x9d   : > { %343 = vst.msk [vmem:[#allocation3 + $0x1b0] sm:$0xff] %vm224_vm0, %v5846_v1  ;;  %344 = vst.msk [vmem:[#allocation3 + $0x1b8] sm:$0xff] %vm224_vm0, %v5846_v1 }
  0x9e   : > { %345 = vst.msk [vmem:[#allocation3 + $0x1c0] sm:$0xff] %vm224_vm0, %v5846_v1  ;;  %346 = vst.msk [vmem:[#allocation3 + $0x1c8] sm:$0xff] %vm224_vm0, %v5846_v1 }
  0x9f   : > { %347 = vst.msk [vmem:[#allocation3 + $0x1d0] sm:$0xff] %vm224_vm0, %v5846_v1  ;;  %348 = vst.msk [vmem:[#allocation3 + $0x1d8] sm:$0xff] %vm224_vm0, %v5846_v1 }
  0xa0   : > { %349 = vst.msk [vmem:[#allocation3 + $0x1e0] sm:$0xff] %vm224_vm0, %v5846_v1  ;;  %350 = vst.msk [vmem:[#allocation3 + $0x1e8] sm:$0xff] %vm224_vm0, %v5846_v1 }
  0xa1   : > { %351 = vst.msk [vmem:[#allocation3 + $0x1f0] sm:$0xff] %vm224_vm0, %v5846_v1  ;;  %352 = vst.msk [vmem:[#allocation3 + $0x1f8] sm:$0xff] %vm224_vm0, %v5846_v1 }
  0xa2 PF: > { %v4834_v2 = vld [vmem:[%s6079_s30 + $0x4] ss:$16 sps:$4 sm:$0xff]   ;;  %v4836_v3 = vld [vmem:[%s6079_s30 + $0xc] ss:$16 sps:$4 sm:$0xff]   ;;  %v9051_v4 = vmov 0   ;;  %v1507_v60 = vlaneseq  ;;  %p1512_p10 = scmp.lt.s32.totalorder %s5820_s15, 1 }
  0xa3   : > { %833 = vmatprep.mubr.bf16.mxu0 %v9051_v4  ;;  %1186 = vmatprep.mubr.bf16.mxu1 %v9051_v4  ;;  %v4838_v5 = vld [vmem:[%s6079_s30] ss:$16 sps:$4 sm:$0xff]   ;;  %v4839_v6 = vld [vmem:[%s6079_s30 + $0x8] ss:$16 sps:$4 sm:$0xff]   ;;  %v4840_v7 = vld [vmem:[%s6079_s30 + $0x24] ss:$16 sps:$4 sm:$0xff]  }
  0xa4   : > { %801 = vmatprep.subr.bf16.mxu0 %v4834_v2  ;;  %4833 = vset.pattern.permute.xlu1 %v9051_v4  ;;  %v4842_v8 = vld [vmem:[%s6079_s30 + $0x2c] ss:$16 sps:$4 sm:$0xff]   ;;  %v4844_v9 = vld [vmem:[%s6079_s30 + $0x20] ss:$16 sps:$4 sm:$0xff]   ;;  %v4845_v10 = vld [vmem:[%s6079_s30 + $0x28] ss:$16 sps:$4 sm:$0xff]  }
  0xa5   : > { %1154 = vmatprep.subr.bf16.mxu1 %v4836_v3  ;;  %4832 = vset.pattern.permute.xlu0 %v9051_v4  ;;  %v4846_v11 = vld [vmem:[%s6079_s30 + $0x44] ss:$16 sps:$4 sm:$0xff]   ;;  %v4848_v12 = vld [vmem:[%s6079_s30 + $0x4c] ss:$16 sps:$4 sm:$0xff]   ;;  %v4850_v13 = vld [vmem:[%s6079_s30 + $0x40] ss:$16 sps:$4 sm:$0xff]  }
  0xa6   : > { %802 = vmatpush1.bf16.msra.mxu0 %v4838_v5  ;;  %1155 = vmatpush1.bf16.msra.mxu1 %v4839_v6  ;;  %v4851_v14 = vld [vmem:[%s6079_s30 + $0x48] ss:$16 sps:$4 sm:$0xff]   ;;  %v4852_v15 = vld [vmem:[%s6079_s30 + $0x64] ss:$16 sps:$4 sm:$0xff]   ;;  %v4854_v16 = vld [vmem:[%s6079_s30 + $0x6c] ss:$16 sps:$4 sm:$0xff]  }
  0xa7   : > { %803 = vmatprep.subr.bf16.mxu0 %v4840_v7  ;;  %1156 = vmatprep.subr.bf16.mxu1 %v4842_v8  ;;  %v4856_v17 = vld [vmem:[%s6079_s30 + $0x60] ss:$16 sps:$4 sm:$0xff]   ;;  %v4857_v18 = vld [vmem:[%s6079_s30 + $0x68] ss:$16 sps:$4 sm:$0xff]   ;;  %v4858_v19 = vld [vmem:[%s6079_s30 + $0x84] ss:$16 sps:$4 sm:$0xff]  }
  0xa8   : > { %v4860_v20 = vld [vmem:[%s6079_s30 + $0x8c] ss:$16 sps:$4 sm:$0xff]   ;;  %v4862_v21 = vld [vmem:[%s6079_s30 + $0x80] ss:$16 sps:$4 sm:$0xff]   ;;  %v4863_v22 = vld [vmem:[%s6079_s30 + $0x88] ss:$16 sps:$4 sm:$0xff]  }
  0xa9   : > { %v4864_v23 = vld [vmem:[%s6079_s30 + $0xa4] ss:$16 sps:$4 sm:$0xff]   ;;  %v4866_v24 = vld [vmem:[%s6079_s30 + $0xac] ss:$16 sps:$4 sm:$0xff]   ;;  %v4868_v25 = vld [vmem:[%s6079_s30 + $0xa0] ss:$16 sps:$4 sm:$0xff]  }
  0xaa   : > { %804 = vmatpush1.bf16.msra.mxu0 %v4844_v9  ;;  %1157 = vmatpush1.bf16.msra.mxu1 %v4845_v10  ;;  %v4869_v26 = vld [vmem:[%s6079_s30 + $0xa8] ss:$16 sps:$4 sm:$0xff]   ;;  %v4870_v27 = vld [vmem:[%s6079_s30 + $0xc4] ss:$16 sps:$4 sm:$0xff]   ;;  %v4872_v28 = vld [vmem:[%s6079_s30 + $0xcc] ss:$16 sps:$4 sm:$0xff]  }
  0xab   : > { %805 = vmatprep.subr.bf16.mxu0 %v4846_v11  ;;  %1158 = vmatprep.subr.bf16.mxu1 %v4848_v12  ;;  %v4874_v29 = vld [vmem:[%s6079_s30 + $0xc0] ss:$16 sps:$4 sm:$0xff]   ;;  %v4875_v30 = vld [vmem:[%s6079_s30 + $0xc8] ss:$16 sps:$4 sm:$0xff]   ;;  %v4876_v31 = vld [vmem:[%s6079_s30 + $0xe4] ss:$16 sps:$4 sm:$0xff]  }
  0xac   : > { %v4878_v32 = vld [vmem:[%s6079_s30 + $0xec] ss:$16 sps:$4 sm:$0xff]   ;;  %v4880_v33 = vld [vmem:[%s6079_s30 + $0xe0] ss:$16 sps:$4 sm:$0xff]   ;;  %v4881_v34 = vld [vmem:[%s6079_s30 + $0xe8] ss:$16 sps:$4 sm:$0xff]  }
  0xad   : > { %v4882_v35 = vld [vmem:[%s6072_s25] sm:$0xff]   ;;  %v4883_v36 = vld [vmem:[%s6072_s25 + $0x8] sm:$0xff]   ;;  %v4884_v37 = vld [vmem:[%s6072_s25 + $0x10] sm:$0xff]   ;;  %v1508_v61 = vand.u32 127, %v1507_v60  ;;  %s1517_s16 = scalar_select %p1512_p10, 1, 0 }
  0xae   : > { %806 = vmatpush1.bf16.msra.mxu0 %v4850_v13  ;;  %1159 = vmatpush1.bf16.msra.mxu1 %v4851_v14  ;;  %v4885_v38 = vld [vmem:[%s6072_s25 + $0x18] sm:$0xff]   ;;  %v4886_v39 = vld [vmem:[%s6072_s25 + $0x20] sm:$0xff]   ;;  %v4887_v40 = vld [vmem:[%s6072_s25 + $0x28] sm:$0xff]   ;;  %vm4020_vm4 = vcmask 7168   ;;  %p4719_p9 = scmp.ne.s32.totalorder %s5820_s15, 1 }
  0xaf   : > { %807 = vmatprep.subr.bf16.mxu0 %v4852_v15  ;;  %1160 = vmatprep.subr.bf16.mxu1 %v4854_v16  ;;  %v4888_v41 = vld [vmem:[%s6072_s25 + $0x30] sm:$0xff]   ;;  %v4889_v42 = vld [vmem:[%s6072_s25 + $0x38] sm:$0xff]   ;;  %v4890_v43 = vld [vmem:[%s6072_s25 + $0x40] sm:$0xff]   ;;  %v1511_v62 = vadd.s32 384, %v1508_v61  ;;  %v1518_v63 = vstv %s1517_s16 }
  0xb0   : > { %v4891_v44 = vld [vmem:[%s6072_s25 + $0x48] sm:$0xff]   ;;  %v4892_v45 = vld [vmem:[%s6072_s25 + $0x50] sm:$0xff]   ;;  %v4893_v46 = vld [vmem:[%s6072_s25 + $0x58] sm:$0xff]   ;;  %vm1519_vm2 = vcmp.eq.s32.totalorder %v1518_v63, 1 }
  0xb1   : > { %v4894_v47 = vld [vmem:[%s6072_s25 + $0x60] sm:$0xff]   ;;  %v4895_v48 = vld [vmem:[%s6072_s25 + $0x68] sm:$0xff]   ;;  %v4896_v49 = vld [vmem:[%s6072_s25 + $0x70] sm:$0xff]   ;;  %vm1516_vm1 = vcmp.lt.s32.totalorder %v1511_v62, 488 }
  0xb2   : > { %808 = vmatpush1.bf16.msra.mxu0 %v4856_v17  ;;  %1161 = vmatpush1.bf16.msra.mxu1 %v4857_v18  ;;  %v4897_v50 = vld [vmem:[%s6072_s25 + $0x78] sm:$0xff]   ;;  %v4898_v51 = vld [vmem:[%s6072_s25 + $0x80] sm:$0xff]   ;;  %v4899_v52 = vld [vmem:[%s6072_s25 + $0x88] sm:$0xff]  }
  0xb3   : > { %809 = vmatprep.subr.bf16.mxu0 %v4858_v19  ;;  %1162 = vmatprep.subr.bf16.mxu1 %v4860_v20  ;;  %v4900_v53 = vld [vmem:[%s6072_s25 + $0x90] sm:$0xff]   ;;  %v4901_v54 = vld [vmem:[%s6072_s25 + $0x98] sm:$0xff]   ;;  %v4902_v55 = vld [vmem:[%s6072_s25 + $0xa0] sm:$0xff]  }
  0xb4   : > { %v4903_v56 = vld [vmem:[%s6072_s25 + $0xa8] sm:$0xff]   ;;  %v4904_v57 = vld [vmem:[%s6072_s25 + $0xb0] sm:$0xff]   ;;  %v4905_v58 = vld [vmem:[%s6072_s25 + $0xb8] sm:$0xff]  }
  0xb5   : > { %v4906_v59 = vld [vmem:[%s6072_s25 + $0xc0] sm:$0xff]   ;;  %vm6464_vm3 = vmor %vm1519_vm2, %vm1516_vm1  ;;  %v4907_v60 = vld [vmem:[%s6072_s25 + $0xc8] sm:$0xff]  }
  0xb6   : > { %810 = vmatpush1.bf16.msra.mxu0 %v4862_v21  ;;  %1163 = vmatpush1.bf16.msra.mxu1 %v4863_v22 }
  0xb7   : > { %811 = vmatprep.subr.bf16.mxu0 %v4864_v23  ;;  %1164 = vmatprep.subr.bf16.mxu1 %v4866_v24 }
  0xba   : > { %812 = vmatpush1.bf16.msra.mxu0 %v4868_v25  ;;  %1165 = vmatpush1.bf16.msra.mxu1 %v4869_v26 }
  0xbb   : > { %813 = vmatprep.subr.bf16.mxu0 %v4870_v27  ;;  %1166 = vmatprep.subr.bf16.mxu1 %v4872_v28 }
  0xbe   : > { %814 = vmatpush1.bf16.msra.mxu0 %v4874_v29  ;;  %1167 = vmatpush1.bf16.msra.mxu1 %v4875_v30 }
  0xbf   : > { %815 = vmatprep.subr.bf16.mxu0 %v4876_v31  ;;  %1168 = vmatprep.subr.bf16.mxu1 %v4878_v32 }
  0xc2   : > { %816 = vmatpush1.bf16.msra.mxu0 %v4880_v33  ;;  %1169 = vmatpush1.bf16.msra.mxu1 %v4881_v34 }
  0xc5   : > { %834 = vmatmul.mubr.bf16.vlgmr.msra.gmra.mrb[0].mxu0 %v4882_v35  ;;  %1187 = vmatmul.mubr.bf16.vlgmr.msra.gmra.mrb[0].mxu1 %v4882_v35 }
  0xc6   : > { %843 = vmatprep.mubr.bf16.mxu0 %v9051_v4  ;;  %1196 = vmatprep.mubr.bf16.mxu1 %v9051_v4 }
  0xcd   : > { %844 = vmatmul.mubr.bf16.gmra.mrb[4].mxu0 %v4883_v36  ;;  %1197 = vmatmul.mubr.bf16.gmra.mrb[4].mxu1 %v4883_v36 }
  0xce   : > { %853 = vmatprep.mubr.bf16.mxu0 %v9051_v4  ;;  %1206 = vmatprep.mubr.bf16.mxu1 %v9051_v4 }
  0xd5   : > { %854 = vmatmul.mubr.bf16.gmra.mrb[8].mxu0 %v4884_v37  ;;  %1207 = vmatmul.mubr.bf16.gmra.mrb[8].mxu1 %v4884_v37 }
  0xd6   : > { %863 = vmatprep.mubr.bf16.mxu0 %v9051_v4  ;;  %1216 = vmatprep.mubr.bf16.mxu1 %v9051_v4 }
  0xdd   : > { %864 = vmatmul.mubr.bf16.gmra.mrb[12].mxu0 %v4885_v38  ;;  %1217 = vmatmul.mubr.bf16.gmra.mrb[12].mxu1 %v4885_v38 }
  0xde   : > { %873 = vmatprep.mubr.bf16.mxu0 %v9051_v4  ;;  %1226 = vmatprep.mubr.bf16.mxu1 %v9051_v4 }
  0xe5   : > { %874 = vmatmul.mubr.bf16.gmra.mrb[16].mxu0 %v4886_v39  ;;  %1227 = vmatmul.mubr.bf16.gmra.mrb[16].mxu1 %v4886_v39 }
  0xe6   : > { %883 = vmatprep.mubr.bf16.mxu0 %v9051_v4  ;;  %1236 = vmatprep.mubr.bf16.mxu1 %v9051_v4 }
  0xed   : > { %884 = vmatmul.mubr.bf16.gmra.mrb[20].mxu0 %v4887_v40  ;;  %1237 = vmatmul.mubr.bf16.gmra.mrb[20].mxu1 %v4887_v40 }
  0xee   : > { %893 = vmatprep.mubr.bf16.mxu0 %v9051_v4  ;;  %1246 = vmatprep.mubr.bf16.mxu1 %v9051_v4 }
  0xf5   : > { %894 = vmatmul.mubr.bf16.gmra.mrb[24].mxu0 %v4888_v41  ;;  %1247 = vmatmul.mubr.bf16.gmra.mrb[24].mxu1 %v4888_v41 }
  0xf6   : > { %903 = vmatprep.mubr.bf16.mxu0 %v9051_v4  ;;  %1256 = vmatprep.mubr.bf16.mxu1 %v9051_v4 }
  0xfd   : > { %904 = vmatmul.mubr.bf16.gmra.mrb[28].mxu0 %v4889_v42  ;;  %1257 = vmatmul.mubr.bf16.gmra.mrb[28].mxu1 %v4889_v42 }
  0xfe   : > { %913 = vmatprep.mubr.bf16.mxu0 %v9051_v4  ;;  %1266 = vmatprep.mubr.bf16.mxu1 %v9051_v4 }
 0x105   : > { %914 = vmatmul.mubr.bf16.gmra.mrb[32].mxu0 %v4890_v43  ;;  %1267 = vmatmul.mubr.bf16.gmra.mrb[32].mxu1 %v4890_v43 }
 0x106   : > { %923 = vmatprep.mubr.bf16.mxu0 %v9051_v4  ;;  %1276 = vmatprep.mubr.bf16.mxu1 %v9051_v4 }
 0x10d   : > { %924 = vmatmul.mubr.bf16.gmra.mrb[36].mxu0 %v4891_v44  ;;  %1277 = vmatmul.mubr.bf16.gmra.mrb[36].mxu1 %v4891_v44 }
 0x10e   : > { %933 = vmatprep.mubr.bf16.mxu0 %v9051_v4  ;;  %1286 = vmatprep.mubr.bf16.mxu1 %v9051_v4 }
 0x115   : > { %934 = vmatmul.mubr.bf16.gmra.mrb[40].mxu0 %v4892_v45  ;;  %1287 = vmatmul.mubr.bf16.gmra.mrb[40].mxu1 %v4892_v45 }
 0x116   : > { %943 = vmatprep.mubr.bf16.mxu0 %v9051_v4  ;;  %1296 = vmatprep.mubr.bf16.mxu1 %v9051_v4 }
 0x11d   : > { %944 = vmatmul.mubr.bf16.gmra.mrb[44].mxu0 %v4893_v46  ;;  %1297 = vmatmul.mubr.bf16.gmra.mrb[44].mxu1 %v4893_v46 }
 0x11e   : > { %953 = vmatprep.mubr.bf16.mxu0 %v9051_v4  ;;  %1306 = vmatprep.mubr.bf16.mxu1 %v9051_v4 }
 0x125   : > { %954 = vmatmul.mubr.bf16.gmra.mrb[48].mxu0 %v4894_v47  ;;  %1307 = vmatmul.mubr.bf16.gmra.mrb[48].mxu1 %v4894_v47 }
 0x126   : > { %963 = vmatprep.mubr.bf16.mxu0 %v9051_v4  ;;  %1316 = vmatprep.mubr.bf16.mxu1 %v9051_v4 }
 0x12d   : > { %964 = vmatmul.mubr.bf16.gmra.mrb[52].mxu0 %v4895_v48  ;;  %1317 = vmatmul.mubr.bf16.gmra.mrb[52].mxu1 %v4895_v48 }
 0x12e   : > { %973 = vmatprep.mubr.bf16.mxu0 %v9051_v4  ;;  %1326 = vmatprep.mubr.bf16.mxu1 %v9051_v4 }
 0x135   : > { %974 = vmatmul.mubr.bf16.gmra.mrb[56].mxu0 %v4896_v49  ;;  %1327 = vmatmul.mubr.bf16.gmra.mrb[56].mxu1 %v4896_v49 }
 0x136   : > { %983 = vmatprep.mubr.bf16.mxu0 %v9051_v4  ;;  %1336 = vmatprep.mubr.bf16.mxu1 %v9051_v4 }
 0x13d   : > { %984 = vmatmul.mubr.bf16.gmra.mrb[60].mxu0 %v4897_v50  ;;  %1337 = vmatmul.mubr.bf16.gmra.mrb[60].mxu1 %v4897_v50 }
 0x13e   : > { %993 = vmatprep.mubr.bf16.mxu0 %v9051_v4  ;;  %1346 = vmatprep.mubr.bf16.mxu1 %v9051_v4 }
 0x145   : > { %994 = vmatmul.mubr.bf16.gmra.mrb[64].mxu0 %v4898_v51  ;;  %1347 = vmatmul.mubr.bf16.gmra.mrb[64].mxu1 %v4898_v51 }
 0x146   : > { %1003 = vmatprep.mubr.bf16.mxu0 %v9051_v4  ;;  %1356 = vmatprep.mubr.bf16.mxu1 %v9051_v4 }
 0x14d   : > { %1004 = vmatmul.mubr.bf16.gmra.mrb[68].mxu0 %v4899_v52  ;;  %1357 = vmatmul.mubr.bf16.gmra.mrb[68].mxu1 %v4899_v52 }
 0x14e   : > { %1013 = vmatprep.mubr.bf16.mxu0 %v9051_v4  ;;  %1366 = vmatprep.mubr.bf16.mxu1 %v9051_v4 }
 0x155   : > { %1014 = vmatmul.mubr.bf16.gmra.mrb[72].mxu0 %v4900_v53  ;;  %1367 = vmatmul.mubr.bf16.gmra.mrb[72].mxu1 %v4900_v53 }
 0x156   : > { %1023 = vmatprep.mubr.bf16.mxu0 %v9051_v4  ;;  %1376 = vmatprep.mubr.bf16.mxu1 %v9051_v4 }
 0x15d   : > { %1024 = vmatmul.mubr.bf16.gmra.mrb[76].mxu0 %v4901_v54  ;;  %1377 = vmatmul.mubr.bf16.gmra.mrb[76].mxu1 %v4901_v54 }
 0x15e   : > { %1033 = vmatprep.mubr.bf16.mxu0 %v9051_v4  ;;  %1386 = vmatprep.mubr.bf16.mxu1 %v9051_v4 }
 0x165   : > { %1034 = vmatmul.mubr.bf16.gmra.mrb[80].mxu0 %v4902_v55  ;;  %1387 = vmatmul.mubr.bf16.gmra.mrb[80].mxu1 %v4902_v55 }
 0x166   : > { %1043 = vmatprep.mubr.bf16.mxu0 %v9051_v4  ;;  %1396 = vmatprep.mubr.bf16.mxu1 %v9051_v4 }
 0x16d   : > { %1044 = vmatmul.mubr.bf16.gmra.mrb[84].mxu0 %v4903_v56  ;;  %1397 = vmatmul.mubr.bf16.gmra.mrb[84].mxu1 %v4903_v56 }
 0x16e   : > { %1053 = vmatprep.mubr.bf16.mxu0 %v9051_v4  ;;  %1406 = vmatprep.mubr.bf16.mxu1 %v9051_v4 }
 0x175   : > { %1054 = vmatmul.mubr.bf16.gmra.mrb[88].mxu0 %v4904_v57  ;;  %1407 = vmatmul.mubr.bf16.gmra.mrb[88].mxu1 %v4904_v57 }
 0x176   : > { %1063 = vmatprep.mubr.bf16.mxu0 %v9051_v4  ;;  %1416 = vmatprep.mubr.bf16.mxu1 %v9051_v4 }
 0x17d   : > { %1064 = vmatmul.mubr.bf16.gmra.mrb[92].mxu0 %v4905_v58  ;;  %1417 = vmatmul.mubr.bf16.gmra.mrb[92].mxu1 %v4905_v58 }
 0x17e   : > { %1073 = vmatprep.mubr.bf16.mxu0 %v9051_v4  ;;  %1426 = vmatprep.mubr.bf16.mxu1 %v9051_v4 }
 0x185   : > { %1074 = vmatmul.mubr.bf16.gmra.mrb[96].mxu0 %v4906_v59  ;;  %1427 = vmatmul.mubr.bf16.gmra.mrb[96].mxu1 %v4906_v59 }
 0x186   : > { %1083 = vmatprep.mubr.bf16.mxu0 %v9051_v4  ;;  %1436 = vmatprep.mubr.bf16.mxu1 %v9051_v4 }
 0x18d   : > { %1084 = vmatmul.mubr.bf16.gmra.mrb[100].mxu0 %v4907_v60  ;;  %1437 = vmatmul.mubr.bf16.gmra.mrb[100].mxu1 %v4907_v60 }
 0x18e   : > { %1093 = vmatprep.mubr.bf16.mxu0 %v9051_v4  ;;  %1446 = vmatprep.mubr.bf16.mxu1 %v9051_v4 }
 0x198   : > { %v6460_v0 = vpop.f32.mrb[0].mxu0  ;;  %v6462_v1 = vpop.f32.mrb[0].mxu1 }
 0x199   : > { %v6468_v3 = vpop.f32.mrb[1].mxu0  ;;  %v1190_v5 = vpop.f32.mrb[1].mxu1 }
 0x19a   : > { %v1844_v6 = vmax.f32 %v6460_v0, %v6468_v3  ;;  %v6472_v7 = vpop.f32.mrb[2].mxu0  ;;  %v6474_v8 = vpop.f32.mrb[2].mxu1  ;;  %v6478_v9 = vsel %vm6464_vm3, %v1190_v5, -inf }
 0x19b   : > { %9455 = vst [vmem:[#allocation10_spill] sm:$0xff] %v6478_v9  ;;  %v6480_v10 = vpop.f32.mrb[3].mxu0  ;;  %v1194_v11 = vpop.f32.mrb[3].mxu1 }
 0x19c   : > { %v1849_v12 = vmax.f32 %v6472_v7, %v6480_v10  ;;  %v1845_v13 = vmax.f32 %v1844_v6, %v6462_v1  ;;  %v6493_v18 = vsel %vm6464_vm3, %v1194_v11, -inf }
 0x19d   : > { %9456 = vst [vmem:[#allocation11_spill] sm:$0xff] %v6493_v18 }
 0x19e   : > { %v1846_v14 = vmax.f32 %v1845_v13, %v6478_v9  ;;  %v1850_v15 = vmax.f32 %v1849_v12, %v6474_v8 }
 0x1a0   : > { %v6487_v16 = vpop.f32.mrb[4].mxu1  ;;  %1847 = vmax.xlane.f32.xlu0 %v1846_v14  ;;  %v6489_v17 = vpop.f32.mrb[4].mxu0  ;;  %v1851_v24 = vmax.f32 %v1850_v15, %v6493_v18 }
 0x1a1   : > { %v6495_v19 = vpop.f32.mrb[5].mxu0  ;;  %v1200_v20 = vpop.f32.mrb[5].mxu1 }
 0x1a2   : > { %v1854_v21 = vmax.f32 %v6489_v17, %v6495_v19  ;;  %v6499_v22 = vpop.f32.mrb[6].mxu0  ;;  %v6501_v23 = vpop.f32.mrb[6].mxu1  ;;  %v6506_v25 = vsel %vm6464_vm3, %v1200_v20, -inf }
 0x1a3   : > { %9457 = vst [vmem:[#allocation12_spill] sm:$0xff] %v6506_v25  ;;  %v6508_v26 = vpop.f32.mrb[7].mxu0  ;;  %v1204_v27 = vpop.f32.mrb[7].mxu1 }
 0x1a4   : > { %v1859_v28 = vmax.f32 %v6499_v22, %v6508_v26  ;;  %1852 = vmax.xlane.f32.xlu0 %v1851_v24  ;;  %v1855_v29 = vmax.f32 %v1854_v21, %v6487_v16  ;;  %v6521_v34 = vsel %vm6464_vm3, %v1204_v27, -inf }
 0x1a5   : > { %9458 = vst [vmem:[#allocation13_spill] sm:$0xff] %v6521_v34 }
 0x1a6   : > { %v1856_v30 = vmax.f32 %v1855_v29, %v6506_v25  ;;  %v1860_v31 = vmax.f32 %v1859_v28, %v6501_v23 }
 0x1a8   : > { %v6515_v32 = vpop.f32.mrb[8].mxu1  ;;  %1857 = vmax.xlane.f32.xlu1 %v1856_v30  ;;  %v6517_v33 = vpop.f32.mrb[8].mxu0  ;;  %v1861_v40 = vmax.f32 %v1860_v31, %v6521_v34 }
 0x1a9   : > { %v6523_v35 = vpop.f32.mrb[9].mxu0  ;;  %v1210_v36 = vpop.f32.mrb[9].mxu1 }
 0x1aa   : > { %v1864_v37 = vmax.f32 %v6517_v33, %v6523_v35  ;;  %v6527_v38 = vpop.f32.mrb[10].mxu0  ;;  %v6529_v39 = vpop.f32.mrb[10].mxu1  ;;  %v6534_v41 = vsel %vm6464_vm3, %v1210_v36, -inf }
 0x1ab   : > { %9459 = vst [vmem:[#allocation14_spill] sm:$0xff] %v6534_v41  ;;  %v6536_v42 = vpop.f32.mrb[11].mxu0  ;;  %v1214_v43 = vpop.f32.mrb[11].mxu1 }
 0x1ac   : > { %v1869_v44 = vmax.f32 %v6527_v38, %v6536_v42  ;;  %1862 = vmax.xlane.f32.xlu1 %v1861_v40  ;;  %v1865_v45 = vmax.f32 %v1864_v37, %v6515_v32  ;;  %v6545_v48 = vsel %vm6464_vm3, %v1214_v43, -inf }
 0x1ad   : > { %9460 = vst [vmem:[#allocation15_spill] sm:$0xff] %v6545_v48 }
 0x1ae   : > { %v1866_v46 = vmax.f32 %v1865_v45, %v6534_v41  ;;  %v1870_v47 = vmax.f32 %v1869_v44, %v6529_v39 }
 0x1b0   : > { %v6547_v49 = vpop.f32.mrb[12].mxu1  ;;  %1867 = vmax.xlane.f32.xlu0 %v1866_v46  ;;  %v6549_v50 = vpop.f32.mrb[12].mxu0  ;;  %v1871_v51 = vmax.f32 %v1870_v47, %v6545_v48 }
 0x1b1   : > { %9461 = vst [vmem:[#allocation16_spill] sm:$0xff] %v6547_v49  ;;  %v6552_v52 = vpop.f32.mrb[13].mxu0  ;;  %v1220_v53 = vpop.f32.mrb[13].mxu1 }
 0x1b2   : > { %v1874_v54 = vmax.f32 %v6549_v50, %v6552_v52  ;;  %v6556_v55 = vpop.f32.mrb[14].mxu1  ;;  %1872 = vmax.xlane.f32.xlu1 %v1871_v51  ;;  %v6558_v56 = vpop.f32.mrb[14].mxu0  ;;  %v6562_v57 = vsel %vm6464_vm3, %v1220_v53, -inf }
 0x1b3   : > { %9462 = vst [vmem:[#allocation17_spill] sm:$0xff] %v6556_v55  ;;  %9463 = vst [vmem:[#allocation18_spill] sm:$0xff] %v6558_v56  ;;  %v6564_v58 = vpop.f32.mrb[15].mxu0  ;;  %v1224_v59 = vpop.f32.mrb[15].mxu1 }
 0x1b4   : > { %9464 = vst [vmem:[#allocation19_spill] sm:$0xff] %v6562_v57  ;;  %9465 = vst [vmem:[#allocation20_spill] sm:$0xff] %v6564_v58  ;;  %v1879_v61 = vmax.f32 %v6558_v56, %v6564_v58  ;;  %v1875_v62 = vmax.f32 %v1874_v54, %v6547_v49  ;;  %v6576_v6 = vsel %vm6464_vm3, %v1224_v59, -inf }
 0x1b5   : > { %9466 = vst [vmem:[#allocation21_spill] sm:$0xff] %v6576_v6 }
 0x1b6   : > { %v1876_v63 = vmax.f32 %v1875_v62, %v6562_v57  ;;  %v1880_v5 = vmax.f32 %v1879_v61, %v6556_v55 }
 0x1b8   : > { %v6578_v11 = vpop.f32.mrb[16].mxu1  ;;  %1877 = vmax.xlane.f32.xlu0 %v1876_v63  ;;  %v6580_v12 = vpop.f32.mrb[16].mxu0  ;;  %v1881_v13 = vmax.f32 %v1880_v5, %v6576_v6 }
 0x1b9   : > { %9467 = vst [vmem:[#allocation22_spill] sm:$0xff] %v6578_v11  ;;  %9468 = vst [vmem:[#allocation23_spill] sm:$0xff] %v6580_v12  ;;  %v6583_v14 = vpop.f32.mrb[17].mxu0  ;;  %v1230_v15 = vpop.f32.mrb[17].mxu1 }
 0x1ba   : > { %9469 = vst [vmem:[#allocation24_spill] sm:$0xff] %v6583_v14  ;;  %v1884_v20 = vmax.f32 %v6580_v12, %v6583_v14  ;;  %v6587_v21 = vpop.f32.mrb[18].mxu1  ;;  %1882 = vmax.xlane.f32.xlu1 %v1881_v13  ;;  %v6589_v24 = vpop.f32.mrb[18].mxu0  ;;  %v6593_v27 = vsel %vm6464_vm3, %v1230_v15, -inf }
 0x1bb   : > { %9470 = vst [vmem:[#allocation25_spill] sm:$0xff] %v6593_v27  ;;  %v6595_v28 = vpop.f32.mrb[19].mxu0  ;;  %v1234_v29 = vpop.f32.mrb[19].mxu1 }
 0x1bc   : > { %v1889_v30 = vmax.f32 %v6589_v24, %v6595_v28  ;;  %v1885_v31 = vmax.f32 %v1884_v20, %v6578_v11  ;;  %v6604_v40 = vsel %vm6464_vm3, %v1234_v29, -inf }
 0x1bd   : > { %9471 = vst [vmem:[#allocation26_spill] sm:$0xff] %v6604_v40 }
 0x1be   : > { %v1886_v36 = vmax.f32 %v1885_v31, %v6593_v27  ;;  %v1890_v37 = vmax.f32 %v1889_v30, %v6587_v21 }
 0x1c0   : > { %v6606_v43 = vpop.f32.mrb[20].mxu1  ;;  %1887 = vmax.xlane.f32.xlu0 %v1886_v36  ;;  %v6608_v44 = vpop.f32.mrb[20].mxu0  ;;  %v1891_v45 = vmax.f32 %v1890_v37, %v6604_v40 }
 0x1c1   : > { %9472 = vst [vmem:[#allocation27_spill] sm:$0xff] %v6606_v43  ;;  %9473 = vst [vmem:[#allocation28_spill] sm:$0xff] %v6608_v44  ;;  %v6611_v46 = vpop.f32.mrb[21].mxu0  ;;  %v1240_v47 = vpop.f32.mrb[21].mxu1 }
 0x1c2   : > { %9474 = vst [vmem:[#allocation29_spill] sm:$0xff] %v6611_v46  ;;  %v1894_v51 = vmax.f32 %v6608_v44, %v6611_v46  ;;  %v6615_v53 = vpop.f32.mrb[22].mxu1  ;;  %1892 = vmax.xlane.f32.xlu1 %v1891_v45  ;;  %v6617_v54 = vpop.f32.mrb[22].mxu0  ;;  %v6621_v59 = vsel %vm6464_vm3, %v1240_v47, -inf  ;;  %v7092_v46 = vld [vmem:[#allocation2 + $0x28] sm:$0xff] }
 0x1c3   : > { %9475 = vst [vmem:[#allocation30_spill] sm:$0xff] %v6615_v53  ;;  %9476 = vst [vmem:[#allocation31_spill] sm:$0xff] %v6617_v54  ;;  %v6623_v60 = vpop.f32.mrb[23].mxu0  ;;  %v1244_v61 = vpop.f32.mrb[23].mxu1 }
 0x1c4   : > { %9477 = vst [vmem:[#allocation32_spill] sm:$0xff] %v6621_v59  ;;  %9478 = vst [vmem:[#allocation33_spill] sm:$0xff] %v6623_v60  ;;  %v1899_v62 = vmax.f32 %v6617_v54, %v6623_v60  ;;  %v1895_v63 = vmax.f32 %v1894_v51, %v6606_v43  ;;  %v6632_v15 = vsel %vm6464_vm3, %v1244_v61, -inf }
 0x1c5   : > { %9479 = vst [vmem:[#allocation34_spill] sm:$0xff] %v6632_v15  ;;  %9606 = vst [vmem:[#allocation160_spill] sm:$0xff] %v7092_v46 }
 0x1c6   : > { %v1896_v5 = vmax.f32 %v1895_v63, %v6621_v59  ;;  %v1900_v13 = vmax.f32 %v1899_v62, %v6615_v53 }
 0x1c8   : > { %v6634_v20 = vpop.f32.mrb[24].mxu1  ;;  %1897 = vmax.xlane.f32.xlu0 %v1896_v5  ;;  %v6636_v29 = vpop.f32.mrb[24].mxu0  ;;  %v1901_v30 = vmax.f32 %v1900_v13, %v6632_v15 }
 0x1c9   : > { %9480 = vst [vmem:[#allocation35_spill] sm:$0xff] %v6634_v20  ;;  %9481 = vst [vmem:[#allocation36_spill] sm:$0xff] %v6636_v29  ;;  %v6639_v31 = vpop.f32.mrb[25].mxu0  ;;  %v1250_v36 = vpop.f32.mrb[25].mxu1 }
 0x1ca   : > { %9482 = vst [vmem:[#allocation37_spill] sm:$0xff] %v6639_v31  ;;  %v1904_v37 = vmax.f32 %v6636_v29, %v6639_v31  ;;  %v6643_v45 = vpop.f32.mrb[26].mxu1  ;;  %1902 = vmax.xlane.f32.xlu1 %v1901_v30  ;;  %v6645_v47 = vpop.f32.mrb[26].mxu0  ;;  %v6649_v51 = vsel %vm6464_vm3, %v1250_v36, -inf }
 0x1cb   : > { %9483 = vst [vmem:[#allocation38_spill] sm:$0xff] %v6643_v45  ;;  %9484 = vst [vmem:[#allocation39_spill] sm:$0xff] %v6645_v47  ;;  %v6651_v61 = vpop.f32.mrb[27].mxu0  ;;  %v1254_v62 = vpop.f32.mrb[27].mxu1 }
 0x1cc   : > { %9485 = vst [vmem:[#allocation40_spill] sm:$0xff] %v6649_v51  ;;  %9486 = vst [vmem:[#allocation41_spill] sm:$0xff] %v6651_v61  ;;  %v1909_v63 = vmax.f32 %v6645_v47, %v6651_v61  ;;  %v1905_v5 = vmax.f32 %v1904_v37, %v6634_v20  ;;  %v6660_v30 = vsel %vm6464_vm3, %v1254_v62, -inf  ;;  %v4908_v20 = vld [vmem:[%s6072_s25 + $0xd0] sm:$0xff]   ;;  %v7177_v61 = vld [vmem:[#allocation2 + $0x48] sm:$0xff] }
 0x1cd   : > { %9487 = vst [vmem:[#allocation42_spill] sm:$0xff] %v6660_v30  ;;  %1094 = vmatmul.mubr.bf16.gmra.mrb[104].mxu0 %v4908_v20  ;;  %1447 = vmatmul.mubr.bf16.gmra.mrb[104].mxu1 %v4908_v20  ;;  %9626 = vst [vmem:[#allocation180_spill] sm:$0xff] %v7177_v61 }
 0x1ce   : > { %v1906_v13 = vmax.f32 %v1905_v5, %v6649_v51  ;;  %v1910_v4 = vmax.f32 %v1909_v63, %v6643_v45 }
 0x1d0   : > { %v6662_v15 = vpop.f32.mrb[28].mxu1  ;;  %1907 = vmax.xlane.f32.xlu0 %v1906_v13  ;;  %v6664_v36 = vpop.f32.mrb[28].mxu0  ;;  %v1911_v40 = vmax.f32 %v1910_v4, %v6660_v30 }
 0x1d1   : > { %9488 = vst [vmem:[#allocation43_spill] sm:$0xff] %v6662_v15  ;;  %9489 = vst [vmem:[#allocation44_spill] sm:$0xff] %v6664_v36  ;;  %v6667_v6 = vpop.f32.mrb[29].mxu0  ;;  %v1260_v59 = vpop.f32.mrb[29].mxu1 }
 0x1d2   : > { %9490 = vst [vmem:[#allocation45_spill] sm:$0xff] %v6667_v6  ;;  %v1914_v37 = vmax.f32 %v6664_v36, %v6667_v6  ;;  %v6671_v5 = vpop.f32.mrb[30].mxu1  ;;  %1912 = vmax.xlane.f32.xlu1 %v1911_v40  ;;  %v6673_v63 = vpop.f32.mrb[30].mxu0  ;;  %v6677_v62 = vsel %vm6464_vm3, %v1260_v59, -inf }
 0x1d3   : > { %9491 = vst [vmem:[#allocation46_spill] sm:$0xff] %v6671_v5  ;;  %9492 = vst [vmem:[#allocation47_spill] sm:$0xff] %v6673_v63  ;;  %v6679_v13 = vpop.f32.mrb[31].mxu0  ;;  %v1264_v51 = vpop.f32.mrb[31].mxu1 }
 0x1d4   : > { %9493 = vst [vmem:[#allocation48_spill] sm:$0xff] %v6677_v62  ;;  %9494 = vst [vmem:[#allocation49_spill] sm:$0xff] %v6679_v13  ;;  %v1919_v4 = vmax.f32 %v6673_v63, %v6679_v13  ;;  %v1915_v30 = vmax.f32 %v1914_v37, %v6662_v15  ;;  %v6688_v40 = vsel %vm6464_vm3, %v1264_v51, -inf }
 0x1d5   : > { %9495 = vst [vmem:[#allocation50_spill] sm:$0xff] %v6688_v40 }
 0x1d6   : > { %v1916_v48 = vmax.f32 %v1915_v30, %v6677_v62  ;;  %v1920_v34 = vmax.f32 %v1919_v4, %v6671_v5 }
 0x1d8   : > { %v6690_v27 = vpop.f32.mrb[32].mxu1  ;;  %1917 = vmax.xlane.f32.xlu0 %v1916_v48  ;;  %v6692_v59 = vpop.f32.mrb[32].mxu0  ;;  %v1921_v9 = vmax.f32 %v1920_v34, %v6688_v40 }
 0x1d9   : > { %9496 = vst [vmem:[#allocation51_spill] sm:$0xff] %v6690_v27  ;;  %9497 = vst [vmem:[#allocation52_spill] sm:$0xff] %v6692_v59  ;;  %v6695_v57 = vpop.f32.mrb[33].mxu0  ;;  %v1270_v41 = vpop.f32.mrb[33].mxu1 }
 0x1da   : > { %9498 = vst [vmem:[#allocation53_spill] sm:$0xff] %v6695_v57  ;;  %v1924_v37 = vmax.f32 %v6692_v59, %v6695_v57  ;;  %v6699_v30 = vpop.f32.mrb[34].mxu1  ;;  %1922 = vmax.xlane.f32.xlu1 %v1921_v9  ;;  %v6701_v4 = vpop.f32.mrb[34].mxu0  ;;  %v6705_v51 = vsel %vm6464_vm3, %v1270_v41, -inf }
 0x1db   : > { %9499 = vst [vmem:[#allocation54_spill] sm:$0xff] %v6699_v30  ;;  %9500 = vst [vmem:[#allocation55_spill] sm:$0xff] %v6701_v4  ;;  %v6707_v48 = vpop.f32.mrb[35].mxu0  ;;  %v1274_v62 = vpop.f32.mrb[35].mxu1 }
 0x1dc   : > { %9501 = vst [vmem:[#allocation56_spill] sm:$0xff] %v6705_v51  ;;  %9502 = vst [vmem:[#allocation57_spill] sm:$0xff] %v6707_v48  ;;  %v1929_v34 = vmax.f32 %v6701_v4, %v6707_v48  ;;  %v1925_v40 = vmax.f32 %v1924_v37, %v6690_v27  ;;  %v6716_v9 = vsel %vm6464_vm3, %v1274_v62, -inf }
 0x1dd   : > { %9503 = vst [vmem:[#allocation58_spill] sm:$0xff] %v6716_v9 }
 0x1de   : > { %v1926_v25 = vmax.f32 %v1925_v40, %v6705_v51  ;;  %v1930_v18 = vmax.f32 %v1929_v34, %v6699_v30  ;;  %v7054_v30 = vld [vmem:[#allocation2 + $0x18] sm:$0xff] }
 0x1df   : > { %9597 = vst [vmem:[#allocation151_spill] sm:$0xff] %v7054_v30 }
 0x1e0   : > { %v6718_v57 = vpop.f32.mrb[36].mxu1  ;;  %1927 = vmax.xlane.f32.xlu0 %v1926_v25  ;;  %v6720_v41 = vpop.f32.mrb[36].mxu0  ;;  %v1931_v59 = vmax.f32 %v1930_v18, %v6716_v9 }
 0x1e1   : > { %9504 = vst [vmem:[#allocation59_spill] sm:$0xff] %v6718_v57  ;;  %9505 = vst [vmem:[#allocation60_spill] sm:$0xff] %v6720_v41  ;;  %v6723_v15 = vpop.f32.mrb[37].mxu0  ;;  %v1280_v6 = vpop.f32.mrb[37].mxu1 }
 0x1e2   : > { %9506 = vst [vmem:[#allocation61_spill] sm:$0xff] %v6723_v15  ;;  %v1934_v37 = vmax.f32 %v6720_v41, %v6723_v15  ;;  %v6727_v40 = vpop.f32.mrb[38].mxu1  ;;  %1932 = vmax.xlane.f32.xlu1 %v1931_v59  ;;  %v6729_v34 = vpop.f32.mrb[38].mxu0  ;;  %v6733_v62 = vsel %vm6464_vm3, %v1280_v6, -inf }
 0x1e3   : > { %9507 = vst [vmem:[#allocation62_spill] sm:$0xff] %v6727_v40  ;;  %9508 = vst [vmem:[#allocation63_spill] sm:$0xff] %v6729_v34  ;;  %v6735_v25 = vpop.f32.mrb[39].mxu0  ;;  %v1284_v51 = vpop.f32.mrb[39].mxu1 }
 0x1e4   : > { %9509 = vst [vmem:[#allocation64_spill] sm:$0xff] %v6733_v62  ;;  %9510 = vst [vmem:[#allocation65_spill] sm:$0xff] %v6735_v25  ;;  %v1939_v18 = vmax.f32 %v6729_v34, %v6735_v25  ;;  %v1935_v9 = vmax.f32 %v1934_v37, %v6718_v57  ;;  %v6744_v59 = vsel %vm6464_vm3, %v1284_v51, -inf }
 0x1e5   : > { %9511 = vst [vmem:[#allocation66_spill] sm:$0xff] %v6744_v59 }
 0x1e6   : > { %v1936_v15 = vmax.f32 %v1935_v9, %v6733_v62  ;;  %v1940_v41 = vmax.f32 %v1939_v18, %v6727_v40 }
 0x1e8   : > { %v6746_v27 = vpop.f32.mrb[40].mxu1  ;;  %1937 = vmax.xlane.f32.xlu0 %v1936_v15  ;;  %v6748_v6 = vpop.f32.mrb[40].mxu0  ;;  %v1941_v36 = vmax.f32 %v1940_v41, %v6744_v59  ;;  %v9519_v59 = vmov 0  }
 0x1e9   : > { %9512 = vst [vmem:[#allocation67_spill] sm:$0xff] %v6746_v27  ;;  %9513 = vst [vmem:[#allocation68_spill] sm:$0xff] %v6748_v6  ;;  %v6752_v31 = vpop.f32.mrb[41].mxu0  ;;  %v1290_v25 = vpop.f32.mrb[41].mxu1  ;;  %1103 = vmatprep.mubr.bf16.mxu0 %v9519_v59  ;;  %1456 = vmatprep.mubr.bf16.mxu1 %v9519_v59 }
 0x1ea   : > { %9514 = vst [vmem:[#allocation69_spill] sm:$0xff] %v6752_v31  ;;  %v1944_v9 = vmax.f32 %v6748_v6, %v6752_v31  ;;  %v6756_v37 = vpop.f32.mrb[42].mxu1  ;;  %1942 = vmax.xlane.f32.xlu1 %v1941_v36  ;;  %v6758_v18 = vpop.f32.mrb[42].mxu0  ;;  %v6762_v15 = vsel %vm6464_vm3, %v1290_v25, -inf }
 0x1eb   : > { %9515 = vst [vmem:[#allocation70_spill] sm:$0xff] %v6756_v37  ;;  %9516 = vst [vmem:[#allocation71_spill] sm:$0xff] %v6758_v18  ;;  %v6764_v51 = vpop.f32.mrb[43].mxu0  ;;  %v1294_v41 = vpop.f32.mrb[43].mxu1 }
 0x1ec   : > { %9517 = vst [vmem:[#allocation72_spill] sm:$0xff] %v6762_v15  ;;  %9518 = vst [vmem:[#allocation73_spill] sm:$0xff] %v6764_v51  ;;  %v1949_v62 = vmax.f32 %v6758_v18, %v6764_v51  ;;  %v1945_v31 = vmax.f32 %v1944_v9, %v6746_v27  ;;  %v6775_v25 = vsel %vm6464_vm3, %v1294_v41, -inf }
 0x1ed   : > { %9520 = vst [vmem:[#allocation74_spill] sm:$0xff] %v6775_v25 }
 0x1ee   : > { %v1946_v36 = vmax.f32 %v1945_v31, %v6762_v15  ;;  %v1950_v6 = vmax.f32 %v1949_v62, %v6756_v37 }
 0x1f0   : > { %v6777_v57 = vpop.f32.mrb[44].mxu1  ;;  %1947 = vmax.xlane.f32.xlu0 %v1946_v36  ;;  %v6779_v20 = vpop.f32.mrb[44].mxu0  ;;  %v1951_v40 = vmax.f32 %v1950_v6, %v6775_v25 }
 0x1f1   : > { %9521 = vst [vmem:[#allocation75_spill] sm:$0xff] %v6777_v57  ;;  %9522 = vst [vmem:[#allocation76_spill] sm:$0xff] %v6779_v20  ;;  %v6782_v51 = vpop.f32.mrb[45].mxu0  ;;  %v1300_v9 = vpop.f32.mrb[45].mxu1 }
 0x1f2   : > { %9523 = vst [vmem:[#allocation77_spill] sm:$0xff] %v6782_v51  ;;  %v1954_v27 = vmax.f32 %v6779_v20, %v6782_v51  ;;  %v6786_v31 = vpop.f32.mrb[46].mxu1  ;;  %1952 = vmax.xlane.f32.xlu1 %v1951_v40  ;;  %v6788_v62 = vpop.f32.mrb[46].mxu0  ;;  %v6792_v41 = vsel %vm6464_vm3, %v1300_v9, -inf }
 0x1f3   : > { %9524 = vst [vmem:[#allocation78_spill] sm:$0xff] %v6786_v31  ;;  %9525 = vst [vmem:[#allocation79_spill] sm:$0xff] %v6788_v62  ;;  %v6794_v36 = vpop.f32.mrb[47].mxu0  ;;  %v1304_v15 = vpop.f32.mrb[47].mxu1 }
 0x1f4   : > { %9526 = vst [vmem:[#allocation80_spill] sm:$0xff] %v6792_v41  ;;  %9527 = vst [vmem:[#allocation81_spill] sm:$0xff] %v6794_v36  ;;  %v1959_v6 = vmax.f32 %v6788_v62, %v6794_v36  ;;  %v1955_v25 = vmax.f32 %v1954_v27, %v6777_v57  ;;  %v6803_v40 = vsel %vm6464_vm3, %v1304_v15, -inf }
 0x1f5   : > { %9528 = vst [vmem:[#allocation82_spill] sm:$0xff] %v6803_v40 }
 0x1f6   : > { %v1956_v37 = vmax.f32 %v1955_v25, %v6792_v41  ;;  %v1960_v51 = vmax.f32 %v1959_v6, %v6786_v31 }
 0x1f8   : > { %v6805_v20 = vpop.f32.mrb[48].mxu1  ;;  %1957 = vmax.xlane.f32.xlu0 %v1956_v37  ;;  %v6807_v9 = vpop.f32.mrb[48].mxu0  ;;  %v1961_v18 = vmax.f32 %v1960_v51, %v6803_v40 }
 0x1f9   : > { %9529 = vst [vmem:[#allocation83_spill] sm:$0xff] %v6805_v20  ;;  %9530 = vst [vmem:[#allocation84_spill] sm:$0xff] %v6807_v9  ;;  %v6810_v34 = vpop.f32.mrb[49].mxu0  ;;  %v1310_v36 = vpop.f32.mrb[49].mxu1 }
 0x1fa   : > { %9531 = vst [vmem:[#allocation85_spill] sm:$0xff] %v6810_v34  ;;  %v1964_v27 = vmax.f32 %v6807_v9, %v6810_v34  ;;  %v6814_v25 = vpop.f32.mrb[50].mxu1  ;;  %1962 = vmax.xlane.f32.xlu1 %v1961_v18  ;;  %v6816_v6 = vpop.f32.mrb[50].mxu0  ;;  %v6820_v15 = vsel %vm6464_vm3, %v1310_v36, -inf }
 0x1fb   : > { %9532 = vst [vmem:[#allocation86_spill] sm:$0xff] %v6814_v25  ;;  %9533 = vst [vmem:[#allocation87_spill] sm:$0xff] %v6816_v6  ;;  %v6822_v37 = vpop.f32.mrb[51].mxu0  ;;  %v1314_v41 = vpop.f32.mrb[51].mxu1 }
 0x1fc   : > { %9534 = vst [vmem:[#allocation88_spill] sm:$0xff] %v6820_v15  ;;  %9535 = vst [vmem:[#allocation89_spill] sm:$0xff] %v6822_v37  ;;  %v1969_v51 = vmax.f32 %v6816_v6, %v6822_v37  ;;  %v1965_v40 = vmax.f32 %v1964_v27, %v6805_v20  ;;  %v6831_v18 = vsel %vm6464_vm3, %v1314_v41, -inf }
 0x1fd   : > { %9536 = vst [vmem:[#allocation90_spill] sm:$0xff] %v6831_v18 }
 0x1fe   : > { %v1966_v57 = vmax.f32 %v1965_v40, %v6820_v15  ;;  %v1970_v34 = vmax.f32 %v1969_v51, %v6814_v25 }
 0x200   : > { %v6833_v9 = vpop.f32.mrb[52].mxu1  ;;  %1967 = vmax.xlane.f32.xlu0 %v1966_v57  ;;  %v6835_v36 = vpop.f32.mrb[52].mxu0  ;;  %v1971_v31 = vmax.f32 %v1970_v34, %v6831_v18 }
 0x201   : > { %9537 = vst [vmem:[#allocation91_spill] sm:$0xff] %v6833_v9  ;;  %9538 = vst [vmem:[#allocation92_spill] sm:$0xff] %v6835_v36  ;;  %v6838_v62 = vpop.f32.mrb[53].mxu0  ;;  %v1320_v37 = vpop.f32.mrb[53].mxu1 }
 0x202   : > { %9539 = vst [vmem:[#allocation93_spill] sm:$0xff] %v6838_v62  ;;  %v1974_v27 = vmax.f32 %v6835_v36, %v6838_v62  ;;  %v6842_v40 = vpop.f32.mrb[54].mxu1  ;;  %1972 = vmax.xlane.f32.xlu1 %v1971_v31  ;;  %v6844_v51 = vpop.f32.mrb[54].mxu0  ;;  %v6848_v41 = vsel %vm6464_vm3, %v1320_v37, -inf }
 0x203   : > { %9540 = vst [vmem:[#allocation94_spill] sm:$0xff] %v6842_v40  ;;  %9541 = vst [vmem:[#allocation95_spill] sm:$0xff] %v6844_v51  ;;  %v6850_v57 = vpop.f32.mrb[55].mxu0  ;;  %v1324_v15 = vpop.f32.mrb[55].mxu1 }
 0x204   : > { %9542 = vst [vmem:[#allocation96_spill] sm:$0xff] %v6848_v41  ;;  %9543 = vst [vmem:[#allocation97_spill] sm:$0xff] %v6850_v57  ;;  %v1979_v34 = vmax.f32 %v6844_v51, %v6850_v57  ;;  %v1975_v18 = vmax.f32 %v1974_v27, %v6833_v9  ;;  %v6859_v31 = vsel %vm6464_vm3, %v1324_v15, -inf }
 0x205   : > { %9544 = vst [vmem:[#allocation98_spill] sm:$0xff] %v6859_v31 }
 0x206   : > { %v1976_v20 = vmax.f32 %v1975_v18, %v6848_v41  ;;  %v1980_v62 = vmax.f32 %v1979_v34, %v6842_v40 }
 0x208   : > { %v6861_v36 = vpop.f32.mrb[56].mxu1  ;;  %1977 = vmax.xlane.f32.xlu0 %v1976_v20  ;;  %v6863_v37 = vpop.f32.mrb[56].mxu0  ;;  %v1981_v25 = vmax.f32 %v1980_v62, %v6859_v31 }
 0x209   : > { %9545 = vst [vmem:[#allocation99_spill] sm:$0xff] %v6861_v36  ;;  %9546 = vst [vmem:[#allocation100_spill] sm:$0xff] %v6863_v37  ;;  %v6866_v6 = vpop.f32.mrb[57].mxu0  ;;  %v1330_v57 = vpop.f32.mrb[57].mxu1 }
 0x20a   : > { %9547 = vst [vmem:[#allocation101_spill] sm:$0xff] %v6866_v6  ;;  %v1984_v27 = vmax.f32 %v6863_v37, %v6866_v6  ;;  %v6870_v18 = vpop.f32.mrb[58].mxu1  ;;  %1982 = vmax.xlane.f32.xlu1 %v1981_v25  ;;  %v6872_v34 = vpop.f32.mrb[58].mxu0  ;;  %v6876_v15 = vsel %vm6464_vm3, %v1330_v57, -inf }
 0x20b   : > { %9548 = vst [vmem:[#allocation102_spill] sm:$0xff] %v6870_v18  ;;  %9549 = vst [vmem:[#allocation103_spill] sm:$0xff] %v6872_v34  ;;  %v6878_v20 = vpop.f32.mrb[59].mxu0  ;;  %v1334_v41 = vpop.f32.mrb[59].mxu1 }
 0x20c   : > { %9550 = vst [vmem:[#allocation104_spill] sm:$0xff] %v6876_v15  ;;  %9551 = vst [vmem:[#allocation105_spill] sm:$0xff] %v6878_v20  ;;  %v1989_v62 = vmax.f32 %v6872_v34, %v6878_v20  ;;  %v1985_v31 = vmax.f32 %v1984_v27, %v6861_v36  ;;  %v6887_v25 = vsel %vm6464_vm3, %v1334_v41, -inf }
 0x20d   : > { %9552 = vst [vmem:[#allocation106_spill] sm:$0xff] %v6887_v25 }
 0x20e   : > { %v1986_v9 = vmax.f32 %v1985_v31, %v6876_v15  ;;  %v1990_v6 = vmax.f32 %v1989_v62, %v6870_v18 }
 0x210   : > { %v6889_v37 = vpop.f32.mrb[60].mxu1  ;;  %1987 = vmax.xlane.f32.xlu0 %v1986_v9  ;;  %v6891_v57 = vpop.f32.mrb[60].mxu0  ;;  %v1991_v40 = vmax.f32 %v1990_v6, %v6887_v25 }
 0x211   : > { %9553 = vst [vmem:[#allocation107_spill] sm:$0xff] %v6889_v37  ;;  %9554 = vst [vmem:[#allocation108_spill] sm:$0xff] %v6891_v57  ;;  %v6894_v51 = vpop.f32.mrb[61].mxu0  ;;  %v1340_v20 = vpop.f32.mrb[61].mxu1 }
 0x212   : > { %9555 = vst [vmem:[#allocation109_spill] sm:$0xff] %v6894_v51  ;;  %v1994_v27 = vmax.f32 %v6891_v57, %v6894_v51  ;;  %v6898_v31 = vpop.f32.mrb[62].mxu1  ;;  %1992 = vmax.xlane.f32.xlu1 %v1991_v40  ;;  %v6900_v62 = vpop.f32.mrb[62].mxu0  ;;  %v6904_v41 = vsel %vm6464_vm3, %v1340_v20, -inf }
 0x213   : > { %9556 = vst [vmem:[#allocation110_spill] sm:$0xff] %v6898_v31  ;;  %9557 = vst [vmem:[#allocation111_spill] sm:$0xff] %v6900_v62  ;;  %v6906_v9 = vpop.f32.mrb[63].mxu0  ;;  %v1344_v15 = vpop.f32.mrb[63].mxu1 }
 0x214   : > { %9558 = vst [vmem:[#allocation112_spill] sm:$0xff] %v6904_v41  ;;  %9559 = vst [vmem:[#allocation113_spill] sm:$0xff] %v6906_v9  ;;  %v1999_v6 = vmax.f32 %v6900_v62, %v6906_v9  ;;  %v1995_v25 = vmax.f32 %v1994_v27, %v6889_v37  ;;  %v6915_v40 = vsel %vm6464_vm3, %v1344_v15, -inf }
 0x215   : > { %9560 = vst [vmem:[#allocation114_spill] sm:$0xff] %v6915_v40 }
 0x216   : > { %v1996_v36 = vmax.f32 %v1995_v25, %v6904_v41  ;;  %v2000_v51 = vmax.f32 %v1999_v6, %v6898_v31 }
 0x218   : > { %v6917_v57 = vpop.f32.mrb[64].mxu1  ;;  %1997 = vmax.xlane.f32.xlu0 %v1996_v36  ;;  %v6919_v20 = vpop.f32.mrb[64].mxu0  ;;  %v2001_v18 = vmax.f32 %v2000_v51, %v6915_v40  ;;  %v4909_v40 = vld [vmem:[%s6072_s25 + $0xd8] sm:$0xff]  }
 0x219   : > { %9561 = vst [vmem:[#allocation115_spill] sm:$0xff] %v6917_v57  ;;  %9562 = vst [vmem:[#allocation116_spill] sm:$0xff] %v6919_v20  ;;  %v6922_v34 = vpop.f32.mrb[65].mxu0  ;;  %v1350_v9 = vpop.f32.mrb[65].mxu1  ;;  %1104 = vmatmul.mubr.bf16.gmra.mrb[108].mxu0 %v4909_v40  ;;  %1457 = vmatmul.mubr.bf16.gmra.mrb[108].mxu1 %v4909_v40 }
 0x21a   : > { %9563 = vst [vmem:[#allocation117_spill] sm:$0xff] %v6922_v34  ;;  %v2004_v25 = vmax.f32 %v6919_v20, %v6922_v34  ;;  %v6926_v27 = vpop.f32.mrb[66].mxu1  ;;  %2002 = vmax.xlane.f32.xlu1 %v2001_v18  ;;  %v6928_v6 = vpop.f32.mrb[66].mxu0  ;;  %v6932_v15 = vsel %vm6464_vm3, %v1350_v9, -inf  ;;  %1113 = vmatprep.mubr.bf16.mxu0 %v9519_v59 }
 0x21b   : > { %9564 = vst [vmem:[#allocation118_spill] sm:$0xff] %v6926_v27  ;;  %9565 = vst [vmem:[#allocation119_spill] sm:$0xff] %v6928_v6  ;;  %v6934_v36 = vpop.f32.mrb[67].mxu0  ;;  %v1354_v41 = vpop.f32.mrb[67].mxu1  ;;  %1466 = vmatprep.mubr.bf16.mxu1 %v9519_v59 }
 0x21c   : > { %9566 = vst [vmem:[#allocation120_spill] sm:$0xff] %v6932_v15  ;;  %9567 = vst [vmem:[#allocation121_spill] sm:$0xff] %v6934_v36  ;;  %v2009_v51 = vmax.f32 %v6928_v6, %v6934_v36  ;;  %v2005_v37 = vmax.f32 %v2004_v25, %v6917_v57  ;;  %v6944_v18 = vsel %vm6464_vm3, %v1354_v41, -inf }
 0x21d   : > { %9568 = vst [vmem:[#allocation122_spill] sm:$0xff] %v6944_v18 }
 0x21e   : > { %v2006_v34 = vmax.f32 %v2005_v37, %v6932_v15  ;;  %v2010_v20 = vmax.f32 %v2009_v51, %v6926_v27 }
 0x220   : > { %v6946_v9 = vpop.f32.mrb[68].mxu1  ;;  %2007 = vmax.xlane.f32.xlu0 %v2006_v34  ;;  %v6948_v31 = vpop.f32.mrb[68].mxu0  ;;  %v2011_v36 = vmax.f32 %v2010_v20, %v6944_v18 }
 0x221   : > { %9569 = vst [vmem:[#allocation123_spill] sm:$0xff] %v6946_v9  ;;  %9570 = vst [vmem:[#allocation124_spill] sm:$0xff] %v6948_v31  ;;  %v6952_v25 = vpop.f32.mrb[69].mxu0  ;;  %v1360_v37 = vpop.f32.mrb[69].mxu1 }
 0x222   : > { %9571 = vst [vmem:[#allocation125_spill] sm:$0xff] %v6952_v25  ;;  %v2014_v41 = vmax.f32 %v6948_v31, %v6952_v25  ;;  %v6957_v51 = vpop.f32.mrb[70].mxu1  ;;  %2012 = vmax.xlane.f32.xlu1 %v2011_v36  ;;  %v6959_v40 = vpop.f32.mrb[70].mxu0  ;;  %v6963_v34 = vsel %vm6464_vm3, %v1360_v37, -inf }
 0x223   : > { %9572 = vst [vmem:[#allocation126_spill] sm:$0xff] %v6957_v51  ;;  %9573 = vst [vmem:[#allocation127_spill] sm:$0xff] %v6959_v40  ;;  %v6965_v20 = vpop.f32.mrb[71].mxu0  ;;  %v1364_v15 = vpop.f32.mrb[71].mxu1 }
 0x224   : > { %9574 = vst [vmem:[#allocation128_spill] sm:$0xff] %v6963_v34  ;;  %9575 = vst [vmem:[#allocation129_spill] sm:$0xff] %v6965_v20  ;;  %v2019_v57 = vmax.f32 %v6959_v40, %v6965_v20  ;;  %v2015_v18 = vmax.f32 %v2014_v41, %v6946_v9  ;;  %v6974_v36 = vsel %vm6464_vm3, %v1364_v15, -inf  ;;  %v6995_v9 = vld [vmem:[#allocation2] sm:$0xff]  ;;  %v7009_v40 = vld [vmem:[#allocation2 + $0x8] sm:$0xff] }
 0x225   : > { %9576 = vst [vmem:[#allocation130_spill] sm:$0xff] %v6974_v36  ;;  %9584 = vst [vmem:[#allocation138_spill] sm:$0xff] %v6995_v9 }
 0x226   : > { %v2016_v27 = vmax.f32 %v2015_v18, %v6963_v34  ;;  %v2020_v25 = vmax.f32 %v2019_v57, %v6957_v51  ;;  %9587 = vst [vmem:[#allocation141_spill] sm:$0xff] %v7009_v40 }
 0x228   : > { %v6976_v31 = vpop.f32.mrb[72].mxu1  ;;  %2017 = vmax.xlane.f32.xlu0 %v2016_v27  ;;  %v6978_v37 = vpop.f32.mrb[72].mxu0  ;;  %v2021_v6 = vmax.f32 %v2020_v25, %v6974_v36 }
 0x229   : > { %9577 = vst [vmem:[#allocation131_spill] sm:$0xff] %v6976_v31  ;;  %9578 = vst [vmem:[#allocation132_spill] sm:$0xff] %v6978_v37  ;;  %v6981_v62 = vpop.f32.mrb[73].mxu0  ;;  %v1370_v20 = vpop.f32.mrb[73].mxu1 }
 0x22a   : > { %9579 = vst [vmem:[#allocation133_spill] sm:$0xff] %v6981_v62  ;;  %v2024_v41 = vmax.f32 %v6978_v37, %v6981_v62  ;;  %v6985_v18 = vpop.f32.mrb[74].mxu1  ;;  %2022 = vmax.xlane.f32.xlu1 %v2021_v6  ;;  %v6987_v57 = vpop.f32.mrb[74].mxu0  ;;  %v6991_v15 = vsel %vm6464_vm3, %v1370_v20, -inf }
 0x22b   : > { %9580 = vst [vmem:[#allocation134_spill] sm:$0xff] %v6985_v18  ;;  %9581 = vst [vmem:[#allocation135_spill] sm:$0xff] %v6987_v57  ;;  %v6993_v27 = vpop.f32.mrb[75].mxu0  ;;  %v1374_v34 = vpop.f32.mrb[75].mxu1 }
 0x22c   : > { %9582 = vst [vmem:[#allocation136_spill] sm:$0xff] %v6991_v15  ;;  %9583 = vst [vmem:[#allocation137_spill] sm:$0xff] %v6993_v27  ;;  %v2029_v25 = vmax.f32 %v6987_v57, %v6993_v27  ;;  %v2025_v36 = vmax.f32 %v2024_v41, %v6976_v31  ;;  %v7007_v51 = vsel %vm6464_vm3, %v1374_v34, -inf }
 0x22d   : > { %v1848_v62 = vpop.xlane.xlu0 %1847  ;;  %9586 = vst [vmem:[#allocation140_spill] sm:$0xff] %v7007_v51 }
 0x22e   : > { %v7001_v6 = vmax.f32 %v6995_v9, %v1848_v62  ;;  %v2026_v37 = vmax.f32 %v2025_v36, %v6991_v15  ;;  %v2030_v20 = vmax.f32 %v2029_v25, %v6985_v18  ;;  %v7075_v18 = vld [vmem:[#allocation2 + $0x20] sm:$0xff] }
 0x22f   : > { %9603 = vst [vmem:[#allocation157_spill] sm:$0xff] %v7075_v18 }
 0x230   : > { %9585 = vst [vmem:[#allocation139_spill] sm:$0xff] %v7001_v6  ;;  %4085 = vst.msk [vmem:[#allocation2] sm:$0xff] %vm4020_vm4, %v7001_v6  ;;  %2027 = vmax.xlane.f32.xlu0 %v2026_v37  ;;  %v2031_v62 = vmax.f32 %v2030_v20, %v7007_v51  ;;  %v7016_v41 = vpop.f32.mrb[76].mxu0  ;;  %v7018_v36 = vpop.f32.mrb[76].mxu1  ;;  %v7031_v37 = vld [vmem:[#allocation2 + $0x10] sm:$0xff] }
 0x231   : > { %9588 = vst [vmem:[#allocation142_spill] sm:$0xff] %v7016_v41  ;;  %9589 = vst [vmem:[#allocation143_spill] sm:$0xff] %v7018_v36  ;;  %v1853_v25 = vpop.xlane.xlu0 %1852  ;;  %v7020_v15 = vpop.f32.mrb[77].mxu0 }
 0x232   : > { %9590 = vst [vmem:[#allocation144_spill] sm:$0xff] %v7020_v15  ;;  %v7023_v34 = vmax.f32 %v7009_v40, %v1853_v25  ;;  %2032 = vmax.xlane.f32.xlu1 %v2031_v62  ;;  %v2034_v27 = vmax.f32 %v7016_v41, %v7020_v15  ;;  %v7027_v9 = vpop.f32.mrb[78].mxu0  ;;  %v7029_v31 = vpop.f32.mrb[77].mxu1  ;;  %9593 = vst [vmem:[#allocation147_spill] sm:$0xff] %v7031_v37 }
 0x233   : > { %9592 = vst [vmem:[#allocation146_spill] sm:$0xff] %v7027_v9  ;;  %v7033_v20 = vpop.f32.mrb[79].mxu0  ;;  %v7035_v51 = vpop.f32.mrb[78].mxu1  ;;  %v7260_v54 = vsel %vm6464_vm3, %v7029_v31, -inf  ;;  %v7276_v31 = vld [vmem:[#allocation2 + $0x70] sm:$0xff] }
 0x234   : > { %9591 = vst [vmem:[#allocation145_spill] sm:$0xff] %v7023_v34  ;;  %9594 = vst [vmem:[#allocation148_spill] sm:$0xff] %v7033_v20  ;;  %v2039_v62 = vmax.f32 %v7027_v9, %v7033_v20  ;;  %v7044_v25 = vmax.f32 %v2034_v27, %v7018_v36  ;;  %v7046_v15 = vpop.f32.mrb[79].mxu1 }
 0x235   : > { %9595 = vst [vmem:[#allocation149_spill] sm:$0xff] %v7035_v51  ;;  %4086 = vst.msk [vmem:[#allocation2 + $0x8] sm:$0xff] %vm4020_vm4, %v7023_v34  ;;  %v1858_v41 = vpop.xlane.xlu1 %1857 }
 0x236   : > { %v7049_v57 = vmax.f32 %v7031_v37, %v1858_v41  ;;  %v7052_v29 = vmax.f32 %v2039_v62, %v7035_v51  ;;  %9647 = vst [vmem:[#allocation201_spill] sm:$0xff] %v7260_v54  ;;  %9650 = vst [vmem:[#allocation204_spill] sm:$0xff] %v7276_v31 }
 0x238   : > { %9596 = vst [vmem:[#allocation150_spill] sm:$0xff] %v7049_v57  ;;  %4087 = vst.msk [vmem:[#allocation2 + $0x10] sm:$0xff] %vm4020_vm4, %v7049_v57  ;;  %v7060_v20 = vpop.f32.mrb[80].mxu0  ;;  %v7062_v27 = vpop.f32.mrb[80].mxu1 }
 0x239   : > { %9598 = vst [vmem:[#allocation152_spill] sm:$0xff] %v7060_v20  ;;  %9599 = vst [vmem:[#allocation153_spill] sm:$0xff] %v7062_v27  ;;  %v1863_v36 = vpop.xlane.xlu1 %1862  ;;  %v7064_v9 = vpop.f32.mrb[81].mxu0 }
 0x23a   : > { %9600 = vst [vmem:[#allocation154_spill] sm:$0xff] %v7064_v9  ;;  %v7067_v41 = vmax.f32 %v7054_v30, %v1863_v36  ;;  %v2044_v62 = vmax.f32 %v7060_v20, %v7064_v9  ;;  %v7071_v51 = vpop.f32.mrb[82].mxu0  ;;  %v7073_v40 = vpop.f32.mrb[81].mxu1 }
 0x23b   : > { %9602 = vst [vmem:[#allocation156_spill] sm:$0xff] %v7071_v51  ;;  %v7077_v37 = vpop.f32.mrb[83].mxu0  ;;  %v7079_v48 = vpop.f32.mrb[82].mxu1 }
 0x23c   : > { %9601 = vst [vmem:[#allocation155_spill] sm:$0xff] %v7067_v41  ;;  %9604 = vst [vmem:[#allocation158_spill] sm:$0xff] %v7077_v37  ;;  %v2049_v36 = vmax.f32 %v7071_v51, %v7077_v37  ;;  %v7088_v9 = vmax.f32 %v2044_v62, %v7062_v27  ;;  %v7090_v20 = vpop.f32.mrb[83].mxu1 }
 0x23d   : > { %9605 = vst [vmem:[#allocation159_spill] sm:$0xff] %v7079_v48  ;;  %4088 = vst.msk [vmem:[#allocation2 + $0x18] sm:$0xff] %vm4020_vm4, %v7067_v41  ;;  %v1868_v43 = vpop.xlane.xlu0 %1867 }
 0x23e   : > { %v7095_v44 = vmax.f32 %v7075_v18, %v1868_v43  ;;  %v7098_v5 = vmax.f32 %v2049_v36, %v7079_v48 }
 0x23f   : > { %v1873_v4 = vpop.xlane.xlu1 %1872 }
 0x240   : > { %9607 = vst [vmem:[#allocation161_spill] sm:$0xff] %v7095_v44  ;;  %4089 = vst.msk [vmem:[#allocation2 + $0x20] sm:$0xff] %vm4020_vm4, %v7095_v44  ;;  %v7105_v62 = vmax.f32 %v7092_v46, %v1873_v4  ;;  %v7107_v27 = vpop.f32.mrb[84].mxu0  ;;  %v7109_v37 = vpop.f32.mrb[84].mxu1  ;;  %v7124_v4 = vld [vmem:[#allocation2 + $0x30] sm:$0xff] }
 0x241   : > { %9609 = vst [vmem:[#allocation163_spill] sm:$0xff] %v7107_v27  ;;  %9610 = vst [vmem:[#allocation164_spill] sm:$0xff] %v7109_v37  ;;  %v7111_v51 = vpop.f32.mrb[85].mxu0  ;;  %v7113_v43 = vpop.f32.mrb[85].mxu1 }
 0x242   : > { %9608 = vst [vmem:[#allocation162_spill] sm:$0xff] %v7105_v62  ;;  %9611 = vst [vmem:[#allocation165_spill] sm:$0xff] %v7111_v51  ;;  %v2054_v36 = vmax.f32 %v7107_v27, %v7111_v51  ;;  %v7119_v30 = vpop.f32.mrb[86].mxu0  ;;  %v7121_v18 = vpop.f32.mrb[86].mxu1  ;;  %v7135_v51 = vld [vmem:[#allocation2 + $0x38] sm:$0xff] }
 0x243   : > { %4090 = vst.msk [vmem:[#allocation2 + $0x28] sm:$0xff] %vm4020_vm4, %v7105_v62  ;;  %9612 = vst [vmem:[#allocation166_spill] sm:$0xff] %v7119_v30  ;;  %2555 = vperm.xlu1 %4833, %v7023_v34   ;;  %v7126_v46 = vpop.f32.mrb[87].mxu0  ;;  %v7128_v48 = vpop.f32.mrb[87].mxu1 }
 0x244   : > { %9613 = vst [vmem:[#allocation167_spill] sm:$0xff] %v7121_v18  ;;  %9614 = vst [vmem:[#allocation168_spill] sm:$0xff] %v7124_v4  ;;  %v2059_v13 = vmax.f32 %v7119_v30, %v7126_v46  ;;  %v7133_v63 = vmax.f32 %v2054_v36, %v7109_v37 }
 0x245   : > { %9615 = vst [vmem:[#allocation169_spill] sm:$0xff] %v7126_v46  ;;  %v1878_v11 = vpop.xlane.xlu0 %1877  ;;  %9616 = vst [vmem:[#allocation170_spill] sm:$0xff] %v7135_v51 }
 0x246   : > { %v7138_v27 = vmax.f32 %v7124_v4, %v1878_v11  ;;  %2550 = vperm.xlu0 %4832, %v7001_v6   ;;  %v7142_v34 = vmax.f32 %v2059_v13, %v7121_v18 }
 0x247   : > { %v1883_v14 = vpop.xlane.xlu1 %1882  ;;  %2560 = vperm.xlu1 %4833, %v7049_v57  }
 0x248   : > { %9617 = vst [vmem:[#allocation171_spill] sm:$0xff] %v7138_v27  ;;  %4091 = vst.msk [vmem:[#allocation2 + $0x30] sm:$0xff] %vm4020_vm4, %v7138_v27  ;;  %v7148_v36 = vmax.f32 %v7135_v51, %v1883_v14  ;;  %v7150_v37 = vpop.f32.mrb[88].mxu0  ;;  %v7152_v46 = vpop.f32.mrb[88].mxu1  ;;  %v7166_v14 = vld [vmem:[#allocation2 + $0x40] sm:$0xff] }
 0x249   : > { %9619 = vst [vmem:[#allocation173_spill] sm:$0xff] %v7150_v37  ;;  %9620 = vst [vmem:[#allocation174_spill] sm:$0xff] %v7152_v46  ;;  %v7154_v11 = vpop.f32.mrb[89].mxu0  ;;  %v7156_v4 = vpop.f32.mrb[89].mxu1 }
 0x24a   : > { %9618 = vst [vmem:[#allocation172_spill] sm:$0xff] %v7148_v36  ;;  %9621 = vst [vmem:[#allocation175_spill] sm:$0xff] %v7154_v11  ;;  %v2064_v13 = vmax.f32 %v7150_v37, %v7154_v11  ;;  %v7162_v6 = vpop.f32.mrb[90].mxu0  ;;  %v7164_v18 = vpop.f32.mrb[90].mxu1 }
 0x24b   : > { %4092 = vst.msk [vmem:[#allocation2 + $0x38] sm:$0xff] %vm4020_vm4, %v7148_v36  ;;  %9622 = vst [vmem:[#allocation176_spill] sm:$0xff] %v7162_v6  ;;  %v7168_v51 = vpop.f32.mrb[91].mxu0  ;;  %v7170_v30 = vpop.f32.mrb[91].mxu1 }
 0x24c   : > { %9623 = vst [vmem:[#allocation177_spill] sm:$0xff] %v7164_v18  ;;  %9624 = vst [vmem:[#allocation178_spill] sm:$0xff] %v7166_v14  ;;  %v7173_v57 = vmax.f32 %v2064_v13, %v7152_v46  ;;  %v2069_v12 = vmax.f32 %v7162_v6, %v7168_v51 }
 0x24d   : > { %9625 = vst [vmem:[#allocation179_spill] sm:$0xff] %v7168_v51  ;;  %v1888_v45 = vpop.xlane.xlu0 %1887 }
 0x24e   : > { %v7180_v11 = vmax.f32 %v7166_v14, %v1888_v45  ;;  %v7183_v37 = vmax.f32 %v2069_v12, %v7164_v18  ;;  %v7204_v14 = vld [vmem:[#allocation2 + $0x50] sm:$0xff]  ;;  %v4910_v18 = vld [vmem:[%s6072_s25 + $0xe0] sm:$0xff]  }
 0x24f   : > { %v1893_v47 = vpop.xlane.xlu1 %1892  ;;  %9632 = vst [vmem:[#allocation186_spill] sm:$0xff] %v7204_v14  ;;  %1114 = vmatmul.mubr.bf16.gmra.mrb[112].mxu0 %v4910_v18  ;;  %1467 = vmatmul.mubr.bf16.gmra.mrb[112].mxu1 %v4910_v18 }
 0x250   : > { %9627 = vst [vmem:[#allocation181_spill] sm:$0xff] %v7180_v11  ;;  %4093 = vst.msk [vmem:[#allocation2 + $0x40] sm:$0xff] %vm4020_vm4, %v7180_v11  ;;  %v7188_v13 = vmax.f32 %v7177_v61, %v1893_v47  ;;  %v7190_v46 = vpop.f32.mrb[92].mxu0  ;;  %v7192_v51 = vpop.f32.mrb[92].mxu1  ;;  %v7218_v61 = vld [vmem:[#allocation2 + $0x58] sm:$0xff]  ;;  %1123 = vmatprep.mubr.bf16.mxu0 %v9519_v59  ;;  %1476 = vmatprep.mubr.bf16.mxu1 %v9519_v59 }
 0x251   : > { %9629 = vst [vmem:[#allocation183_spill] sm:$0xff] %v7190_v46  ;;  %9630 = vst [vmem:[#allocation184_spill] sm:$0xff] %v7192_v51  ;;  %v7194_v6 = vpop.f32.mrb[93].mxu0  ;;  %v7196_v55 = vpop.f32.mrb[93].mxu1 }
 0x252   : > { %9628 = vst [vmem:[#allocation182_spill] sm:$0xff] %v7188_v13  ;;  %9631 = vst [vmem:[#allocation185_spill] sm:$0xff] %v7194_v6  ;;  %v2074_v12 = vmax.f32 %v7190_v46, %v7194_v6  ;;  %v7206_v47 = vpop.f32.mrb[94].mxu0  ;;  %v7209_v58 = vpop.f32.mrb[94].mxu1 }
 0x253   : > { %4094 = vst.msk [vmem:[#allocation2 + $0x48] sm:$0xff] %vm4020_vm4, %v7188_v13  ;;  %9633 = vst [vmem:[#allocation187_spill] sm:$0xff] %v7206_v47  ;;  %v7214_v53 = vpop.f32.mrb[95].mxu0  ;;  %v7216_v60 = vpop.f32.mrb[95].mxu1 }
 0x254   : > { %9634 = vst [vmem:[#allocation188_spill] sm:$0xff] %v7209_v58  ;;  %v7212_v56 = vmax.f32 %v2074_v12, %v7192_v51  ;;  %9635 = vst [vmem:[#allocation189_spill] sm:$0xff] %v7214_v53  ;;  %v2079_v6 = vmax.f32 %v7206_v47, %v7214_v53 }
 0x255   : > { %9636 = vst [vmem:[#allocation190_spill] sm:$0xff] %v7216_v60  ;;  %v1898_v45 = vpop.xlane.xlu0 %1897  ;;  %9637 = vst [vmem:[#allocation191_spill] sm:$0xff] %v7218_v61 }
 0x256   : > { %v7223_v46 = vmax.f32 %v7204_v14, %v1898_v45  ;;  %v7228_v51 = vmax.f32 %v2079_v6, %v7209_v58  ;;  %v7247_v58 = vld [vmem:[#allocation2 + $0x60] sm:$0xff] }
 0x257   : > { %v1903_v12 = vpop.xlane.xlu1 %1902  ;;  %9644 = vst [vmem:[#allocation198_spill] sm:$0xff] %v7247_v58 }
 0x258   : > { %9638 = vst [vmem:[#allocation192_spill] sm:$0xff] %v7223_v46  ;;  %9639 = vst [vmem:[#allocation193_spill] sm:$0xff] %v7228_v51  ;;  %v7233_v60 = vmax.f32 %v7218_v61, %v1903_v12  ;;  %v7235_v53 = vpop.f32.mrb[96].mxu0  ;;  %v7237_v18 = vpop.f32.mrb[96].mxu1  ;;  %v7252_v61 = vld [vmem:[#allocation2 + $0x68] sm:$0xff] }
 0x259   : > { %4095 = vst.msk [vmem:[#allocation2 + $0x50] sm:$0xff] %vm4020_vm4, %v7223_v46  ;;  %9641 = vst [vmem:[#allocation195_spill] sm:$0xff] %v7235_v53  ;;  %v7239_v45 = vpop.f32.mrb[97].mxu0  ;;  %v7241_v14 = vpop.f32.mrb[97].mxu1 }
 0x25a   : > { %9640 = vst [vmem:[#allocation194_spill] sm:$0xff] %v7233_v60  ;;  %9642 = vst [vmem:[#allocation196_spill] sm:$0xff] %v7237_v18  ;;  %v2084_v6 = vmax.f32 %v7235_v53, %v7239_v45  ;;  %v7278_v53 = vld [vmem:[#allocation2 + $0x78] sm:$0xff] }
 0x25b   : > { %9643 = vst [vmem:[#allocation197_spill] sm:$0xff] %v7239_v45  ;;  %4096 = vst.msk [vmem:[#allocation2 + $0x58] sm:$0xff] %vm4020_vm4, %v7233_v60 }
 0x25c   : > { %v7250_v47 = vmax.f32 %v2084_v6, %v7237_v18  ;;  %9645 = vst [vmem:[#allocation199_spill] sm:$0xff] %v7252_v61  ;;  %v2036_v6 = vmax.f32 %v7044_v25, %v7260_v54  ;;  %9651 = vst [vmem:[#allocation205_spill] sm:$0xff] %v7278_v53  ;;  %v7285_v25 = vsel %vm6464_vm3, %v7046_v15, -inf  ;;  %v7376_v54 = vpop.f32.mrb[98].mxu0 }
 0x25d   : > { %v1908_v12 = vpop.xlane.xlu0 %1907  ;;  %9652 = vst [vmem:[#allocation206_spill] sm:$0xff] %v7285_v25  ;;  %9675 = vst [vmem:[#allocation229_spill] sm:$0xff] %v7376_v54 }
 0x25e   : > { %v7255_v51 = vmax.f32 %v7247_v58, %v1908_v12  ;;  %v7274_v12 = vsel %vm6464_vm3, %v7073_v40, -inf  ;;  %v7293_v40 = vsel %vm6464_vm3, %v7113_v43, -inf  ;;  %v7309_v43 = vsel %vm6464_vm3, %v7156_v4, -inf }
 0x25f   : > { %v1913_v49 = vpop.xlane.xlu1 %1912  ;;  %9649 = vst [vmem:[#allocation203_spill] sm:$0xff] %v7274_v12  ;;  %9654 = vst [vmem:[#allocation208_spill] sm:$0xff] %v7293_v40  ;;  %v2056_v15 = vmax.f32 %v7133_v63, %v7293_v40  ;;  %v7359_v40 = vld [vmem:[#allocation2 + $0xb8] sm:$0xff] }
 0x260   : > { %9646 = vst [vmem:[#allocation200_spill] sm:$0xff] %v7255_v51  ;;  %4097 = vst.msk [vmem:[#allocation2 + $0x60] sm:$0xff] %vm4020_vm4, %v7255_v51  ;;  %v7265_v45 = vmax.f32 %v7252_v61, %v1913_v49  ;;  %v2046_v49 = vmax.f32 %v7088_v9, %v7274_v12  ;;  %v2041_v9 = vmax.f32 %v7052_v29, %v7285_v25 }
 0x261   : > { %9656 = vst [vmem:[#allocation210_spill] sm:$0xff] %v7309_v43  ;;  %v2066_v29 = vmax.f32 %v7173_v57, %v7309_v43  ;;  %9670 = vst [vmem:[#allocation224_spill] sm:$0xff] %v7359_v40 }
 0x262   : > { %9648 = vst [vmem:[#allocation202_spill] sm:$0xff] %v7265_v45  ;;  %4098 = vst.msk [vmem:[#allocation2 + $0x68] sm:$0xff] %vm4020_vm4, %v7265_v45 }
 0x265   : > { %v1918_v18 = vpop.xlane.xlu0 %1917  ;;  %2037 = vmax.xlane.f32.xlu0 %v2036_v6 }
 0x266   : > { %v7288_v61 = vmax.f32 %v7276_v31, %v1918_v18  ;;  %v7311_v18 = vld [vmem:[#allocation2 + $0x80] sm:$0xff]  ;;  %v7329_v31 = vld [vmem:[#allocation2 + $0x98] sm:$0xff] }
 0x267   : > { %v1923_v58 = vpop.xlane.xlu1 %1922  ;;  %9657 = vst [vmem:[#allocation211_spill] sm:$0xff] %v7311_v18  ;;  %9662 = vst [vmem:[#allocation216_spill] sm:$0xff] %v7329_v31 }
 0x268   : > { %9653 = vst [vmem:[#allocation207_spill] sm:$0xff] %v7288_v61  ;;  %4099 = vst.msk [vmem:[#allocation2 + $0x70] sm:$0xff] %vm4020_vm4, %v7288_v61  ;;  %v7298_v6 = vmax.f32 %v7278_v53, %v1923_v58 }
 0x269   : > { %2047 = vmax.xlane.f32.xlu0 %v2046_v49  ;;  %v7313_v49 = vld [vmem:[#allocation2 + $0x88] sm:$0xff] }
 0x26a   : > { %9655 = vst [vmem:[#allocation209_spill] sm:$0xff] %v7298_v6  ;;  %4100 = vst.msk [vmem:[#allocation2 + $0x78] sm:$0xff] %vm4020_vm4, %v7298_v6 }
 0x26b   : > { %2042 = vmax.xlane.f32.xlu1 %v2041_v9  ;;  %9658 = vst [vmem:[#allocation212_spill] sm:$0xff] %v7313_v49  ;;  %v7327_v9 = vld [vmem:[#allocation2 + $0x90] sm:$0xff] }
 0x26c   : > { %9661 = vst [vmem:[#allocation215_spill] sm:$0xff] %v7327_v9 }
 0x26d   : > { %v1928_v58 = vpop.xlane.xlu0 %1927  ;;  %2057 = vmax.xlane.f32.xlu0 %v2056_v15 }
 0x26e   : > { %v7318_v63 = vmax.f32 %v7311_v18, %v1928_v58 }
 0x26f   : > { %v1933_v53 = vpop.xlane.xlu1 %1932 }
 0x270   : > { %9659 = vst [vmem:[#allocation213_spill] sm:$0xff] %v7318_v63  ;;  %4101 = vst.msk [vmem:[#allocation2 + $0x80] sm:$0xff] %vm4020_vm4, %v7318_v63  ;;  %v7323_v4 = vmax.f32 %v7313_v49, %v1933_v53  ;;  %v7341_v53 = vld [vmem:[#allocation2 + $0xa0] sm:$0xff]  ;;  %v7344_v49 = vld [vmem:[#allocation2 + $0xa8] sm:$0xff] }
 0x271   : > { %2067 = vmax.xlane.f32.xlu0 %v2066_v29  ;;  %9665 = vst [vmem:[#allocation219_spill] sm:$0xff] %v7341_v53  ;;  %9666 = vst [vmem:[#allocation220_spill] sm:$0xff] %v7344_v49 }
 0x272   : > { %9660 = vst [vmem:[#allocation214_spill] sm:$0xff] %v7323_v4  ;;  %4102 = vst.msk [vmem:[#allocation2 + $0x88] sm:$0xff] %vm4020_vm4, %v7323_v4 }
 0x275   : > { %v1938_v15 = vpop.xlane.xlu0 %1937 }
 0x276   : > { %v7332_v57 = vmax.f32 %v7327_v9, %v1938_v15 }
 0x277   : > { %v1943_v58 = vpop.xlane.xlu1 %1942 }
 0x278   : > { %9663 = vst [vmem:[#allocation217_spill] sm:$0xff] %v7332_v57  ;;  %4103 = vst.msk [vmem:[#allocation2 + $0x90] sm:$0xff] %vm4020_vm4, %v7332_v57  ;;  %v7337_v18 = vmax.f32 %v7329_v31, %v1943_v58  ;;  %v7357_v31 = vld [vmem:[#allocation2 + $0xb0] sm:$0xff] }
 0x279   : > { %9669 = vst [vmem:[#allocation223_spill] sm:$0xff] %v7357_v31 }
 0x27a   : > { %9664 = vst [vmem:[#allocation218_spill] sm:$0xff] %v7337_v18  ;;  %4104 = vst.msk [vmem:[#allocation2 + $0x98] sm:$0xff] %vm4020_vm4, %v7337_v18 }
 0x27c   : > { %2565 = vperm.xlu1 %4833, %v7067_v41   ;;  %v7374_v41 = vld [vmem:[#allocation2 + $0xc8] sm:$0xff] }
 0x27d   : > { %v1948_v29 = vpop.xlane.xlu0 %1947  ;;  %9674 = vst [vmem:[#allocation228_spill] sm:$0xff] %v7374_v41 }
 0x27e   : > { %v7347_v15 = vmax.f32 %v7341_v53, %v1948_v29 }
 0x27f   : > { %v1953_v9 = vpop.xlane.xlu1 %1952 }
 0x280   : > { %9667 = vst [vmem:[#allocation221_spill] sm:$0xff] %v7347_v15  ;;  %4105 = vst.msk [vmem:[#allocation2 + $0xa0] sm:$0xff] %vm4020_vm4, %v7347_v15  ;;  %v7352_v58 = vmax.f32 %v7344_v49, %v1953_v9  ;;  %2570 = vperm.xlu1 %4833, %v7095_v44   ;;  %v7372_v49 = vld [vmem:[#allocation2 + $0xc0] sm:$0xff]  ;;  %v7384_v44 = vpop.f32.mrb[98].mxu1 }
 0x281   : > { %9673 = vst [vmem:[#allocation227_spill] sm:$0xff] %v7372_v49  ;;  %9678 = vst [vmem:[#allocation232_spill] sm:$0xff] %v7384_v44 }
 0x282   : > { %9668 = vst [vmem:[#allocation222_spill] sm:$0xff] %v7352_v58  ;;  %4106 = vst.msk [vmem:[#allocation2 + $0xa8] sm:$0xff] %vm4020_vm4, %v7352_v58 }
 0x285   : > { %v1958_v43 = vpop.xlane.xlu0 %1957 }
 0x286   : > { %v7362_v29 = vmax.f32 %v7357_v31, %v1958_v43  ;;  %v7381_v31 = vpop.f32.mrb[99].mxu0 }
 0x287   : > { %v1963_v53 = vpop.xlane.xlu1 %1962  ;;  %2595 = vperm.xlu0 %4832, %v7188_v13   ;;  %9677 = vst [vmem:[#allocation231_spill] sm:$0xff] %v7381_v31  ;;  %v4911_v13 = vld [vmem:[%s6072_s25 + $0xe8] sm:$0xff]   ;;  %v7388_v25 = vpop.f32.mrb[100].mxu0 }
 0x288   : > { %9671 = vst [vmem:[#allocation225_spill] sm:$0xff] %v7362_v29  ;;  %4107 = vst.msk [vmem:[#allocation2 + $0xb0] sm:$0xff] %vm4020_vm4, %v7362_v29  ;;  %v7368_v9 = vmax.f32 %v7359_v40, %v1963_v53  ;;  %v2089_v40 = vmax.f32 %v7376_v54, %v7381_v31  ;;  %v7395_v15 = vpop.f32.mrb[101].mxu0  ;;  %1124 = vmatmul.mubr.bf16.gmra.mrb[116].mxu0 %v4911_v13  ;;  %1477 = vmatmul.mubr.bf16.gmra.mrb[116].mxu1 %v4911_v13 }
 0x289   : > { %9679 = vst [vmem:[#allocation233_spill] sm:$0xff] %v7388_v25  ;;  %9681 = vst [vmem:[#allocation235_spill] sm:$0xff] %v7395_v15  ;;  %1133 = vmatprep.mubr.bf16.mxu0 %v9519_v59  ;;  %1486 = vmatprep.mubr.bf16.mxu1 %v9519_v59 }
 0x28a   : > { %9672 = vst [vmem:[#allocation226_spill] sm:$0xff] %v7368_v9  ;;  %4108 = vst.msk [vmem:[#allocation2 + $0xb8] sm:$0xff] %vm4020_vm4, %v7368_v9  ;;  %v7402_v57 = vmax.f32 %v2089_v40, %v7384_v44 }
 0x28d   : > { %v1968_v12 = vpop.xlane.xlu0 %1967 }
 0x28e   : > { %v7379_v43 = vmax.f32 %v7372_v49, %v1968_v12  ;;  %v7397_v12 = vpop.f32.mrb[99].mxu1  ;;  %v2094_v49 = vmax.f32 %v7388_v25, %v7395_v15  ;;  %v7417_v25 = vld [vmem:[#allocation2 + $0xd8] sm:$0xff] }
 0x28f   : > { %v1973_v53 = vpop.xlane.xlu1 %1972  ;;  %v7404_v31 = vpop.f32.mrb[100].mxu1  ;;  %9684 = vst [vmem:[#allocation238_spill] sm:$0xff] %v7417_v25 }
 0x290   : > { %9676 = vst [vmem:[#allocation230_spill] sm:$0xff] %v7379_v43  ;;  %4109 = vst.msk [vmem:[#allocation2 + $0xc0] sm:$0xff] %vm4020_vm4, %v7379_v43  ;;  %v7393_v29 = vmax.f32 %v7374_v41, %v1973_v53  ;;  %v7410_v53 = vpop.f32.mrb[101].mxu1  ;;  %v7412_v41 = vld [vmem:[#allocation2 + $0xd0] sm:$0xff]  ;;  %v7415_v13 = vmax.f32 %v2094_v49, %v7404_v31  ;;  %v7429_v43 = vld [vmem:[#allocation2 + $0xe0] sm:$0xff] }
 0x291   : > { %9682 = vst [vmem:[#allocation236_spill] sm:$0xff] %v7404_v31  ;;  %9683 = vst [vmem:[#allocation237_spill] sm:$0xff] %v7412_v41  ;;  %v7431_v31 = vld [vmem:[#allocation2 + $0xe8] sm:$0xff] }
 0x292   : > { %9680 = vst [vmem:[#allocation234_spill] sm:$0xff] %v7393_v29  ;;  %4110 = vst.msk [vmem:[#allocation2 + $0xc8] sm:$0xff] %vm4020_vm4, %v7393_v29 }
 0x293   : > { %9687 = vst [vmem:[#allocation241_spill] sm:$0xff] %v7429_v43  ;;  %9688 = vst [vmem:[#allocation242_spill] sm:$0xff] %v7431_v31 }
 0x295   : > { %v1978_v15 = vpop.xlane.xlu0 %1977 }
 0x296   : > { %v7420_v40 = vmax.f32 %v7412_v41, %v1978_v15  ;;  %v7439_v15 = vsel %vm6464_vm3, %v7090_v20, -inf }
 0x297   : > { %v1983_v44 = vpop.xlane.xlu1 %1982  ;;  %9690 = vst [vmem:[#allocation244_spill] sm:$0xff] %v7439_v15 }
 0x298   : > { %9685 = vst [vmem:[#allocation239_spill] sm:$0xff] %v7420_v40  ;;  %4111 = vst.msk [vmem:[#allocation2 + $0xd0] sm:$0xff] %vm4020_vm4, %v7420_v40  ;;  %v7425_v54 = vmax.f32 %v7417_v25, %v1983_v44  ;;  %v7444_v44 = vsel %vm6464_vm3, %v7196_v55, -inf  ;;  %v7459_v40 = vld [vmem:[#allocation2 + $0xf8] sm:$0xff] }
 0x299   : > { %9691 = vst [vmem:[#allocation245_spill] sm:$0xff] %v7444_v44  ;;  %v2076_v20 = vmax.f32 %v7212_v56, %v7444_v44  ;;  %9694 = vst [vmem:[#allocation248_spill] sm:$0xff] %v7459_v40  ;;  %v7471_v56 = vld [vmem:[#allocation2 + $0x100] sm:$0xff] }
 0x29a   : > { %9686 = vst [vmem:[#allocation240_spill] sm:$0xff] %v7425_v54  ;;  %4112 = vst.msk [vmem:[#allocation2 + $0xd8] sm:$0xff] %vm4020_vm4, %v7425_v54 }
 0x29b   : > { %9697 = vst [vmem:[#allocation251_spill] sm:$0xff] %v7471_v56 }
 0x29d   : > { %v1988_v49 = vpop.xlane.xlu0 %1987 }
 0x29e   : > { %v7434_v29 = vmax.f32 %v7429_v43, %v1988_v49  ;;  %v2051_v49 = vmax.f32 %v7098_v5, %v7439_v15  ;;  %v7457_v43 = vld [vmem:[#allocation2 + $0xf0] sm:$0xff] }
 0x29f   : > { %v1993_v41 = vpop.xlane.xlu1 %1992  ;;  %9693 = vst [vmem:[#allocation247_spill] sm:$0xff] %v7457_v43 }
 0x2a0   : > { %9689 = vst [vmem:[#allocation243_spill] sm:$0xff] %v7434_v29  ;;  %4113 = vst.msk [vmem:[#allocation2 + $0xe0] sm:$0xff] %vm4020_vm4, %v7434_v29  ;;  %v7449_v25 = vmax.f32 %v7431_v31, %v1993_v41 }
 0x2a2   : > { %9692 = vst [vmem:[#allocation246_spill] sm:$0xff] %v7449_v25  ;;  %4114 = vst.msk [vmem:[#allocation2 + $0xe8] sm:$0xff] %vm4020_vm4, %v7449_v25 }
 0x2a4   : > { %2052 = vmax.xlane.f32.xlu1 %v2051_v49  ;;  %v7473_v49 = vld [vmem:[#allocation2 + $0x108] sm:$0xff] }
 0x2a5   : > { %v1998_v55 = vpop.xlane.xlu0 %1997  ;;  %9698 = vst [vmem:[#allocation252_spill] sm:$0xff] %v7473_v49 }
 0x2a6   : > { %v7462_v29 = vmax.f32 %v7457_v43, %v1998_v55  ;;  %2077 = vmax.xlane.f32.xlu0 %v2076_v20  ;;  %v7488_v43 = vld [vmem:[#allocation2 + $0x118] sm:$0xff] }
 0x2a7   : > { %v2003_v41 = vpop.xlane.xlu1 %2002  ;;  %9702 = vst [vmem:[#allocation256_spill] sm:$0xff] %v7488_v43 }
 0x2a8   : > { %9695 = vst [vmem:[#allocation249_spill] sm:$0xff] %v7462_v29  ;;  %4115 = vst.msk [vmem:[#allocation2 + $0xf0] sm:$0xff] %vm4020_vm4, %v7462_v29  ;;  %v7467_v31 = vmax.f32 %v7459_v40, %v2003_v41  ;;  %v7485_v41 = vld [vmem:[#allocation2 + $0x110] sm:$0xff] }
 0x2a9   : > { %9701 = vst [vmem:[#allocation255_spill] sm:$0xff] %v7485_v41 }
 0x2aa   : > { %9696 = vst [vmem:[#allocation250_spill] sm:$0xff] %v7467_v31  ;;  %4116 = vst.msk [vmem:[#allocation2 + $0xf8] sm:$0xff] %vm4020_vm4, %v7467_v31 }
 0x2ad   : > { %v2008_v5 = vpop.xlane.xlu0 %2007 }
 0x2ae   : > { %v7476_v44 = vmax.f32 %v7471_v56, %v2008_v5 }
 0x2af   : > { %v2013_v55 = vpop.xlane.xlu1 %2012 }
 0x2b0   : > { %9699 = vst [vmem:[#allocation253_spill] sm:$0xff] %v7476_v44  ;;  %4117 = vst.msk [vmem:[#allocation2 + $0x100] sm:$0xff] %vm4020_vm4, %v7476_v44  ;;  %v7481_v20 = vmax.f32 %v7473_v49, %v2013_v55  ;;  %v7501_v49 = vld [vmem:[#allocation2 + $0x120] sm:$0xff] }
 0x2b1   : > { %9705 = vst [vmem:[#allocation259_spill] sm:$0xff] %v7501_v49 }
 0x2b2   : > { %9700 = vst [vmem:[#allocation254_spill] sm:$0xff] %v7481_v20  ;;  %4118 = vst.msk [vmem:[#allocation2 + $0x108] sm:$0xff] %vm4020_vm4, %v7481_v20 }
 0x2b5   : > { %v2018_v40 = vpop.xlane.xlu0 %2017  ;;  %2575 = vperm.xlu1 %4833, %v7105_v62  }
 0x2b6   : > { %v7491_v5 = vmax.f32 %v7485_v41, %v2018_v40  ;;  %v7504_v40 = vld [vmem:[#allocation2 + $0x128] sm:$0xff] }
 0x2b7   : > { %v2023_v56 = vpop.xlane.xlu1 %2022  ;;  %9706 = vst [vmem:[#allocation260_spill] sm:$0xff] %v7504_v40 }
 0x2b8   : > { %9703 = vst [vmem:[#allocation257_spill] sm:$0xff] %v7491_v5  ;;  %4119 = vst.msk [vmem:[#allocation2 + $0x110] sm:$0xff] %vm4020_vm4, %v7491_v5  ;;  %v7496_v55 = vmax.f32 %v7488_v43, %v2023_v56  ;;  %v7516_v43 = vpop.f32.mrb[102].mxu0  ;;  %v4912_v5 = vld [vmem:[%s6072_s25 + $0xf0] sm:$0xff]  }
 0x2b9   : > { %2580 = vperm.xlu1 %4833, %v7138_v27   ;;  %9709 = vst [vmem:[#allocation263_spill] sm:$0xff] %v7516_v43  ;;  %1134 = vmatmul.mubr.bf16.gmra.mrb[120].mxu0 %v4912_v5 }
 0x2ba   : > { %9704 = vst [vmem:[#allocation258_spill] sm:$0xff] %v7496_v55  ;;  %4120 = vst.msk [vmem:[#allocation2 + $0x118] sm:$0xff] %vm4020_vm4, %v7496_v55  ;;  %1487 = vmatmul.mubr.bf16.gmra.mrb[120].mxu1 %v4912_v5  ;;  %1143 = vmatprep.mubr.bf16.mxu0 %v9519_v59 }
 0x2bb   : > { %1496 = vmatprep.mubr.bf16.mxu1 %v9519_v59 }
 0x2bc   : > { %2605 = vperm.xlu0 %4832, %v7233_v60   ;;  %v7520_v60 = vpop.f32.mrb[103].mxu0 }
 0x2bd   : > { %v2028_v62 = vpop.xlane.xlu0 %2027  ;;  %9711 = vst [vmem:[#allocation265_spill] sm:$0xff] %v7520_v60 }
 0x2be   : > { %v7507_v41 = vmax.f32 %v7501_v49, %v2028_v62 }
 0x2bf   : > { %v2033_v15 = vpop.xlane.xlu1 %2032 }
 0x2c0   : > { %9707 = vst [vmem:[#allocation261_spill] sm:$0xff] %v7507_v41  ;;  %4121 = vst.msk [vmem:[#allocation2 + $0x120] sm:$0xff] %vm4020_vm4, %v7507_v41  ;;  %v7512_v56 = vmax.f32 %v7504_v40, %v2033_v15  ;;  %v7527_v41 = vpop.f32.mrb[104].mxu0 }
 0x2c1   : > { %9712 = vst [vmem:[#allocation266_spill] sm:$0xff] %v7527_v41  ;;  %v7533_v44 = vpop.f32.mrb[105].mxu0 }
 0x2c2   : > { %9708 = vst [vmem:[#allocation262_spill] sm:$0xff] %v7512_v56  ;;  %4122 = vst.msk [vmem:[#allocation2 + $0x128] sm:$0xff] %vm4020_vm4, %v7512_v56 }
 0x2c3   : > { %v7518_v27 = vpop.permute.xlu1 %2555  ;;  %9714 = vst [vmem:[#allocation268_spill] sm:$0xff] %v7533_v44 }
 0x2c4   : > { %9710 = vst [vmem:[#allocation264_spill] sm:$0xff] %v7518_v27  ;;  %v2872_v62 = vsub.f32 %v6472_v7, %v7518_v27  ;;  %v2873_v49 = vsub.f32 %v6480_v10, %v7518_v27  ;;  %v2874_v15 = vsub.f32 %v6474_v8, %v7518_v27  ;;  %v7537_v7 = vpop.f32.mrb[102].mxu1 }
 0x2c5   : > { %v7531_v40 = vpop.permute.xlu0 %2550  ;;  %9715 = vst [vmem:[#allocation269_spill] sm:$0xff] %v7537_v7  ;;  %v7547_v5 = vpop.f32.mrb[103].mxu1 }
 0x2c6   : > { %9713 = vst [vmem:[#allocation267_spill] sm:$0xff] %v7531_v40  ;;  %v3132_v29 = vmul.f32 1.442695, %v2872_v62  ;;  %v3134_v56 = vmul.f32 1.442695, %v2873_v49  ;;  %v2868_v55 = vsub.f32 %v6460_v0, %v7531_v40  ;;  %v2869_v8 = vsub.f32 %v6468_v3, %v7531_v40  ;;  %v7551_v62 = vpop.f32.mrb[104].mxu1 }
 0x2c7   : > { %v3136_v10 = vmul.f32 1.442695, %v2874_v15  ;;  %v2870_v27 = vsub.f32 %v6462_v1, %v7531_v40  ;;  %v7545_v20 = vpop.permute.xlu1 %2560  ;;  %9716 = vst [vmem:[#allocation270_spill] sm:$0xff] %v7551_v62  ;;  %v7555_v3 = vpop.f32.mrb[105].mxu1 }
 0x2c8   : > { %4914 = vpow2.f32 %v3132_v29  ;;  %v3124_v49 = vmul.f32 1.442695, %v2868_v55  ;;  %v2876_v0 = vsub.f32 %v6489_v17, %v7545_v20  ;;  %v3126_v59 = vmul.f32 1.442695, %v2869_v8 }
 0x2c9   : > { %4916 = vpow2.f32 %v3134_v56  ;;  %v2877_v15 = vsub.f32 %v6495_v19, %v7545_v20  ;;  %v3128_v1 = vmul.f32 1.442695, %v2870_v27  ;;  %v2878_v40 = vsub.f32 %v6487_v16, %v7545_v20 }
 0x2ca   : > { %4918 = vpow2.f32 %v3136_v10  ;;  %v2099_v29 = vmax.f32 %v7516_v43, %v7520_v60  ;;  %v3140_v55 = vmul.f32 1.442695, %v2876_v0  ;;  %v2104_v17 = vmax.f32 %v7527_v41, %v7533_v44 }
 0x2cb   : > { %4920 = vpow2.f32 %v3124_v49  ;;  %v3142_v56 = vmul.f32 1.442695, %v2877_v15  ;;  %v3144_v27 = vmul.f32 1.442695, %v2878_v40  ;;  %v7572_v49 = vsel %vm6464_vm3, %v7241_v14, -inf }
 0x2cc   : > { %4922 = vpow2.f32 %v3126_v59  ;;  %v7564_v8 = vmax.f32 %v2099_v29, %v7537_v7  ;;  %v7567_v19 = vmax.f32 %v2104_v17, %v7551_v62  ;;  %9717 = vst [vmem:[#allocation271_spill] sm:$0xff] %v7572_v49  ;;  %v7581_v40 = vsel %vm6464_vm3, %v7128_v48, -inf  ;;  %v7590_v48 = vld [vmem:[#allocation2 + $0x130] sm:$0xff] }
 0x2cd   : > { %4924 = vpow2.f32 %v3128_v1  ;;  %v2086_v1 = vmax.f32 %v7250_v47, %v7572_v49  ;;  %9718 = vst [vmem:[#allocation272_spill] sm:$0xff] %v7590_v48 }
 0x2ce   : > { %4926 = vpow2.f32 %v3140_v55 }
 0x2cf   : > { %4928 = vpow2.f32 %v3142_v56 }
 0x2d0   : > { %4930 = vpow2.f32 %v3144_v27 }
 0x2d2   : > { %v4915_v16 = vpop.eup %4914 }
 0x2d3   : > { %v4917_v10 = vpop.eup %4916 }
 0x2d4   : > { %v3641_v0 = vadd.f32 %v4917_v10, %v4915_v16  ;;  %v4919_v59 = vpop.eup %4918  ;;  %v2061_v16 = vmax.f32 %v7142_v34, %v7581_v40  ;;  %v7601_v34 = vld [vmem:[#allocation2 + $0x138] sm:$0xff] }
 0x2d5   : > { %v4921_v15 = vpop.eup %4920  ;;  %9720 = vst [vmem:[#allocation274_spill] sm:$0xff] %v7601_v34 }
 0x2d6   : > { %v7574_v29 = vadd.f32 %v4919_v59, %v3641_v0  ;;  %v4923_v44 = vpop.eup %4922 }
 0x2d7   : > { %v3636_v55 = vadd.f32 %v4923_v44, %v4921_v15  ;;  %v4925_v17 = vpop.eup %4924  ;;  %v7597_v15 = vld [vmem:[#allocation2 + $0x140] sm:$0xff] }
 0x2d8   : > { %v4927_v56 = vpop.eup %4926  ;;  %9719 = vst [vmem:[#allocation273_spill] sm:$0xff] %v7597_v15 }
 0x2d9   : > { %v7583_v27 = vadd.f32 %v4925_v17, %v3636_v55  ;;  %v4929_v14 = vpop.eup %4928  ;;  %v7606_v17 = vpop.f32.mrb[106].mxu0 }
 0x2da   : > { %v3646_v10 = vadd.f32 %v4929_v14, %v4927_v56  ;;  %v4931_v0 = vpop.eup %4930  ;;  %9721 = vst [vmem:[#allocation275_spill] sm:$0xff] %v7606_v17  ;;  %v7608_v14 = vld [vmem:[#allocation2 + $0x150] sm:$0xff] }
 0x2db   : > { %2087 = vmax.xlane.f32.xlu0 %v2086_v1  ;;  %9722 = vst [vmem:[#allocation276_spill] sm:$0xff] %v7608_v14 }
 0x2dc   : > { %v7587_v59 = vadd.f32 %v4931_v0, %v3646_v10  ;;  %v4913_v10 = vld [vmem:[%s6072_s25 + $0xf8] sm:$0xff]  }
 0x2dd   : > { %2062 = vmax.xlane.f32.xlu1 %v2061_v16  ;;  %v7610_v16 = vpop.f32.mrb[107].mxu0  ;;  %1144 = vmatmul.mubr.bf16.gmra.mrb[124].mxu0 %v4913_v10 }
 0x2de   : > { %9723 = vst [vmem:[#allocation277_spill] sm:$0xff] %v7610_v16  ;;  %1497 = vmatmul.mubr.bf16.gmra.mrb[124].mxu1 %v4913_v10 }
 0x2ee   : > { %2585 = vperm.xlu1 %4833, %v7148_v36  }
 0x2f1   : > { %2615 = vperm.xlu0 %4832, %v7265_v45   ;;  %v7635_v45 = vld [vmem:[#allocation2 + $0x160] sm:$0xff] }
 0x2f2   : > { %2590 = vperm.xlu1 %4833, %v7180_v11   ;;  %v2038_v47 = vpop.xlane.xlu0 %2037  ;;  %9728 = vst [vmem:[#allocation282_spill] sm:$0xff] %v7635_v45 }
 0x2f3   : > { %v7595_v44 = vmax.f32 %v7590_v48, %v2038_v47  ;;  %v7618_v47 = vpop.f32.mrb[108].mxu0 }
 0x2f4   : > { %9725 = vst [vmem:[#allocation279_spill] sm:$0xff] %v7618_v47 }
 0x2f5   : > { %4123 = vst.msk [vmem:[#allocation2 + $0x130] sm:$0xff] %vm4020_vm4, %v7595_v44 }
 0x2f6   : > { %v2048_v1 = vpop.xlane.xlu0 %2047 }
 0x2f7   : > { %v7604_v55 = vmax.f32 %v7597_v15, %v2048_v1  ;;  %v2109_v1 = vmax.f32 %v7606_v17, %v7610_v16  ;;  %v7622_v15 = vpop.f32.mrb[109].mxu0 }
 0x2f8   : > { %v2043_v56 = vpop.xlane.xlu1 %2042  ;;  %9726 = vst [vmem:[#allocation280_spill] sm:$0xff] %v7622_v15 }
 0x2f9   : > { %v7614_v0 = vmax.f32 %v7601_v34, %v2043_v56  ;;  %4125 = vst.msk [vmem:[#allocation2 + $0x140] sm:$0xff] %vm4020_vm4, %v7604_v55  ;;  %v2114_v56 = vmax.f32 %v7618_v47, %v7622_v15  ;;  %v7631_v34 = vpop.f32.mrb[106].mxu1 }
 0x2fa   : > { %v2058_v48 = vpop.xlane.xlu0 %2057  ;;  %9727 = vst [vmem:[#allocation281_spill] sm:$0xff] %v7631_v34  ;;  %v7637_v49 = vpop.f32.mrb[107].mxu1  ;;  %v7650_v47 = vmax.f32 %v2109_v1, %v7631_v34 }
 0x2fb   : > { %9724 = vst [vmem:[#allocation278_spill] sm:$0xff] %v7614_v0  ;;  %4124 = vst.msk [vmem:[#allocation2 + $0x138] sm:$0xff] %vm4020_vm4, %v7614_v0  ;;  %v7627_v62 = vmax.f32 %v7608_v14, %v2058_v48  ;;  %v7645_v48 = vpop.f32.mrb[108].mxu1 }
 0x2fc   : > { %v7633_v41 = vpop.permute.xlu1 %2565  ;;  %9729 = vst [vmem:[#allocation283_spill] sm:$0xff] %v7645_v48  ;;  %v7652_v17 = vpop.f32.mrb[109].mxu1  ;;  %v7660_v36 = vmax.f32 %v2114_v56, %v7645_v48 }
 0x2fd   : > { %v2880_v10 = vsub.f32 %v6499_v22, %v7633_v41  ;;  %v2881_v16 = vsub.f32 %v6508_v26, %v7633_v41  ;;  %4127 = vst.msk [vmem:[#allocation2 + $0x150] sm:$0xff] %vm4020_vm4, %v7627_v62  ;;  %v2882_v14 = vsub.f32 %v6501_v23, %v7633_v41 }
 0x2fe   : > { %v2068_v15 = vpop.xlane.xlu0 %2067 }
 0x2ff   : > { %v3148_v7 = vmul.f32 1.442695, %v2880_v10  ;;  %v3150_v60 = vmul.f32 1.442695, %v2881_v16  ;;  %v7655_v22 = vmax.f32 %v7635_v45, %v2068_v15  ;;  %v3152_v26 = vmul.f32 1.442695, %v2882_v14 }
 0x300   : > { %v7657_v43 = vpop.permute.xlu1 %2570 }
 0x301   : > { %9730 = vst [vmem:[#allocation284_spill] sm:$0xff] %v7655_v22  ;;  %4932 = vpow2.f32 %v3148_v7  ;;  %v2884_v23 = vsub.f32 %v6517_v33, %v7657_v43  ;;  %v2885_v1 = vsub.f32 %v6523_v35, %v7657_v43  ;;  %v2886_v10 = vsub.f32 %v6515_v32, %v7657_v43  ;;  %4129 = vst.msk [vmem:[#allocation2 + $0x160] sm:$0xff] %vm4020_vm4, %v7655_v22 }
 0x302   : > { %4934 = vpow2.f32 %v3150_v60 }
 0x303   : > { %v3156_v15 = vmul.f32 1.442695, %v2884_v23  ;;  %v3158_v14 = vmul.f32 1.442695, %v2885_v1  ;;  %4936 = vpow2.f32 %v3152_v26  ;;  %v3160_v16 = vmul.f32 1.442695, %v2886_v10 }
 0x304   : > { %v7681_v26 = vsel %vm6464_vm3, %v7410_v53, -inf  ;;  %v7690_v53 = vsel %vm6464_vm3, %v7170_v30, -inf  ;;  %v7700_v30 = vpop.f32.mrb[110].mxu0 }
 0x305   : > { %4938 = vpow2.f32 %v3156_v15  ;;  %9732 = vst [vmem:[#allocation286_spill] sm:$0xff] %v7681_v26  ;;  %9734 = vst [vmem:[#allocation288_spill] sm:$0xff] %v7700_v30 }
 0x306   : > { %v7670_v56 = vpop.permute.xlu0 %2595  ;;  %4940 = vpow2.f32 %v3158_v14 }
 0x307   : > { %9731 = vst [vmem:[#allocation285_spill] sm:$0xff] %v7670_v56  ;;  %v2904_v33 = vsub.f32 %v6589_v24, %v7670_v56  ;;  %v2905_v35 = vsub.f32 %v6595_v28, %v7670_v56  ;;  %v2906_v32 = vsub.f32 %v6587_v21, %v7670_v56  ;;  %4942 = vpow2.f32 %v3160_v16 }
 0x308   : > { %v2096_v24 = vmax.f32 %v7415_v13, %v7681_v26 }
 0x309   : > { %v3196_v7 = vmul.f32 1.442695, %v2904_v33  ;;  %v3198_v60 = vmul.f32 1.442695, %v2905_v35  ;;  %v3200_v23 = vmul.f32 1.442695, %v2906_v32  ;;  %v2071_v32 = vmax.f32 %v7183_v37, %v7690_v53 }
 0x30b   : > { %v4933_v1 = vpop.eup %4932  ;;  %4944 = vpow2.f32 %v3196_v7 }
 0x30c   : > { %v4935_v10 = vpop.eup %4934  ;;  %4946 = vpow2.f32 %v3198_v60 }
 0x30d   : > { %v3651_v28 = vadd.f32 %v4935_v10, %v4933_v1  ;;  %v4937_v15 = vpop.eup %4936  ;;  %4948 = vpow2.f32 %v3200_v23 }
 0x30f   : > { %v7685_v21 = vadd.f32 %v4937_v15, %v3651_v28  ;;  %v4939_v14 = vpop.eup %4938  ;;  %v7708_v15 = vld [vmem:[#allocation2 + $0x148] sm:$0xff] }
 0x310   : > { %2097 = vmax.xlane.f32.xlu0 %v2096_v24  ;;  %v4941_v16 = vpop.eup %4940  ;;  %v7702_v24 = vpop.f32.mrb[111].mxu0  ;;  %9737 = vst [vmem:[#allocation291_spill] sm:$0xff] %v7708_v15 }
 0x311   : > { %v3656_v33 = vadd.f32 %v4941_v16, %v4939_v14  ;;  %v4943_v35 = vpop.eup %4942  ;;  %9735 = vst [vmem:[#allocation289_spill] sm:$0xff] %v7702_v24  ;;  %v2119_v37 = vmax.f32 %v7700_v30, %v7702_v24  ;;  %v7712_v16 = vpop.f32.mrb[110].mxu1 }
 0x312   : > { %9739 = vst [vmem:[#allocation293_spill] sm:$0xff] %v7712_v16 }
 0x313   : > { %v7694_v7 = vadd.f32 %v4943_v35, %v3656_v33  ;;  %v7716_v35 = vpop.f32.mrb[111].mxu1 }
 0x315   : > { %v4945_v13 = vpop.eup %4944 }
 0x316   : > { %v4947_v60 = vpop.eup %4946  ;;  %2072 = vmax.xlane.f32.xlu1 %v2071_v32 }
 0x317   : > { %v3681_v23 = vadd.f32 %v4947_v60, %v4945_v13  ;;  %v4949_v1 = vpop.eup %4948  ;;  %v7718_v13 = vld [vmem:[#allocation2 + $0x170] sm:$0xff] }
 0x318   : > { %9740 = vst [vmem:[#allocation294_spill] sm:$0xff] %v7718_v13 }
 0x319   : > { %v7696_v10 = vadd.f32 %v4949_v1, %v3681_v23  ;;  %v7726_v1 = vmax.f32 %v2119_v37, %v7712_v16 }
 0x31b   : > { %9733 = vst [vmem:[#allocation287_spill] sm:$0xff] %v7696_v10 }
 0x322   : > { %v7706_v28 = vpop.f32.mrb[112].mxu0  ;;  %v7720_v60 = vpop.f32.mrb[112].mxu1 }
 0x323   : > { %9736 = vst [vmem:[#allocation290_spill] sm:$0xff] %v7706_v28  ;;  %v7710_v14 = vpop.f32.mrb[113].mxu0  ;;  %9741 = vst [vmem:[#allocation295_spill] sm:$0xff] %v7720_v60  ;;  %v7731_v48 = vpop.f32.mrb[113].mxu1 }
 0x324   : > { %9738 = vst [vmem:[#allocation292_spill] sm:$0xff] %v7710_v14  ;;  %v2124_v33 = vmax.f32 %v7706_v28, %v7710_v14 }
 0x326   : > { %2625 = vperm.xlu0 %4832, %v7298_v6   ;;  %v7729_v45 = vmax.f32 %v2124_v33, %v7720_v60 }
 0x327   : > { %2600 = vperm.xlu1 %4833, %v7223_v46   ;;  %v9769_v46 = vld [vmem:[#allocation41_spill] sm:$0xff] }
 0x331   : > { %v2053_v32 = vpop.xlane.xlu1 %2052 }
 0x332   : > { %v7723_v23 = vmax.f32 %v7708_v15, %v2053_v32 }
 0x333   : > { %v2078_v26 = vpop.xlane.xlu0 %2077 }
 0x334   : > { %9742 = vst [vmem:[#allocation296_spill] sm:$0xff] %v7723_v23  ;;  %4126 = vst.msk [vmem:[#allocation2 + $0x148] sm:$0xff] %vm4020_vm4, %v7723_v23  ;;  %v7736_v14 = vmax.f32 %v7718_v13, %v2078_v26 }
 0x335   : > { %v7738_v28 = vpop.permute.xlu1 %2575 }
 0x336   : > { %9743 = vst [vmem:[#allocation297_spill] sm:$0xff] %v7736_v14  ;;  %v2888_v32 = vsub.f32 %v6527_v38, %v7738_v28  ;;  %v2889_v37 = vsub.f32 %v6536_v42, %v7738_v28  ;;  %v2890_v33 = vsub.f32 %v6529_v39, %v7738_v28  ;;  %4131 = vst.msk [vmem:[#allocation2 + $0x170] sm:$0xff] %vm4020_vm4, %v7736_v14  ;;  %v9744_v42 = vld [vmem:[#allocation16_spill] sm:$0xff] }
 0x338   : > { %v3164_v15 = vmul.f32 1.442695, %v2888_v32  ;;  %v3166_v60 = vmul.f32 1.442695, %v2889_v37  ;;  %v3168_v6 = vmul.f32 1.442695, %v2890_v33 }
 0x339   : > { %v7748_v16 = vpop.permute.xlu1 %2580  ;;  %v9746_v32 = vld [vmem:[#allocation31_spill] sm:$0xff] }
 0x33a   : > { %4950 = vpow2.f32 %v3164_v15  ;;  %v2892_v26 = vsub.f32 %v6549_v50, %v7748_v16  ;;  %v2893_v38 = vsub.f32 %v6552_v52, %v7748_v16  ;;  %v2894_v13 = vsub.f32 %v9744_v42, %v7748_v16  ;;  %v9747_v15 = vld [vmem:[#allocation33_spill] sm:$0xff]  ;;  %v9748_v50 = vld [vmem:[#allocation30_spill] sm:$0xff] }
 0x33b   : > { %4952 = vpow2.f32 %v3166_v60  ;;  %v7756_v39 = vpop.permute.xlu0 %2605  ;;  %v7767_v52 = vsel %vm6464_vm3, %v7555_v3, -inf }
 0x33c   : > { %9745 = vst [vmem:[#allocation16_spill] sm:$0xff] %v7756_v39  ;;  %v3172_v24 = vmul.f32 1.442695, %v2892_v26  ;;  %v3174_v30 = vmul.f32 1.442695, %v2893_v38  ;;  %4954 = vpow2.f32 %v3168_v6  ;;  %v2912_v37 = vsub.f32 %v9746_v32, %v7756_v39  ;;  %9749 = vst [vmem:[#allocation31_spill] sm:$0xff] %v7767_v52 }
 0x33d   : > { %v2913_v33 = vsub.f32 %v9747_v15, %v7756_v39  ;;  %v3176_v34 = vmul.f32 1.442695, %v2894_v13  ;;  %v2914_v14 = vsub.f32 %v9748_v50, %v7756_v39  ;;  %v2106_v6 = vmax.f32 %v7567_v19, %v7767_v52  ;;  %v9750_v32 = vld [vmem:[#allocation190_spill] sm:$0xff]  ;;  %v9752_v19 = vld [vmem:[#allocation193_spill] sm:$0xff] }
 0x33e   : > { %4956 = vpow2.f32 %v3172_v24  ;;  %v3212_v60 = vmul.f32 1.442695, %v2912_v37  ;;  %v7774_v15 = vsel %vm6464_vm3, %v9750_v32, -inf }
 0x33f   : > { %4958 = vpow2.f32 %v3174_v30  ;;  %v3214_v26 = vmul.f32 1.442695, %v2913_v33  ;;  %v3216_v38 = vmul.f32 1.442695, %v2914_v14  ;;  %9751 = vst [vmem:[#allocation33_spill] sm:$0xff] %v7774_v15 }
 0x340   : > { %4960 = vpow2.f32 %v3176_v34  ;;  %v2081_v34 = vmax.f32 %v9752_v19, %v7774_v15  ;;  %v9770_v15 = vld [vmem:[#allocation38_spill] sm:$0xff] }
 0x341   : > { %4962 = vpow2.f32 %v3212_v60 }
 0x342   : > { %4964 = vpow2.f32 %v3214_v26 }
 0x343   : > { %4966 = vpow2.f32 %v3216_v38  ;;  %v7786_v38 = vpop.f32.mrb[114].mxu0 }
 0x344   : > { %v4951_v42 = vpop.eup %4950  ;;  %9754 = vst [vmem:[#allocation190_spill] sm:$0xff] %v7786_v38 }
 0x345   : > { %v4953_v13 = vpop.eup %4952  ;;  %2107 = vmax.xlane.f32.xlu0 %v2106_v6 }
 0x346   : > { %v3661_v3 = vadd.f32 %v4953_v13, %v4951_v42  ;;  %v4955_v24 = vpop.eup %4954  ;;  %v7788_v42 = vpop.f32.mrb[115].mxu0 }
 0x347   : > { %9755 = vst [vmem:[#allocation193_spill] sm:$0xff] %v7788_v42  ;;  %v2129_v13 = vmax.f32 %v7786_v38, %v7788_v42 }
 0x348   : > { %v7776_v30 = vadd.f32 %v4955_v24, %v3661_v3  ;;  %v4957_v37 = vpop.eup %4956 }
 0x349   : > { %v4959_v14 = vpop.eup %4958 }
 0x34a   : > { %v3666_v33 = vadd.f32 %v4959_v14, %v4957_v37  ;;  %v4961_v50 = vpop.eup %4960  ;;  %v7796_v37 = vpop.f32.mrb[114].mxu1 }
 0x34b   : > { %2082 = vmax.xlane.f32.xlu1 %v2081_v34  ;;  %v4963_v60 = vpop.eup %4962  ;;  %9758 = vst [vmem:[#allocation300_spill] sm:$0xff] %v7796_v37  ;;  %v7800_v19 = vpop.f32.mrb[115].mxu1  ;;  %v7802_v34 = vld [vmem:[#allocation2 + $0x180] sm:$0xff] }
 0x34c   : > { %v7780_v26 = vadd.f32 %v4961_v50, %v3666_v33  ;;  %v4965_v6 = vpop.eup %4964  ;;  %9759 = vst [vmem:[#allocation301_spill] sm:$0xff] %v7802_v34  ;;  %v7807_v33 = vmax.f32 %v2129_v13, %v7796_v37  ;;  %v9765_v37 = vld [vmem:[#allocation20_spill] sm:$0xff] }
 0x34d   : > { %v3691_v52 = vadd.f32 %v4965_v6, %v4963_v60  ;;  %v4967_v32 = vpop.eup %4966  ;;  %v7814_v6 = vld [vmem:[#allocation2 + $0x158] sm:$0xff] }
 0x34e   : > { %9761 = vst [vmem:[#allocation303_spill] sm:$0xff] %v7814_v6 }
 0x34f   : > { %v7782_v39 = vadd.f32 %v4967_v32, %v3691_v52 }
 0x351   : > { %9753 = vst [vmem:[#allocation30_spill] sm:$0xff] %v7782_v39 }
 0x35b   : > { %2635 = vperm.xlu0 %4832, %v7323_v4   ;;  %v7792_v3 = vpop.f32.mrb[116].mxu0  ;;  %v7804_v14 = vpop.f32.mrb[116].mxu1 }
 0x35c   : > { %2610 = vperm.xlu1 %4833, %v7255_v51   ;;  %9756 = vst [vmem:[#allocation298_spill] sm:$0xff] %v7792_v3  ;;  %v7794_v24 = vpop.f32.mrb[117].mxu0  ;;  %9760 = vst [vmem:[#allocation302_spill] sm:$0xff] %v7804_v14  ;;  %v7812_v60 = vpop.f32.mrb[117].mxu1 }
 0x35d   : > { %9757 = vst [vmem:[#allocation299_spill] sm:$0xff] %v7794_v24  ;;  %v2134_v52 = vmax.f32 %v7792_v3, %v7794_v24 }
 0x35f   : > { %v7810_v50 = vmax.f32 %v2134_v52, %v7804_v14  ;;  %v9764_v52 = vld [vmem:[#allocation18_spill] sm:$0xff] }
 0x368   : > { %v2088_v32 = vpop.xlane.xlu0 %2087 }
 0x369   : > { %v7817_v4 = vmax.f32 %v7802_v34, %v2088_v32  ;;  %v9766_v32 = vld [vmem:[#allocation17_spill] sm:$0xff] }
 0x36a   : > { %v2063_v24 = vpop.xlane.xlu1 %2062 }
 0x36b   : > { %9762 = vst [vmem:[#allocation304_spill] sm:$0xff] %v7817_v4  ;;  %v7820_v3 = vmax.f32 %v7814_v6, %v2063_v24  ;;  %4133 = vst.msk [vmem:[#allocation2 + $0x180] sm:$0xff] %vm4020_vm4, %v7817_v4  ;;  %v9768_v4 = vld [vmem:[#allocation39_spill] sm:$0xff] }
 0x36d   : > { %9763 = vst [vmem:[#allocation305_spill] sm:$0xff] %v7820_v3  ;;  %4128 = vst.msk [vmem:[#allocation2 + $0x158] sm:$0xff] %vm4020_vm4, %v7820_v3 }
 0x36e   : > { %v7826_v13 = vpop.permute.xlu1 %2585 }
 0x36f   : > { %v2896_v14 = vsub.f32 %v9764_v52, %v7826_v13  ;;  %v2897_v42 = vsub.f32 %v9765_v37, %v7826_v13  ;;  %v2898_v34 = vsub.f32 %v9766_v32, %v7826_v13  ;;  %v9771_v32 = vld [vmem:[#allocation23_spill] sm:$0xff] }
 0x370   : > { %v7834_v38 = vpop.permute.xlu0 %2615 }
 0x371   : > { %9767 = vst [vmem:[#allocation18_spill] sm:$0xff] %v7834_v38  ;;  %v3180_v24 = vmul.f32 1.442695, %v2896_v14  ;;  %v3182_v6 = vmul.f32 1.442695, %v2897_v42  ;;  %v2920_v51 = vsub.f32 %v9768_v4, %v7834_v38  ;;  %v2921_v10 = vsub.f32 %v9769_v46, %v7834_v38 }
 0x372   : > { %v3184_v39 = vmul.f32 1.442695, %v2898_v34  ;;  %v2922_v52 = vsub.f32 %v9770_v15, %v7834_v38  ;;  %v7842_v56 = vpop.permute.xlu1 %2590  ;;  %v7849_v42 = vsel %vm6464_vm3, %v7652_v17, -inf  ;;  %v9773_v34 = vld [vmem:[#allocation24_spill] sm:$0xff]  ;;  %v9774_v15 = vld [vmem:[#allocation22_spill] sm:$0xff] }
 0x373   : > { %4968 = vpow2.f32 %v3180_v24  ;;  %v3228_v37 = vmul.f32 1.442695, %v2920_v51  ;;  %v2900_v22 = vsub.f32 %v9771_v32, %v7842_v56  ;;  %9772 = vst [vmem:[#allocation20_spill] sm:$0xff] %v7849_v42  ;;  %v3230_v4 = vmul.f32 1.442695, %v2921_v10 }
 0x374   : > { %4970 = vpow2.f32 %v3182_v6  ;;  %v2901_v46 = vsub.f32 %v9773_v34, %v7842_v56  ;;  %v3232_v14 = vmul.f32 1.442695, %v2922_v52  ;;  %v2902_v38 = vsub.f32 %v9774_v15, %v7842_v56 }
 0x375   : > { %4972 = vpow2.f32 %v3184_v39  ;;  %v2116_v51 = vmax.f32 %v7660_v36, %v7849_v42  ;;  %v3188_v24 = vmul.f32 1.442695, %v2900_v22  ;;  %v7860_v10 = vsel %vm6464_vm3, %v7397_v12, -inf  ;;  %v9791_v42 = vld [vmem:[#allocation46_spill] sm:$0xff] }
 0x376   : > { %4974 = vpow2.f32 %v3228_v37  ;;  %v3190_v32 = vmul.f32 1.442695, %v2901_v46  ;;  %v3192_v17 = vmul.f32 1.442695, %v2902_v38  ;;  %9775 = vst [vmem:[#allocation17_spill] sm:$0xff] %v7860_v10  ;;  %v2091_v36 = vmax.f32 %v7402_v57, %v7860_v10  ;;  %v7872_v57 = vpop.f32.mrb[118].mxu0 }
 0x377   : > { %4976 = vpow2.f32 %v3230_v4  ;;  %9778 = vst [vmem:[#allocation38_spill] sm:$0xff] %v7872_v57 }
 0x378   : > { %4978 = vpow2.f32 %v3232_v14 }
 0x379   : > { %4980 = vpow2.f32 %v3188_v24 }
 0x37a   : > { %2117 = vmax.xlane.f32.xlu0 %v2116_v51  ;;  %4982 = vpow2.f32 %v3190_v32 }
 0x37b   : > { %4984 = vpow2.f32 %v3192_v17  ;;  %v7874_v17 = vpop.f32.mrb[119].mxu0 }
 0x37c   : > { %9779 = vst [vmem:[#allocation23_spill] sm:$0xff] %v7874_v17 }
 0x37d   : > { %v4969_v39 = vpop.eup %4968 }
 0x37e   : > { %v4971_v6 = vpop.eup %4970 }
 0x37f   : > { %v3671_v52 = vadd.f32 %v4971_v6, %v4969_v39  ;;  %v4973_v22 = vpop.eup %4972  ;;  %v2139_v39 = vmax.f32 %v7872_v57, %v7874_v17 }
 0x380   : > { %2092 = vmax.xlane.f32.xlu1 %v2091_v36  ;;  %v4975_v37 = vpop.eup %4974 }
 0x381   : > { %v7864_v4 = vadd.f32 %v4973_v22, %v3671_v52  ;;  %v4977_v38 = vpop.eup %4976  ;;  %v7882_v52 = vpop.f32.mrb[118].mxu1 }
 0x382   : > { %v3701_v34 = vadd.f32 %v4977_v38, %v4975_v37  ;;  %v4979_v46 = vpop.eup %4978  ;;  %9782 = vst [vmem:[#allocation306_spill] sm:$0xff] %v7882_v52  ;;  %v7886_v37 = vpop.f32.mrb[119].mxu1  ;;  %v7888_v38 = vld [vmem:[#allocation2 + $0x190] sm:$0xff] }
 0x383   : > { %9776 = vst [vmem:[#allocation39_spill] sm:$0xff] %v7864_v4  ;;  %v4981_v14 = vpop.eup %4980  ;;  %9783 = vst [vmem:[#allocation307_spill] sm:$0xff] %v7888_v38 }
 0x384   : > { %v7866_v12 = vadd.f32 %v4979_v46, %v3701_v34  ;;  %v4983_v15 = vpop.eup %4982  ;;  %v7893_v46 = vmax.f32 %v2139_v39, %v7882_v52 }
 0x385   : > { %v3676_v51 = vadd.f32 %v4983_v15, %v4981_v14  ;;  %v4985_v24 = vpop.eup %4984 }
 0x386   : > { %9777 = vst [vmem:[#allocation41_spill] sm:$0xff] %v7866_v12 }
 0x387   : > { %v7868_v32 = vadd.f32 %v4985_v24, %v3676_v51 }
 0x38c   : > { %v7878_v6 = vpop.f32.mrb[120].mxu0 }
 0x38d   : > { %9780 = vst [vmem:[#allocation24_spill] sm:$0xff] %v7878_v6  ;;  %v7880_v36 = vpop.f32.mrb[121].mxu0  ;;  %v7890_v34 = vpop.f32.mrb[120].mxu1 }
 0x38e   : > { %9781 = vst [vmem:[#allocation22_spill] sm:$0xff] %v7880_v36  ;;  %v2144_v22 = vmax.f32 %v7878_v6, %v7880_v36  ;;  %9784 = vst [vmem:[#allocation308_spill] sm:$0xff] %v7890_v34  ;;  %v7898_v15 = vpop.f32.mrb[121].mxu1  ;;  %v7905_v36 = vld [vmem:[#allocation2 + $0x168] sm:$0xff] }
 0x38f   : > { %9786 = vst [vmem:[#allocation310_spill] sm:$0xff] %v7905_v36 }
 0x390   : > { %2645 = vperm.xlu0 %4832, %v7337_v18   ;;  %v7896_v14 = vmax.f32 %v2144_v22, %v7890_v34  ;;  %v9789_v22 = vld [vmem:[#allocation47_spill] sm:$0xff] }
 0x391   : > { %2620 = vperm.xlu1 %4833, %v7288_v61   ;;  %v7927_v61 = vsel %vm6464_vm3, %v7731_v48, -inf  ;;  %v7938_v48 = vsel %vm6464_vm3, %v7547_v5, -inf  ;;  %v7948_v5 = vpop.f32.mrb[122].mxu0 }
 0x392   : > { %9793 = vst [vmem:[#allocation47_spill] sm:$0xff] %v7927_v61 }
 0x39d   : > { %v2098_v51 = vpop.xlane.xlu0 %2097 }
 0x39e   : > { %v7901_v24 = vmax.f32 %v7888_v38, %v2098_v51  ;;  %v9790_v51 = vld [vmem:[#allocation49_spill] sm:$0xff] }
 0x39f   : > { %9796 = vst [vmem:[#allocation49_spill] sm:$0xff] %v7938_v48 }
 0x3a0   : > { %9785 = vst [vmem:[#allocation309_spill] sm:$0xff] %v7901_v24  ;;  %4135 = vst.msk [vmem:[#allocation2 + $0x190] sm:$0xff] %vm4020_vm4, %v7901_v24 }
 0x3a3   : > { %v2073_v6 = vpop.xlane.xlu1 %2072 }
 0x3a4   : > { %v7908_v18 = vmax.f32 %v7905_v36, %v2073_v6  ;;  %v9792_v6 = vld [vmem:[#allocation28_spill] sm:$0xff] }
 0x3a5   : > { %v7910_v39 = vpop.permute.xlu0 %2625  ;;  %9798 = vst [vmem:[#allocation28_spill] sm:$0xff] %v7948_v5 }
 0x3a6   : > { %9787 = vst [vmem:[#allocation311_spill] sm:$0xff] %v7908_v18  ;;  %9788 = vst [vmem:[#allocation312_spill] sm:$0xff] %v7910_v39  ;;  %v2928_v34 = vsub.f32 %v9789_v22, %v7910_v39  ;;  %v2929_v38 = vsub.f32 %v9790_v51, %v7910_v39  ;;  %v2930_v52 = vsub.f32 %v9791_v42, %v7910_v39  ;;  %v9794_v22 = vld [vmem:[#allocation29_spill] sm:$0xff]  ;;  %v9795_v51 = vld [vmem:[#allocation27_spill] sm:$0xff] }
 0x3a7   : > { %4130 = vst.msk [vmem:[#allocation2 + $0x168] sm:$0xff] %vm4020_vm4, %v7908_v18  ;;  %v7920_v17 = vpop.permute.xlu1 %2600 }
 0x3a8   : > { %v3244_v57 = vmul.f32 1.442695, %v2928_v34  ;;  %v3246_v24 = vmul.f32 1.442695, %v2929_v38  ;;  %v2908_v36 = vsub.f32 %v9792_v6, %v7920_v17  ;;  %v2909_v12 = vsub.f32 %v9794_v22, %v7920_v17 }
 0x3a9   : > { %v3248_v10 = vmul.f32 1.442695, %v2930_v52  ;;  %v2910_v11 = vsub.f32 %v9795_v51, %v7920_v17  ;;  %v2126_v38 = vmax.f32 %v7729_v45, %v7927_v61 }
 0x3aa   : > { %4986 = vpow2.f32 %v3244_v57  ;;  %v3204_v42 = vmul.f32 1.442695, %v2908_v36  ;;  %v3206_v34 = vmul.f32 1.442695, %v2909_v12  ;;  %v2101_v57 = vmax.f32 %v7564_v8, %v7938_v48  ;;  %v7950_v8 = vpop.f32.mrb[123].mxu0 }
 0x3ab   : > { %4988 = vpow2.f32 %v3246_v24  ;;  %v3208_v6 = vmul.f32 1.442695, %v2910_v11  ;;  %9799 = vst [vmem:[#allocation29_spill] sm:$0xff] %v7950_v8 }
 0x3ac   : > { %4990 = vpow2.f32 %v3248_v10 }
 0x3ad   : > { %4992 = vpow2.f32 %v3204_v42 }
 0x3ae   : > { %4994 = vpow2.f32 %v3206_v34 }
 0x3af   : > { %2127 = vmax.xlane.f32.xlu0 %v2126_v38  ;;  %4996 = vpow2.f32 %v3208_v6  ;;  %v2149_v38 = vmax.f32 %v7948_v5, %v7950_v8 }
 0x3b0   : > { %v7954_v34 = vpop.f32.mrb[124].mxu0 }
 0x3b1   : > { %9800 = vst [vmem:[#allocation27_spill] sm:$0xff] %v7954_v34  ;;  %v7956_v6 = vpop.f32.mrb[125].mxu0 }
 0x3b2   : > { %9801 = vst [vmem:[#allocation313_spill] sm:$0xff] %v7956_v6 }
 0x3b4   : > { %v4987_v36 = vpop.eup %4986 }
 0x3b5   : > { %2102 = vmax.xlane.f32.xlu1 %v2101_v57  ;;  %v4989_v52 = vpop.eup %4988  ;;  %v7958_v57 = vpop.f32.mrb[122].mxu1 }
 0x3b6   : > { %v3711_v45 = vadd.f32 %v4989_v52, %v4987_v36  ;;  %v4991_v24 = vpop.eup %4990  ;;  %9802 = vst [vmem:[#allocation314_spill] sm:$0xff] %v7958_v57  ;;  %v2154_v36 = vmax.f32 %v7954_v34, %v7956_v6  ;;  %v7962_v52 = vpop.f32.mrb[123].mxu1  ;;  %v7981_v6 = vld [vmem:[#allocation2 + $0x178] sm:$0xff] }
 0x3b7   : > { %v4993_v12 = vpop.eup %4992  ;;  %9806 = vst [vmem:[#allocation318_spill] sm:$0xff] %v7981_v6 }
 0x3b8   : > { %v7942_v10 = vadd.f32 %v4991_v24, %v3711_v45  ;;  %v4995_v11 = vpop.eup %4994  ;;  %v7964_v45 = vld [vmem:[#allocation2 + $0x1a0] sm:$0xff]  ;;  %v7966_v24 = vpop.f32.mrb[124].mxu1 }
 0x3b9   : > { %v3686_v22 = vadd.f32 %v4995_v11, %v4993_v12  ;;  %v4997_v51 = vpop.eup %4996  ;;  %9803 = vst [vmem:[#allocation315_spill] sm:$0xff] %v7964_v45  ;;  %9804 = vst [vmem:[#allocation316_spill] sm:$0xff] %v7966_v24  ;;  %v7969_v12 = vmax.f32 %v2149_v38, %v7958_v57  ;;  %v7972_v11 = vmax.f32 %v2154_v36, %v7966_v24  ;;  %v9809_v36 = vld [vmem:[#allocation55_spill] sm:$0xff]  ;;  %v9811_v57 = vld [vmem:[#allocation54_spill] sm:$0xff] }
 0x3ba   : > { %9797 = vst [vmem:[#allocation46_spill] sm:$0xff] %v7942_v10  ;;  %v8003_v10 = vsel %vm6464_vm3, %v7812_v60, -inf  ;;  %v8014_v60 = vsel %vm6464_vm3, %v7637_v49, -inf  ;;  %v9818_v49 = vld [vmem:[#allocation217_spill] sm:$0xff] }
 0x3bb   : > { %v7944_v42 = vadd.f32 %v4997_v51, %v3686_v22  ;;  %v7974_v22 = vpop.f32.mrb[125].mxu1  ;;  %9813 = vst [vmem:[#allocation55_spill] sm:$0xff] %v8003_v10 }
 0x3c5   : > { %2655 = vperm.xlu0 %4832, %v7352_v58  }
 0x3c6   : > { %2630 = vperm.xlu1 %4833, %v7318_v63  }
 0x3d2   : > { %v2108_v51 = vpop.xlane.xlu0 %2107 }
 0x3d3   : > { %v7977_v58 = vmax.f32 %v7964_v45, %v2108_v51  ;;  %v9810_v51 = vld [vmem:[#allocation57_spill] sm:$0xff] }
 0x3d4   : > { %9816 = vst [vmem:[#allocation57_spill] sm:$0xff] %v8014_v60 }
 0x3d5   : > { %9805 = vst [vmem:[#allocation317_spill] sm:$0xff] %v7977_v58  ;;  %4137 = vst.msk [vmem:[#allocation2 + $0x1a0] sm:$0xff] %vm4020_vm4, %v7977_v58 }
 0x3d8   : > { %v2083_v34 = vpop.xlane.xlu1 %2082 }
 0x3d9   : > { %v7984_v61 = vmax.f32 %v7981_v6, %v2083_v34  ;;  %v9812_v34 = vld [vmem:[#allocation36_spill] sm:$0xff] }
 0x3da   : > { %v7986_v38 = vpop.permute.xlu0 %2635 }
 0x3db   : > { %9807 = vst [vmem:[#allocation319_spill] sm:$0xff] %v7984_v61  ;;  %9808 = vst [vmem:[#allocation320_spill] sm:$0xff] %v7986_v38  ;;  %v2936_v24 = vsub.f32 %v9809_v36, %v7986_v38  ;;  %v2937_v45 = vsub.f32 %v9810_v51, %v7986_v38  ;;  %v2938_v8 = vsub.f32 %v9811_v57, %v7986_v38  ;;  %v9814_v36 = vld [vmem:[#allocation37_spill] sm:$0xff]  ;;  %v9815_v51 = vld [vmem:[#allocation35_spill] sm:$0xff] }
 0x3dc   : > { %4132 = vst.msk [vmem:[#allocation2 + $0x178] sm:$0xff] %vm4020_vm4, %v7984_v61  ;;  %v7996_v5 = vpop.permute.xlu1 %2610 }
 0x3dd   : > { %v3260_v58 = vmul.f32 1.442695, %v2936_v24  ;;  %v3262_v63 = vmul.f32 1.442695, %v2937_v45  ;;  %v2916_v6 = vsub.f32 %v9812_v34, %v7996_v5  ;;  %v2917_v39 = vsub.f32 %v9814_v36, %v7996_v5 }
 0x3de   : > { %v3264_v48 = vmul.f32 1.442695, %v2938_v8  ;;  %v2918_v4 = vsub.f32 %v9815_v51, %v7996_v5  ;;  %v2136_v45 = vmax.f32 %v7810_v50, %v8003_v10  ;;  %v8053_v10 = vsel %vm6464_vm3, %v7898_v15, -inf }
 0x3df   : > { %4998 = vpow2.f32 %v3260_v58  ;;  %v3220_v57 = vmul.f32 1.442695, %v2916_v6  ;;  %v3222_v24 = vmul.f32 1.442695, %v2917_v39  ;;  %v2111_v58 = vmax.f32 %v7650_v47, %v8014_v60 }
 0x3e0   : > { %5000 = vpow2.f32 %v3262_v63  ;;  %v3224_v34 = vmul.f32 1.442695, %v2918_v4  ;;  %v8064_v15 = vsel %vm6464_vm3, %v7716_v35, -inf  ;;  %v9832_v35 = vld [vmem:[#allocation234_spill] sm:$0xff] }
 0x3e1   : > { %5002 = vpow2.f32 %v3264_v48 }
 0x3e2   : > { %5004 = vpow2.f32 %v3220_v57 }
 0x3e3   : > { %5006 = vpow2.f32 %v3222_v24 }
 0x3e4   : > { %2137 = vmax.xlane.f32.xlu0 %v2136_v45  ;;  %5008 = vpow2.f32 %v3224_v34  ;;  %v8024_v45 = vld [vmem:[#allocation2 + $0x1b0] sm:$0xff]  ;;  %v8031_v34 = vld [vmem:[#allocation2 + $0x188] sm:$0xff] }
 0x3e5   : > { %9819 = vst [vmem:[#allocation36_spill] sm:$0xff] %v8024_v45  ;;  %9821 = vst [vmem:[#allocation35_spill] sm:$0xff] %v8031_v34 }
 0x3e9   : > { %v4999_v8 = vpop.eup %4998 }
 0x3ea   : > { %2112 = vmax.xlane.f32.xlu1 %v2111_v58  ;;  %v5001_v6 = vpop.eup %5000 }
 0x3eb   : > { %v3721_v50 = vadd.f32 %v5001_v6, %v4999_v8  ;;  %v5003_v63 = vpop.eup %5002 }
 0x3ec   : > { %v5005_v39 = vpop.eup %5004 }
 0x3ed   : > { %v8018_v48 = vadd.f32 %v5003_v63, %v3721_v50  ;;  %v5007_v4 = vpop.eup %5006  ;;  %v9823_v50 = vld [vmem:[#allocation63_spill] sm:$0xff] }
 0x3ee   : > { %v3696_v36 = vadd.f32 %v5007_v4, %v5005_v39  ;;  %v5009_v51 = vpop.eup %5008  ;;  %v9824_v39 = vld [vmem:[#allocation65_spill] sm:$0xff]  ;;  %9827 = vst [vmem:[#allocation63_spill] sm:$0xff] %v8053_v10 }
 0x3ef   : > { %9817 = vst [vmem:[#allocation54_spill] sm:$0xff] %v8018_v48  ;;  %9830 = vst [vmem:[#allocation65_spill] sm:$0xff] %v8064_v15 }
 0x3f0   : > { %v8020_v57 = vadd.f32 %v5009_v51, %v3696_v36  ;;  %v9825_v36 = vld [vmem:[#allocation62_spill] sm:$0xff] }
 0x3fa   : > { %2665 = vperm.xlu0 %4832, %v7368_v9  }
 0x3fb   : > { %2640 = vperm.xlu1 %4833, %v9818_v49  }
 0x407   : > { %v2118_v47 = vpop.xlane.xlu0 %2117 }
 0x408   : > { %v8027_v24 = vmax.f32 %v8024_v45, %v2118_v47 }
 0x40a   : > { %9820 = vst [vmem:[#allocation37_spill] sm:$0xff] %v8027_v24  ;;  %4139 = vst.msk [vmem:[#allocation2 + $0x1b0] sm:$0xff] %vm4020_vm4, %v8027_v24 }
 0x40d   : > { %v2093_v58 = vpop.xlane.xlu1 %2092 }
 0x40e   : > { %v8034_v8 = vmax.f32 %v8031_v34, %v2093_v58  ;;  %v9826_v58 = vld [vmem:[#allocation44_spill] sm:$0xff] }
 0x40f   : > { %v8036_v6 = vpop.permute.xlu0 %2645 }
 0x410   : > { %9822 = vst [vmem:[#allocation321_spill] sm:$0xff] %v8036_v6  ;;  %4134 = vst.msk [vmem:[#allocation2 + $0x188] sm:$0xff] %vm4020_vm4, %v8034_v8  ;;  %v2944_v63 = vsub.f32 %v9823_v50, %v8036_v6  ;;  %v2945_v4 = vsub.f32 %v9824_v39, %v8036_v6  ;;  %v2946_v51 = vsub.f32 %v9825_v36, %v8036_v6  ;;  %v9828_v50 = vld [vmem:[#allocation45_spill] sm:$0xff]  ;;  %v9829_v39 = vld [vmem:[#allocation43_spill] sm:$0xff] }
 0x411   : > { %v8046_v47 = vpop.permute.xlu1 %2620 }
 0x412   : > { %v3276_v45 = vmul.f32 1.442695, %v2944_v63  ;;  %v3278_v9 = vmul.f32 1.442695, %v2945_v4  ;;  %v2924_v34 = vsub.f32 %v9826_v58, %v8046_v47  ;;  %v2925_v24 = vsub.f32 %v9828_v50, %v8046_v47 }
 0x413   : > { %v3280_v49 = vmul.f32 1.442695, %v2946_v51  ;;  %v2926_v48 = vsub.f32 %v9829_v39, %v8046_v47  ;;  %v2146_v63 = vmax.f32 %v7896_v14, %v8053_v10 }
 0x414   : > { %5010 = vpow2.f32 %v3276_v45  ;;  %v3236_v36 = vmul.f32 1.442695, %v2924_v34  ;;  %v3238_v4 = vmul.f32 1.442695, %v2925_v24  ;;  %v2121_v45 = vmax.f32 %v7726_v1, %v8064_v15  ;;  %v9901_v15 = vld [vmem:[#allocation113_spill] sm:$0xff] }
 0x415   : > { %5012 = vpow2.f32 %v3278_v9  ;;  %v3240_v58 = vmul.f32 1.442695, %v2926_v48 }
 0x416   : > { %5014 = vpow2.f32 %v3280_v49 }
 0x417   : > { %5016 = vpow2.f32 %v3236_v36 }
 0x418   : > { %5018 = vpow2.f32 %v3238_v4  ;;  %v8074_v4 = vld [vmem:[#allocation2 + $0x1c0] sm:$0xff] }
 0x419   : > { %2147 = vmax.xlane.f32.xlu0 %v2146_v63  ;;  %5020 = vpow2.f32 %v3240_v58  ;;  %v9833_v63 = vld [vmem:[#allocation221_spill] sm:$0xff]  ;;  %9834 = vst [vmem:[#allocation44_spill] sm:$0xff] %v8074_v4 }
 0x41e   : > { %v5011_v34 = vpop.eup %5010 }
 0x41f   : > { %2122 = vmax.xlane.f32.xlu1 %v2121_v45  ;;  %v5013_v51 = vpop.eup %5012  ;;  %v8081_v45 = vld [vmem:[#allocation2 + $0x198] sm:$0xff] }
 0x420   : > { %v3731_v14 = vadd.f32 %v5013_v51, %v5011_v34  ;;  %v5015_v9 = vpop.eup %5014  ;;  %9836 = vst [vmem:[#allocation43_spill] sm:$0xff] %v8081_v45 }
 0x421   : > { %v5017_v24 = vpop.eup %5016 }
 0x422   : > { %v8068_v49 = vadd.f32 %v5015_v9, %v3731_v14  ;;  %v5019_v48 = vpop.eup %5018  ;;  %v9838_v9 = vld [vmem:[#allocation71_spill] sm:$0xff] }
 0x423   : > { %v3706_v50 = vadd.f32 %v5019_v48, %v5017_v24  ;;  %v5021_v39 = vpop.eup %5020  ;;  %v9839_v48 = vld [vmem:[#allocation73_spill] sm:$0xff] }
 0x424   : > { %9831 = vst [vmem:[#allocation62_spill] sm:$0xff] %v8068_v49 }
 0x425   : > { %v8070_v36 = vadd.f32 %v5021_v39, %v3706_v50  ;;  %v9840_v39 = vld [vmem:[#allocation70_spill] sm:$0xff] }
 0x42f   : > { %2675 = vperm.xlu0 %4832, %v9832_v35  }
 0x430   : > { %2650 = vperm.xlu1 %4833, %v9833_v63  }
 0x43c   : > { %v2128_v1 = vpop.xlane.xlu0 %2127 }
 0x43d   : > { %v8077_v58 = vmax.f32 %v8074_v4, %v2128_v1 }
 0x43f   : > { %9835 = vst [vmem:[#allocation45_spill] sm:$0xff] %v8077_v58  ;;  %4141 = vst.msk [vmem:[#allocation2 + $0x1c0] sm:$0xff] %vm4020_vm4, %v8077_v58  ;;  %v8103_v58 = vsel %vm6464_vm3, %v7974_v22, -inf  ;;  %v8114_v22 = vsel %vm6464_vm3, %v7800_v19, -inf  ;;  %v9847_v19 = vld [vmem:[#allocation225_spill] sm:$0xff] }
 0x440   : > { %9842 = vst [vmem:[#allocation71_spill] sm:$0xff] %v8103_v58  ;;  %9845 = vst [vmem:[#allocation73_spill] sm:$0xff] %v8114_v22 }
 0x442   : > { %v2103_v34 = vpop.xlane.xlu1 %2102 }
 0x443   : > { %v8084_v51 = vmax.f32 %v8081_v45, %v2103_v34  ;;  %v9841_v34 = vld [vmem:[#allocation52_spill] sm:$0xff] }
 0x444   : > { %v8086_v14 = vpop.permute.xlu0 %2655 }
 0x445   : > { %9837 = vst [vmem:[#allocation322_spill] sm:$0xff] %v8086_v14  ;;  %4136 = vst.msk [vmem:[#allocation2 + $0x198] sm:$0xff] %vm4020_vm4, %v8084_v51  ;;  %v2952_v24 = vsub.f32 %v9838_v9, %v8086_v14  ;;  %v2953_v50 = vsub.f32 %v9839_v48, %v8086_v14  ;;  %v2954_v1 = vsub.f32 %v9840_v39, %v8086_v14  ;;  %v9843_v9 = vld [vmem:[#allocation53_spill] sm:$0xff]  ;;  %v9844_v48 = vld [vmem:[#allocation51_spill] sm:$0xff] }
 0x446   : > { %v8096_v4 = vpop.permute.xlu1 %2630 }
 0x447   : > { %v3292_v35 = vmul.f32 1.442695, %v2952_v24  ;;  %v3294_v10 = vmul.f32 1.442695, %v2953_v50  ;;  %v2932_v45 = vsub.f32 %v9841_v34, %v8096_v4  ;;  %v2933_v63 = vsub.f32 %v9843_v9, %v8096_v4 }
 0x448   : > { %v3296_v49 = vmul.f32 1.442695, %v2954_v1  ;;  %v2934_v6 = vsub.f32 %v9844_v48, %v8096_v4  ;;  %v2156_v24 = vmax.f32 %v7972_v11, %v8103_v58 }
 0x449   : > { %5022 = vpow2.f32 %v3292_v35  ;;  %v3252_v39 = vmul.f32 1.442695, %v2932_v45  ;;  %v3254_v50 = vmul.f32 1.442695, %v2933_v63  ;;  %v2131_v35 = vmax.f32 %v7807_v33, %v8114_v22  ;;  %v8125_v33 = vpop.f32.mrb[126].mxu0  ;;  %v9864_v22 = vld [vmem:[#allocation264_spill] sm:$0xff] }
 0x44a   : > { %5024 = vpow2.f32 %v3294_v10  ;;  %v3256_v34 = vmul.f32 1.442695, %v2934_v6  ;;  %9848 = vst [vmem:[#allocation52_spill] sm:$0xff] %v8125_v33 }
 0x44b   : > { %5026 = vpow2.f32 %v3296_v49 }
 0x44c   : > { %5028 = vpow2.f32 %v3252_v39 }
 0x44d   : > { %5030 = vpow2.f32 %v3254_v50 }
 0x44e   : > { %2157 = vmax.xlane.f32.xlu0 %v2156_v24  ;;  %5032 = vpow2.f32 %v3256_v34  ;;  %v8127_v24 = vpop.f32.mrb[127].mxu0  ;;  %v8132_v34 = vpop.f32.mrb[126].mxu1 }
 0x44f   : > { %9849 = vst [vmem:[#allocation53_spill] sm:$0xff] %v8127_v24  ;;  %v2159_v50 = vmax.f32 %v8125_v33, %v8127_v24  ;;  %9850 = vst [vmem:[#allocation51_spill] sm:$0xff] %v8132_v34  ;;  %v9862_v33 = vld [vmem:[#allocation61_spill] sm:$0xff] }
 0x453   : > { %v5023_v45 = vpop.eup %5022 }
 0x454   : > { %2132 = vmax.xlane.f32.xlu1 %v2131_v35  ;;  %v5025_v1 = vpop.eup %5024  ;;  %v8135_v35 = vmax.f32 %v2159_v50, %v8132_v34 }
 0x455   : > { %v3741_v11 = vadd.f32 %v5025_v1, %v5023_v45  ;;  %v5027_v10 = vpop.eup %5026  ;;  %v8137_v45 = vpop.f32.mrb[127].mxu1  ;;  %v8139_v1 = vld [vmem:[#allocation2 + $0x1d0] sm:$0xff] }
 0x456   : > { %v5029_v63 = vpop.eup %5028  ;;  %9851 = vst [vmem:[#allocation323_spill] sm:$0xff] %v8139_v1 }
 0x457   : > { %v8118_v49 = vadd.f32 %v5027_v10, %v3741_v11  ;;  %v5031_v6 = vpop.eup %5030  ;;  %v9852_v11 = vld [vmem:[#allocation254_spill] sm:$0xff] }
 0x458   : > { %v3716_v9 = vadd.f32 %v5031_v6, %v5029_v63  ;;  %v5033_v48 = vpop.eup %5032  ;;  %v9854_v6 = vld [vmem:[#allocation258_spill] sm:$0xff] }
 0x459   : > { %9846 = vst [vmem:[#allocation70_spill] sm:$0xff] %v8118_v49  ;;  %v9863_v49 = vld [vmem:[#allocation59_spill] sm:$0xff] }
 0x45a   : > { %v8120_v39 = vadd.f32 %v5033_v48, %v3716_v9  ;;  %v8148_v9 = vld [vmem:[#allocation2 + $0x1a8] sm:$0xff] }
 0x45b   : > { %9855 = vst [vmem:[#allocation325_spill] sm:$0xff] %v8148_v9 }
 0x464   : > { %2685 = vperm.xlu0 %4832, %v7425_v54   ;;  %v9860_v54 = vld [vmem:[#allocation78_spill] sm:$0xff] }
 0x465   : > { %2660 = vperm.xlu1 %4833, %v9847_v19  }
 0x468   : > { %2695 = vperm.xlu0 %4832, %v7449_v25  }
 0x46c   : > { %2705 = vperm.xlu0 %4832, %v7467_v31   ;;  %v9856_v31 = vld [vmem:[#allocation262_spill] sm:$0xff] }
 0x470   : > { %2715 = vperm.xlu0 %4832, %v9852_v11  }
 0x471   : > { %v2138_v10 = vpop.xlane.xlu0 %2137 }
 0x472   : > { %v8143_v63 = vmax.f32 %v8139_v1, %v2138_v10  ;;  %v9858_v10 = vld [vmem:[#allocation79_spill] sm:$0xff] }
 0x474   : > { %9853 = vst [vmem:[#allocation324_spill] sm:$0xff] %v8143_v63  ;;  %2725 = vperm.xlu0 %4832, %v9854_v6   ;;  %4143 = vst.msk [vmem:[#allocation2 + $0x1d0] sm:$0xff] %vm4020_vm4, %v8143_v63  ;;  %v9859_v6 = vld [vmem:[#allocation81_spill] sm:$0xff] }
 0x477   : > { %v2113_v48 = vpop.xlane.xlu1 %2112 }
 0x478   : > { %v8151_v50 = vmax.f32 %v8148_v9, %v2113_v48  ;;  %2735 = vperm.xlu0 %4832, %v9856_v31   ;;  %v9861_v31 = vld [vmem:[#allocation60_spill] sm:$0xff] }
 0x479   : > { %v8154_v25 = vpop.permute.xlu0 %2665 }
 0x47a   : > { %9857 = vst [vmem:[#allocation326_spill] sm:$0xff] %v8154_v25  ;;  %4138 = vst.msk [vmem:[#allocation2 + $0x1a8] sm:$0xff] %vm4020_vm4, %v8151_v50  ;;  %v2960_v11 = vsub.f32 %v9858_v10, %v8154_v25  ;;  %v2961_v1 = vsub.f32 %v9859_v6, %v8154_v25  ;;  %v2962_v58 = vsub.f32 %v9860_v54, %v8154_v25  ;;  %v9865_v54 = vld [vmem:[#allocation11_spill] sm:$0xff] }
 0x47b   : > { %v8164_v34 = vpop.permute.xlu1 %2640  ;;  %v2875_v25 = vsub.f32 %v9865_v54, %v9864_v22 }
 0x47c   : > { %v3308_v48 = vmul.f32 1.442695, %v2960_v11  ;;  %v3310_v9 = vmul.f32 1.442695, %v2961_v1  ;;  %v2940_v24 = vsub.f32 %v9861_v31, %v8164_v34  ;;  %v2941_v63 = vsub.f32 %v9862_v33, %v8164_v34 }
 0x47d   : > { %v3312_v19 = vmul.f32 1.442695, %v2962_v58  ;;  %v2942_v10 = vsub.f32 %v9863_v49, %v8164_v34  ;;  %v8177_v31 = vsel %vm6464_vm3, %v7886_v37, -inf  ;;  %v3138_v58 = vmul.f32 1.442695, %v2875_v25 }
 0x47e   : > { %5034 = vpow2.f32 %v3308_v48  ;;  %v3268_v14 = vmul.f32 1.442695, %v2940_v24  ;;  %v3270_v6 = vmul.f32 1.442695, %v2941_v63  ;;  %9866 = vst [vmem:[#allocation79_spill] sm:$0xff] %v8177_v31  ;;  %v2141_v49 = vmax.f32 %v7893_v46, %v8177_v31  ;;  %v8187_v46 = vld [vmem:[#allocation2 + $0x1e0] sm:$0xff] }
 0x47f   : > { %5036 = vpow2.f32 %v3310_v9  ;;  %v3272_v11 = vmul.f32 1.442695, %v2942_v10  ;;  %9869 = vst [vmem:[#allocation78_spill] sm:$0xff] %v8187_v46 }
 0x480   : > { %5038 = vpow2.f32 %v3312_v19 }
 0x481   : > { %5040 = vpow2.f32 %v3268_v14 }
 0x482   : > { %5042 = vpow2.f32 %v3270_v6  ;;  %v9868_v6 = vld [vmem:[#allocation230_spill] sm:$0xff] }
 0x483   : > { %5044 = vpow2.f32 %v3272_v11 }
 0x484   : > { %5046 = vpow2.f32 %v3138_v58  ;;  %v8194_v58 = vld [vmem:[#allocation2 + $0x1b8] sm:$0xff] }
 0x485   : > { %9871 = vst [vmem:[#allocation61_spill] sm:$0xff] %v8194_v58 }
 0x488   : > { %v5035_v33 = vpop.eup %5034 }
 0x489   : > { %2142 = vmax.xlane.f32.xlu1 %v2141_v49  ;;  %v5037_v24 = vpop.eup %5036 }
 0x48a   : > { %v3751_v1 = vadd.f32 %v5037_v24, %v5035_v33  ;;  %v5039_v22 = vpop.eup %5038  ;;  %v9873_v24 = vld [vmem:[#allocation87_spill] sm:$0xff] }
 0x48b   : > { %v5041_v19 = vpop.eup %5040 }
 0x48c   : > { %v8181_v63 = vadd.f32 %v5039_v22, %v3751_v1  ;;  %v5043_v14 = vpop.eup %5042  ;;  %v9874_v22 = vld [vmem:[#allocation89_spill] sm:$0xff] }
 0x48d   : > { %v3726_v9 = vadd.f32 %v5043_v14, %v5041_v19  ;;  %v5045_v48 = vpop.eup %5044  ;;  %v9875_v14 = vld [vmem:[#allocation86_spill] sm:$0xff] }
 0x48e   : > { %9867 = vst [vmem:[#allocation81_spill] sm:$0xff] %v8181_v63  ;;  %v5047_v10 = vpop.eup %5046 }
 0x48f   : > { %v8183_v37 = vadd.f32 %v5045_v48, %v3726_v9  ;;  %v3643_v25 = vadd.f32 %v5047_v10, %v7574_v29 }
 0x497   : > { %3644 = vadd.xlane.f32.xlu0 %v3643_v25 }
 0x49a   : > { %2670 = vperm.xlu1 %4833, %v9868_v6  }
 0x4a6   : > { %v2148_v54 = vpop.xlane.xlu0 %2147 }
 0x4a7   : > { %v8190_v11 = vmax.f32 %v8187_v46, %v2148_v54  ;;  %v9876_v54 = vld [vmem:[#allocation68_spill] sm:$0xff]  ;;  %v9877_v46 = vld [vmem:[#allocation69_spill] sm:$0xff] }
 0x4a9   : > { %9870 = vst [vmem:[#allocation60_spill] sm:$0xff] %v8190_v11  ;;  %4145 = vst.msk [vmem:[#allocation2 + $0x1e0] sm:$0xff] %vm4020_vm4, %v8190_v11  ;;  %v9878_v11 = vld [vmem:[#allocation67_spill] sm:$0xff] }
 0x4ac   : > { %v2123_v49 = vpop.xlane.xlu1 %2122 }
 0x4ad   : > { %v8197_v33 = vmax.f32 %v8194_v58, %v2123_v49  ;;  %2745 = vperm.xlu0 %4832, %v7614_v0  }
 0x4ae   : > { %v8200_v29 = vpop.permute.xlu0 %2675 }
 0x4af   : > { %9872 = vst [vmem:[#allocation59_spill] sm:$0xff] %v8200_v29  ;;  %4140 = vst.msk [vmem:[#allocation2 + $0x1b8] sm:$0xff] %vm4020_vm4, %v8197_v33  ;;  %v2968_v1 = vsub.f32 %v9873_v24, %v8200_v29  ;;  %v2969_v19 = vsub.f32 %v9874_v22, %v8200_v29  ;;  %v2970_v9 = vsub.f32 %v9875_v14, %v8200_v29  ;;  %v9879_v14 = vld [vmem:[#allocation12_spill] sm:$0xff] }
 0x4b0   : > { %v8210_v48 = vpop.permute.xlu1 %2650  ;;  %v2879_v29 = vsub.f32 %v9879_v14, %v7545_v20 }
 0x4b1   : > { %v3324_v10 = vmul.f32 1.442695, %v2968_v1  ;;  %v3326_v25 = vmul.f32 1.442695, %v2969_v19  ;;  %v2948_v49 = vsub.f32 %v9876_v54, %v8210_v48  ;;  %v2949_v58 = vsub.f32 %v9877_v46, %v8210_v48 }
 0x4b2   : > { %v3328_v0 = vmul.f32 1.442695, %v2970_v9  ;;  %v2950_v24 = vsub.f32 %v9878_v11, %v8210_v48  ;;  %v8223_v19 = vsel %vm6464_vm3, %v7962_v52, -inf  ;;  %v3146_v46 = vmul.f32 1.442695, %v2879_v29 }
 0x4b3   : > { %5048 = vpow2.f32 %v3324_v10  ;;  %v3284_v6 = vmul.f32 1.442695, %v2948_v49  ;;  %v3286_v22 = vmul.f32 1.442695, %v2949_v58  ;;  %9880 = vst [vmem:[#allocation264_spill] sm:$0xff] %v8223_v19  ;;  %v2151_v11 = vmax.f32 %v7969_v12, %v8223_v19  ;;  %v8233_v12 = vld [vmem:[#allocation2 + $0x1f0] sm:$0xff] }
 0x4b4   : > { %5050 = vpow2.f32 %v3326_v25  ;;  %v3288_v1 = vmul.f32 1.442695, %v2950_v24  ;;  %9884 = vst [vmem:[#allocation89_spill] sm:$0xff] %v8233_v12 }
 0x4b5   : > { %5052 = vpow2.f32 %v3328_v0 }
 0x4b6   : > { %5054 = vpow2.f32 %v3284_v6 }
 0x4b7   : > { %5056 = vpow2.f32 %v3286_v22  ;;  %v9883_v22 = vld [vmem:[#allocation239_spill] sm:$0xff] }
 0x4b8   : > { %5058 = vpow2.f32 %v3288_v1 }
 0x4b9   : > { %5060 = vpow2.f32 %v3146_v46  ;;  %v8240_v46 = vld [vmem:[#allocation2 + $0x1c8] sm:$0xff] }
 0x4ba   : > { %9886 = vst [vmem:[#allocation68_spill] sm:$0xff] %v8240_v46 }
 0x4bd   : > { %v5049_v9 = vpop.eup %5048 }
 0x4be   : > { %2152 = vmax.xlane.f32.xlu1 %v2151_v11  ;;  %v5051_v58 = vpop.eup %5050 }
 0x4bf   : > { %v3761_v10 = vadd.f32 %v5051_v58, %v5049_v9  ;;  %v5053_v20 = vpop.eup %5052  ;;  %v9888_v58 = vld [vmem:[#allocation95_spill] sm:$0xff] }
 0x4c0   : > { %v5055_v0 = vpop.eup %5054 }
 0x4c1   : > { %v8227_v25 = vadd.f32 %v5053_v20, %v3761_v10  ;;  %v5057_v6 = vpop.eup %5056  ;;  %v9889_v20 = vld [vmem:[#allocation97_spill] sm:$0xff] }
 0x4c2   : > { %v3736_v54 = vadd.f32 %v5057_v6, %v5055_v0  ;;  %v5059_v49 = vpop.eup %5058  ;;  %v9890_v6 = vld [vmem:[#allocation94_spill] sm:$0xff] }
 0x4c3   : > { %9881 = vst [vmem:[#allocation11_spill] sm:$0xff] %v8227_v25  ;;  %v5061_v24 = vpop.eup %5060 }
 0x4c4   : > { %v8229_v52 = vadd.f32 %v5059_v49, %v3736_v54  ;;  %v3648_v29 = vadd.f32 %v5061_v24, %v7587_v59 }
 0x4c6   : > { %9882 = vst [vmem:[#allocation87_spill] sm:$0xff] %v8229_v52 }
 0x4cc   : > { %3649 = vadd.xlane.f32.xlu0 %v3648_v29 }
 0x4cf   : > { %2680 = vperm.xlu1 %4833, %v9883_v22  }
 0x4db   : > { %v2158_v14 = vpop.xlane.xlu0 %2157 }
 0x4dc   : > { %v8236_v1 = vmax.f32 %v8233_v12, %v2158_v14  ;;  %v9892_v14 = vld [vmem:[#allocation76_spill] sm:$0xff]  ;;  %v9893_v12 = vld [vmem:[#allocation77_spill] sm:$0xff] }
 0x4de   : > { %9885 = vst [vmem:[#allocation86_spill] sm:$0xff] %v8236_v1  ;;  %4147 = vst.msk [vmem:[#allocation2 + $0x1f0] sm:$0xff] %vm4020_vm4, %v8236_v1 }
 0x4e1   : > { %v2133_v11 = vpop.xlane.xlu1 %2132 }
 0x4e2   : > { %v8243_v9 = vmax.f32 %v8240_v46, %v2133_v11  ;;  %2755 = vperm.xlu0 %4832, %v7723_v23  }
 0x4e3   : > { %v8246_v59 = vpop.permute.xlu0 %2685 }
 0x4e4   : > { %9887 = vst [vmem:[#allocation69_spill] sm:$0xff] %v8246_v59  ;;  %4142 = vst.msk [vmem:[#allocation2 + $0x1c8] sm:$0xff] %vm4020_vm4, %v8243_v9  ;;  %v2976_v10 = vsub.f32 %v9888_v58, %v8246_v59  ;;  %v2977_v0 = vsub.f32 %v9889_v20, %v8246_v59  ;;  %v2978_v54 = vsub.f32 %v9890_v6, %v8246_v59  ;;  %v9895_v58 = vld [vmem:[#allocation75_spill] sm:$0xff] }
 0x4e5   : > { %v8256_v49 = vpop.permute.xlu1 %2660  ;;  %v9896_v6 = vld [vmem:[#allocation103_spill] sm:$0xff] }
 0x4e6   : > { %9891 = vst [vmem:[#allocation67_spill] sm:$0xff] %v8256_v49  ;;  %v3340_v24 = vmul.f32 1.442695, %v2976_v10  ;;  %v3342_v29 = vmul.f32 1.442695, %v2977_v0  ;;  %v2956_v11 = vsub.f32 %v9892_v14, %v8256_v49  ;;  %v2957_v46 = vsub.f32 %v9893_v12, %v8256_v49  ;;  %v9897_v0 = vld [vmem:[#allocation105_spill] sm:$0xff] }
 0x4e7   : > { %v8262_v23 = vpop.permute.xlu0 %2695  ;;  %v3344_v1 = vmul.f32 1.442695, %v2978_v54  ;;  %v2958_v22 = vsub.f32 %v9895_v58, %v8256_v49  ;;  %v9898_v14 = vld [vmem:[#allocation14_spill] sm:$0xff]  ;;  %v9900_v58 = vld [vmem:[#allocation111_spill] sm:$0xff] }
 0x4e8   : > { %9894 = vst [vmem:[#allocation12_spill] sm:$0xff] %v8262_v23  ;;  %5062 = vpow2.f32 %v3340_v24  ;;  %v3300_v20 = vmul.f32 1.442695, %v2956_v11  ;;  %v2984_v59 = vsub.f32 %v9896_v6, %v8262_v23  ;;  %v3302_v10 = vmul.f32 1.442695, %v2957_v46  ;;  %v9899_v12 = vld [vmem:[#allocation102_spill] sm:$0xff] }
 0x4e9   : > { %5064 = vpow2.f32 %v3342_v29  ;;  %v2985_v25 = vsub.f32 %v9897_v0, %v8262_v23  ;;  %v2887_v63 = vsub.f32 %v9898_v14, %v7657_v43  ;;  %v2986_v19 = vsub.f32 %v9899_v12, %v8262_v23  ;;  %v9902_v29 = vld [vmem:[#allocation110_spill] sm:$0xff] }
 0x4ea   : > { %5066 = vpow2.f32 %v3344_v1  ;;  %v3304_v31 = vmul.f32 1.442695, %v2958_v22  ;;  %v3356_v11 = vmul.f32 1.442695, %v2984_v59  ;;  %v8280_v0 = vsel %vm6464_vm3, %v8137_v45, -inf  ;;  %v9904_v23 = vld [vmem:[#allocation114_spill] sm:$0xff] }
 0x4eb   : > { %v2706_v54 = vpop.permute.xlu0 %2705  ;;  %5068 = vpow2.f32 %v3300_v20  ;;  %9903 = vst [vmem:[#allocation95_spill] sm:$0xff] %v8280_v0  ;;  %v3358_v43 = vmul.f32 1.442695, %v2985_v25  ;;  %v3162_v14 = vmul.f32 1.442695, %v2887_v63  ;;  %v9906_v59 = vld [vmem:[#allocation121_spill] sm:$0xff]  ;;  %v2161_v2 = vmax.f32 %v8135_v35, %v8280_v0 }
 0x4ec   : > { %v2992_v24 = vsub.f32 %v9900_v58, %v2706_v54  ;;  %v2993_v6 = vsub.f32 %v9901_v15, %v2706_v54  ;;  %v2994_v46 = vsub.f32 %v9902_v29, %v2706_v54  ;;  %5070 = vpow2.f32 %v3302_v10  ;;  %v9905_v58 = vld [vmem:[#allocation119_spill] sm:$0xff]  ;;  %v9907_v15 = vld [vmem:[#allocation118_spill] sm:$0xff] }
 0x4ed   : > { %v3360_v12 = vmul.f32 1.442695, %v2986_v19  ;;  %v2995_v1 = vsub.f32 %v9904_v23, %v2706_v54  ;;  %5072 = vpow2.f32 %v3304_v31  ;;  %v9908_v23 = vld [vmem:[#allocation122_spill] sm:$0xff] }
 0x4ee   : > { %5074 = vpow2.f32 %v3356_v11  ;;  %v3372_v10 = vmul.f32 1.442695, %v2992_v24  ;;  %v3374_v45 = vmul.f32 1.442695, %v2993_v6  ;;  %v3376_v63 = vmul.f32 1.442695, %v2994_v46 }
 0x4ef   : > { %v2716_v22 = vpop.permute.xlu0 %2715  ;;  %5076 = vpow2.f32 %v3358_v43  ;;  %v3378_v19 = vmul.f32 1.442695, %v2995_v1  ;;  %v9911_v24 = vld [vmem:[#allocation126_spill] sm:$0xff] }
 0x4f0   : > { %v3000_v20 = vsub.f32 %v9905_v58, %v2716_v22  ;;  %v3001_v38 = vsub.f32 %v9906_v59, %v2716_v22  ;;  %v3002_v49 = vsub.f32 %v9907_v15, %v2716_v22  ;;  %5078 = vpow2.f32 %v3162_v14  ;;  %v9909_v58 = vld [vmem:[#allocation127_spill] sm:$0xff]  ;;  %v9910_v15 = vld [vmem:[#allocation129_spill] sm:$0xff] }
 0x4f1   : > { %v3003_v54 = vsub.f32 %v9908_v23, %v2716_v22  ;;  %5080 = vpow2.f32 %v3360_v12  ;;  %v9912_v23 = vld [vmem:[#allocation130_spill] sm:$0xff] }
 0x4f2   : > { %v5063_v25 = vpop.eup %5062  ;;  %5082 = vpow2.f32 %v3372_v10  ;;  %v3388_v35 = vmul.f32 1.442695, %v3000_v20  ;;  %v3390_v14 = vmul.f32 1.442695, %v3001_v38  ;;  %v3392_v46 = vmul.f32 1.442695, %v3002_v49 }
 0x4f3   : > { %v2726_v31 = vpop.permute.xlu0 %2725  ;;  %2162 = vmax.xlane.f32.xlu1 %v2161_v2  ;;  %v5065_v29 = vpop.eup %5064  ;;  %5084 = vpow2.f32 %v3374_v45  ;;  %v3394_v22 = vmul.f32 1.442695, %v3003_v54  ;;  %v9916_v20 = vld [vmem:[#allocation134_spill] sm:$0xff] }
 0x4f4   : > { %v3008_v59 = vsub.f32 %v9909_v58, %v2726_v31  ;;  %v3009_v11 = vsub.f32 %v9910_v15, %v2726_v31  ;;  %v3010_v52 = vsub.f32 %v9911_v24, %v2726_v31  ;;  %v3771_v43 = vadd.f32 %v5065_v29, %v5063_v25  ;;  %v5067_v6 = vpop.eup %5066  ;;  %v9914_v15 = vld [vmem:[#allocation135_spill] sm:$0xff]  ;;  %v9915_v24 = vld [vmem:[#allocation137_spill] sm:$0xff] }
 0x4f5   : > { %v5069_v1 = vpop.eup %5068  ;;  %5086 = vpow2.f32 %v3376_v63  ;;  %v3011_v2 = vsub.f32 %v9912_v23, %v2726_v31 }
 0x4f6   : > { %v8293_v12 = vadd.f32 %v5067_v6, %v3771_v43  ;;  %v5071_v58 = vpop.eup %5070  ;;  %5088 = vpow2.f32 %v3378_v19  ;;  %v3404_v45 = vmul.f32 1.442695, %v3008_v59  ;;  %v3406_v63 = vmul.f32 1.442695, %v3009_v11 }
 0x4f7   : > { %v2736_v0 = vpop.permute.xlu0 %2735  ;;  %5090 = vpow2.f32 %v3388_v35  ;;  %v3746_v38 = vadd.f32 %v5071_v58, %v5069_v1  ;;  %v5073_v49 = vpop.eup %5072  ;;  %v3408_v31 = vmul.f32 1.442695, %v3010_v52  ;;  %v3410_v19 = vmul.f32 1.442695, %v3011_v2  ;;  %v9917_v35 = vld [vmem:[#allocation140_spill] sm:$0xff] }
 0x4f8   : > { %9913 = vst [vmem:[#allocation97_spill] sm:$0xff] %v8293_v12  ;;  %v3016_v60 = vsub.f32 %v9914_v15, %v2736_v0  ;;  %v3017_v10 = vsub.f32 %v9915_v24, %v2736_v0  ;;  %v3018_v25 = vsub.f32 %v9916_v20, %v2736_v0  ;;  %5092 = vpow2.f32 %v3390_v14  ;;  %v5075_v54 = vpop.eup %5074 }
 0x4f9   : > { %5094 = vpow2.f32 %v3392_v46  ;;  %v8298_v29 = vadd.f32 %v5073_v49, %v3746_v38  ;;  %v5077_v43 = vpop.eup %5076  ;;  %v3019_v59 = vsub.f32 %v9917_v35, %v2736_v0 }
 0x4fa   : > { %5096 = vpow2.f32 %v3394_v22  ;;  %v5079_v6 = vpop.eup %5078  ;;  %v3420_v23 = vmul.f32 1.442695, %v3016_v60  ;;  %v3781_v15 = vadd.f32 %v5077_v43, %v5075_v54  ;;  %v3422_v1 = vmul.f32 1.442695, %v3017_v10  ;;  %v9919_v10 = vld [vmem:[#allocation243_spill] sm:$0xff] }
 0x4fb   : > { %5098 = vpow2.f32 %v3404_v45  ;;  %v5081_v24 = vpop.eup %5080  ;;  %v3658_v11 = vadd.f32 %v5079_v6, %v7694_v7  ;;  %v3424_v46 = vmul.f32 1.442695, %v3018_v25  ;;  %v3426_v20 = vmul.f32 1.442695, %v3019_v59 }
 0x4fc   : > { %5100 = vpow2.f32 %v3406_v63  ;;  %v5083_v58 = vpop.eup %5082  ;;  %v8302_v14 = vadd.f32 %v5081_v24, %v3781_v15 }
 0x4fd   : > { %5102 = vpow2.f32 %v3408_v31  ;;  %v5085_v52 = vpop.eup %5084 }
 0x4fe   : > { %9918 = vst [vmem:[#allocation94_spill] sm:$0xff] %v8302_v14  ;;  %5104 = vpow2.f32 %v3410_v19  ;;  %v3791_v2 = vadd.f32 %v5085_v52, %v5083_v58  ;;  %v9921_v19 = vld [vmem:[#allocation249_spill] sm:$0xff] }
 0x4ff   : > { %v5087_v22 = vpop.eup %5086  ;;  %5106 = vpow2.f32 %v3420_v23  ;;  %v9923_v58 = vld [vmem:[#allocation253_spill] sm:$0xff] }
 0x500   : > { %v5089_v60 = vpop.eup %5088  ;;  %5108 = vpow2.f32 %v3422_v1  ;;  %v3792_v38 = vadd.f32 %v5087_v22, %v3791_v2  ;;  %v9985_v14 = vld [vmem:[#allocation169_spill] sm:$0xff] }
 0x501   : > { %3659 = vadd.xlane.f32.xlu0 %v3658_v11  ;;  %v5091_v45 = vpop.eup %5090  ;;  %5110 = vpow2.f32 %v3424_v46 }
 0x502   : > { %v5093_v0 = vpop.eup %5092  ;;  %v8305_v7 = vadd.f32 %v5089_v60, %v3792_v38  ;;  %5112 = vpow2.f32 %v3426_v20  ;;  %v9925_v60 = vld [vmem:[#allocation257_spill] sm:$0xff] }
 0x503   : > { %v5095_v49 = vpop.eup %5094  ;;  %v3801_v63 = vadd.f32 %v5093_v0, %v5091_v45  ;;  %v9927_v45 = vld [vmem:[#allocation141_spill] sm:$0xff] }
 0x504   : > { %2690 = vperm.xlu1 %4833, %v9919_v10   ;;  %9920 = vst [vmem:[#allocation76_spill] sm:$0xff] %v8305_v7  ;;  %v5097_v54 = vpop.eup %5096  ;;  %v9928_v38 = vld [vmem:[#allocation145_spill] sm:$0xff]  ;;  %v9984_v7 = vld [vmem:[#allocation166_spill] sm:$0xff] }
 0x505   : > { %v5099_v25 = vpop.eup %5098  ;;  %v3802_v31 = vadd.f32 %v5095_v49, %v3801_v63  ;;  %v9929_v0 = vsub.f32 %v9927_v45, %v9928_v38  ;;  %v9930_v63 = vld [vmem:[#allocation261_spill] sm:$0xff]  ;;  %v2421_v45 = vld [vmem:[#allocation3 + $0x8] sm:$0xff] }
 0x506   : > { %v5101_v43 = vpop.eup %5100  ;;  %v9936_v38 = vld [vmem:[#allocation19_spill] sm:$0xff] }
 0x507   : > { %v5103_v6 = vpop.eup %5102  ;;  %v8308_v23 = vadd.f32 %v5097_v54, %v3802_v31  ;;  %v3811_v15 = vadd.f32 %v5101_v43, %v5099_v25  ;;  %v2294_v49 = vmul.f32 1.442695, %v9929_v0  ;;  %v8320_v54 = vld [vmem:[#allocation2 + $0x1d8] sm:$0xff]  ;;  %v2895_v0 = vsub.f32 %v9936_v38, %v7748_v16  ;;  %v9940_v38 = vld [vmem:[#allocation148_spill] sm:$0xff] }
 0x508   : > { %2700 = vperm.xlu1 %4833, %v9921_v19   ;;  %v5105_v24 = vpop.eup %5104  ;;  %9931 = vst [vmem:[#allocation105_spill] sm:$0xff] %v8320_v54 }
 0x509   : > { %9922 = vst [vmem:[#allocation77_spill] sm:$0xff] %v8308_v23  ;;  %v5107_v35 = vpop.eup %5106  ;;  %v3812_v59 = vadd.f32 %v5103_v6, %v3811_v15  ;;  %5114 = vpow2.f32 %v2294_v49  ;;  %v9933_v6 = vld [vmem:[#allocation84_spill] sm:$0xff]  ;;  %v9937_v49 = vld [vmem:[#allocation267_spill] sm:$0xff] }
 0x50a   : > { %v5109_v1 = vpop.eup %5108 }
 0x50b   : > { %v8311_v11 = vadd.f32 %v5105_v24, %v3812_v59  ;;  %v3821_v52 = vadd.f32 %v5109_v1, %v5107_v35  ;;  %v5111_v46 = vpop.eup %5110  ;;  %v9934_v24 = vld [vmem:[#allocation85_spill] sm:$0xff]  ;;  %v9935_v59 = vld [vmem:[#allocation83_spill] sm:$0xff] }
 0x50c   : > { %2710 = vperm.xlu1 %4833, %v9923_v58   ;;  %v5113_v2 = vpop.eup %5112 }
 0x50d   : > { %9924 = vst [vmem:[#allocation75_spill] sm:$0xff] %v8311_v11  ;;  %v3822_v22 = vadd.f32 %v5111_v46, %v3821_v52 }
 0x50f   : > { %v8314_v20 = vadd.f32 %v5113_v2, %v3822_v22 }
 0x510   : > { %2720 = vperm.xlu1 %4833, %v9925_v60  }
 0x511   : > { %9926 = vst [vmem:[#allocation103_spill] sm:$0xff] %v8314_v20 }
 0x513   : > { %v5115_v2 = vpop.eup %5114 }
 0x514   : > { %2730 = vperm.xlu1 %4833, %v9930_v63  }
 0x516   : > { %v2143_v25 = vpop.xlane.xlu1 %2142 }
 0x517   : > { %v8323_v31 = vmax.f32 %v8320_v54, %v2143_v25  ;;  %2765 = vperm.xlu0 %4832, %v7820_v3   ;;  %v9938_v25 = vld [vmem:[#allocation10_spill] sm:$0xff] }
 0x518   : > { %v2871_v54 = vsub.f32 %v9938_v25, %v9937_v49  ;;  %v9941_v49 = vld [vmem:[#allocation149_spill] sm:$0xff] }
 0x519   : > { %9932 = vst [vmem:[#allocation14_spill] sm:$0xff] %v8323_v31  ;;  %4144 = vst.msk [vmem:[#allocation2 + $0x1d8] sm:$0xff] %vm4020_vm4, %v8323_v31 }
 0x51a   : > { %v8328_v43 = vpop.permute.xlu1 %2670  ;;  %v3130_v11 = vmul.f32 1.442695, %v2871_v54 }
 0x51b   : > { %v2964_v15 = vsub.f32 %v9933_v6, %v8328_v43  ;;  %v2965_v35 = vsub.f32 %v9934_v24, %v8328_v43  ;;  %v2966_v1 = vsub.f32 %v9935_v59, %v8328_v43  ;;  %v2485_v6 = vmul.f32 %v5115_v2, %v2421_v45  ;;  %v9942_v2 = vld [vmem:[#allocation206_spill] sm:$0xff] }
 0x51c   : > { %v3178_v24 = vmul.f32 1.442695, %v2895_v0 }
 0x51d   : > { %v3316_v52 = vmul.f32 1.442695, %v2964_v15  ;;  %v3318_v46 = vmul.f32 1.442695, %v2965_v35  ;;  %v3320_v22 = vmul.f32 1.442695, %v2966_v1 }
 0x51f   : > { %5116 = vpow2.f32 %v3316_v52 }
 0x520   : > { %5118 = vpow2.f32 %v3318_v46  ;;  %v9939_v46 = vld [vmem:[#allocation146_spill] sm:$0xff] }
 0x521   : > { %5120 = vpow2.f32 %v3320_v22 }
 0x522   : > { %5122 = vpow2.f32 %v3178_v24 }
 0x523   : > { %5124 = vpow2.f32 %v3130_v11 }
 0x524   : > { %v3645_v3 = vpop.xlane.xlu0 %3644 }
 0x525   : > { %v3957_v20 = vadd.f32 %v3645_v3, %v2485_v6 }
 0x527   : > { %4022 = vst.msk [vmem:[#allocation3 + $0x8] sm:$0xff] %vm4020_vm4, %v3957_v20 }
 0x529   : > { %v5117_v15 = vpop.eup %5116 }
 0x52a   : > { %v5119_v35 = vpop.eup %5118 }
 0x52b   : > { %v3756_v59 = vadd.f32 %v5119_v35, %v5117_v15  ;;  %v5121_v52 = vpop.eup %5120 }
 0x52c   : > { %v2746_v1 = vpop.permute.xlu0 %2745  ;;  %v5123_v11 = vpop.eup %5122 }
 0x52d   : > { %v3024_v16 = vsub.f32 %v9939_v46, %v2746_v1  ;;  %v3025_v23 = vsub.f32 %v9940_v38, %v2746_v1  ;;  %v3026_v22 = vsub.f32 %v9941_v49, %v2746_v1  ;;  %v3027_v45 = vsub.f32 %v9942_v2, %v2746_v1  ;;  %v5125_v24 = vpop.eup %5124  ;;  %v9944_v38 = vld [vmem:[#allocation147_spill] sm:$0xff]  ;;  %v9945_v49 = vld [vmem:[#allocation150_spill] sm:$0xff] }
 0x52e   : > { %v8345_v0 = vadd.f32 %v5121_v52, %v3756_v59  ;;  %v3668_v6 = vadd.f32 %v5123_v11, %v7780_v26  ;;  %v3638_v15 = vadd.f32 %v5125_v24, %v7583_v27  ;;  %v8355_v26 = vld [vmem:[#allocation2 + $0x1e8] sm:$0xff] }
 0x52f   : > { %v3436_v3 = vmul.f32 1.442695, %v3024_v16  ;;  %v3438_v54 = vmul.f32 1.442695, %v3025_v23  ;;  %v3440_v20 = vmul.f32 1.442695, %v3026_v22  ;;  %v9946_v22 = vsub.f32 %v9944_v38, %v9945_v49 }
 0x530   : > { %v3442_v25 = vmul.f32 1.442695, %v3027_v45  ;;  %9947 = vst [vmem:[#allocation111_spill] sm:$0xff] %v8355_v26  ;;  %v9952_v38 = vld [vmem:[#allocation13_spill] sm:$0xff] }
 0x531   : > { %5126 = vpow2.f32 %v3436_v3  ;;  %v2296_v2 = vmul.f32 1.442695, %v9946_v22  ;;  %v2883_v49 = vsub.f32 %v9952_v38, %v7633_v41  ;;  %v9955_v41 = vld [vmem:[#allocation159_spill] sm:$0xff] }
 0x532   : > { %5128 = vpow2.f32 %v3438_v54  ;;  %v9948_v54 = vld [vmem:[#allocation92_spill] sm:$0xff] }
 0x533   : > { %5130 = vpow2.f32 %v3440_v20 }
 0x534   : > { %5132 = vpow2.f32 %v3442_v25  ;;  %v9949_v25 = vld [vmem:[#allocation93_spill] sm:$0xff] }
 0x535   : > { %5134 = vpow2.f32 %v2296_v2 }
 0x536   : > { %3669 = vadd.xlane.f32.xlu0 %v3668_v6  ;;  %v9950_v6 = vld [vmem:[#allocation91_spill] sm:$0xff] }
 0x538   : > { %3639 = vadd.xlane.f32.xlu1 %v3638_v15 }
 0x53b   : > { %v5127_v35 = vpop.eup %5126 }
 0x53c   : > { %v5129_v1 = vpop.eup %5128 }
 0x53d   : > { %v3831_v59 = vadd.f32 %v5129_v1, %v5127_v35  ;;  %v5131_v52 = vpop.eup %5130 }
 0x53e   : > { %v5133_v23 = vpop.eup %5132 }
 0x53f   : > { %v3832_v46 = vadd.f32 %v5131_v52, %v3831_v59  ;;  %v5135_v59 = vpop.eup %5134  ;;  %v2422_v52 = vld [vmem:[#allocation3 + $0x10] sm:$0xff] }
 0x540   : > { %v2486_v22 = vmul.f32 %v5135_v59, %v2422_v52  ;;  %v9956_v59 = vld [vmem:[#allocation244_spill] sm:$0xff] }
 0x541   : > { %v8349_v16 = vadd.f32 %v5133_v23, %v3832_v46  ;;  %v9951_v46 = vld [vmem:[#allocation25_spill] sm:$0xff] }
 0x542   : > { %v2903_v23 = vsub.f32 %v9951_v46, %v7842_v56  ;;  %v9954_v46 = vld [vmem:[#allocation158_spill] sm:$0xff] }
 0x543   : > { %9943 = vst [vmem:[#allocation102_spill] sm:$0xff] %v8349_v16  ;;  %v9978_v16 = vld [vmem:[#allocation123_spill] sm:$0xff] }
 0x549   : > { %2740 = vperm.xlu1 %4833, %v7595_v44  }
 0x54b   : > { %v2153_v45 = vpop.xlane.xlu1 %2152 }
 0x54c   : > { %v8358_v27 = vmax.f32 %v8355_v26, %v2153_v45  ;;  %2775 = vperm.xlu0 %4832, %v7908_v18   ;;  %v3194_v45 = vmul.f32 1.442695, %v2903_v23 }
 0x54e   : > { %4146 = vst.msk [vmem:[#allocation2 + $0x1e8] sm:$0xff] %vm4020_vm4, %v8358_v27 }
 0x54f   : > { %v8363_v3 = vpop.permute.xlu1 %2680 }
 0x550   : > { %v2972_v20 = vsub.f32 %v9948_v54, %v8363_v3  ;;  %v2973_v11 = vsub.f32 %v9949_v25, %v8363_v3  ;;  %v2974_v24 = vsub.f32 %v9950_v6, %v8363_v3  ;;  %v3154_v25 = vmul.f32 1.442695, %v2883_v49 }
 0x552   : > { %v3332_v15 = vmul.f32 1.442695, %v2972_v20  ;;  %v3334_v35 = vmul.f32 1.442695, %v2973_v11  ;;  %v3336_v1 = vmul.f32 1.442695, %v2974_v24 }
 0x554   : > { %5136 = vpow2.f32 %v3332_v15 }
 0x555   : > { %5138 = vpow2.f32 %v3334_v35  ;;  %v9953_v35 = vld [vmem:[#allocation156_spill] sm:$0xff] }
 0x556   : > { %5140 = vpow2.f32 %v3336_v1 }
 0x557   : > { %5142 = vpow2.f32 %v3194_v45 }
 0x558   : > { %5144 = vpow2.f32 %v3154_v25 }
 0x559   : > { %v3650_v2 = vpop.xlane.xlu0 %3649 }
 0x55a   : > { %v3958_v54 = vadd.f32 %v3650_v2, %v2486_v22 }
 0x55c   : > { %4023 = vst.msk [vmem:[#allocation3 + $0x10] sm:$0xff] %vm4020_vm4, %v3958_v54 }
 0x55e   : > { %v5137_v20 = vpop.eup %5136 }
 0x55f   : > { %v5139_v11 = vpop.eup %5138 }
 0x560   : > { %v3766_v6 = vadd.f32 %v5139_v11, %v5137_v20  ;;  %v5141_v15 = vpop.eup %5140 }
 0x561   : > { %v2756_v24 = vpop.permute.xlu0 %2755  ;;  %v5143_v45 = vpop.eup %5142 }
 0x562   : > { %v3032_v56 = vsub.f32 %v9953_v35, %v2756_v24  ;;  %v3033_v26 = vsub.f32 %v9954_v46, %v2756_v24  ;;  %v3034_v1 = vsub.f32 %v9955_v41, %v2756_v24  ;;  %v3035_v52 = vsub.f32 %v9956_v59, %v2756_v24  ;;  %v5145_v25 = vpop.eup %5144  ;;  %v9958_v46 = vld [vmem:[#allocation157_spill] sm:$0xff] }
 0x563   : > { %v8380_v23 = vadd.f32 %v5141_v15, %v3766_v6  ;;  %v3678_v54 = vadd.f32 %v5143_v45, %v7868_v32  ;;  %v3653_v20 = vadd.f32 %v5145_v25, %v7685_v21  ;;  %v9959_v41 = vld [vmem:[#allocation161_spill] sm:$0xff]  ;;  %v9965_v25 = vld [vmem:[#allocation100_spill] sm:$0xff] }
 0x564   : > { %v3452_v38 = vmul.f32 1.442695, %v3032_v56  ;;  %v3454_v49 = vmul.f32 1.442695, %v3033_v26  ;;  %v3456_v22 = vmul.f32 1.442695, %v3034_v1  ;;  %v9960_v1 = vsub.f32 %v9958_v46, %v9959_v41 }
 0x565   : > { %v3458_v2 = vmul.f32 1.442695, %v3035_v52  ;;  %v8390_v32 = vld [vmem:[#allocation2 + $0x1f8] sm:$0xff]  ;;  %v9962_v52 = vld [vmem:[#allocation15_spill] sm:$0xff]  ;;  %v9968_v41 = vld [vmem:[#allocation108_spill] sm:$0xff] }
 0x566   : > { %5146 = vpow2.f32 %v3452_v38  ;;  %v2300_v59 = vmul.f32 1.442695, %v9960_v1  ;;  %9961 = vst [vmem:[#allocation110_spill] sm:$0xff] %v8390_v32  ;;  %v2891_v21 = vsub.f32 %v9962_v52, %v7738_v28  ;;  %v9966_v28 = vld [vmem:[#allocation101_spill] sm:$0xff] }
 0x567   : > { %5148 = vpow2.f32 %v3454_v49 }
 0x568   : > { %5150 = vpow2.f32 %v3456_v22  ;;  %v9964_v22 = vld [vmem:[#allocation32_spill] sm:$0xff]  ;;  %v3170_v45 = vmul.f32 1.442695, %v2891_v21  ;;  %v9970_v21 = vld [vmem:[#allocation107_spill] sm:$0xff] }
 0x569   : > { %5152 = vpow2.f32 %v3458_v2  ;;  %v2911_v2 = vsub.f32 %v9964_v22, %v7920_v17  ;;  %v9971_v22 = vld [vmem:[#allocation112_spill] sm:$0xff] }
 0x56a   : > { %5154 = vpow2.f32 %v2300_v59  ;;  %v9969_v59 = vld [vmem:[#allocation109_spill] sm:$0xff] }
 0x56b   : > { %3679 = vadd.xlane.f32.xlu0 %v3678_v54  ;;  %5156 = vpow2.f32 %v3170_v45 }
 0x56d   : > { %3654 = vadd.xlane.f32.xlu1 %v3653_v20 }
 0x570   : > { %v5147_v11 = vpop.eup %5146 }
 0x571   : > { %v5149_v24 = vpop.eup %5148 }
 0x572   : > { %v3841_v6 = vadd.f32 %v5149_v24, %v5147_v11  ;;  %v5151_v15 = vpop.eup %5150  ;;  %v9967_v24 = vld [vmem:[#allocation99_spill] sm:$0xff] }
 0x573   : > { %v5153_v26 = vpop.eup %5152 }
 0x574   : > { %v3842_v35 = vadd.f32 %v5151_v15, %v3841_v6  ;;  %v3210_v15 = vmul.f32 1.442695, %v2911_v2 }
 0x576   : > { %v8384_v56 = vadd.f32 %v5153_v26, %v3842_v35 }
 0x578   : > { %9957 = vst [vmem:[#allocation113_spill] sm:$0xff] %v8384_v56  ;;  %v9977_v56 = vld [vmem:[#allocation125_spill] sm:$0xff] }
 0x57e   : > { %2750 = vperm.xlu1 %4833, %v7604_v55  }
 0x580   : > { %v2163_v38 = vpop.xlane.xlu1 %2162 }
 0x581   : > { %v8395_v49 = vmax.f32 %v8390_v32, %v2163_v38  ;;  %2785 = vperm.xlu0 %4832, %v7984_v61   ;;  %v5155_v32 = vpop.eup %5154 }
 0x583   : > { %9963 = vst [vmem:[#allocation114_spill] sm:$0xff] %v8395_v49  ;;  %4148 = vst.msk [vmem:[#allocation2 + $0x1f8] sm:$0xff] %vm4020_vm4, %v8395_v49 }
 0x584   : > { %v8402_v54 = vpop.permute.xlu1 %2690 }
 0x585   : > { %v2980_v20 = vsub.f32 %v9965_v25, %v8402_v54  ;;  %v2981_v11 = vsub.f32 %v9966_v28, %v8402_v54  ;;  %v2982_v6 = vsub.f32 %v9967_v24, %v8402_v54  ;;  %v2424_v28 = vld [vmem:[#allocation3 + $0x20] sm:$0xff] }
 0x587   : > { %v3348_v35 = vmul.f32 1.442695, %v2980_v20  ;;  %v3350_v26 = vmul.f32 1.442695, %v2981_v11  ;;  %v3352_v17 = vmul.f32 1.442695, %v2982_v6 }
 0x588   : > { %v2701_v46 = vpop.permute.xlu1 %2700  ;;  %v9972_v6 = vld [vmem:[#allocation116_spill] sm:$0xff] }
 0x589   : > { %5158 = vpow2.f32 %v3348_v35  ;;  %v2988_v1 = vsub.f32 %v9968_v41, %v2701_v46  ;;  %v2989_v52 = vsub.f32 %v9969_v59, %v2701_v46  ;;  %v2990_v38 = vsub.f32 %v9970_v21, %v2701_v46  ;;  %v9973_v41 = vld [vmem:[#allocation117_spill] sm:$0xff]  ;;  %v9974_v59 = vld [vmem:[#allocation115_spill] sm:$0xff] }
 0x58a   : > { %5160 = vpow2.f32 %v3350_v26  ;;  %v2991_v25 = vsub.f32 %v9971_v22, %v2701_v46  ;;  %v9975_v26 = vld [vmem:[#allocation120_spill] sm:$0xff]  ;;  %v2488_v46 = vmul.f32 %v5155_v32, %v2424_v28 }
 0x58b   : > { %5162 = vpow2.f32 %v3210_v15  ;;  %v3364_v24 = vmul.f32 1.442695, %v2988_v1  ;;  %v3366_v2 = vmul.f32 1.442695, %v2989_v52  ;;  %v3368_v20 = vmul.f32 1.442695, %v2990_v38 }
 0x58c   : > { %5164 = vpow2.f32 %v3352_v17  ;;  %v3370_v45 = vmul.f32 1.442695, %v2991_v25  ;;  %v2711_v11 = vpop.permute.xlu1 %2710  ;;  %v9979_v32 = vld [vmem:[#allocation128_spill] sm:$0xff] }
 0x58d   : > { %5166 = vpow2.f32 %v3364_v24  ;;  %v2996_v35 = vsub.f32 %v9972_v6, %v2711_v11  ;;  %v2997_v61 = vsub.f32 %v9973_v41, %v2711_v11  ;;  %v2998_v18 = vsub.f32 %v9974_v59, %v2711_v11  ;;  %v9976_v24 = vld [vmem:[#allocation124_spill] sm:$0xff] }
 0x58e   : > { %5168 = vpow2.f32 %v3366_v2  ;;  %v2999_v21 = vsub.f32 %v9975_v26, %v2711_v11  ;;  %v3660_v22 = vpop.xlane.xlu0 %3659  ;;  %v5157_v2 = vpop.eup %5156 }
 0x58f   : > { %5170 = vpow2.f32 %v3368_v20  ;;  %v3380_v15 = vmul.f32 1.442695, %v2996_v35  ;;  %v3382_v1 = vmul.f32 1.442695, %v2997_v61  ;;  %v3384_v52 = vmul.f32 1.442695, %v2998_v18 }
 0x590   : > { %5172 = vpow2.f32 %v3370_v45  ;;  %v3386_v17 = vmul.f32 1.442695, %v2999_v21  ;;  %v3960_v38 = vadd.f32 %v3660_v22, %v2488_v46  ;;  %v2721_v25 = vpop.permute.xlu1 %2720 }
 0x591   : > { %5174 = vpow2.f32 %v3380_v15  ;;  %v3004_v6 = vsub.f32 %v9976_v24, %v2721_v25  ;;  %v3005_v41 = vsub.f32 %v9977_v56, %v2721_v25  ;;  %v3006_v59 = vsub.f32 %v9978_v16, %v2721_v25  ;;  %v9980_v56 = vld [vmem:[#allocation132_spill] sm:$0xff]  ;;  %v9981_v16 = vld [vmem:[#allocation133_spill] sm:$0xff]  ;;  %v9982_v15 = vld [vmem:[#allocation131_spill] sm:$0xff] }
 0x592   : > { %5176 = vpow2.f32 %v3382_v1  ;;  %4025 = vst.msk [vmem:[#allocation3 + $0x20] sm:$0xff] %vm4020_vm4, %v3960_v38  ;;  %v3007_v28 = vsub.f32 %v9979_v32, %v2721_v25  ;;  %v9983_v25 = vld [vmem:[#allocation136_spill] sm:$0xff] }
 0x593   : > { %v5159_v20 = vpop.eup %5158  ;;  %5178 = vpow2.f32 %v3384_v52  ;;  %v3396_v61 = vmul.f32 1.442695, %v3004_v6  ;;  %v3398_v18 = vmul.f32 1.442695, %v3005_v41  ;;  %v3400_v45 = vmul.f32 1.442695, %v3006_v59 }
 0x594   : > { %v5161_v11 = vpop.eup %5160  ;;  %5180 = vpow2.f32 %v3386_v17  ;;  %v3402_v35 = vmul.f32 1.442695, %v3007_v28  ;;  %v2731_v26 = vpop.permute.xlu1 %2730 }
 0x595   : > { %v5163_v21 = vpop.eup %5162  ;;  %5182 = vpow2.f32 %v3396_v61  ;;  %v3012_v46 = vsub.f32 %v9980_v56, %v2731_v26  ;;  %v3013_v22 = vsub.f32 %v9981_v16, %v2731_v26  ;;  %v3014_v1 = vsub.f32 %v9982_v15, %v2731_v26  ;;  %v9986_v15 = vld [vmem:[#allocation167_spill] sm:$0xff] }
 0x596   : > { %v5165_v38 = vpop.eup %5164  ;;  %5184 = vpow2.f32 %v3398_v18  ;;  %v3015_v24 = vsub.f32 %v9983_v25, %v2731_v26  ;;  %v2766_v52 = vpop.permute.xlu0 %2765  ;;  %v3776_v6 = vadd.f32 %v5161_v11, %v5159_v20 }
 0x597   : > { %v5167_v41 = vpop.eup %5166  ;;  %5186 = vpow2.f32 %v3400_v45  ;;  %v3412_v59 = vmul.f32 1.442695, %v3012_v46  ;;  %v3414_v17 = vmul.f32 1.442695, %v3013_v22  ;;  %v3416_v32 = vmul.f32 1.442695, %v3014_v1 }
 0x598   : > { %v5169_v28 = vpop.eup %5168  ;;  %5188 = vpow2.f32 %v3402_v35  ;;  %v3418_v61 = vmul.f32 1.442695, %v3015_v24  ;;  %v3040_v56 = vsub.f32 %v9984_v7, %v2766_v52  ;;  %v3041_v16 = vsub.f32 %v9985_v14, %v2766_v52 }
 0x599   : > { %v5171_v12 = vpop.eup %5170  ;;  %5190 = vpow2.f32 %v3412_v59  ;;  %v3042_v18 = vsub.f32 %v9986_v15, %v2766_v52  ;;  %v3043_v26 = vsub.f32 %v7581_v40, %v2766_v52  ;;  %v8431_v25 = vadd.f32 %v5165_v38, %v3776_v6 }
 0x59a   : > { %v5173_v20 = vpop.eup %5172  ;;  %5192 = vpow2.f32 %v3414_v17  ;;  %v3468_v45 = vmul.f32 1.442695, %v3040_v56  ;;  %v3470_v11 = vmul.f32 1.442695, %v3041_v16  ;;  %v3786_v46 = vadd.f32 %v5169_v28, %v5167_v41 }
 0x59b   : > { %v5175_v22 = vpop.eup %5174  ;;  %5194 = vpow2.f32 %v3416_v32  ;;  %v3472_v7 = vmul.f32 1.442695, %v3042_v18  ;;  %v3474_v15 = vmul.f32 1.442695, %v3043_v26  ;;  %v3688_v40 = vadd.f32 %v5163_v21, %v7944_v42 }
 0x59c   : > { %v5177_v35 = vpop.eup %5176  ;;  %5196 = vpow2.f32 %v3418_v61  ;;  %v3787_v1 = vadd.f32 %v5171_v12, %v3786_v46  ;;  %v3663_v41 = vadd.f32 %v5157_v2, %v7776_v30 }
 0x59d   : > { %v5179_v14 = vpop.eup %5178  ;;  %5198 = vpow2.f32 %v3468_v45  ;;  %v3796_v24 = vadd.f32 %v5177_v35, %v5175_v22 }
 0x59e   : > { %v5181_v59 = vpop.eup %5180  ;;  %5200 = vpow2.f32 %v3470_v11  ;;  %v8434_v38 = vadd.f32 %v5173_v20, %v3787_v1  ;;  %v9987_v1 = vld [vmem:[#allocation171_spill] sm:$0xff] }
 0x59f   : > { %v5183_v52 = vpop.eup %5182  ;;  %v3797_v6 = vadd.f32 %v5179_v14, %v3796_v24  ;;  %5202 = vpow2.f32 %v3472_v7  ;;  %v9988_v14 = vld [vmem:[#allocation168_spill] sm:$0xff] }
 0x5a0   : > { %v5185_v17 = vpop.eup %5184  ;;  %3689 = vadd.xlane.f32.xlu0 %v3688_v40  ;;  %5204 = vpow2.f32 %v3474_v15  ;;  %v2234_v24 = vsub.f32 %v9988_v14, %v9987_v1  ;;  %v9989_v40 = vld [vmem:[#allocation138_spill] sm:$0xff]  ;;  %v9995_v14 = vld [vmem:[#allocation144_spill] sm:$0xff] }
 0x5a1   : > { %v5187_v32 = vpop.eup %5186  ;;  %v8437_v28 = vadd.f32 %v5181_v59, %v3797_v6  ;;  %v3806_v12 = vadd.f32 %v5185_v17, %v5183_v52  ;;  %v9990_v52 = vld [vmem:[#allocation139_spill] sm:$0xff] }
 0x5a2   : > { %v5189_v61 = vpop.eup %5188  ;;  %3664 = vadd.xlane.f32.xlu1 %v3663_v41  ;;  %v2304_v15 = vmul.f32 1.442695, %v2234_v24  ;;  %v9991_v6 = vsub.f32 %v9989_v40, %v9990_v52  ;;  %v9996_v24 = vld [vmem:[#allocation143_spill] sm:$0xff]  ;;  %v9997_v40 = vld [vmem:[#allocation201_spill] sm:$0xff] }
 0x5a3   : > { %v5191_v56 = vpop.eup %5190  ;;  %v3807_v16 = vadd.f32 %v5187_v32, %v3806_v12  ;;  %v2426_v32 = vld [vmem:[#allocation3 + $0x30] sm:$0xff] }
 0x5a4   : > { %v5193_v18 = vpop.eup %5192  ;;  %v2292_v17 = vmul.f32 1.442695, %v9991_v6  ;;  %5206 = vpow2.f32 %v2304_v15  ;;  %v9992_v12 = vld [vmem:[#allocation40_spill] sm:$0xff] }
 0x5a5   : > { %v5195_v42 = vpop.eup %5194  ;;  %v8439_v21 = vadd.f32 %v5189_v61, %v3807_v16  ;;  %v3816_v26 = vadd.f32 %v5193_v18, %v5191_v56  ;;  %v2919_v61 = vsub.f32 %v9992_v12, %v7996_v5  ;;  %v9993_v16 = vld [vmem:[#allocation21_spill] sm:$0xff]  ;;  %v9998_v12 = vld [vmem:[#allocation176_spill] sm:$0xff] }
 0x5a6   : > { %v5197_v20 = vpop.eup %5196  ;;  %5208 = vpow2.f32 %v2292_v17  ;;  %v2899_v18 = vsub.f32 %v9993_v16, %v7826_v13  ;;  %v9999_v16 = vld [vmem:[#allocation179_spill] sm:$0xff] }
 0x5a7   : > { %v5199_v45 = vpop.eup %5198  ;;  %v3817_v11 = vadd.f32 %v5195_v42, %v3816_v26  ;;  %v2420_v42 = vld [vmem:[#allocation3] sm:$0xff] }
 0x5a8   : > { %v5201_v46 = vpop.eup %5200 }
 0x5a9   : > { %v8441_v22 = vadd.f32 %v5197_v20, %v3817_v11  ;;  %v3851_v30 = vadd.f32 %v5201_v46, %v5199_v45  ;;  %v5203_v2 = vpop.eup %5202  ;;  %v3226_v45 = vmul.f32 1.442695, %v2919_v61 }
 0x5aa   : > { %v5205_v7 = vpop.eup %5204 }
 0x5ab   : > { %v3852_v35 = vadd.f32 %v5203_v2, %v3851_v30  ;;  %v3186_v30 = vmul.f32 1.442695, %v2899_v18  ;;  %5210 = vpow2.f32 %v3226_v45 }
 0x5ad   : > { %v8445_v59 = vadd.f32 %v5205_v7, %v3852_v35  ;;  %5212 = vpow2.f32 %v3186_v30  ;;  %v9994_v7 = vld [vmem:[#allocation142_spill] sm:$0xff] }
 0x5ae   : > { %v5207_v41 = vpop.eup %5206 }
 0x5af   : > { %v2490_v26 = vmul.f32 %v5207_v41, %v2426_v32 }
 0x5b0   : > { %v5209_v56 = vpop.eup %5208 }
 0x5b1   : > { %v2484_v46 = vmul.f32 %v5209_v56, %v2420_v42  ;;  %v10000_v42 = vld [vmem:[#allocation177_spill] sm:$0xff] }
 0x5b3   : > { %2760 = vperm.xlu1 %4833, %v7627_v62  }
 0x5b5   : > { %v5211_v30 = vpop.eup %5210 }
 0x5b6   : > { %2795 = vperm.xlu0 %4832, %v8034_v8  }
 0x5c3   : > { %v3670_v20 = vpop.xlane.xlu0 %3669 }
 0x5c4   : > { %v3962_v11 = vadd.f32 %v3670_v20, %v2490_v26 }
 0x5c5   : > { %v3640_v2 = vpop.xlane.xlu1 %3639 }
 0x5c6   : > { %4027 = vst.msk [vmem:[#allocation3 + $0x30] sm:$0xff] %vm4020_vm4, %v3962_v11  ;;  %v3956_v35 = vadd.f32 %v3640_v2, %v2484_v46  ;;  %v5213_v2 = vpop.eup %5212 }
 0x5c8   : > { %4021 = vst.msk [vmem:[#allocation3] sm:$0xff] %vm4020_vm4, %v3956_v35 }
 0x5c9   : > { %v2741_v5 = vpop.permute.xlu1 %2740 }
 0x5ca   : > { %v3020_v1 = vsub.f32 %v9994_v7, %v2741_v5  ;;  %v3021_v13 = vsub.f32 %v9995_v14, %v2741_v5  ;;  %v3022_v15 = vsub.f32 %v9996_v24, %v2741_v5  ;;  %v3023_v52 = vsub.f32 %v9997_v40, %v2741_v5  ;;  %v10001_v7 = vld [vmem:[#allocation39_spill] sm:$0xff] }
 0x5cb   : > { %v2776_v6 = vpop.permute.xlu0 %2775  ;;  %v3698_v5 = vadd.f32 %v5211_v30, %v8020_v57 }
 0x5cc   : > { %v3428_v17 = vmul.f32 1.442695, %v3020_v1  ;;  %v3430_v41 = vmul.f32 1.442695, %v3021_v13  ;;  %v3432_v32 = vmul.f32 1.442695, %v3022_v15  ;;  %v3048_v61 = vsub.f32 %v9998_v12, %v2776_v6 }
 0x5cd   : > { %v3434_v56 = vmul.f32 1.442695, %v3023_v52  ;;  %v3049_v18 = vsub.f32 %v9999_v16, %v2776_v6  ;;  %v3050_v26 = vsub.f32 %v10000_v42, %v2776_v6  ;;  %v3051_v45 = vsub.f32 %v7690_v53, %v2776_v6 }
 0x5ce   : > { %5214 = vpow2.f32 %v3428_v17  ;;  %v3484_v20 = vmul.f32 1.442695, %v3048_v61  ;;  %v3673_v1 = vadd.f32 %v5213_v2, %v10001_v7  ;;  %v10002_v61 = vld [vmem:[#allocation181_spill] sm:$0xff]  ;;  %v2428_v2 = vld [vmem:[#allocation3 + $0x40] sm:$0xff] }
 0x5cf   : > { %5216 = vpow2.f32 %v3430_v41  ;;  %v3486_v11 = vmul.f32 1.442695, %v3049_v18  ;;  %v3488_v46 = vmul.f32 1.442695, %v3050_v26  ;;  %v3490_v35 = vmul.f32 1.442695, %v3051_v45 }
 0x5d0   : > { %5218 = vpow2.f32 %v3432_v32  ;;  %v10004_v26 = vld [vmem:[#allocation151_spill] sm:$0xff] }
 0x5d1   : > { %5220 = vpow2.f32 %v3434_v56  ;;  %v10003_v56 = vld [vmem:[#allocation178_spill] sm:$0xff] }
 0x5d2   : > { %5222 = vpow2.f32 %v3484_v20  ;;  %v2236_v16 = vsub.f32 %v10003_v56, %v10002_v61  ;;  %v10005_v20 = vld [vmem:[#allocation155_spill] sm:$0xff]  ;;  %v10012_v56 = vld [vmem:[#allocation154_spill] sm:$0xff] }
 0x5d3   : > { %5224 = vpow2.f32 %v3486_v11  ;;  %v10006_v45 = vsub.f32 %v10004_v26, %v10005_v20  ;;  %v10014_v20 = vld [vmem:[#allocation203_spill] sm:$0xff] }
 0x5d4   : > { %5226 = vpow2.f32 %v3488_v46  ;;  %v2308_v42 = vmul.f32 1.442695, %v2236_v16  ;;  %v10007_v46 = vld [vmem:[#allocation284_spill] sm:$0xff] }
 0x5d5   : > { %3699 = vadd.xlane.f32.xlu0 %v3698_v5  ;;  %5228 = vpow2.f32 %v3490_v35  ;;  %v2298_v11 = vmul.f32 1.442695, %v10006_v45  ;;  %v10008_v35 = vld [vmem:[#allocation48_spill] sm:$0xff] }
 0x5d6   : > { %5230 = vpow2.f32 %v2308_v42  ;;  %v2927_v5 = vsub.f32 %v10008_v35, %v8046_v47  ;;  %v10013_v42 = vld [vmem:[#allocation153_spill] sm:$0xff] }
 0x5d7   : > { %3674 = vadd.xlane.f32.xlu1 %v3673_v1  ;;  %5232 = vpow2.f32 %v2298_v11  ;;  %v10009_v1 = vld [vmem:[#allocation285_spill] sm:$0xff] }
 0x5d8   : > { %v5215_v14 = vpop.eup %5214 }
 0x5d9   : > { %v5217_v13 = vpop.eup %5216 }
 0x5da   : > { %v5219_v53 = vpop.eup %5218  ;;  %v3826_v24 = vadd.f32 %v5217_v13, %v5215_v14  ;;  %v10010_v14 = vld [vmem:[#allocation26_spill] sm:$0xff] }
 0x5db   : > { %v5221_v15 = vpop.eup %5220  ;;  %v2907_v13 = vsub.f32 %v10010_v14, %v10009_v1  ;;  %v10016_v14 = vld [vmem:[#allocation189_spill] sm:$0xff] }
 0x5dc   : > { %v5223_v40 = vpop.eup %5222  ;;  %v3827_v52 = vadd.f32 %v5219_v53, %v3826_v24  ;;  %v2423_v53 = vld [vmem:[#allocation3 + $0x18] sm:$0xff] }
 0x5dd   : > { %v5225_v6 = vpop.eup %5224 }
 0x5de   : > { %v8468_v17 = vadd.f32 %v5221_v15, %v3827_v52  ;;  %v3861_v41 = vadd.f32 %v5225_v6, %v5223_v40  ;;  %v5227_v32 = vpop.eup %5226  ;;  %v3242_v40 = vmul.f32 1.442695, %v2927_v5  ;;  %v10015_v5 = vld [vmem:[#allocation187_spill] sm:$0xff] }
 0x5df   : > { %v5229_v57 = vpop.eup %5228 }
 0x5e0   : > { %v3862_v12 = vadd.f32 %v5227_v32, %v3861_v41  ;;  %v5231_v30 = vpop.eup %5230  ;;  %v3202_v41 = vmul.f32 1.442695, %v2907_v13  ;;  %5234 = vpow2.f32 %v3242_v40  ;;  %v10018_v40 = vld [vmem:[#allocation33_spill] sm:$0xff] }
 0x5e1   : > { %v5233_v7 = vpop.eup %5232  ;;  %v2492_v24 = vmul.f32 %v5231_v30, %v2428_v2 }
 0x5e2   : > { %v8472_v18 = vadd.f32 %v5229_v57, %v3862_v12  ;;  %v2487_v6 = vmul.f32 %v5233_v7, %v2423_v53  ;;  %5236 = vpow2.f32 %v3202_v41  ;;  %v10011_v57 = vld [vmem:[#allocation152_spill] sm:$0xff] }
 0x5e3   : > { %v10017_v53 = vld [vmem:[#allocation188_spill] sm:$0xff] }
 0x5e8   : > { %2770 = vperm.xlu1 %4833, %v10007_v46  }
 0x5eb   : > { %2805 = vperm.xlu0 %4832, %v8084_v51  }
 0x5f8   : > { %v3680_v15 = vpop.xlane.xlu0 %3679 }
 0x5f9   : > { %v3964_v52 = vadd.f32 %v3680_v15, %v2492_v24 }
 0x5fa   : > { %v3655_v32 = vpop.xlane.xlu1 %3654 }
 0x5fb   : > { %4029 = vst.msk [vmem:[#allocation3 + $0x40] sm:$0xff] %vm4020_vm4, %v3964_v52  ;;  %v3959_v12 = vadd.f32 %v3655_v32, %v2487_v6  ;;  %v5235_v32 = vpop.eup %5234 }
 0x5fd   : > { %4024 = vst.msk [vmem:[#allocation3 + $0x18] sm:$0xff] %vm4020_vm4, %v3959_v12  ;;  %v5237_v12 = vpop.eup %5236 }
 0x5fe   : > { %v2751_v47 = vpop.permute.xlu1 %2750 }
 0x5ff   : > { %v3028_v61 = vsub.f32 %v10011_v57, %v2751_v47  ;;  %v3029_v16 = vsub.f32 %v10012_v56, %v2751_v47  ;;  %v3030_v26 = vsub.f32 %v10013_v42, %v2751_v47  ;;  %v3031_v45 = vsub.f32 %v10014_v20, %v2751_v47 }
 0x600   : > { %v2786_v11 = vpop.permute.xlu0 %2785  ;;  %v3708_v57 = vadd.f32 %v5235_v32, %v8070_v36  ;;  %v10024_v32 = vld [vmem:[#allocation297_spill] sm:$0xff] }
 0x601   : > { %v3444_v30 = vmul.f32 1.442695, %v3028_v61  ;;  %v3446_v2 = vmul.f32 1.442695, %v3029_v16  ;;  %v3448_v35 = vmul.f32 1.442695, %v3030_v26  ;;  %v3056_v7 = vsub.f32 %v10015_v5, %v2786_v11 }
 0x602   : > { %v3450_v1 = vmul.f32 1.442695, %v3031_v45  ;;  %v3057_v13 = vsub.f32 %v10016_v14, %v2786_v11  ;;  %v3058_v24 = vsub.f32 %v10017_v53, %v2786_v11  ;;  %v3059_v52 = vsub.f32 %v10018_v40, %v2786_v11  ;;  %v10019_v61 = vld [vmem:[#allocation287_spill] sm:$0xff]  ;;  %v10020_v14 = vld [vmem:[#allocation192_spill] sm:$0xff] }
 0x603   : > { %5238 = vpow2.f32 %v3444_v30  ;;  %v3500_v15 = vmul.f32 1.442695, %v3056_v7  ;;  %v3683_v56 = vadd.f32 %v5237_v12, %v10019_v61  ;;  %v10023_v40 = vld [vmem:[#allocation160_spill] sm:$0xff] }
 0x604   : > { %5240 = vpow2.f32 %v3446_v2  ;;  %v3502_v6 = vmul.f32 1.442695, %v3057_v13  ;;  %v3504_v41 = vmul.f32 1.442695, %v3058_v24  ;;  %v3506_v47 = vmul.f32 1.442695, %v3059_v52 }
 0x605   : > { %5242 = vpow2.f32 %v3448_v35  ;;  %v10021_v13 = vld [vmem:[#allocation186_spill] sm:$0xff] }
 0x606   : > { %5244 = vpow2.f32 %v3450_v1  ;;  %v2238_v53 = vsub.f32 %v10021_v13, %v10020_v14  ;;  %v10028_v14 = vld [vmem:[#allocation163_spill] sm:$0xff] }
 0x607   : > { %5246 = vpow2.f32 %v3500_v15  ;;  %v10022_v15 = vld [vmem:[#allocation162_spill] sm:$0xff] }
 0x608   : > { %5248 = vpow2.f32 %v3502_v6  ;;  %v2233_v52 = vsub.f32 %v10023_v40, %v10022_v15  ;;  %v2312_v6 = vmul.f32 1.442695, %v2238_v53  ;;  %v10029_v53 = vld [vmem:[#allocation165_spill] sm:$0xff]  ;;  %v10030_v40 = vld [vmem:[#allocation164_spill] sm:$0xff] }
 0x609   : > { %5250 = vpow2.f32 %v3504_v41 }
 0x60a   : > { %3709 = vadd.xlane.f32.xlu0 %v3708_v57  ;;  %5252 = vpow2.f32 %v3506_v47  ;;  %v2302_v41 = vmul.f32 1.442695, %v2233_v52  ;;  %v2430_v47 = vld [vmem:[#allocation3 + $0x50] sm:$0xff] }
 0x60b   : > { %5254 = vpow2.f32 %v2312_v6  ;;  %v10025_v57 = vld [vmem:[#allocation56_spill] sm:$0xff] }
 0x60c   : > { %3684 = vadd.xlane.f32.xlu1 %v3683_v56  ;;  %5256 = vpow2.f32 %v2302_v41  ;;  %v2935_v61 = vsub.f32 %v10025_v57, %v8096_v4  ;;  %v10031_v6 = vld [vmem:[#allocation208_spill] sm:$0xff] }
 0x60d   : > { %v5239_v16 = vpop.eup %5238 }
 0x60e   : > { %v5241_v42 = vpop.eup %5240 }
 0x60f   : > { %v5243_v26 = vpop.eup %5242  ;;  %v3836_v20 = vadd.f32 %v5241_v42, %v5239_v16  ;;  %v10026_v16 = vld [vmem:[#allocation16_spill] sm:$0xff]  ;;  %v10027_v42 = vld [vmem:[#allocation34_spill] sm:$0xff] }
 0x610   : > { %v5245_v45 = vpop.eup %5244 }
 0x611   : > { %v5247_v11 = vpop.eup %5246  ;;  %v3837_v30 = vadd.f32 %v5243_v26, %v3836_v20  ;;  %v2915_v26 = vsub.f32 %v10027_v42, %v10026_v16  ;;  %v2425_v20 = vld [vmem:[#allocation3 + $0x28] sm:$0xff] }
 0x612   : > { %v5249_v2 = vpop.eup %5248 }
 0x613   : > { %v8495_v35 = vadd.f32 %v5245_v45, %v3837_v30  ;;  %v3871_v5 = vadd.f32 %v5249_v2, %v5247_v11  ;;  %v5251_v7 = vpop.eup %5250  ;;  %v3258_v30 = vmul.f32 1.442695, %v2935_v61 }
 0x614   : > { %v5253_v36 = vpop.eup %5252 }
 0x615   : > { %v3872_v1 = vadd.f32 %v5251_v7, %v3871_v5  ;;  %v5255_v12 = vpop.eup %5254  ;;  %v3218_v7 = vmul.f32 1.442695, %v2915_v26  ;;  %5258 = vpow2.f32 %v3258_v30  ;;  %v10033_v26 = vld [vmem:[#allocation231_spill] sm:$0xff] }
 0x616   : > { %v5257_v56 = vpop.eup %5256  ;;  %v2494_v45 = vmul.f32 %v5255_v12, %v2430_v47 }
 0x617   : > { %v8499_v24 = vadd.f32 %v5253_v36, %v3872_v1  ;;  %v2489_v5 = vmul.f32 %v5257_v56, %v2425_v20  ;;  %5260 = vpow2.f32 %v3218_v7  ;;  %v10032_v56 = vld [vmem:[#allocation229_spill] sm:$0xff] }
 0x61d   : > { %2780 = vperm.xlu1 %4833, %v10024_v32  }
 0x620   : > { %2815 = vperm.xlu0 %4832, %v8151_v50  }
 0x62d   : > { %v3690_v11 = vpop.xlane.xlu0 %3689 }
 0x62e   : > { %v3966_v2 = vadd.f32 %v3690_v11, %v2494_v45  ;;  %v10034_v45 = vld [vmem:[#allocation232_spill] sm:$0xff] }
 0x62f   : > { %v3665_v1 = vpop.xlane.xlu1 %3664 }
 0x630   : > { %4031 = vst.msk [vmem:[#allocation3 + $0x50] sm:$0xff] %vm4020_vm4, %v3966_v2  ;;  %v3961_v36 = vadd.f32 %v3665_v1, %v2489_v5  ;;  %v10035_v2 = vld [vmem:[#allocation17_spill] sm:$0xff] }
 0x632   : > { %4026 = vst.msk [vmem:[#allocation3 + $0x28] sm:$0xff] %vm4020_vm4, %v3961_v36  ;;  %v5259_v36 = vpop.eup %5258 }
 0x633   : > { %v2761_v4 = vpop.permute.xlu1 %2760 }
 0x634   : > { %v3036_v13 = vsub.f32 %v10028_v14, %v2761_v4  ;;  %v3037_v15 = vsub.f32 %v10029_v53, %v2761_v4  ;;  %v3038_v52 = vsub.f32 %v10030_v40, %v2761_v4  ;;  %v3039_v41 = vsub.f32 %v10031_v6, %v2761_v4  ;;  %v5261_v4 = vpop.eup %5260  ;;  %v10036_v53 = vld [vmem:[#allocation30_spill] sm:$0xff] }
 0x635   : > { %v2796_v12 = vpop.permute.xlu0 %2795 }
 0x636   : > { %v3460_v47 = vmul.f32 1.442695, %v3036_v13  ;;  %v3462_v57 = vmul.f32 1.442695, %v3037_v15  ;;  %v3464_v61 = vmul.f32 1.442695, %v3038_v52  ;;  %v3064_v16 = vsub.f32 %v10032_v56, %v2796_v12 }
 0x637   : > { %v3466_v42 = vmul.f32 1.442695, %v3039_v41  ;;  %v3065_v20 = vsub.f32 %v10033_v26, %v2796_v12  ;;  %v3066_v11 = vsub.f32 %v10034_v45, %v2796_v12  ;;  %v3067_v5 = vsub.f32 %v10035_v2, %v2796_v12  ;;  %v10038_v45 = vld [vmem:[#allocation198_spill] sm:$0xff]  ;;  %v10039_v2 = vld [vmem:[#allocation172_spill] sm:$0xff] }
 0x638   : > { %5262 = vpow2.f32 %v3460_v47  ;;  %v3516_v30 = vmul.f32 1.442695, %v3064_v16  ;;  %v3718_v13 = vadd.f32 %v5259_v36, %v8120_v39  ;;  %v3693_v15 = vadd.f32 %v5261_v4, %v10036_v53  ;;  %v10041_v4 = vld [vmem:[#allocation304_spill] sm:$0xff] }
 0x639   : > { %5264 = vpow2.f32 %v3462_v57  ;;  %v3518_v7 = vmul.f32 1.442695, %v3065_v20  ;;  %v3520_v1 = vmul.f32 1.442695, %v3066_v11  ;;  %v3522_v14 = vmul.f32 1.442695, %v3067_v5 }
 0x63a   : > { %5266 = vpow2.f32 %v3464_v61  ;;  %v10037_v20 = vld [vmem:[#allocation200_spill] sm:$0xff]  ;;  %v10040_v5 = vld [vmem:[#allocation170_spill] sm:$0xff] }
 0x63b   : > { %5268 = vpow2.f32 %v3466_v42  ;;  %v2240_v11 = vsub.f32 %v10038_v45, %v10037_v20  ;;  %v10042_v53 = vld [vmem:[#allocation64_spill] sm:$0xff]  ;;  %v10045_v45 = vld [vmem:[#allocation173_spill] sm:$0xff] }
 0x63c   : > { %5270 = vpow2.f32 %v3516_v30 }
 0x63d   : > { %5272 = vpow2.f32 %v3518_v7  ;;  %v2235_v7 = vsub.f32 %v10040_v5, %v10039_v2  ;;  %v10046_v2 = vld [vmem:[#allocation175_spill] sm:$0xff] }
 0x63e   : > { %5274 = vpow2.f32 %v3520_v1  ;;  %v2316_v1 = vmul.f32 1.442695, %v2240_v11 }
 0x63f   : > { %3719 = vadd.xlane.f32.xlu0 %v3718_v13  ;;  %5276 = vpow2.f32 %v3522_v14  ;;  %v2306_v36 = vmul.f32 1.442695, %v2235_v7  ;;  %v2432_v13 = vld [vmem:[#allocation3 + $0x60] sm:$0xff] }
 0x640   : > { %5278 = vpow2.f32 %v2316_v1  ;;  %v10047_v7 = vld [vmem:[#allocation174_spill] sm:$0xff] }
 0x641   : > { %3694 = vadd.xlane.f32.xlu1 %v3693_v15  ;;  %5280 = vpow2.f32 %v2306_v36  ;;  %v2943_v15 = vsub.f32 %v10042_v53, %v8164_v34  ;;  %v10048_v36 = vld [vmem:[#allocation210_spill] sm:$0xff] }
 0x642   : > { %v5263_v40 = vpop.eup %5262 }
 0x643   : > { %v5265_v52 = vpop.eup %5264 }
 0x644   : > { %v5267_v6 = vpop.eup %5266  ;;  %v3846_v41 = vadd.f32 %v5265_v52, %v5263_v40  ;;  %v10043_v52 = vld [vmem:[#allocation18_spill] sm:$0xff] }
 0x645   : > { %v5269_v12 = vpop.eup %5268 }
 0x646   : > { %v5271_v47 = vpop.eup %5270  ;;  %v3847_v57 = vadd.f32 %v5267_v6, %v3846_v41  ;;  %v10044_v6 = vld [vmem:[#allocation42_spill] sm:$0xff] }
 0x647   : > { %v5273_v61 = vpop.eup %5272  ;;  %v2923_v41 = vsub.f32 %v10044_v6, %v10043_v52  ;;  %v10049_v52 = vld [vmem:[#allocation263_spill] sm:$0xff] }
 0x648   : > { %v8521_v56 = vadd.f32 %v5269_v12, %v3847_v57  ;;  %v3881_v16 = vadd.f32 %v5273_v61, %v5271_v47  ;;  %v5275_v42 = vpop.eup %5274  ;;  %v2427_v12 = vld [vmem:[#allocation3 + $0x38] sm:$0xff]  ;;  %v3274_v61 = vmul.f32 1.442695, %v2943_v15 }
 0x649   : > { %v5277_v39 = vpop.eup %5276 }
 0x64a   : > { %v3882_v26 = vadd.f32 %v5275_v42, %v3881_v16  ;;  %v5279_v14 = vpop.eup %5278  ;;  %5282 = vpow2.f32 %v3274_v61 }
 0x64b   : > { %v5281_v40 = vpop.eup %5280  ;;  %v2496_v47 = vmul.f32 %v5279_v14, %v2432_v13 }
 0x64c   : > { %v8525_v30 = vadd.f32 %v5277_v39, %v3882_v26  ;;  %v2491_v42 = vmul.f32 %v5281_v40, %v2427_v12  ;;  %v3234_v26 = vmul.f32 1.442695, %v2923_v41  ;;  %v10050_v12 = vld [vmem:[#allocation265_spill] sm:$0xff] }
 0x64e   : > { %5284 = vpow2.f32 %v3234_v26 }
 0x652   : > { %2790 = vperm.xlu1 %4833, %v10041_v4  }
 0x655   : > { %2825 = vperm.xlu0 %4832, %v8197_v33  }
 0x662   : > { %v3700_v57 = vpop.xlane.xlu0 %3699 }
 0x663   : > { %v3968_v16 = vadd.f32 %v3700_v57, %v2496_v47  ;;  %v10051_v57 = vld [vmem:[#allocation269_spill] sm:$0xff] }
 0x664   : > { %v3675_v39 = vpop.xlane.xlu1 %3674 }
 0x665   : > { %4033 = vst.msk [vmem:[#allocation3 + $0x60] sm:$0xff] %vm4020_vm4, %v3968_v16  ;;  %v3963_v20 = vadd.f32 %v3675_v39, %v2491_v42  ;;  %v10052_v42 = vld [vmem:[#allocation49_spill] sm:$0xff] }
 0x667   : > { %4028 = vst.msk [vmem:[#allocation3 + $0x38] sm:$0xff] %vm4020_vm4, %v3963_v20 }
 0x668   : > { %v2771_v34 = vpop.permute.xlu1 %2770 }
 0x669   : > { %v3044_v11 = vsub.f32 %v10045_v45, %v2771_v34  ;;  %v3045_v5 = vsub.f32 %v10046_v2, %v2771_v34  ;;  %v3046_v1 = vsub.f32 %v10047_v7, %v2771_v34  ;;  %v3047_v14 = vsub.f32 %v10048_v36, %v2771_v34  ;;  %v5283_v34 = vpop.eup %5282 }
 0x66a   : > { %v2806_v13 = vpop.permute.xlu0 %2805  ;;  %v5285_v45 = vpop.eup %5284  ;;  %v3728_v2 = vadd.f32 %v5283_v34, %v8183_v37 }
 0x66b   : > { %v3476_v53 = vmul.f32 1.442695, %v3044_v11  ;;  %v3478_v15 = vmul.f32 1.442695, %v3045_v5  ;;  %v3480_v40 = vmul.f32 1.442695, %v3046_v1  ;;  %v3072_v6 = vsub.f32 %v10049_v52, %v2806_v13 }
 0x66c   : > { %v3482_v41 = vmul.f32 1.442695, %v3047_v14  ;;  %v3073_v47 = vsub.f32 %v10050_v12, %v2806_v13  ;;  %v3074_v61 = vsub.f32 %v10051_v57, %v2806_v13  ;;  %v3075_v26 = vsub.f32 %v10052_v42, %v2806_v13  ;;  %v10053_v5 = vld [vmem:[#allocation41_spill] sm:$0xff]  ;;  %v10054_v57 = vld [vmem:[#allocation207_spill] sm:$0xff] }
 0x66d   : > { %5286 = vpow2.f32 %v3476_v53  ;;  %v3532_v16 = vmul.f32 1.442695, %v3072_v6  ;;  %v3703_v7 = vadd.f32 %v5285_v45, %v10053_v5  ;;  %v2434_v5 = vld [vmem:[#allocation3 + $0x70] sm:$0xff] }
 0x66e   : > { %5288 = vpow2.f32 %v3478_v15  ;;  %v3534_v39 = vmul.f32 1.442695, %v3073_v47  ;;  %v3536_v20 = vmul.f32 1.442695, %v3074_v61  ;;  %v3538_v11 = vmul.f32 1.442695, %v3075_v26 }
 0x66f   : > { %5290 = vpow2.f32 %v3480_v40  ;;  %v10055_v61 = vld [vmem:[#allocation204_spill] sm:$0xff] }
 0x670   : > { %5292 = vpow2.f32 %v3482_v41 }
 0x671   : > { %5294 = vpow2.f32 %v3532_v16  ;;  %v2242_v16 = vsub.f32 %v10055_v61, %v10054_v57 }
 0x672   : > { %5296 = vpow2.f32 %v3534_v39  ;;  %v10056_v39 = vld [vmem:[#allocation180_spill] sm:$0xff] }
 0x673   : > { %5298 = vpow2.f32 %v3536_v20  ;;  %v2320_v26 = vmul.f32 1.442695, %v2242_v16  ;;  %v10057_v20 = vld [vmem:[#allocation182_spill] sm:$0xff]  ;;  %v10063_v16 = vld [vmem:[#allocation183_spill] sm:$0xff] }
 0x674   : > { %3729 = vadd.xlane.f32.xlu0 %v3728_v2  ;;  %5300 = vpow2.f32 %v3538_v11  ;;  %v10058_v34 = vsub.f32 %v10056_v39, %v10057_v20  ;;  %v10059_v11 = vld [vmem:[#allocation309_spill] sm:$0xff] }
 0x675   : > { %5302 = vpow2.f32 %v2320_v26  ;;  %v10064_v39 = vld [vmem:[#allocation185_spill] sm:$0xff] }
 0x676   : > { %3704 = vadd.xlane.f32.xlu1 %v3703_v7  ;;  %v2310_v45 = vmul.f32 1.442695, %v10058_v34  ;;  %v10060_v7 = vld [vmem:[#allocation72_spill] sm:$0xff] }
 0x677   : > { %v5287_v1 = vpop.eup %5286  ;;  %v10065_v34 = vld [vmem:[#allocation184_spill] sm:$0xff] }
 0x678   : > { %v5289_v36 = vpop.eup %5288  ;;  %5304 = vpow2.f32 %v2310_v45 }
 0x679   : > { %v5291_v14 = vpop.eup %5290  ;;  %v3856_v13 = vadd.f32 %v5289_v36, %v5287_v1  ;;  %v2951_v1 = vsub.f32 %v10060_v7, %v8210_v48 }
 0x67a   : > { %v5293_v53 = vpop.eup %5292 }
 0x67b   : > { %v5295_v15 = vpop.eup %5294  ;;  %v3857_v40 = vadd.f32 %v5291_v14, %v3856_v13  ;;  %v10061_v14 = vld [vmem:[#allocation312_spill] sm:$0xff]  ;;  %v10062_v13 = vld [vmem:[#allocation50_spill] sm:$0xff] }
 0x67c   : > { %v5297_v52 = vpop.eup %5296 }
 0x67d   : > { %v8547_v6 = vadd.f32 %v5293_v53, %v3857_v40  ;;  %v3891_v41 = vadd.f32 %v5297_v52, %v5295_v15  ;;  %v5299_v12 = vpop.eup %5298  ;;  %v2931_v53 = vsub.f32 %v10062_v13, %v10061_v14  ;;  %v2429_v15 = vld [vmem:[#allocation3 + $0x48] sm:$0xff] }
 0x67e   : > { %v5301_v37 = vpop.eup %5300  ;;  %v10067_v13 = vld [vmem:[#allocation275_spill] sm:$0xff] }
 0x67f   : > { %v3892_v47 = vadd.f32 %v5299_v12, %v3891_v41  ;;  %v5303_v2 = vpop.eup %5302  ;;  %v3290_v41 = vmul.f32 1.442695, %v2951_v1 }
 0x680   : > { %v2498_v40 = vmul.f32 %v5303_v2, %v2434_v5  ;;  %v10066_v2 = vld [vmem:[#allocation245_spill] sm:$0xff] }
 0x681   : > { %v8551_v42 = vadd.f32 %v5301_v37, %v3892_v47  ;;  %v3250_v37 = vmul.f32 1.442695, %v2931_v53  ;;  %5306 = vpow2.f32 %v3290_v41  ;;  %v10069_v41 = vld [vmem:[#allocation281_spill] sm:$0xff] }
 0x682   : > { %v5305_v36 = vpop.eup %5304 }
 0x683   : > { %v2493_v47 = vmul.f32 %v5305_v36, %v2429_v15  ;;  %5308 = vpow2.f32 %v3250_v37  ;;  %v10070_v37 = vld [vmem:[#allocation57_spill] sm:$0xff] }
 0x687   : > { %2800 = vperm.xlu1 %4833, %v10059_v11  }
 0x68a   : > { %2835 = vperm.xlu0 %4832, %v8243_v9  }
 0x697   : > { %v3710_v52 = vpop.xlane.xlu0 %3709 }
 0x698   : > { %v3970_v12 = vadd.f32 %v3710_v52, %v2498_v40  ;;  %v10068_v40 = vld [vmem:[#allocation277_spill] sm:$0xff] }
 0x699   : > { %v3685_v57 = vpop.xlane.xlu1 %3684 }
 0x69a   : > { %4035 = vst.msk [vmem:[#allocation3 + $0x70] sm:$0xff] %vm4020_vm4, %v3970_v12  ;;  %v3965_v61 = vadd.f32 %v3685_v57, %v2493_v47 }
 0x69c   : > { %4030 = vst.msk [vmem:[#allocation3 + $0x48] sm:$0xff] %vm4020_vm4, %v3965_v61 }
 0x69d   : > { %v2781_v48 = vpop.permute.xlu1 %2780 }
 0x69e   : > { %v3052_v26 = vsub.f32 %v10063_v16, %v2781_v48  ;;  %v3053_v20 = vsub.f32 %v10064_v39, %v2781_v48  ;;  %v3054_v45 = vsub.f32 %v10065_v34, %v2781_v48  ;;  %v3055_v5 = vsub.f32 %v10066_v2, %v2781_v48  ;;  %v5307_v16 = vpop.eup %5306 }
 0x69f   : > { %v2816_v7 = vpop.permute.xlu0 %2815 }
 0x6a0   : > { %v3492_v1 = vmul.f32 1.442695, %v3052_v26  ;;  %v3494_v36 = vmul.f32 1.442695, %v3053_v20  ;;  %v3496_v14 = vmul.f32 1.442695, %v3054_v45  ;;  %v3080_v53 = vsub.f32 %v10067_v13, %v2816_v7  ;;  %v5309_v26 = vpop.eup %5308 }
 0x6a1   : > { %v3498_v15 = vmul.f32 1.442695, %v3055_v5  ;;  %v3081_v52 = vsub.f32 %v10068_v40, %v2816_v7  ;;  %v3082_v12 = vsub.f32 %v10069_v41, %v2816_v7  ;;  %v3083_v57 = vsub.f32 %v10070_v37, %v2816_v7  ;;  %v10071_v20 = vld [vmem:[#allocation87_spill] sm:$0xff]  ;;  %v10072_v45 = vld [vmem:[#allocation46_spill] sm:$0xff]  ;;  %v10073_v37 = vld [vmem:[#allocation213_spill] sm:$0xff] }
 0x6a2   : > { %5310 = vpow2.f32 %v3492_v1  ;;  %v3548_v47 = vmul.f32 1.442695, %v3080_v53  ;;  %v3738_v34 = vadd.f32 %v5307_v16, %v10071_v20  ;;  %v3713_v2 = vadd.f32 %v5309_v26, %v10072_v45  ;;  %v10075_v16 = vld [vmem:[#allocation194_spill] sm:$0xff]  ;;  %v10076_v26 = vld [vmem:[#allocation191_spill] sm:$0xff]  ;;  %v10077_v45 = vld [vmem:[#allocation317_spill] sm:$0xff] }
 0x6a3   : > { %5312 = vpow2.f32 %v3494_v36  ;;  %v3550_v61 = vmul.f32 1.442695, %v3081_v52  ;;  %v3552_v48 = vmul.f32 1.442695, %v3082_v12  ;;  %v3554_v39 = vmul.f32 1.442695, %v3083_v57 }
 0x6a4   : > { %5314 = vpow2.f32 %v3496_v14  ;;  %v10074_v57 = vld [vmem:[#allocation211_spill] sm:$0xff] }
 0x6a5   : > { %5316 = vpow2.f32 %v3498_v15 }
 0x6a6   : > { %5318 = vpow2.f32 %v3548_v47 }
 0x6a7   : > { %5320 = vpow2.f32 %v3550_v61  ;;  %v2244_v61 = vsub.f32 %v10074_v57, %v10073_v37 }
 0x6a8   : > { %5322 = vpow2.f32 %v3552_v48 }
 0x6a9   : > { %3739 = vadd.xlane.f32.xlu0 %v3738_v34  ;;  %5324 = vpow2.f32 %v3554_v39  ;;  %v2239_v39 = vsub.f32 %v10076_v26, %v10075_v16  ;;  %v2324_v20 = vmul.f32 1.442695, %v2244_v61 }
 0x6ab   : > { %3714 = vadd.xlane.f32.xlu1 %v3713_v2  ;;  %v2314_v34 = vmul.f32 1.442695, %v2239_v39  ;;  %5326 = vpow2.f32 %v2324_v20  ;;  %v10082_v20 = vld [vmem:[#allocation195_spill] sm:$0xff] }
 0x6ac   : > { %v5311_v5 = vpop.eup %5310 }
 0x6ad   : > { %v5313_v1 = vpop.eup %5312  ;;  %5328 = vpow2.f32 %v2314_v34 }
 0x6ae   : > { %v5315_v7 = vpop.eup %5314  ;;  %v3866_v36 = vadd.f32 %v5313_v1, %v5311_v5  ;;  %v2436_v5 = vld [vmem:[#allocation3 + $0x80] sm:$0xff]  ;;  %v10078_v1 = vld [vmem:[#allocation67_spill] sm:$0xff] }
 0x6af   : > { %v5317_v14 = vpop.eup %5316 }
 0x6b0   : > { %v5319_v13 = vpop.eup %5318  ;;  %v3867_v53 = vadd.f32 %v5315_v7, %v3866_v36  ;;  %v10079_v7 = vld [vmem:[#allocation80_spill] sm:$0xff] }
 0x6b1   : > { %v5321_v15 = vpop.eup %5320  ;;  %v2959_v36 = vsub.f32 %v10079_v7, %v10078_v1  ;;  %v10083_v1 = vld [vmem:[#allocation197_spill] sm:$0xff] }
 0x6b2   : > { %v8574_v40 = vadd.f32 %v5317_v14, %v3867_v53  ;;  %v3901_v52 = vadd.f32 %v5321_v15, %v5319_v13  ;;  %v5323_v41 = vpop.eup %5322  ;;  %v10080_v13 = vld [vmem:[#allocation320_spill] sm:$0xff]  ;;  %v10081_v53 = vld [vmem:[#allocation58_spill] sm:$0xff] }
 0x6b3   : > { %v5325_v47 = vpop.eup %5324  ;;  %v2939_v15 = vsub.f32 %v10081_v53, %v10080_v13  ;;  %v10084_v13 = vld [vmem:[#allocation196_spill] sm:$0xff] }
 0x6b4   : > { %v3902_v12 = vadd.f32 %v5323_v41, %v3901_v52  ;;  %v2431_v52 = vld [vmem:[#allocation3 + $0x58] sm:$0xff] }
 0x6b5   : > { %v5327_v2 = vpop.eup %5326  ;;  %v3266_v61 = vmul.f32 1.442695, %v2939_v15 }
 0x6b6   : > { %v8578_v48 = vadd.f32 %v5325_v47, %v3902_v12  ;;  %v2500_v41 = vmul.f32 %v5327_v2, %v2436_v5  ;;  %v3306_v47 = vmul.f32 1.442695, %v2959_v36  ;;  %v10085_v5 = vld [vmem:[#allocation271_spill] sm:$0xff] }
 0x6b7   : > { %v5329_v14 = vpop.eup %5328 }
 0x6b8   : > { %v2495_v57 = vmul.f32 %v5329_v14, %v2431_v52  ;;  %5330 = vpow2.f32 %v3306_v47  ;;  %v10087_v47 = vld [vmem:[#allocation289_spill] sm:$0xff] }
 0x6b9   : > { %5332 = vpow2.f32 %v3266_v61 }
 0x6bc   : > { %2810 = vperm.xlu1 %4833, %v10077_v45  }
 0x6bf   : > { %2845 = vperm.xlu0 %4832, %v8323_v31  }
 0x6cc   : > { %v3720_v12 = vpop.xlane.xlu0 %3719 }
 0x6cd   : > { %v3972_v37 = vadd.f32 %v3720_v12, %v2500_v41  ;;  %v10086_v41 = vld [vmem:[#allocation288_spill] sm:$0xff] }
 0x6ce   : > { %v3695_v16 = vpop.xlane.xlu1 %3694 }
 0x6cf   : > { %4037 = vst.msk [vmem:[#allocation3 + $0x80] sm:$0xff] %vm4020_vm4, %v3972_v37  ;;  %v3967_v26 = vadd.f32 %v3695_v16, %v2495_v57  ;;  %v10088_v16 = vld [vmem:[#allocation293_spill] sm:$0xff] }
 0x6d1   : > { %4032 = vst.msk [vmem:[#allocation3 + $0x58] sm:$0xff] %vm4020_vm4, %v3967_v26 }
 0x6d2   : > { %v2791_v39 = vpop.permute.xlu1 %2790 }
 0x6d3   : > { %v3060_v34 = vsub.f32 %v10082_v20, %v2791_v39  ;;  %v3061_v7 = vsub.f32 %v10083_v1, %v2791_v39  ;;  %v3062_v2 = vsub.f32 %v10084_v13, %v2791_v39  ;;  %v3063_v36 = vsub.f32 %v10085_v5, %v2791_v39  ;;  %v10089_v20 = vld [vmem:[#allocation65_spill] sm:$0xff]  ;;  %v5331_v13 = vpop.eup %5330  ;;  %v10090_v5 = vld [vmem:[#allocation54_spill] sm:$0xff] }
 0x6d4   : > { %v2826_v53 = vpop.permute.xlu0 %2825 }
 0x6d5   : > { %v3508_v14 = vmul.f32 1.442695, %v3060_v34  ;;  %v3510_v15 = vmul.f32 1.442695, %v3061_v7  ;;  %v3512_v52 = vmul.f32 1.442695, %v3062_v2  ;;  %v3088_v12 = vsub.f32 %v10086_v41, %v2826_v53  ;;  %v5333_v34 = vpop.eup %5332 }
 0x6d6   : > { %v3514_v37 = vmul.f32 1.442695, %v3063_v36  ;;  %v3089_v57 = vsub.f32 %v10087_v47, %v2826_v53  ;;  %v3090_v61 = vsub.f32 %v10088_v16, %v2826_v53  ;;  %v3091_v1 = vsub.f32 %v10089_v20, %v2826_v53  ;;  %v10092_v20 = vld [vmem:[#allocation215_spill] sm:$0xff] }
 0x6d7   : > { %5334 = vpow2.f32 %v3508_v14  ;;  %v3564_v26 = vmul.f32 1.442695, %v3088_v12  ;;  %v3748_v2 = vadd.f32 %v5331_v13, %v8298_v29  ;;  %v3723_v36 = vadd.f32 %v5333_v34, %v10090_v5  ;;  %v10093_v13 = vld [vmem:[#allocation202_spill] sm:$0xff]  ;;  %v10094_v34 = vld [vmem:[#allocation199_spill] sm:$0xff] }
 0x6d8   : > { %5336 = vpow2.f32 %v3510_v15  ;;  %v3566_v31 = vmul.f32 1.442695, %v3089_v57  ;;  %v3568_v39 = vmul.f32 1.442695, %v3090_v61  ;;  %v3570_v7 = vmul.f32 1.442695, %v3091_v1 }
 0x6d9   : > { %5338 = vpow2.f32 %v3512_v52 }
 0x6da   : > { %5340 = vpow2.f32 %v3514_v37 }
 0x6db   : > { %5342 = vpow2.f32 %v3564_v26  ;;  %v10091_v26 = vld [vmem:[#allocation217_spill] sm:$0xff] }
 0x6dc   : > { %5344 = vpow2.f32 %v3566_v31  ;;  %v2246_v1 = vsub.f32 %v10092_v20, %v10091_v26 }
 0x6dd   : > { %5346 = vpow2.f32 %v3568_v39 }
 0x6de   : > { %3749 = vadd.xlane.f32.xlu0 %v3748_v2  ;;  %5348 = vpow2.f32 %v3570_v7  ;;  %v2241_v7 = vsub.f32 %v10094_v34, %v10093_v13  ;;  %v2328_v2 = vmul.f32 1.442695, %v2246_v1 }
 0x6e0   : > { %3724 = vadd.xlane.f32.xlu1 %v3723_v36  ;;  %v2318_v5 = vmul.f32 1.442695, %v2241_v7  ;;  %v10095_v36 = vld [vmem:[#allocation37_spill] sm:$0xff]  ;;  %5350 = vpow2.f32 %v2328_v2 }
 0x6e1   : > { %v5335_v14 = vpop.eup %5334 }
 0x6e2   : > { %v5337_v15 = vpop.eup %5336  ;;  %5352 = vpow2.f32 %v2318_v5  ;;  %v10100_v5 = vld [vmem:[#allocation235_spill] sm:$0xff] }
 0x6e3   : > { %v5339_v53 = vpop.eup %5338  ;;  %v3876_v41 = vadd.f32 %v5337_v15, %v5335_v14  ;;  %v2438_v15 = vld [vmem:[#allocation3 + $0x90] sm:$0xff] }
 0x6e4   : > { %v5341_v52 = vpop.eup %5340 }
 0x6e5   : > { %v5343_v12 = vpop.eup %5342  ;;  %v3877_v37 = vadd.f32 %v5339_v53, %v3876_v41  ;;  %v10096_v53 = vld [vmem:[#allocation88_spill] sm:$0xff] }
 0x6e6   : > { %v5345_v47 = vpop.eup %5344  ;;  %v2967_v41 = vsub.f32 %v10096_v53, %v8328_v43  ;;  %v10099_v43 = vld [vmem:[#allocation233_spill] sm:$0xff] }
 0x6e7   : > { %v8600_v57 = vadd.f32 %v5341_v52, %v3877_v37  ;;  %v3911_v31 = vadd.f32 %v5345_v47, %v5343_v12  ;;  %v5347_v16 = vpop.eup %5346  ;;  %v2433_v12 = vld [vmem:[#allocation3 + $0x68] sm:$0xff]  ;;  %v10097_v37 = vld [vmem:[#allocation321_spill] sm:$0xff]  ;;  %v10098_v47 = vld [vmem:[#allocation66_spill] sm:$0xff] }
 0x6e8   : > { %v5349_v29 = vpop.eup %5348 }
 0x6e9   : > { %v3912_v61 = vadd.f32 %v5347_v16, %v3911_v31  ;;  %v2947_v31 = vsub.f32 %v10098_v47, %v10097_v37  ;;  %v10102_v37 = vld [vmem:[#allocation190_spill] sm:$0xff] }
 0x6ea   : > { %v5351_v14 = vpop.eup %5350 }
 0x6eb   : > { %v8604_v39 = vadd.f32 %v5349_v29, %v3912_v61  ;;  %v2502_v16 = vmul.f32 %v5351_v14, %v2438_v15  ;;  %v3322_v29 = vmul.f32 1.442695, %v2967_v41  ;;  %v3282_v13 = vmul.f32 1.442695, %v2947_v31  ;;  %v10101_v15 = vld [vmem:[#allocation236_spill] sm:$0xff] }
 0x6ec   : > { %v5353_v52 = vpop.eup %5352 }
 0x6ed   : > { %v2497_v20 = vmul.f32 %v5353_v52, %v2433_v12  ;;  %5354 = vpow2.f32 %v3322_v29  ;;  %v10104_v29 = vld [vmem:[#allocation300_spill] sm:$0xff] }
 0x6ee   : > { %5356 = vpow2.f32 %v3282_v13 }
 0x6f1   : > { %2820 = vperm.xlu1 %4833, %v10095_v36  }
 0x6f4   : > { %2855 = vperm.xlu0 %4832, %v8358_v27  }
 0x701   : > { %v3730_v61 = vpop.xlane.xlu0 %3729 }
 0x702   : > { %v3974_v26 = vadd.f32 %v3730_v61, %v2502_v16  ;;  %v10103_v16 = vld [vmem:[#allocation193_spill] sm:$0xff] }
 0x703   : > { %v3705_v1 = vpop.xlane.xlu1 %3704 }
 0x704   : > { %4039 = vst.msk [vmem:[#allocation3 + $0x90] sm:$0xff] %vm4020_vm4, %v3974_v26  ;;  %v3969_v34 = vadd.f32 %v3705_v1, %v2497_v20  ;;  %v10105_v1 = vld [vmem:[#allocation73_spill] sm:$0xff] }
 0x706   : > { %4034 = vst.msk [vmem:[#allocation3 + $0x68] sm:$0xff] %vm4020_vm4, %v3969_v34 }
 0x707   : > { %v8616_v7 = vpop.permute.xlu1 %2800 }
 0x708   : > { %v3068_v2 = vsub.f32 %v10099_v43, %v8616_v7  ;;  %v3069_v14 = vsub.f32 %v10100_v5, %v8616_v7  ;;  %v3070_v53 = vsub.f32 %v10101_v15, %v8616_v7  ;;  %v5355_v5 = vpop.eup %5354 }
 0x709   : > { %v2836_v41 = vpop.permute.xlu0 %2835  ;;  %v5357_v15 = vpop.eup %5356 }
 0x70a   : > { %v3524_v52 = vmul.f32 1.442695, %v3068_v2  ;;  %v3526_v12 = vmul.f32 1.442695, %v3069_v14  ;;  %v3096_v47 = vsub.f32 %v10102_v37, %v2836_v41  ;;  %v3528_v31 = vmul.f32 1.442695, %v3070_v53 }
 0x70b   : > { %v3097_v61 = vsub.f32 %v10103_v16, %v2836_v41  ;;  %v3098_v26 = vsub.f32 %v10104_v29, %v2836_v41  ;;  %v3099_v13 = vsub.f32 %v10105_v1, %v2836_v41  ;;  %v3758_v14 = vadd.f32 %v5355_v5, %v8345_v0  ;;  %v10106_v53 = vld [vmem:[#allocation62_spill] sm:$0xff]  ;;  %v10107_v0 = vld [vmem:[#allocation221_spill] sm:$0xff] }
 0x70c   : > { %5358 = vpow2.f32 %v3524_v52  ;;  %v3580_v20 = vmul.f32 1.442695, %v3096_v47  ;;  %v3733_v37 = vadd.f32 %v5357_v15, %v10106_v53  ;;  %v10109_v5 = vld [vmem:[#allocation209_spill] sm:$0xff] }
 0x70d   : > { %5360 = vpow2.f32 %v3526_v12  ;;  %v3582_v34 = vmul.f32 1.442695, %v3097_v61  ;;  %v3584_v43 = vmul.f32 1.442695, %v3098_v26  ;;  %v3586_v2 = vmul.f32 1.442695, %v3099_v13 }
 0x70e   : > { %5362 = vpow2.f32 %v3528_v31  ;;  %v10108_v13 = vld [vmem:[#allocation219_spill] sm:$0xff] }
 0x70f   : > { %5364 = vpow2.f32 %v3580_v20 }
 0x710   : > { %5366 = vpow2.f32 %v3582_v34  ;;  %v2248_v34 = vsub.f32 %v10108_v13, %v10107_v0 }
 0x711   : > { %5368 = vpow2.f32 %v3584_v43 }
 0x712   : > { %5370 = vpow2.f32 %v3586_v2  ;;  %v10110_v2 = vld [vmem:[#allocation205_spill] sm:$0xff]  ;;  %v2332_v15 = vmul.f32 1.442695, %v2248_v34  ;;  %v10115_v34 = vld [vmem:[#allocation104_spill] sm:$0xff] }
 0x713   : > { %3759 = vadd.xlane.f32.xlu0 %v3758_v14  ;;  %v2243_v14 = vsub.f32 %v10110_v2, %v10109_v5  ;;  %v2983_v5 = vsub.f32 %v10115_v34, %v8402_v54 }
 0x714   : > { %5372 = vpow2.f32 %v2332_v15 }
 0x715   : > { %3734 = vadd.xlane.f32.xlu1 %v3733_v37  ;;  %v2322_v53 = vmul.f32 1.442695, %v2243_v14  ;;  %v10111_v37 = vld [vmem:[#allocation45_spill] sm:$0xff] }
 0x716   : > { %v5359_v52 = vpop.eup %5358 }
 0x717   : > { %v5361_v12 = vpop.eup %5360  ;;  %5374 = vpow2.f32 %v2322_v53 }
 0x718   : > { %v3886_v47 = vadd.f32 %v5361_v12, %v5359_v52  ;;  %v5363_v41 = vpop.eup %5362  ;;  %v2440_v12 = vld [vmem:[#allocation3 + $0xa0] sm:$0xff] }
 0x719   : > { %v5365_v16 = vpop.eup %5364 }
 0x71a   : > { %v8630_v31 = vadd.f32 %v5363_v41, %v3886_v47  ;;  %v5367_v61 = vpop.eup %5366  ;;  %v10112_v47 = vld [vmem:[#allocation96_spill] sm:$0xff] }
 0x71b   : > { %v3921_v29 = vadd.f32 %v5367_v61, %v5365_v16  ;;  %v5369_v26 = vpop.eup %5368  ;;  %v2975_v41 = vsub.f32 %v10112_v47, %v8363_v3  ;;  %v2435_v61 = vld [vmem:[#allocation3 + $0x78] sm:$0xff]  ;;  %v3354_v3 = vmul.f32 1.442695, %v2983_v5  ;;  %v10121_v5 = vld [vmem:[#allocation306_spill] sm:$0xff] }
 0x71c   : > { %v5371_v1 = vpop.eup %5370 }
 0x71d   : > { %v3922_v20 = vadd.f32 %v5369_v26, %v3921_v29  ;;  %v10113_v29 = vld [vmem:[#allocation322_spill] sm:$0xff]  ;;  %v3338_v13 = vmul.f32 1.442695, %v2975_v41  ;;  %v10117_v41 = vld [vmem:[#allocation268_spill] sm:$0xff] }
 0x71e   : > { %v5373_v52 = vpop.eup %5372  ;;  %v10114_v26 = vld [vmem:[#allocation74_spill] sm:$0xff] }
 0x71f   : > { %v8634_v43 = vadd.f32 %v5371_v1, %v3922_v20  ;;  %v2955_v20 = vsub.f32 %v10114_v26, %v10113_v29  ;;  %v2504_v1 = vmul.f32 %v5373_v52, %v2440_v12  ;;  %5376 = vpow2.f32 %v3338_v13  ;;  %v10116_v52 = vld [vmem:[#allocation266_spill] sm:$0xff] }
 0x721   : > { %v5375_v16 = vpop.eup %5374  ;;  %v3298_v53 = vmul.f32 1.442695, %v2955_v20 }
 0x722   : > { %v2499_v14 = vmul.f32 %v5375_v16, %v2435_v61  ;;  %v10118_v16 = vld [vmem:[#allocation270_spill] sm:$0xff] }
 0x723   : > { %5378 = vpow2.f32 %v3298_v53 }
 0x724   : > { %5380 = vpow2.f32 %v3354_v3 }
 0x726   : > { %2830 = vperm.xlu1 %4833, %v10111_v37  }
 0x729   : > { %2865 = vperm.xlu0 %4832, %v8395_v49  }
 0x736   : > { %v3740_v0 = vpop.xlane.xlu0 %3739 }
 0x737   : > { %v3976_v2 = vadd.f32 %v3740_v0, %v2504_v1  ;;  %v10119_v1 = vld [vmem:[#allocation38_spill] sm:$0xff] }
 0x738   : > { %v3715_v15 = vpop.xlane.xlu1 %3714 }
 0x739   : > { %4041 = vst.msk [vmem:[#allocation3 + $0xa0] sm:$0xff] %vm4020_vm4, %v3976_v2  ;;  %v3971_v49 = vadd.f32 %v3715_v15, %v2499_v14  ;;  %v10122_v15 = vld [vmem:[#allocation79_spill] sm:$0xff] }
 0x73b   : > { %4036 = vst.msk [vmem:[#allocation3 + $0x78] sm:$0xff] %vm4020_vm4, %v3971_v49  ;;  %v10120_v49 = vld [vmem:[#allocation23_spill] sm:$0xff] }
 0x73c   : > { %v8648_v47 = vpop.permute.xlu1 %2810 }
 0x73d   : > { %v3076_v12 = vsub.f32 %v10116_v52, %v8648_v47  ;;  %v3077_v54 = vsub.f32 %v10117_v41, %v8648_v47  ;;  %v3078_v61 = vsub.f32 %v10118_v16, %v8648_v47  ;;  %v5377_v16 = vpop.eup %5376 }
 0x73e   : > { %v2846_v29 = vpop.permute.xlu0 %2845 }
 0x73f   : > { %v3540_v26 = vmul.f32 1.442695, %v3076_v12  ;;  %v3542_v20 = vmul.f32 1.442695, %v3077_v54  ;;  %v3104_v0 = vsub.f32 %v10119_v1, %v2846_v29  ;;  %v3544_v13 = vmul.f32 1.442695, %v3078_v61  ;;  %v5379_v54 = vpop.eup %5378 }
 0x740   : > { %v3105_v34 = vsub.f32 %v10120_v49, %v2846_v29  ;;  %v3106_v2 = vsub.f32 %v10121_v5, %v2846_v29  ;;  %v3107_v53 = vsub.f32 %v10122_v15, %v2846_v29  ;;  %v3768_v12 = vadd.f32 %v5377_v16, %v8380_v23  ;;  %v10123_v61 = vld [vmem:[#allocation70_spill] sm:$0xff]  ;;  %v5381_v49 = vpop.eup %5380 }
 0x741   : > { %5382 = vpow2.f32 %v3540_v26  ;;  %v3596_v14 = vmul.f32 1.442695, %v3104_v0  ;;  %v3743_v1 = vadd.f32 %v5379_v54, %v10123_v61  ;;  %v3778_v26 = vadd.f32 %v5381_v49, %v8431_v25  ;;  %v10128_v49 = vld [vmem:[#allocation324_spill] sm:$0xff] }
 0x742   : > { %5384 = vpow2.f32 %v3542_v20  ;;  %v3598_v52 = vmul.f32 1.442695, %v3105_v34  ;;  %v3600_v41 = vmul.f32 1.442695, %v3106_v2  ;;  %v3602_v3 = vmul.f32 1.442695, %v3107_v53 }
 0x743   : > { %5386 = vpow2.f32 %v3544_v13 }
 0x744   : > { %5388 = vpow2.f32 %v3596_v14 }
 0x745   : > { %5390 = vpow2.f32 %v3598_v52  ;;  %v10124_v52 = vld [vmem:[#allocation225_spill] sm:$0xff] }
 0x746   : > { %5392 = vpow2.f32 %v3600_v41  ;;  %v10125_v41 = vld [vmem:[#allocation223_spill] sm:$0xff] }
 0x747   : > { %5394 = vpow2.f32 %v3602_v3  ;;  %v2250_v25 = vsub.f32 %v10125_v41, %v10124_v52  ;;  %v10126_v3 = vld [vmem:[#allocation214_spill] sm:$0xff]  ;;  %v10133_v41 = vld [vmem:[#allocation279_spill] sm:$0xff] }
 0x748   : > { %3769 = vadd.xlane.f32.xlu0 %v3768_v12  ;;  %v10127_v12 = vld [vmem:[#allocation212_spill] sm:$0xff] }
 0x749   : > { %v2245_v54 = vsub.f32 %v10127_v12, %v10126_v3  ;;  %v2336_v61 = vmul.f32 1.442695, %v2250_v25  ;;  %v10134_v3 = vld [vmem:[#allocation280_spill] sm:$0xff] }
 0x74a   : > { %3744 = vadd.xlane.f32.xlu1 %v3743_v1 }
 0x74b   : > { %v5383_v29 = vpop.eup %5382  ;;  %v2326_v1 = vmul.f32 1.442695, %v2245_v54  ;;  %5396 = vpow2.f32 %v2336_v61  ;;  %v10135_v54 = vld [vmem:[#allocation283_spill] sm:$0xff] }
 0x74c   : > { %v5385_v20 = vpop.eup %5384  ;;  %3779 = vadd.xlane.f32.xlu0 %v3778_v26 }
 0x74d   : > { %v3896_v0 = vadd.f32 %v5385_v20, %v5383_v29  ;;  %v5387_v13 = vpop.eup %5386  ;;  %5398 = vpow2.f32 %v2326_v1  ;;  %v10130_v20 = vld [vmem:[#allocation31_spill] sm:$0xff] }
 0x74e   : > { %v5389_v34 = vpop.eup %5388 }
 0x74f   : > { %v8663_v5 = vadd.f32 %v5387_v13, %v3896_v0  ;;  %v5391_v2 = vpop.eup %5390  ;;  %v2442_v0 = vld [vmem:[#allocation3 + $0xb0] sm:$0xff] }
 0x750   : > { %3789 = vadd.xlane.f32.xlu0 %v8434_v38  ;;  %v3931_v23 = vadd.f32 %v5391_v2, %v5389_v34  ;;  %v5393_v14 = vpop.eup %5392  ;;  %v10129_v38 = vld [vmem:[#allocation286_spill] sm:$0xff] }
 0x751   : > { %v5395_v53 = vpop.eup %5394  ;;  %v10131_v34 = vld [vmem:[#allocation326_spill] sm:$0xff] }
 0x752   : > { %v3932_v15 = vadd.f32 %v5393_v14, %v3931_v23  ;;  %v2437_v23 = vld [vmem:[#allocation3 + $0x88] sm:$0xff] }
 0x754   : > { %3799 = vadd.xlane.f32.xlu0 %v8437_v28  ;;  %v8669_v16 = vadd.f32 %v5395_v53, %v3932_v15  ;;  %v3071_v28 = vsub.f32 %v10129_v38, %v8616_v7 }
 0x755   : > { %v5397_v26 = vpop.eup %5396 }
 0x756   : > { %v3530_v29 = vmul.f32 1.442695, %v3071_v28  ;;  %v2506_v14 = vmul.f32 %v5397_v26, %v2442_v0 }
 0x757   : > { %v5399_v13 = vpop.eup %5398 }
 0x758   : > { %3809 = vadd.xlane.f32.xlu0 %v8439_v21  ;;  %v3079_v21 = vsub.f32 %v10130_v20, %v8648_v47  ;;  %5400 = vpow2.f32 %v3530_v29  ;;  %v10137_v20 = vld [vmem:[#allocation28_spill] sm:$0xff] }
 0x75b   : > { %2840 = vperm.xlu1 %4833, %v10128_v49  }
 0x75c   : > { %3819 = vadd.xlane.f32.xlu0 %v8441_v22  ;;  %v10132_v22 = vld [vmem:[#allocation82_spill] sm:$0xff] }
 0x75d   : > { %v2963_v2 = vsub.f32 %v10132_v22, %v10131_v34  ;;  %v10139_v22 = vld [vmem:[#allocation314_spill] sm:$0xff] }
 0x75f   : > { %v3314_v53 = vmul.f32 1.442695, %v2963_v2 }
 0x760   : > { %3829 = vadd.xlane.f32.xlu0 %v8468_v17  ;;  %v3546_v17 = vmul.f32 1.442695, %v3079_v21 }
 0x762   : > { %5402 = vpow2.f32 %v3546_v17  ;;  %v5401_v0 = vpop.eup %5400  ;;  %v10140_v17 = vld [vmem:[#allocation264_spill] sm:$0xff] }
 0x763   : > { %5404 = vpow2.f32 %v3314_v53 }
 0x764   : > { %3839 = vadd.xlane.f32.xlu0 %v8495_v35  ;;  %v2501_v35 = vmul.f32 %v5399_v13, %v2437_v23  ;;  %v10138_v13 = vld [vmem:[#allocation29_spill] sm:$0xff] }
 0x768   : > { %3849 = vadd.xlane.f32.xlu0 %v8521_v56 }
 0x76b   : > { %v3750_v15 = vpop.xlane.xlu0 %3749 }
 0x76c   : > { %v3978_v7 = vadd.f32 %v3750_v15, %v2506_v14  ;;  %3859 = vadd.xlane.f32.xlu0 %v8547_v6  ;;  %v10136_v6 = vld [vmem:[#allocation20_spill] sm:$0xff]  ;;  %v3888_v14 = vadd.f32 %v5401_v0, %v8630_v31 }
 0x76d   : > { %v3725_v52 = vpop.xlane.xlu1 %3724 }
 0x76e   : > { %4043 = vst.msk [vmem:[#allocation3 + $0xb0] sm:$0xff] %vm4020_vm4, %v3978_v7  ;;  %v3973_v47 = vadd.f32 %v3725_v52, %v2501_v35  ;;  %v5403_v35 = vpop.eup %5402 }
 0x76f   : > { %v5405_v52 = vpop.eup %5404 }
 0x770   : > { %4038 = vst.msk [vmem:[#allocation3 + $0x88] sm:$0xff] %vm4020_vm4, %v3973_v47  ;;  %3869 = vadd.xlane.f32.xlu0 %v8574_v40 }
 0x771   : > { %v2821_v56 = vpop.permute.xlu1 %2820 }
 0x772   : > { %v3084_v25 = vsub.f32 %v10133_v41, %v2821_v56  ;;  %v3085_v12 = vsub.f32 %v10134_v3, %v2821_v56  ;;  %v3086_v61 = vsub.f32 %v10135_v54, %v2821_v56  ;;  %v3087_v1 = vsub.f32 %v10136_v6, %v2821_v56  ;;  %v10141_v56 = vld [vmem:[#allocation81_spill] sm:$0xff] }
 0x773   : > { %v2856_v38 = vpop.permute.xlu0 %2855  ;;  %v3753_v41 = vadd.f32 %v5405_v52, %v10141_v56  ;;  %v2439_v52 = vld [vmem:[#allocation3 + $0x98] sm:$0xff] }
 0x774   : > { %v3556_v28 = vmul.f32 1.442695, %v3084_v25  ;;  %v3558_v26 = vmul.f32 1.442695, %v3085_v12  ;;  %v3560_v29 = vmul.f32 1.442695, %v3086_v61  ;;  %v3112_v21 = vsub.f32 %v10137_v20, %v2856_v38  ;;  %3879 = vadd.xlane.f32.xlu0 %v8600_v57 }
 0x775   : > { %v3562_v40 = vmul.f32 1.442695, %v3087_v1  ;;  %v3113_v34 = vsub.f32 %v10138_v13, %v2856_v38  ;;  %v3114_v2 = vsub.f32 %v10139_v22, %v2856_v38  ;;  %v3115_v15 = vsub.f32 %v10140_v17, %v2856_v38  ;;  %v10142_v20 = vld [vmem:[#allocation230_spill] sm:$0xff] }
 0x776   : > { %5406 = vpow2.f32 %v3556_v28  ;;  %v3612_v23 = vmul.f32 1.442695, %v3112_v21  ;;  %v3898_v57 = vadd.f32 %v5403_v35, %v8663_v5  ;;  %v10143_v21 = vld [vmem:[#allocation227_spill] sm:$0xff]  ;;  %v10144_v13 = vld [vmem:[#allocation218_spill] sm:$0xff] }
 0x777   : > { %5408 = vpow2.f32 %v3558_v26  ;;  %v3614_v7 = vmul.f32 1.442695, %v3113_v34  ;;  %v3616_v53 = vmul.f32 1.442695, %v3114_v2  ;;  %v3618_v47 = vmul.f32 1.442695, %v3115_v15 }
 0x778   : > { %5410 = vpow2.f32 %v3560_v29  ;;  %3889 = vadd.xlane.f32.xlu0 %v3888_v14  ;;  %v2252_v0 = vsub.f32 %v10143_v21, %v10142_v20  ;;  %v10145_v34 = vld [vmem:[#allocation216_spill] sm:$0xff]  ;;  %v2444_v15 = vld [vmem:[#allocation3 + $0xc0] sm:$0xff]  ;;  %v10147_v35 = vld [vmem:[#allocation59_spill] sm:$0xff] }
 0x779   : > { %5412 = vpow2.f32 %v3562_v40  ;;  %v2247_v22 = vsub.f32 %v10145_v34, %v10144_v13  ;;  %v10146_v14 = vld [vmem:[#allocation60_spill] sm:$0xff] }
 0x77a   : > { %5414 = vpow2.f32 %v3612_v23  ;;  %v2340_v2 = vmul.f32 1.442695, %v2252_v0  ;;  %v10153_v34 = vld [vmem:[#allocation52_spill] sm:$0xff] }
 0x77b   : > { %5416 = vpow2.f32 %v3614_v7  ;;  %v2330_v23 = vmul.f32 1.442695, %v2247_v22 }
 0x77c   : > { %3899 = vadd.xlane.f32.xlu0 %v3898_v57  ;;  %5418 = vpow2.f32 %v3616_v53  ;;  %v10148_v53 = vld [vmem:[#allocation90_spill] sm:$0xff] }
 0x77d   : > { %5420 = vpow2.f32 %v3618_v47  ;;  %v2971_v57 = vsub.f32 %v10148_v53, %v10147_v35  ;;  %v10156_v53 = vld [vmem:[#allocation95_spill] sm:$0xff] }
 0x77e   : > { %5422 = vpow2.f32 %v2340_v2 }
 0x77f   : > { %3754 = vadd.xlane.f32.xlu1 %v3753_v41  ;;  %5424 = vpow2.f32 %v2330_v23  ;;  %v10154_v23 = vld [vmem:[#allocation53_spill] sm:$0xff] }
 0x780   : > { %v5407_v31 = vpop.eup %5406 }
 0x781   : > { %v5409_v25 = vpop.eup %5408 }
 0x782   : > { %v5411_v3 = vpop.eup %5410  ;;  %v3906_v12 = vadd.f32 %v5409_v25, %v5407_v31  ;;  %v3330_v25 = vmul.f32 1.442695, %v2971_v57 }
 0x783   : > { %v5413_v54 = vpop.eup %5412 }
 0x784   : > { %v5415_v61 = vpop.eup %5414  ;;  %v3907_v6 = vadd.f32 %v5411_v3, %v3906_v12  ;;  %5426 = vpow2.f32 %v3330_v25 }
 0x785   : > { %v5417_v1 = vpop.eup %5416 }
 0x786   : > { %v3908_v38 = vadd.f32 %v5413_v54, %v3907_v6  ;;  %v3941_v28 = vadd.f32 %v5417_v1, %v5415_v61  ;;  %v5419_v5 = vpop.eup %5418  ;;  %v10149_v61 = vld [vmem:[#allocation290_spill] sm:$0xff]  ;;  %v10150_v1 = vld [vmem:[#allocation292_spill] sm:$0xff] }
 0x787   : > { %v5421_v29 = vpop.eup %5420 }
 0x788   : > { %3909 = vadd.xlane.f32.xlu0 %v3908_v38  ;;  %v3942_v26 = vadd.f32 %v5419_v5, %v3941_v28  ;;  %v5423_v17 = vpop.eup %5422  ;;  %v10151_v28 = vld [vmem:[#allocation295_spill] sm:$0xff] }
 0x789   : > { %v5425_v7 = vpop.eup %5424  ;;  %v2508_v47 = vmul.f32 %v5423_v17, %v2444_v15  ;;  %v10155_v15 = vld [vmem:[#allocation51_spill] sm:$0xff] }
 0x78a   : > { %v8703_v40 = vadd.f32 %v5421_v29, %v3942_v26  ;;  %v2503_v31 = vmul.f32 %v5425_v7, %v2439_v52  ;;  %v10152_v26 = vld [vmem:[#allocation47_spill] sm:$0xff] }
 0x790   : > { %2850 = vperm.xlu1 %4833, %v10146_v14  }
 0x7a0   : > { %v3760_v56 = vpop.xlane.xlu0 %3759 }
 0x7a1   : > { %v3980_v41 = vadd.f32 %v3760_v56, %v2508_v47  ;;  %v5427_v56 = vpop.eup %5426 }
 0x7a2   : > { %v3735_v3 = vpop.xlane.xlu1 %3734 }
 0x7a3   : > { %4045 = vst.msk [vmem:[#allocation3 + $0xc0] sm:$0xff] %vm4020_vm4, %v3980_v41  ;;  %v3975_v12 = vadd.f32 %v3735_v3, %v2503_v31  ;;  %v10157_v31 = vld [vmem:[#allocation11_spill] sm:$0xff] }
 0x7a4   : > { %v3763_v25 = vadd.f32 %v5427_v56, %v10157_v31  ;;  %v10165_v31 = vld [vmem:[#allocation251_spill] sm:$0xff] }
 0x7a5   : > { %4040 = vst.msk [vmem:[#allocation3 + $0x98] sm:$0xff] %vm4020_vm4, %v3975_v12 }
 0x7a6   : > { %v2831_v54 = vpop.permute.xlu1 %2830 }
 0x7a7   : > { %v3092_v6 = vsub.f32 %v10149_v61, %v2831_v54  ;;  %v3093_v38 = vsub.f32 %v10150_v1, %v2831_v54  ;;  %v3094_v5 = vsub.f32 %v10151_v28, %v2831_v54  ;;  %v3095_v29 = vsub.f32 %v10152_v26, %v2831_v54 }
 0x7a8   : > { %v2866_v20 = vpop.permute.xlu0 %2865 }
 0x7a9   : > { %v3572_v21 = vmul.f32 1.442695, %v3092_v6  ;;  %v3574_v0 = vmul.f32 1.442695, %v3093_v38  ;;  %v3576_v13 = vmul.f32 1.442695, %v3094_v5  ;;  %v3120_v22 = vsub.f32 %v10153_v34, %v2866_v20 }
 0x7aa   : > { %v3578_v2 = vmul.f32 1.442695, %v3095_v29  ;;  %v3121_v17 = vsub.f32 %v10154_v23, %v2866_v20  ;;  %v3122_v7 = vsub.f32 %v10155_v15, %v2866_v20  ;;  %v3123_v57 = vsub.f32 %v10156_v53, %v2866_v20  ;;  %v10161_v23 = vld [vmem:[#allocation220_spill] sm:$0xff] }
 0x7ab   : > { %5428 = vpow2.f32 %v3572_v21  ;;  %v3628_v35 = vmul.f32 1.442695, %v3120_v22 }
 0x7ac   : > { %5430 = vpow2.f32 %v3574_v0  ;;  %v3630_v52 = vmul.f32 1.442695, %v3121_v17  ;;  %v3632_v47 = vmul.f32 1.442695, %v3122_v7  ;;  %v3634_v41 = vmul.f32 1.442695, %v3123_v57 }
 0x7ad   : > { %5432 = vpow2.f32 %v3576_v13  ;;  %v10158_v0 = vld [vmem:[#allocation239_spill] sm:$0xff]  ;;  %v10159_v13 = vld [vmem:[#allocation237_spill] sm:$0xff]  ;;  %v10163_v57 = vld [vmem:[#allocation86_spill] sm:$0xff] }
 0x7ae   : > { %5434 = vpow2.f32 %v3578_v2  ;;  %v2254_v34 = vsub.f32 %v10159_v13, %v10158_v0  ;;  %v10160_v2 = vld [vmem:[#allocation222_spill] sm:$0xff]  ;;  %v10162_v7 = vld [vmem:[#allocation241_spill] sm:$0xff] }
 0x7af   : > { %5436 = vpow2.f32 %v3628_v35  ;;  %v2249_v17 = vsub.f32 %v10161_v23, %v10160_v2  ;;  %v2256_v35 = vsub.f32 %v10162_v7, %v9919_v10 }
 0x7b0   : > { %5438 = vpow2.f32 %v3630_v52  ;;  %v2344_v15 = vmul.f32 1.442695, %v2254_v34  ;;  %v10164_v52 = vld [vmem:[#allocation247_spill] sm:$0xff]  ;;  %v2448_v34 = vld [vmem:[#allocation3 + $0xe0] sm:$0xff] }
 0x7b1   : > { %5440 = vpow2.f32 %v3632_v47  ;;  %v2334_v53 = vmul.f32 1.442695, %v2249_v17  ;;  %v2258_v47 = vsub.f32 %v10164_v52, %v9921_v19  ;;  %v2348_v56 = vmul.f32 1.442695, %v2256_v35  ;;  %v10167_v19 = vld [vmem:[#allocation259_spill] sm:$0xff]  ;;  %v10171_v17 = vld [vmem:[#allocation12_spill] sm:$0xff] }
 0x7b2   : > { %5442 = vpow2.f32 %v3634_v41 }
 0x7b3   : > { %5444 = vpow2.f32 %v2344_v15  ;;  %v2352_v41 = vmul.f32 1.442695, %v2258_v47  ;;  %v10172_v15 = vld [vmem:[#allocation106_spill] sm:$0xff] }
 0x7b4   : > { %3764 = vadd.xlane.f32.xlu1 %v3763_v25  ;;  %5446 = vpow2.f32 %v2334_v53  ;;  %v2260_v25 = vsub.f32 %v10165_v31, %v9923_v58  ;;  %v10170_v58 = vld [vmem:[#allocation272_spill] sm:$0xff]  ;;  %v2987_v7 = vsub.f32 %v10172_v15, %v10171_v17 }
 0x7b5   : > { %v5429_v3 = vpop.eup %5428  ;;  %5448 = vpow2.f32 %v2348_v56  ;;  %v2266_v0 = vsub.f32 %v10170_v58, %v7595_v44  ;;  %v2450_v56 = vld [vmem:[#allocation3 + $0xf0] sm:$0xff]  ;;  %v10173_v44 = vld [vmem:[#allocation273_spill] sm:$0xff] }
 0x7b6   : > { %v5431_v12 = vpop.eup %5430  ;;  %5450 = vpow2.f32 %v2352_v41 }
 0x7b7   : > { %v5433_v54 = vpop.eup %5432  ;;  %v3916_v61 = vadd.f32 %v5431_v12, %v5429_v3  ;;  %v2356_v3 = vmul.f32 1.442695, %v2260_v25  ;;  %v10166_v12 = vld [vmem:[#allocation255_spill] sm:$0xff]  ;;  %v2368_v41 = vmul.f32 1.442695, %v2266_v0  ;;  %v2268_v25 = vsub.f32 %v10173_v44, %v7604_v55 }
 0x7b8   : > { %v5435_v6 = vpop.eup %5434 }
 0x7b9   : > { %v5437_v1 = vpop.eup %5436  ;;  %v3917_v38 = vadd.f32 %v5433_v54, %v3916_v61  ;;  %v2262_v54 = vsub.f32 %v10166_v12, %v9925_v60  ;;  %v2446_v61 = vld [vmem:[#allocation3 + $0xd0] sm:$0xff]  ;;  %5452 = vpow2.f32 %v2356_v3  ;;  %v3362_v12 = vmul.f32 1.442695, %v2987_v7 }
 0x7ba   : > { %v5439_v28 = vpop.eup %5438 }
 0x7bb   : > { %v3918_v5 = vadd.f32 %v5435_v6, %v3917_v38  ;;  %v3951_v26 = vadd.f32 %v5439_v28, %v5437_v1  ;;  %v5441_v29 = vpop.eup %5440  ;;  %v2360_v1 = vmul.f32 1.442695, %v2262_v54  ;;  %v2264_v38 = vsub.f32 %v10167_v19, %v9930_v63  ;;  %v2441_v28 = vld [vmem:[#allocation3 + $0xa8] sm:$0xff] }
 0x7bc   : > { %v5443_v21 = vpop.eup %5442 }
 0x7bd   : > { %3919 = vadd.xlane.f32.xlu0 %v3918_v5  ;;  %v3952_v20 = vadd.f32 %v5441_v29, %v3951_v26  ;;  %v5445_v10 = vpop.eup %5444  ;;  %v10168_v5 = vld [vmem:[#allocation69_spill] sm:$0xff]  ;;  %v10169_v26 = vld [vmem:[#allocation98_spill] sm:$0xff]  ;;  %5454 = vpow2.f32 %v2360_v1  ;;  %v2364_v23 = vmul.f32 1.442695, %v2264_v38  ;;  %v10175_v1 = vld [vmem:[#allocation299_spill] sm:$0xff] }
 0x7be   : > { %v5447_v6 = vpop.eup %5446  ;;  %v2979_v29 = vsub.f32 %v10169_v26, %v10168_v5  ;;  %v10176_v38 = vld [vmem:[#allocation302_spill] sm:$0xff]  ;;  %v10177_v26 = vld [vmem:[#allocation55_spill] sm:$0xff] }
 0x7bf   : > { %v8723_v22 = vadd.f32 %v5443_v21, %v3952_v20  ;;  %v2510_v20 = vmul.f32 %v5445_v10, %v2446_v61  ;;  %v5449_v21 = vpop.eup %5448  ;;  %v2505_v2 = vmul.f32 %v5447_v6, %v2441_v28  ;;  %5456 = vpow2.f32 %v2364_v23  ;;  %v10174_v61 = vld [vmem:[#allocation298_spill] sm:$0xff] }
 0x7c0   : > { %v5451_v63 = vpop.eup %5450  ;;  %v3346_v53 = vmul.f32 1.442695, %v2979_v29  ;;  %v2512_v47 = vmul.f32 %v5449_v21, %v2448_v34  ;;  %v2372_v21 = vmul.f32 1.442695, %v2268_v25  ;;  %v10178_v34 = vld [vmem:[#allocation276_spill] sm:$0xff] }
 0x7c1   : > { %v2514_v10 = vmul.f32 %v5451_v63, %v2450_v56 }
 0x7c2   : > { %5458 = vpow2.f32 %v3346_v53 }
 0x7c3   : > { %v5453_v5 = vpop.eup %5452  ;;  %5460 = vpow2.f32 %v2368_v41 }
 0x7c4   : > { %5462 = vpow2.f32 %v3362_v12 }
 0x7c5   : > { %2860 = vperm.xlu1 %4833, %v10163_v57  }
 0x7c7   : > { %v5455_v17 = vpop.eup %5454 }
 0x7c9   : > { %v5457_v56 = vpop.eup %5456 }
 0x7cc   : > { %v5459_v44 = vpop.eup %5458 }
 0x7d5   : > { %v3770_v13 = vpop.xlane.xlu0 %3769 }
 0x7d6   : > { %v3982_v60 = vadd.f32 %v3770_v13, %v2510_v20  ;;  %v2452_v20 = vld [vmem:[#allocation3 + $0x100] sm:$0xff] }
 0x7d7   : > { %v3745_v35 = vpop.xlane.xlu1 %3744  ;;  %v2516_v23 = vmul.f32 %v5453_v5, %v2452_v20 }
 0x7d8   : > { %4047 = vst.msk [vmem:[#allocation3 + $0xd0] sm:$0xff] %vm4020_vm4, %v3982_v60  ;;  %v3977_v52 = vadd.f32 %v3745_v35, %v2505_v2  ;;  %v2270_v60 = vsub.f32 %v10178_v34, %v7627_v62  ;;  %v2454_v35 = vld [vmem:[#allocation3 + $0x110] sm:$0xff] }
 0x7d9   : > { %v3780_v31 = vpop.xlane.xlu0 %3779  ;;  %v2518_v62 = vmul.f32 %v5455_v17, %v2454_v35  ;;  %v10184_v35 = vld [vmem:[#allocation307_spill] sm:$0xff] }
 0x7da   : > { %4042 = vst.msk [vmem:[#allocation3 + $0xa8] sm:$0xff] %vm4020_vm4, %v3977_v52  ;;  %v3984_v3 = vadd.f32 %v3780_v31, %v2512_v47  ;;  %v2376_v53 = vmul.f32 1.442695, %v2270_v60  ;;  %v10179_v52 = vld [vmem:[#allocation282_spill] sm:$0xff] }
 0x7db   : > { %v2841_v54 = vpop.permute.xlu1 %2840  ;;  %v2272_v47 = vsub.f32 %v10179_v52, %v10007_v46  ;;  %v2456_v31 = vld [vmem:[#allocation3 + $0x120] sm:$0xff] }
 0x7dc   : > { %4049 = vst.msk [vmem:[#allocation3 + $0xe0] sm:$0xff] %vm4020_vm4, %v3984_v3  ;;  %v3100_v6 = vsub.f32 %v10174_v61, %v2841_v54  ;;  %v3101_v19 = vsub.f32 %v10175_v1, %v2841_v54  ;;  %v3102_v28 = vsub.f32 %v10176_v38, %v2841_v54  ;;  %v3103_v55 = vsub.f32 %v10177_v26, %v2841_v54  ;;  %v5461_v3 = vpop.eup %5460  ;;  %v10180_v54 = vld [vmem:[#allocation294_spill] sm:$0xff]  ;;  %v10181_v61 = vld [vmem:[#allocation97_spill] sm:$0xff]  ;;  %v2458_v38 = vld [vmem:[#allocation3 + $0x130] sm:$0xff] }
 0x7dd   : > { %v3790_v29 = vpop.xlane.xlu0 %3789  ;;  %v2380_v12 = vmul.f32 1.442695, %v2272_v47  ;;  %v2520_v46 = vmul.f32 %v5457_v56, %v2456_v31  ;;  %v5463_v1 = vpop.eup %5462  ;;  %v10185_v47 = vld [vmem:[#allocation76_spill] sm:$0xff] }
 0x7de   : > { %v3588_v58 = vmul.f32 1.442695, %v3100_v6  ;;  %v3590_v0 = vmul.f32 1.442695, %v3101_v19  ;;  %v3986_v13 = vadd.f32 %v3790_v29, %v2514_v10  ;;  %v3592_v2 = vmul.f32 1.442695, %v3102_v28 }
 0x7df   : > { %v3594_v15 = vmul.f32 1.442695, %v3103_v55  ;;  %v2274_v10 = vsub.f32 %v10180_v54, %v10024_v32  ;;  %v3773_v6 = vadd.f32 %v5459_v44, %v10181_v61  ;;  %v10182_v29 = vld [vmem:[#allocation301_spill] sm:$0xff]  ;;  %v2462_v56 = vld [vmem:[#allocation3 + $0x150] sm:$0xff]  ;;  %v10186_v44 = vld [vmem:[#allocation315_spill] sm:$0xff] }
 0x7e0   : > { %5464 = vpow2.f32 %v3588_v58  ;;  %4051 = vst.msk [vmem:[#allocation3 + $0xf0] sm:$0xff] %vm4020_vm4, %v3986_v13  ;;  %v2276_v20 = vsub.f32 %v10182_v29, %v10041_v4  ;;  %v10188_v61 = vld [vmem:[#allocation226_spill] sm:$0xff] }
 0x7e1   : > { %5466 = vpow2.f32 %v3590_v0  ;;  %v3800_v7 = vpop.xlane.xlu0 %3799  ;;  %v2384_v55 = vmul.f32 1.442695, %v2274_v10  ;;  %v2522_v0 = vmul.f32 %v5461_v3, %v2458_v38  ;;  %v2464_v10 = vld [vmem:[#allocation3 + $0x160] sm:$0xff] }
 0x7e2   : > { %5468 = vpow2.f32 %v2372_v21  ;;  %v3988_v63 = vadd.f32 %v3800_v7, %v2516_v23  ;;  %v10183_v21 = vld [vmem:[#allocation94_spill] sm:$0xff]  ;;  %v2388_v7 = vmul.f32 1.442695, %v2276_v20 }
 0x7e3   : > { %5470 = vpow2.f32 %v3592_v2  ;;  %v3783_v58 = vadd.f32 %v5463_v1, %v10183_v21  ;;  %v2460_v2 = vld [vmem:[#allocation3 + $0x140] sm:$0xff] }
 0x7e4   : > { %4053 = vst.msk [vmem:[#allocation3 + $0x100] sm:$0xff] %vm4020_vm4, %v3988_v63  ;;  %5472 = vpow2.f32 %v3594_v15  ;;  %v2278_v63 = vsub.f32 %v10184_v35, %v10059_v11 }
 0x7e5   : > { %v3810_v41 = vpop.xlane.xlu0 %3809  ;;  %5474 = vpow2.f32 %v2376_v53 }
 0x7e6   : > { %v3990_v25 = vadd.f32 %v3810_v41, %v2518_v62  ;;  %5476 = vpow2.f32 %v2380_v12  ;;  %v2392_v31 = vmul.f32 1.442695, %v2278_v63  ;;  %v10187_v12 = vld [vmem:[#allocation77_spill] sm:$0xff] }
 0x7e7   : > { %5478 = vpow2.f32 %v2384_v55 }
 0x7e8   : > { %4055 = vst.msk [vmem:[#allocation3 + $0x110] sm:$0xff] %vm4020_vm4, %v3990_v25  ;;  %5480 = vpow2.f32 %v2388_v7  ;;  %v2280_v25 = vsub.f32 %v10186_v44, %v10077_v45  ;;  %v2470_v7 = vld [vmem:[#allocation3 + $0x190] sm:$0xff] }
 0x7e9   : > { %3774 = vadd.xlane.f32.xlu1 %v3773_v6  ;;  %v3820_v19 = vpop.xlane.xlu0 %3819  ;;  %v10189_v6 = vld [vmem:[#allocation224_spill] sm:$0xff]  ;;  %5482 = vpow2.f32 %v2392_v31  ;;  %v2443_v31 = vld [vmem:[#allocation3 + $0xb8] sm:$0xff] }
 0x7ea   : > { %v5465_v28 = vpop.eup %5464  ;;  %v3992_v5 = vadd.f32 %v3820_v19, %v2520_v46  ;;  %v2251_v46 = vsub.f32 %v10189_v6, %v10188_v61  ;;  %v2396_v19 = vmul.f32 1.442695, %v2280_v25  ;;  %v10195_v61 = vld [vmem:[#allocation24_spill] sm:$0xff] }
 0x7eb   : > { %v5467_v26 = vpop.eup %5466 }
 0x7ec   : > { %v5469_v32 = vpop.eup %5468  ;;  %4057 = vst.msk [vmem:[#allocation3 + $0x120] sm:$0xff] %vm4020_vm4, %v3992_v5  ;;  %v3926_v13 = vadd.f32 %v5467_v26, %v5465_v28  ;;  %v10190_v5 = vld [vmem:[#allocation75_spill] sm:$0xff]  ;;  %v2466_v26 = vld [vmem:[#allocation3 + $0x170] sm:$0xff]  ;;  %v2338_v55 = vmul.f32 1.442695, %v2251_v46  ;;  %5484 = vpow2.f32 %v2396_v19  ;;  %v10196_v46 = vld [vmem:[#allocation22_spill] sm:$0xff] }
 0x7ed   : > { %v5471_v34 = vpop.eup %5470  ;;  %3784 = vadd.xlane.f32.xlu1 %v3783_v58  ;;  %v3830_v60 = vpop.xlane.xlu0 %3829  ;;  %v2524_v4 = vmul.f32 %v5469_v32, %v2460_v2  ;;  %v10191_v58 = vld [vmem:[#allocation103_spill] sm:$0xff]  ;;  %v10197_v19 = vld [vmem:[#allocation308_spill] sm:$0xff] }
 0x7ee   : > { %v3994_v23 = vadd.f32 %v3830_v60, %v2522_v0  ;;  %v3927_v17 = vadd.f32 %v5471_v34, %v3926_v13  ;;  %v5473_v15 = vpop.eup %5472  ;;  %v2468_v0 = vld [vmem:[#allocation3 + $0x180] sm:$0xff]  ;;  %5486 = vpow2.f32 %v2338_v55  ;;  %v10192_v34 = vld [vmem:[#allocation36_spill] sm:$0xff] }
 0x7ef   : > { %v5475_v52 = vpop.eup %5474  ;;  %v2282_v60 = vsub.f32 %v10192_v34, %v10095_v36 }
 0x7f0   : > { %4059 = vst.msk [vmem:[#allocation3 + $0x130] sm:$0xff] %vm4020_vm4, %v3994_v23  ;;  %v3928_v53 = vadd.f32 %v5473_v15, %v3927_v17  ;;  %v2526_v3 = vmul.f32 %v5475_v52, %v2462_v56  ;;  %v5477_v11 = vpop.eup %5476  ;;  %v10193_v17 = vld [vmem:[#allocation102_spill] sm:$0xff]  ;;  %v10194_v52 = vld [vmem:[#allocation113_spill] sm:$0xff] }
 0x7f1   : > { %3794 = vadd.xlane.f32.xlu1 %v10185_v47  ;;  %v3840_v62 = vpop.xlane.xlu0 %3839  ;;  %v2528_v38 = vmul.f32 %v5477_v11, %v2464_v10  ;;  %v5479_v28 = vpop.eup %5478  ;;  %v2400_v63 = vmul.f32 1.442695, %v2282_v60  ;;  %v10199_v60 = vld [vmem:[#allocation234_spill] sm:$0xff] }
 0x7f2   : > { %v3996_v41 = vadd.f32 %v3840_v62, %v2524_v4  ;;  %3929 = vadd.xlane.f32.xlu0 %v3928_v53  ;;  %v2530_v20 = vmul.f32 %v5479_v28, %v2466_v26  ;;  %v5481_v21 = vpop.eup %5480  ;;  %v2472_v62 = vld [vmem:[#allocation3 + $0x1a0] sm:$0xff]  ;;  %v10198_v28 = vld [vmem:[#allocation63_spill] sm:$0xff] }
 0x7f3   : > { %v2532_v2 = vmul.f32 %v5481_v21, %v2468_v0  ;;  %v5483_v23 = vpop.eup %5482  ;;  %5488 = vpow2.f32 %v2400_v63 }
 0x7f4   : > { %4061 = vst.msk [vmem:[#allocation3 + $0x140] sm:$0xff] %vm4020_vm4, %v3996_v41  ;;  %v2534_v4 = vmul.f32 %v5483_v23, %v2470_v7 }
 0x7f5   : > { %3804 = vadd.xlane.f32.xlu1 %v10187_v12  ;;  %v3850_v54 = vpop.xlane.xlu0 %3849 }
 0x7f6   : > { %v3998_v1 = vadd.f32 %v3850_v54, %v2526_v3  ;;  %v5485_v53 = vpop.eup %5484 }
 0x7f7   : > { %v2536_v41 = vmul.f32 %v5485_v53, %v2472_v62  ;;  %v10202_v53 = vld [vmem:[#allocation27_spill] sm:$0xff] }
 0x7f8   : > { %4063 = vst.msk [vmem:[#allocation3 + $0x150] sm:$0xff] %vm4020_vm4, %v3998_v1  ;;  %v5487_v36 = vpop.eup %5486 }
 0x7f9   : > { %3814 = vadd.xlane.f32.xlu1 %v10190_v5  ;;  %v3860_v45 = vpop.xlane.xlu0 %3859  ;;  %v2507_v3 = vmul.f32 %v5487_v36, %v2443_v31  ;;  %v10205_v36 = vld [vmem:[#allocation71_spill] sm:$0xff] }
 0x7fa   : > { %v4000_v29 = vadd.f32 %v3860_v45, %v2528_v38 }
 0x7fc   : > { %4065 = vst.msk [vmem:[#allocation3 + $0x160] sm:$0xff] %vm4020_vm4, %v4000_v29 }
 0x7fd   : > { %3824 = vadd.xlane.f32.xlu1 %v10191_v58  ;;  %v3870_v32 = vpop.xlane.xlu0 %3869  ;;  %v5489_v10 = vpop.eup %5488 }
 0x7fe   : > { %v4002_v13 = vadd.f32 %v3870_v32, %v2530_v20 }
 0x800   : > { %4067 = vst.msk [vmem:[#allocation3 + $0x170] sm:$0xff] %vm4020_vm4, %v4002_v13 }
 0x801   : > { %3834 = vadd.xlane.f32.xlu1 %v10193_v17  ;;  %v3880_v15 = vpop.xlane.xlu0 %3879 }
 0x802   : > { %v4004_v35 = vadd.f32 %v3880_v15, %v2532_v2  ;;  %v10200_v2 = vld [vmem:[#allocation228_spill] sm:$0xff] }
 0x804   : > { %4069 = vst.msk [vmem:[#allocation3 + $0x180] sm:$0xff] %vm4020_vm4, %v4004_v35 }
 0x805   : > { %3844 = vadd.xlane.f32.xlu1 %v10194_v52  ;;  %v3890_v47 = vpop.xlane.xlu0 %3889  ;;  %v10203_v52 = vld [vmem:[#allocation313_spill] sm:$0xff] }
 0x806   : > { %v4006_v56 = vadd.f32 %v3890_v47, %v2534_v4 }
 0x808   : > { %4071 = vst.msk [vmem:[#allocation3 + $0x190] sm:$0xff] %vm4020_vm4, %v4006_v56  ;;  %v2476_v56 = vld [vmem:[#allocation3 + $0x1c0] sm:$0xff] }
 0x809   : > { %3854 = vadd.xlane.f32.xlu1 %v8445_v59  ;;  %v3900_v44 = vpop.xlane.xlu0 %3899  ;;  %v2474_v59 = vld [vmem:[#allocation3 + $0x1b0] sm:$0xff] }
 0x80a   : > { %v4008_v25 = vadd.f32 %v3900_v44, %v2536_v41  ;;  %v2538_v29 = vmul.f32 %v5489_v10, %v2474_v59  ;;  %v10207_v59 = vld [vmem:[#allocation238_spill] sm:$0xff] }
 0x80c   : > { %4073 = vst.msk [vmem:[#allocation3 + $0x1a0] sm:$0xff] %vm4020_vm4, %v4008_v25  ;;  %v3755_v11 = vpop.xlane.xlu1 %3754 }
 0x80d   : > { %v3979_v12 = vadd.f32 %v3755_v11, %v2507_v3  ;;  %3864 = vadd.xlane.f32.xlu1 %v8472_v18 }
 0x80f   : > { %4044 = vst.msk [vmem:[#allocation3 + $0xb8] sm:$0xff] %vm4020_vm4, %v3979_v12 }
 0x810   : > { %v2851_v54 = vpop.permute.xlu1 %2850 }
 0x811   : > { %v3108_v6 = vsub.f32 %v10195_v61, %v2851_v54  ;;  %v3109_v1 = vsub.f32 %v10196_v46, %v2851_v54  ;;  %v3110_v38 = vsub.f32 %v10197_v19, %v2851_v54  ;;  %3874 = vadd.xlane.f32.xlu1 %v8499_v24  ;;  %v3111_v5 = vsub.f32 %v10198_v28, %v2851_v54 }
 0x813   : > { %v3604_v45 = vmul.f32 1.442695, %v3108_v6  ;;  %v3606_v26 = vmul.f32 1.442695, %v3109_v1  ;;  %v3608_v55 = vmul.f32 1.442695, %v3110_v38 }
 0x814   : > { %v3610_v20 = vmul.f32 1.442695, %v3111_v5  ;;  %v10206_v38 = vld [vmem:[#allocation240_spill] sm:$0xff] }
 0x815   : > { %5490 = vpow2.f32 %v3604_v45  ;;  %v3910_v18 = vpop.xlane.xlu0 %3909  ;;  %3884 = vadd.xlane.f32.xlu1 %v8525_v30  ;;  %v2255_v28 = vsub.f32 %v10207_v59, %v10206_v38  ;;  %v10208_v45 = vld [vmem:[#allocation246_spill] sm:$0xff]  ;;  %v10223_v38 = vld [vmem:[#allocation305_spill] sm:$0xff]  ;;  %v10224_v59 = vld [vmem:[#allocation303_spill] sm:$0xff] }
 0x816   : > { %5492 = vpow2.f32 %v3606_v26  ;;  %v4010_v21 = vadd.f32 %v3910_v18, %v2538_v29  ;;  %v10209_v26 = vld [vmem:[#allocation242_spill] sm:$0xff] }
 0x817   : > { %5494 = vpow2.f32 %v3608_v55  ;;  %v2346_v5 = vmul.f32 1.442695, %v2255_v28  ;;  %v2257_v55 = vsub.f32 %v10209_v26, %v10208_v45  ;;  %v10210_v18 = vld [vmem:[#allocation250_spill] sm:$0xff]  ;;  %v2271_v28 = vsub.f32 %v10224_v59, %v10223_v38  ;;  %v10233_v59 = vld [vmem:[#allocation68_spill] sm:$0xff] }
 0x818   : > { %4075 = vst.msk [vmem:[#allocation3 + $0x1b0] sm:$0xff] %vm4020_vm4, %v4010_v21  ;;  %5496 = vpow2.f32 %v3610_v20  ;;  %v10211_v20 = vld [vmem:[#allocation248_spill] sm:$0xff] }
 0x819   : > { %3894 = vadd.xlane.f32.xlu1 %v8551_v42  ;;  %v2253_v42 = vsub.f32 %v10200_v2, %v10199_v60  ;;  %v2350_v29 = vmul.f32 1.442695, %v2257_v55  ;;  %v2259_v21 = vsub.f32 %v10211_v20, %v10210_v18  ;;  %v10215_v2 = vld [vmem:[#allocation258_spill] sm:$0xff]  ;;  %v2378_v20 = vmul.f32 1.442695, %v2271_v28 }
 0x81a   : > { %v2285_v28 = vsub.f32 %v10233_v59, %v8243_v9 }
 0x81d   : > { %3904 = vadd.xlane.f32.xlu1 %v8578_v48  ;;  %v2342_v48 = vmul.f32 1.442695, %v2253_v42  ;;  %v10216_v42 = vld [vmem:[#allocation256_spill] sm:$0xff] }
 0x81f   : > { %v5491_v24 = vpop.eup %5490  ;;  %5498 = vpow2.f32 %v2342_v48  ;;  %v2263_v48 = vsub.f32 %v10216_v42, %v10215_v2  ;;  %v10227_v2 = vld [vmem:[#allocation319_spill] sm:$0xff]  ;;  %v10228_v42 = vld [vmem:[#allocation318_spill] sm:$0xff] }
 0x820   : > { %v5493_v58 = vpop.eup %5492 }
 0x821   : > { %3914 = vadd.xlane.f32.xlu1 %v8604_v39  ;;  %v3936_v32 = vadd.f32 %v5493_v58, %v5491_v24  ;;  %v5495_v0 = vpop.eup %5494  ;;  %v10201_v39 = vld [vmem:[#allocation44_spill] sm:$0xff]  ;;  %v10212_v24 = vld [vmem:[#allocation323_spill] sm:$0xff] }
 0x822   : > { %v5497_v34 = vpop.eup %5496  ;;  %v2284_v23 = vsub.f32 %v10201_v39, %v10111_v37  ;;  %v2286_v58 = vsub.f32 %v10212_v24, %v10128_v49  ;;  %v10226_v24 = vld [vmem:[#allocation310_spill] sm:$0xff] }
 0x823   : > { %v3937_v13 = vadd.f32 %v5495_v0, %v3936_v32  ;;  %v2354_v32 = vmul.f32 1.442695, %v2259_v21  ;;  %v10213_v0 = vld [vmem:[#allocation254_spill] sm:$0xff]  ;;  %v10225_v21 = vld [vmem:[#allocation311_spill] sm:$0xff] }
 0x824   : > { %v2404_v17 = vmul.f32 1.442695, %v2284_v23  ;;  %v2447_v23 = vld [vmem:[#allocation3 + $0xd8] sm:$0xff] }
 0x825   : > { %3924 = vadd.xlane.f32.xlu1 %v8634_v43  ;;  %v3938_v30 = vadd.f32 %v5497_v34, %v3937_v13  ;;  %v2445_v43 = vld [vmem:[#allocation3 + $0xc8] sm:$0xff]  ;;  %v10214_v13 = vld [vmem:[#allocation252_spill] sm:$0xff] }
 0x826   : > { %5500 = vpow2.f32 %v2404_v17  ;;  %v2261_v34 = vsub.f32 %v10214_v13, %v10213_v0  ;;  %v2362_v17 = vmul.f32 1.442695, %v2263_v48  ;;  %v2275_v48 = vsub.f32 %v10228_v42, %v10227_v2 }
 0x827   : > { %3939 = vadd.xlane.f32.xlu0 %v3938_v30  ;;  %v2408_v30 = vmul.f32 1.442695, %v2286_v58  ;;  %v2273_v58 = vsub.f32 %v10226_v24, %v10225_v21  ;;  %v10235_v21 = vld [vmem:[#allocation14_spill] sm:$0xff]  ;;  %v10236_v24 = vld [vmem:[#allocation105_spill] sm:$0xff] }
 0x828   : > { %v2358_v60 = vmul.f32 1.442695, %v2261_v34  ;;  %v2457_v34 = vld [vmem:[#allocation3 + $0x128] sm:$0xff] }
 0x829   : > { %3934 = vadd.xlane.f32.xlu1 %v8669_v16  ;;  %v5499_v15 = vpop.eup %5498 }
 0x82a   : > { %v2509_v7 = vmul.f32 %v5499_v15, %v2445_v43  ;;  %v10217_v15 = vld [vmem:[#allocation262_spill] sm:$0xff]  ;;  %v10218_v43 = vld [vmem:[#allocation260_spill] sm:$0xff] }
 0x82d   : > { %3944 = vadd.xlane.f32.xlu1 %v8703_v40 }
 0x830   : > { %v5501_v4 = vpop.eup %5500 }
 0x831   : > { %3954 = vadd.xlane.f32.xlu1 %v8723_v22  ;;  %v10204_v22 = vld [vmem:[#allocation316_spill] sm:$0xff]  ;;  %v2540_v25 = vmul.f32 %v5501_v4, %v2476_v56 }
 0x841   : > { %v3765_v35 = vpop.xlane.xlu1 %3764 }
 0x842   : > { %v3981_v63 = vadd.f32 %v3765_v35, %v2509_v7  ;;  %v2265_v7 = vsub.f32 %v10218_v43, %v10217_v15  ;;  %v2459_v15 = vld [vmem:[#allocation3 + $0x138] sm:$0xff] }
 0x844   : > { %4046 = vst.msk [vmem:[#allocation3 + $0xc8] sm:$0xff] %vm4020_vm4, %v3981_v63 }
 0x845   : > { %v2861_v16 = vpop.permute.xlu1 %2860 }
 0x846   : > { %v3116_v40 = vsub.f32 %v10202_v53, %v2861_v16  ;;  %v3117_v47 = vsub.f32 %v10203_v52, %v2861_v16  ;;  %v3118_v62 = vsub.f32 %v10204_v22, %v2861_v16  ;;  %v3119_v37 = vsub.f32 %v10205_v36, %v2861_v16  ;;  %v2449_v16 = vld [vmem:[#allocation3 + $0xe8] sm:$0xff]  ;;  %v10220_v52 = vld [vmem:[#allocation274_spill] sm:$0xff]  ;;  %v2451_v36 = vld [vmem:[#allocation3 + $0xf8] sm:$0xff] }
 0x847   : > { %v2366_v53 = vmul.f32 1.442695, %v2265_v7  ;;  %v2386_v7 = vmul.f32 1.442695, %v2275_v48 }
 0x848   : > { %v3620_v41 = vmul.f32 1.442695, %v3116_v40  ;;  %v3622_v31 = vmul.f32 1.442695, %v3117_v47  ;;  %v3624_v44 = vmul.f32 1.442695, %v3118_v62 }
 0x849   : > { %v3626_v11 = vmul.f32 1.442695, %v3119_v37  ;;  %v10219_v40 = vld [vmem:[#allocation278_spill] sm:$0xff] }
 0x84a   : > { %5502 = vpow2.f32 %v3620_v41  ;;  %v3920_v3 = vpop.xlane.xlu0 %3919  ;;  %v2267_v47 = vsub.f32 %v10220_v52, %v10219_v40 }
 0x84b   : > { %5504 = vpow2.f32 %v3622_v31  ;;  %v4012_v12 = vadd.f32 %v3920_v3, %v2540_v25  ;;  %v2478_v31 = vld [vmem:[#allocation3 + $0x1d0] sm:$0xff]  ;;  %v10222_v3 = vld [vmem:[#allocation291_spill] sm:$0xff] }
 0x84c   : > { %5506 = vpow2.f32 %v3624_v44  ;;  %v2370_v44 = vmul.f32 1.442695, %v2267_v47  ;;  %v10221_v25 = vld [vmem:[#allocation296_spill] sm:$0xff]  ;;  %v10230_v47 = vld [vmem:[#allocation43_spill] sm:$0xff] }
 0x84d   : > { %4077 = vst.msk [vmem:[#allocation3 + $0x1c0] sm:$0xff] %vm4020_vm4, %v4012_v12  ;;  %5508 = vpow2.f32 %v3626_v11  ;;  %v2269_v11 = vsub.f32 %v10222_v3, %v10221_v25 }
 0x84e   : > { %5510 = vpow2.f32 %v2346_v5 }
 0x84f   : > { %5512 = vpow2.f32 %v2350_v29  ;;  %v2455_v29 = vld [vmem:[#allocation3 + $0x118] sm:$0xff] }
 0x850   : > { %5514 = vpow2.f32 %v2354_v32 }
 0x851   : > { %5516 = vpow2.f32 %v2408_v30 }
 0x852   : > { %5518 = vpow2.f32 %v2358_v60  ;;  %v2382_v60 = vmul.f32 1.442695, %v2273_v58  ;;  %v2287_v58 = vsub.f32 %v10236_v24, %v10235_v21  ;;  %v4217_v21 = vld [vmem:[#allocation3] sm:$0xff] (!%p4719_p9)  ;;  %v4218_v24 = vld [vmem:[#allocation3 + $0x8] sm:$0xff] (!%p4719_p9) }
 0x853   : > { %5520 = vpow2.f32 %v2362_v17 }
 0x854   : > { %v5503_v54 = vpop.eup %5502  ;;  %5522 = vpow2.f32 %v2366_v53  ;;  %v2461_v53 = vld [vmem:[#allocation3 + $0x148] sm:$0xff] }
 0x855   : > { %v5505_v10 = vpop.eup %5504  ;;  %5524 = vpow2.f32 %v2370_v44 }
 0x856   : > { %v3946_v61 = vadd.f32 %v5505_v10, %v5503_v54  ;;  %v5507_v6 = vpop.eup %5506 }
 0x857   : > { %v5509_v1 = vpop.eup %5508 }
 0x858   : > { %v3947_v46 = vadd.f32 %v5507_v6, %v3946_v61  ;;  %v5511_v39 = vpop.eup %5510  ;;  %v2453_v6 = vld [vmem:[#allocation3 + $0x108] sm:$0xff] }
 0x859   : > { %v2511_v49 = vmul.f32 %v5511_v39, %v2447_v23  ;;  %v5513_v35 = vpop.eup %5512 }
 0x85a   : > { %v3948_v19 = vadd.f32 %v5509_v1, %v3947_v46  ;;  %v2513_v22 = vmul.f32 %v5513_v35, %v2449_v16  ;;  %v5515_v62 = vpop.eup %5514 }
 0x85b   : > { %v5517_v37 = vpop.eup %5516  ;;  %v2515_v12 = vmul.f32 %v5515_v62, %v2451_v36 }
 0x85c   : > { %3949 = vadd.xlane.f32.xlu0 %v3948_v19  ;;  %v5519_v54 = vpop.eup %5518  ;;  %v2542_v10 = vmul.f32 %v5517_v37, %v2478_v31  ;;  %v2374_v19 = vmul.f32 1.442695, %v2269_v11  ;;  %v2463_v37 = vld [vmem:[#allocation3 + $0x158] sm:$0xff] }
 0x85d   : > { %v2517_v45 = vmul.f32 %v5519_v54, %v2453_v6  ;;  %v5521_v26 = vpop.eup %5520  ;;  %v10231_v31 = vld [vmem:[#allocation325_spill] sm:$0xff] }
 0x85e   : > { %5526 = vpow2.f32 %v2374_v19  ;;  %v2519_v32 = vmul.f32 %v5521_v26, %v2455_v29  ;;  %v5523_v0 = vpop.eup %5522  ;;  %v2281_v44 = vsub.f32 %v10231_v31, %v8151_v50  ;;  %v2467_v19 = vld [vmem:[#allocation3 + $0x178] sm:$0xff]  ;;  %v10234_v26 = vld [vmem:[#allocation78_spill] sm:$0xff]  ;;  %v2469_v29 = vld [vmem:[#allocation3 + $0x188] sm:$0xff] }
 0x85f   : > { %5528 = vpow2.f32 %v2378_v20  ;;  %v2521_v39 = vmul.f32 %v5523_v0, %v2457_v34  ;;  %v5525_v23 = vpop.eup %5524  ;;  %v2406_v20 = vmul.f32 1.442695, %v2285_v28  ;;  %v2471_v34 = vld [vmem:[#allocation3 + $0x198] sm:$0xff] }
 0x860   : > { %5530 = vpow2.f32 %v2382_v60  ;;  %v2410_v60 = vmul.f32 1.442695, %v2287_v58  ;;  %v2479_v31 = vld [vmem:[#allocation3 + $0x1d8] sm:$0xff]  ;;  %v4219_v58 = vld [vmem:[#allocation3 + $0x10] sm:$0xff] (!%p4719_p9) }
 0x861   : > { %5532 = vpow2.f32 %v2386_v7  ;;  %v10239_v7 = vld [vmem:[#allocation110_spill] sm:$0xff] }
 0x868   : > { %v5527_v16 = vpop.eup %5526 }
 0x869   : > { %v2525_v62 = vmul.f32 %v5527_v16, %v2461_v53 }
 0x876   : > { %v3775_v63 = vpop.xlane.xlu1 %3774 }
 0x877   : > { %v3983_v4 = vadd.f32 %v3775_v63, %v2511_v49  ;;  %v10229_v49 = vld [vmem:[#allocation35_spill] sm:$0xff]  ;;  %v2523_v63 = vmul.f32 %v5525_v23, %v2459_v15 }
 0x878   : > { %v2277_v35 = vsub.f32 %v10229_v49, %v8034_v8  ;;  %v2473_v23 = vld [vmem:[#allocation3 + $0x1a8] sm:$0xff] }
 0x879   : > { %4048 = vst.msk [vmem:[#allocation3 + $0xd8] sm:$0xff] %vm4020_vm4, %v3983_v4 }
 0x87a   : > { %v3785_v56 = vpop.xlane.xlu1 %3784  ;;  %v2390_v52 = vmul.f32 1.442695, %v2277_v35 }
 0x87b   : > { %v3985_v41 = vadd.f32 %v3785_v56, %v2513_v22  ;;  %v2279_v22 = vsub.f32 %v10230_v47, %v8084_v51  ;;  %v5529_v56 = vpop.eup %5528  ;;  %v2398_v51 = vmul.f32 1.442695, %v2281_v44 }
 0x87c   : > { %5534 = vpow2.f32 %v2390_v52  ;;  %v2527_v25 = vmul.f32 %v5529_v56, %v2463_v37  ;;  %v5531_v3 = vpop.eup %5530 }
 0x87d   : > { %4050 = vst.msk [vmem:[#allocation3 + $0xe8] sm:$0xff] %vm4020_vm4, %v3985_v41  ;;  %v2394_v8 = vmul.f32 1.442695, %v2279_v22  ;;  %v2477_v22 = vld [vmem:[#allocation3 + $0x1c8] sm:$0xff] }
 0x87e   : > { %v3795_v61 = vpop.xlane.xlu1 %3794 }
 0x87f   : > { %v3930_v46 = vpop.xlane.xlu0 %3929  ;;  %v3987_v1 = vadd.f32 %v3795_v61, %v2515_v12  ;;  %v2465_v12 = vld [vmem:[#allocation3 + $0x168] sm:$0xff]  ;;  %5536 = vpow2.f32 %v2394_v8 }
 0x880   : > { %v4014_v5 = vadd.f32 %v3930_v46, %v2542_v10  ;;  %v10232_v10 = vld [vmem:[#allocation61_spill] sm:$0xff]  ;;  %v2529_v6 = vmul.f32 %v5531_v3, %v2465_v12  ;;  %v5533_v46 = vpop.eup %5532  ;;  %5538 = vpow2.f32 %v2398_v51 }
 0x881   : > { %4052 = vst.msk [vmem:[#allocation3 + $0xf8] sm:$0xff] %vm4020_vm4, %v3987_v1  ;;  %v2283_v61 = vsub.f32 %v10232_v10, %v8197_v33  ;;  %v2481_v10 = vld [vmem:[#allocation3 + $0x1e8] sm:$0xff] }
 0x882   : > { %4079 = vst.msk [vmem:[#allocation3 + $0x1d0] sm:$0xff] %vm4020_vm4, %v4014_v5  ;;  %v3805_v55 = vpop.xlane.xlu1 %3804  ;;  %v2531_v5 = vmul.f32 %v5533_v46, %v2467_v19  ;;  %v2483_v19 = vld [vmem:[#allocation3 + $0x1f8] sm:$0xff] }
 0x883   : > { %v3989_v18 = vadd.f32 %v3805_v55, %v2517_v45  ;;  %v2402_v50 = vmul.f32 1.442695, %v2283_v61  ;;  %v2288_v55 = vsub.f32 %v10234_v26, %v10146_v14  ;;  %v10237_v14 = vld [vmem:[#allocation111_spill] sm:$0xff] }
 0x884   : > { %v2289_v2 = vsub.f32 %v10237_v14, %v8358_v27  ;;  %v4228_v14 = vld [vmem:[#allocation3 + $0x58] sm:$0xff] (!%p4719_p9) }
 0x885   : > { %4054 = vst.msk [vmem:[#allocation3 + $0x108] sm:$0xff] %vm4020_vm4, %v3989_v18  ;;  %5540 = vpow2.f32 %v2402_v50  ;;  %v2412_v9 = vmul.f32 1.442695, %v2288_v55 }
 0x886   : > { %v3815_v13 = vpop.xlane.xlu1 %3814  ;;  %v5535_v45 = vpop.eup %5534  ;;  %5542 = vpow2.f32 %v2406_v20  ;;  %v2414_v15 = vmul.f32 1.442695, %v2289_v2  ;;  %v4229_v2 = vld [vmem:[#allocation3 + $0x60] sm:$0xff] (!%p4719_p9) }
 0x887   : > { %v3991_v30 = vadd.f32 %v3815_v13, %v2519_v32  ;;  %v2533_v32 = vmul.f32 %v5535_v45, %v2469_v29  ;;  %5544 = vpow2.f32 %v2412_v9  ;;  %v4223_v9 = vld [vmem:[#allocation3 + $0x30] sm:$0xff] (!%p4719_p9) }
 0x888   : > { %5546 = vpow2.f32 %v2410_v60  ;;  %v4227_v60 = vld [vmem:[#allocation3 + $0x50] sm:$0xff] (!%p4719_p9) }
 0x889   : > { %4056 = vst.msk [vmem:[#allocation3 + $0x118] sm:$0xff] %vm4020_vm4, %v3991_v30  ;;  %v5537_v0 = vpop.eup %5536  ;;  %5548 = vpow2.f32 %v2414_v15  ;;  %v4154_v15 = vld [vmem:[#allocation2 + $0x8] sm:$0xff] (!%p4719_p9) }
 0x88a   : > { %v3825_v17 = vpop.xlane.xlu1 %3824  ;;  %v2535_v42 = vmul.f32 %v5537_v0, %v2471_v34  ;;  %v5539_v48 = vpop.eup %5538  ;;  %v4222_v0 = vld [vmem:[#allocation3 + $0x28] sm:$0xff] (!%p4719_p9)  ;;  %v4225_v34 = vld [vmem:[#allocation3 + $0x40] sm:$0xff] (!%p4719_p9) }
 0x88b   : > { %v3993_v43 = vadd.f32 %v3825_v17, %v2521_v39  ;;  %v2537_v35 = vmul.f32 %v5539_v48, %v2473_v23  ;;  %v4153_v48 = vld [vmem:[#allocation2] sm:$0xff] (!%p4719_p9) }
 0x88d   : > { %4058 = vst.msk [vmem:[#allocation3 + $0x128] sm:$0xff] %vm4020_vm4, %v3993_v43  ;;  %v10238_v43 = vld [vmem:[#allocation114_spill] sm:$0xff] }
 0x88e   : > { %v3835_v4 = vpop.xlane.xlu1 %3834  ;;  %v2291_v49 = vsub.f32 %v10239_v7, %v10238_v43  ;;  %v4231_v43 = vld [vmem:[#allocation3 + $0x70] sm:$0xff] (!%p4719_p9) }
 0x88f   : > { %v3995_v40 = vadd.f32 %v3835_v4, %v2523_v63  ;;  %v5541_v63 = vpop.eup %5540  ;;  %v2475_v4 = vld [vmem:[#allocation3 + $0x1b8] sm:$0xff] }
 0x890   : > { %v2418_v53 = vmul.f32 1.442695, %v2291_v49  ;;  %v5543_v52 = vpop.eup %5542 }
 0x891   : > { %4060 = vst.msk [vmem:[#allocation3 + $0x138] sm:$0xff] %vm4020_vm4, %v3995_v40  ;;  %v2539_v40 = vmul.f32 %v5541_v63, %v2475_v4  ;;  %v5545_v56 = vpop.eup %5544  ;;  %v2541_v37 = vmul.f32 %v5543_v52, %v2477_v22  ;;  %v4232_v63 = vld [vmem:[#allocation3 + $0x78] sm:$0xff] (!%p4719_p9) }
 0x892   : > { %v3845_v36 = vpop.xlane.xlu1 %3844  ;;  %5550 = vpow2.f32 %v2418_v53  ;;  %v4156_v53 = vld [vmem:[#allocation2 + $0x18] sm:$0xff] (!%p4719_p9) }
 0x893   : > { %v3997_v41 = vadd.f32 %v3845_v36, %v2525_v62  ;;  %v2480_v36 = vld [vmem:[#allocation3 + $0x1e0] sm:$0xff] }
 0x895   : > { %4062 = vst.msk [vmem:[#allocation3 + $0x148] sm:$0xff] %vm4020_vm4, %v3997_v41  ;;  %v5547_v41 = vpop.eup %5546 }
 0x896   : > { %v3855_v11 = vpop.xlane.xlu1 %3854  ;;  %v2543_v12 = vmul.f32 %v5547_v41, %v2479_v31  ;;  %v4235_v31 = vld [vmem:[#allocation3 + $0x90] sm:$0xff] (!%p4719_p9) }
 0x897   : > { %v3999_v54 = vadd.f32 %v3855_v11, %v2527_v25  ;;  %v2544_v25 = vmul.f32 %v5545_v56, %v2480_v36  ;;  %v4234_v56 = vld [vmem:[#allocation3 + $0x88] sm:$0xff] (!%p4719_p9) }
 0x899   : > { %4064 = vst.msk [vmem:[#allocation3 + $0x158] sm:$0xff] %vm4020_vm4, %v3999_v54  ;;  %v5549_v54 = vpop.eup %5548 }
 0x89a   : > { %v3865_v1 = vpop.xlane.xlu1 %3864 }
 0x89b   : > { %v4001_v38 = vadd.f32 %v3865_v1, %v2529_v6  ;;  %v2545_v6 = vmul.f32 %v5549_v54, %v2481_v10 }
 0x89c   : > { %v5551_v46 = vpop.eup %5550 }
 0x89d   : > { %4066 = vst.msk [vmem:[#allocation3 + $0x168] sm:$0xff] %vm4020_vm4, %v4001_v38  ;;  %v2547_v50 = vmul.f32 %v5551_v46, %v2483_v19 }
 0x89e   : > { %v3875_v33 = vpop.xlane.xlu1 %3874 }
 0x89f   : > { %v4003_v18 = vadd.f32 %v3875_v33, %v2531_v5  ;;  %v10240_v5 = vld [vmem:[#allocation89_spill] sm:$0xff]  ;;  %v2482_v33 = vld [vmem:[#allocation3 + $0x1f0] sm:$0xff] }
 0x8a0   : > { %v2290_v45 = vsub.f32 %v10240_v5, %v10163_v57  ;;  %v4221_v57 = vld [vmem:[#allocation3 + $0x20] sm:$0xff] (!%p4719_p9) }
 0x8a1   : > { %4068 = vst.msk [vmem:[#allocation3 + $0x178] sm:$0xff] %vm4020_vm4, %v4003_v18 }
 0x8a2   : > { %v3885_v13 = vpop.xlane.xlu1 %3884  ;;  %v2416_v26 = vmul.f32 1.442695, %v2290_v45  ;;  %v4162_v45 = vld [vmem:[#allocation2 + $0x48] sm:$0xff] (!%p4719_p9) }
 0x8a3   : > { %v4005_v30 = vadd.f32 %v3885_v13, %v2533_v32  ;;  %v4220_v32 = vld [vmem:[#allocation3 + $0x18] sm:$0xff] (!%p4719_p9) }
 0x8a4   : > { %5552 = vpow2.f32 %v2416_v26  ;;  %v4224_v13 = vld [vmem:[#allocation3 + $0x38] sm:$0xff] (!%p4719_p9)  ;;  %v4239_v26 = vld [vmem:[#allocation3 + $0xb0] sm:$0xff] (!%p4719_p9) }
 0x8a5   : > { %4070 = vst.msk [vmem:[#allocation3 + $0x188] sm:$0xff] %vm4020_vm4, %v4005_v30  ;;  %5554 = vlog2.f32 (!%p4719_p9), %v4217_v21  ;;  %v4226_v30 = vld [vmem:[#allocation3 + $0x48] sm:$0xff] (!%p4719_p9) }
 0x8a6   : > { %v3895_v39 = vpop.xlane.xlu1 %3894  ;;  %5556 = vlog2.f32 (!%p4719_p9), %v4218_v24 }
 0x8a7   : > { %v4007_v17 = vadd.f32 %v3895_v39, %v2535_v42  ;;  %5558 = vlog2.f32 (!%p4719_p9), %v4219_v58  ;;  %v4230_v39 = vld [vmem:[#allocation3 + $0x68] sm:$0xff] (!%p4719_p9) }
 0x8a8   : > { %5560 = vlog2.f32 (!%p4719_p9), %v4220_v32  ;;  %v4164_v32 = vld [vmem:[#allocation2 + $0x58] sm:$0xff] (!%p4719_p9) }
 0x8a9   : > { %4072 = vst.msk [vmem:[#allocation3 + $0x198] sm:$0xff] %vm4020_vm4, %v4007_v17  ;;  %5562 = vlog2.f32 (!%p4719_p9), %v4221_v57  ;;  %v4241_v57 = vld [vmem:[#allocation3 + $0xc0] sm:$0xff] (!%p4719_p9) }
 0x8aa   : > { %v3905_v16 = vpop.xlane.xlu1 %3904  ;;  %5564 = vlog2.f32 (!%p4719_p9), %v4222_v0 }
 0x8ab   : > { %v4009_v27 = vadd.f32 %v3905_v16, %v2537_v35  ;;  %5566 = vlog2.f32 (!%p4719_p9), %v4223_v9  ;;  %v4155_v35 = vld [vmem:[#allocation2 + $0x10] sm:$0xff] (!%p4719_p9) }
 0x8ac   : > { %5568 = vlog2.f32 (!%p4719_p9), %v4224_v13 }
 0x8ad   : > { %4074 = vst.msk [vmem:[#allocation3 + $0x1a8] sm:$0xff] %vm4020_vm4, %v4009_v27  ;;  %5570 = vlog2.f32 (!%p4719_p9), %v4225_v34  ;;  %v4165_v34 = vld [vmem:[#allocation2 + $0x60] sm:$0xff] (!%p4719_p9) }
 0x8ae   : > { %v3915_v47 = vpop.xlane.xlu1 %3914  ;;  %v5553_v55 = vpop.eup %5552  ;;  %5572 = vlog2.f32 (!%p4719_p9), %v4226_v30  ;;  %v4242_v30 = vld [vmem:[#allocation3 + $0xc8] sm:$0xff] (!%p4719_p9) }
 0x8af   : > { %v4011_v62 = vadd.f32 %v3915_v47, %v2539_v40  ;;  %v2546_v29 = vmul.f32 %v5553_v55, %v2482_v33  ;;  %v5555_v42 = vpop.eup (!%p4719_p9), %5554  ;;  %5574 = vlog2.f32 (!%p4719_p9), %v4227_v60  ;;  %v4233_v40 = vld [vmem:[#allocation3 + $0x80] sm:$0xff] (!%p4719_p9) }
 0x8b0   : > { %v5557_v23 = vpop.eup (!%p4719_p9), %5556  ;;  %v4282_v17 = vmul.f32 (!%p4719_p9), 0.6931472, %v5555_v42  ;;  %5576 = vlog2.f32 (!%p4719_p9), %v4228_v14  ;;  %v4166_v42 = vld [vmem:[#allocation2 + $0x68] sm:$0xff] (!%p4719_p9) }
 0x8b1   : > { %4076 = vst.msk [vmem:[#allocation3 + $0x1b8] sm:$0xff] %vm4020_vm4, %v4011_v62  ;;  %v5559_v7 = vpop.eup (!%p4719_p9), %5558  ;;  %v4284_v49 = vmul.f32 (!%p4719_p9), 0.6931472, %v5557_v23  ;;  %5578 = vlog2.f32 (!%p4719_p9), %v4229_v2  ;;  %v4157_v62 = vld [vmem:[#allocation2 + $0x20] sm:$0xff] (!%p4719_p9) }
 0x8b2   : > { %v3925_v8 = vpop.xlane.xlu1 %3924  ;;  %v5561_v16 = vpop.eup (!%p4719_p9), %5560  ;;  %v4409_v4 = vadd.f32 (!%p4719_p9), %v4282_v17, %v4153_v48  ;;  %v4286_v27 = vmul.f32 (!%p4719_p9), 0.6931472, %v5559_v7  ;;  %5580 = vlog2.f32 (!%p4719_p9), %v4230_v39  ;;  %v4243_v48 = vld [vmem:[#allocation3 + $0xd0] sm:$0xff] (!%p4719_p9) }
 0x8b3   : > { %v4013_v44 = vadd.f32 %v3925_v8, %v2541_v37  ;;  %v5563_v52 = vpop.eup (!%p4719_p9), %5562  ;;  %v4410_v47 = vadd.f32 (!%p4719_p9), %v4284_v49, %v4154_v15  ;;  %v4288_v22 = vmul.f32 (!%p4719_p9), 0.6931472, %v5561_v16  ;;  %5582 = vlog2.f32 (!%p4719_p9), %v4231_v43  ;;  %v4158_v8 = vld [vmem:[#allocation2 + $0x28] sm:$0xff] (!%p4719_p9)  ;;  %v4167_v15 = vld [vmem:[#allocation2 + $0x70] sm:$0xff] (!%p4719_p9)  ;;  %v4244_v43 = vld [vmem:[#allocation3 + $0xd8] sm:$0xff] (!%p4719_p9) }
 0x8b4   : > { %v3940_v3 = vpop.xlane.xlu0 %3939  ;;  %v5565_v36 = vpop.eup (!%p4719_p9), %5564  ;;  %4473 = vst.msk [vmem:[%s6089_s4] sm:$0xff] (!%p4719_p9), %vm4020_vm4, %v4409_v4  ;;  %v4411_v37 = vadd.f32 (!%p4719_p9), %v4286_v27, %v4155_v35  ;;  %v4290_v41 = vmul.f32 (!%p4719_p9), 0.6931472, %v5563_v52  ;;  %5584 = vlog2.f32 (!%p4719_p9), %v4232_v63  ;;  %v4168_v63 = vld [vmem:[#allocation2 + $0x78] sm:$0xff] (!%p4719_p9)  ;;  %v4245_v16 = vld [vmem:[#allocation3 + $0xe0] sm:$0xff] (!%p4719_p9)  ;;  %v4246_v52 = vld [vmem:[#allocation3 + $0xe8] sm:$0xff] (!%p4719_p9) }
 0x8b5   : > { %4078 = vst.msk [vmem:[#allocation3 + $0x1c8] sm:$0xff] %vm4020_vm4, %v4013_v44  ;;  %v4016_v11 = vadd.f32 %v3940_v3, %v2544_v25  ;;  %v5567_v44 = vpop.eup (!%p4719_p9), %5566  ;;  %4474 = vst.msk [vmem:[%s6089_s4 + $0x8] sm:$0xff] (!%p4719_p9), %vm4020_vm4, %v4410_v47  ;;  %v4412_v25 = vadd.f32 (!%p4719_p9), %v4288_v22, %v4156_v53  ;;  %v4292_v3 = vmul.f32 (!%p4719_p9), 0.6931472, %v5565_v36  ;;  %5586 = vlog2.f32 (!%p4719_p9), %v4233_v40  ;;  %v4169_v40 = vld [vmem:[#allocation2 + $0x80] sm:$0xff] (!%p4719_p9)  ;;  %v4247_v36 = vld [vmem:[#allocation3 + $0xf0] sm:$0xff] (!%p4719_p9) }
 0x8b6   : > { %v3935_v51 = vpop.xlane.xlu1 %3934  ;;  %v5569_v54 = vpop.eup (!%p4719_p9), %5568  ;;  %4475 = vst.msk [vmem:[%s6089_s4 + $0x10] sm:$0xff] (!%p4719_p9), %vm4020_vm4, %v4411_v37  ;;  %v4294_v10 = vmul.f32 (!%p4719_p9), 0.6931472, %v5567_v44  ;;  %5588 = vlog2.f32 (!%p4719_p9), %v4234_v56  ;;  %v4170_v56 = vld [vmem:[#allocation2 + $0x88] sm:$0xff] (!%p4719_p9)  ;;  %v4248_v44 = vld [vmem:[#allocation3 + $0xf8] sm:$0xff] (!%p4719_p9) }
 0x8b7   : > { %4081 = vst.msk [vmem:[#allocation3 + $0x1e0] sm:$0xff] %vm4020_vm4, %v4016_v11  ;;  %v4015_v61 = vadd.f32 %v3935_v51, %v2543_v12  ;;  %v4159_v11 = vld [vmem:[#allocation2 + $0x30] sm:$0xff] (!%p4719_p9)  ;;  %v4236_v12 = vld [vmem:[#allocation3 + $0x98] sm:$0xff] (!%p4719_p9)  ;;  %v4413_v51 = vadd.f32 (!%p4719_p9), %v4290_v41, %v4157_v62  ;;  %v5571_v46 = vpop.eup (!%p4719_p9), %5570  ;;  %4476 = vst.msk [vmem:[%s6089_s4 + $0x18] sm:$0xff] (!%p4719_p9), %vm4020_vm4, %v4412_v25  ;;  %v4296_v19 = vmul.f32 (!%p4719_p9), 0.6931472, %v5569_v54  ;;  %5590 = vlog2.f32 (!%p4719_p9), %v4235_v31 }
 0x8b8   : > { %v4298_v5 = vmul.f32 (!%p4719_p9), 0.6931472, %v5571_v46  ;;  %5592 = vlog2.f32 (!%p4719_p9), %v4236_v12  ;;  %v4171_v31 = vld [vmem:[#allocation2 + $0x90] sm:$0xff] (!%p4719_p9)  ;;  %v4172_v12 = vld [vmem:[#allocation2 + $0x98] sm:$0xff] (!%p4719_p9)  ;;  %v4249_v54 = vld [vmem:[#allocation3 + $0x100] sm:$0xff] (!%p4719_p9) }
 0x8b9   : > { %4080 = vst.msk [vmem:[#allocation3 + $0x1d8] sm:$0xff] %vm4020_vm4, %v4015_v61  ;;  %v4160_v61 = vld [vmem:[#allocation2 + $0x38] sm:$0xff] (!%p4719_p9)  ;;  %4477 = vst.msk [vmem:[%s6089_s4 + $0x20] sm:$0xff] (!%p4719_p9), %vm4020_vm4, %v4413_v51  ;;  %v4250_v46 = vld [vmem:[#allocation3 + $0x108] sm:$0xff] (!%p4719_p9) }
 0x8ba   : > { %v3945_v1 = vpop.xlane.xlu1 %3944  ;;  %v4416_v33 = vadd.f32 (!%p4719_p9), %v4296_v19, %v4160_v61 }
 0x8bb   : > { %v4017_v38 = vadd.f32 %v3945_v1, %v2545_v6  ;;  %v4237_v6 = vld [vmem:[#allocation3 + $0xa0] sm:$0xff] (!%p4719_p9)  ;;  %v4414_v1 = vadd.f32 (!%p4719_p9), %v4292_v3, %v4158_v8 }
 0x8bc   : > { %5594 = vlog2.f32 (!%p4719_p9), %v4237_v6  ;;  %4480 = vst.msk [vmem:[%s6089_s4 + $0x38] sm:$0xff] (!%p4719_p9), %vm4020_vm4, %v4416_v33  ;;  %v4173_v6 = vld [vmem:[#allocation2 + $0xa0] sm:$0xff] (!%p4719_p9) }
 0x8bd   : > { %4082 = vst.msk [vmem:[#allocation3 + $0x1e8] sm:$0xff] %vm4020_vm4, %v4017_v38  ;;  %v4161_v38 = vld [vmem:[#allocation2 + $0x40] sm:$0xff] (!%p4719_p9)  ;;  %4478 = vst.msk [vmem:[%s6089_s4 + $0x28] sm:$0xff] (!%p4719_p9), %vm4020_vm4, %v4414_v1 }
 0x8be   : > { %v3955_v59 = vpop.xlane.xlu1 %3954  ;;  %v4417_v24 = vadd.f32 (!%p4719_p9), %v4298_v5, %v4161_v38 }
 0x8bf   : > { %v4019_v28 = vadd.f32 %v3955_v59, %v2547_v50  ;;  %v4238_v50 = vld [vmem:[#allocation3 + $0xa8] sm:$0xff] (!%p4719_p9)  ;;  %v5573_v59 = vpop.eup (!%p4719_p9), %5572 }
 0x8c0   : > { %v5575_v55 = vpop.eup (!%p4719_p9), %5574  ;;  %5596 = vlog2.f32 (!%p4719_p9), %v4238_v50  ;;  %4481 = vst.msk [vmem:[%s6089_s4 + $0x40] sm:$0xff] (!%p4719_p9), %vm4020_vm4, %v4417_v24  ;;  %v4174_v50 = vld [vmem:[#allocation2 + $0xa8] sm:$0xff] (!%p4719_p9) }
 0x8c1   : > { %4084 = vst.msk [vmem:[#allocation3 + $0x1f8] sm:$0xff] %vm4020_vm4, %v4019_v28  ;;  %v4415_v28 = vadd.f32 (!%p4719_p9), %v4294_v10, %v4159_v11  ;;  %v5577_v21 = vpop.eup (!%p4719_p9), %5576  ;;  %v4302_v58 = vmul.f32 (!%p4719_p9), 0.6931472, %v5575_v55  ;;  %5598 = vlog2.f32 (!%p4719_p9), %v4239_v26  ;;  %v4175_v26 = vld [vmem:[#allocation2 + $0xb0] sm:$0xff] (!%p4719_p9)  ;;  %v4252_v55 = vld [vmem:[#allocation3 + $0x118] sm:$0xff] (!%p4719_p9) }
 0x8c2   : > { %v5579_v0 = vpop.eup (!%p4719_p9), %5578  ;;  %v4304_v13 = vmul.f32 (!%p4719_p9), 0.6931472, %v5577_v21  ;;  %v4253_v21 = vld [vmem:[#allocation3 + $0x120] sm:$0xff] (!%p4719_p9) }
 0x8c3   : > { %4479 = vst.msk [vmem:[%s6089_s4 + $0x30] sm:$0xff] (!%p4719_p9), %vm4020_vm4, %v4415_v28  ;;  %v5581_v60 = vpop.eup (!%p4719_p9), %5580  ;;  %v4306_v2 = vmul.f32 (!%p4719_p9), 0.6931472, %v5579_v0  ;;  %v4254_v0 = vld [vmem:[#allocation3 + $0x128] sm:$0xff] (!%p4719_p9) }
 0x8c4   : > { %v5583_v39 = vpop.eup (!%p4719_p9), %5582  ;;  %v4420_v23 = vadd.f32 (!%p4719_p9), %v4304_v13, %v4164_v32  ;;  %v4308_v17 = vmul.f32 (!%p4719_p9), 0.6931472, %v5581_v60  ;;  %v4255_v60 = vld [vmem:[#allocation3 + $0x130] sm:$0xff] (!%p4719_p9) }
 0x8c5   : > { %v5585_v7 = vpop.eup (!%p4719_p9), %5584  ;;  %v4421_v49 = vadd.f32 (!%p4719_p9), %v4306_v2, %v4165_v34  ;;  %v4310_v35 = vmul.f32 (!%p4719_p9), 0.6931472, %v5583_v39  ;;  %v4256_v39 = vld [vmem:[#allocation3 + $0x138] sm:$0xff] (!%p4719_p9) }
 0x8c6   : > { %v5587_v4 = vpop.eup (!%p4719_p9), %5586  ;;  %4484 = vst.msk [vmem:[%s6089_s4 + $0x58] sm:$0xff] (!%p4719_p9), %vm4020_vm4, %v4420_v23  ;;  %v4422_v27 = vadd.f32 (!%p4719_p9), %v4308_v17, %v4166_v42  ;;  %v4312_v53 = vmul.f32 (!%p4719_p9), 0.6931472, %v5585_v7  ;;  %v4257_v7 = vld [vmem:[#allocation3 + $0x140] sm:$0xff] (!%p4719_p9) }
 0x8c7   : > { %v5589_v47 = vpop.eup (!%p4719_p9), %5588  ;;  %4485 = vst.msk [vmem:[%s6089_s4 + $0x60] sm:$0xff] (!%p4719_p9), %vm4020_vm4, %v4421_v49  ;;  %v4423_v22 = vadd.f32 (!%p4719_p9), %v4310_v35, %v4167_v15  ;;  %v4314_v62 = vmul.f32 (!%p4719_p9), 0.6931472, %v5587_v4  ;;  %v4258_v4 = vld [vmem:[#allocation3 + $0x148] sm:$0xff] (!%p4719_p9) }
 0x8c8   : > { %v5591_v37 = vpop.eup (!%p4719_p9), %5590  ;;  %4486 = vst.msk [vmem:[%s6089_s4 + $0x68] sm:$0xff] (!%p4719_p9), %vm4020_vm4, %v4422_v27  ;;  %v4424_v41 = vadd.f32 (!%p4719_p9), %v4312_v53, %v4168_v63  ;;  %v4316_v8 = vmul.f32 (!%p4719_p9), 0.6931472, %v5589_v47  ;;  %v4259_v47 = vld [vmem:[#allocation3 + $0x150] sm:$0xff] (!%p4719_p9) }
 0x8c9   : > { %v5593_v25 = vpop.eup (!%p4719_p9), %5592  ;;  %4487 = vst.msk [vmem:[%s6089_s4 + $0x70] sm:$0xff] (!%p4719_p9), %vm4020_vm4, %v4423_v22  ;;  %v4425_v3 = vadd.f32 (!%p4719_p9), %v4314_v62, %v4169_v40  ;;  %v4318_v11 = vmul.f32 (!%p4719_p9), 0.6931472, %v5591_v37  ;;  %v4260_v37 = vld [vmem:[#allocation3 + $0x158] sm:$0xff] (!%p4719_p9) }
 0x8ca   : > { %v5595_v51 = vpop.eup (!%p4719_p9), %5594  ;;  %4488 = vst.msk [vmem:[%s6089_s4 + $0x78] sm:$0xff] (!%p4719_p9), %vm4020_vm4, %v4424_v41  ;;  %v4426_v10 = vadd.f32 (!%p4719_p9), %v4316_v8, %v4170_v56  ;;  %v4320_v61 = vmul.f32 (!%p4719_p9), 0.6931472, %v5593_v25  ;;  %v4261_v25 = vld [vmem:[#allocation3 + $0x160] sm:$0xff] (!%p4719_p9) }
 0x8cb   : > { %v5597_v1 = vpop.eup (!%p4719_p9), %5596  ;;  %4489 = vst.msk [vmem:[%s6089_s4 + $0x80] sm:$0xff] (!%p4719_p9), %vm4020_vm4, %v4425_v3  ;;  %v4427_v19 = vadd.f32 (!%p4719_p9), %v4318_v11, %v4171_v31  ;;  %v4322_v38 = vmul.f32 (!%p4719_p9), 0.6931472, %v5595_v51  ;;  %v4262_v51 = vld [vmem:[#allocation3 + $0x168] sm:$0xff] (!%p4719_p9) }
 0x8cc   : > { %v5599_v28 = vpop.eup (!%p4719_p9), %5598  ;;  %4490 = vst.msk [vmem:[%s6089_s4 + $0x88] sm:$0xff] (!%p4719_p9), %vm4020_vm4, %v4426_v10  ;;  %v4428_v5 = vadd.f32 (!%p4719_p9), %v4320_v61, %v4172_v12 }
 0x8cd   : > { %4491 = vst.msk [vmem:[%s6089_s4 + $0x90] sm:$0xff] (!%p4719_p9), %vm4020_vm4, %v4427_v19 }
 0x8ce   : > { %4492 = vst.msk [vmem:[%s6089_s4 + $0x98] sm:$0xff] (!%p4719_p9), %vm4020_vm4, %v4428_v5 }
 0x8e6   : > { %4152 = sbr.rel (%p4719_p9) target bundleno = 2341 (0x925), region = 44 }
 0x8e9   : > { %v3950_v18 = vpop.xlane.xlu0 %3949 }
 0x8ea   : > { %v4018_v20 = vadd.f32 %v3950_v18, %v2546_v29  ;;  %v4300_v29 = vmul.f32 (!%p4719_p9), 0.6931472, %v5573_v59  ;;  %v4163_v18 = vld [vmem:[#allocation2 + $0x50] sm:$0xff] (!%p4719_p9) }
 0x8eb   : > { %v4419_v14 = vadd.f32 (!%p4719_p9), %v4302_v58, %v4163_v18  ;;  %v4251_v59 = vld [vmem:[#allocation3 + $0x110] sm:$0xff] (!%p4719_p9)  ;;  %v4326_v18 = vmul.f32 (!%p4719_p9), 0.6931472, %v5599_v28  ;;  %v4264_v28 = vld [vmem:[#allocation3 + $0x178] sm:$0xff] (!%p4719_p9) }
 0x8ec   : > { %4083 = vst.msk [vmem:[#allocation3 + $0x1f0] sm:$0xff] %vm4020_vm4, %v4018_v20  ;;  %v4240_v20 = vld [vmem:[#allocation3 + $0xb8] sm:$0xff] (!%p4719_p9)  ;;  %v4418_v9 = vadd.f32 (!%p4719_p9), %v4300_v29, %v4162_v45  ;;  %v4324_v45 = vmul.f32 (!%p4719_p9), 0.6931472, %v5597_v1  ;;  %v4429_v29 = vadd.f32 (!%p4719_p9), %v4322_v38, %v4173_v6  ;;  %v4263_v1 = vld [vmem:[#allocation3 + $0x170] sm:$0xff] (!%p4719_p9) }
 0x8ed   : > { %5600 = vlog2.f32 %v4240_v20  ;;  %4483 = vst.msk [vmem:[%s6089_s4 + $0x50] sm:$0xff] %vm4020_vm4, %v4419_v14  ;;  %v4176_v20 = vld [vmem:[#allocation2 + $0xb8] sm:$0xff]  ;;  %v4431_v13 = vadd.f32 %v4326_v18, %v4175_v26 }
 0x8ee   : > { %4482 = vst.msk [vmem:[%s6089_s4 + $0x48] sm:$0xff] %vm4020_vm4, %v4418_v9  ;;  %5602 = vlog2.f32 %v4241_v57  ;;  %v4430_v58 = vadd.f32 %v4324_v45, %v4174_v50  ;;  %v4177_v57 = vld [vmem:[#allocation2 + $0xc0] sm:$0xff]  ;;  %4493 = vst.msk [vmem:[%s6089_s4 + $0xa0] sm:$0xff] %vm4020_vm4, %v4429_v29 }
 0x8ef   : > { %5604 = vlog2.f32 %v4242_v30  ;;  %v4178_v30 = vld [vmem:[#allocation2 + $0xc8] sm:$0xff]  ;;  %4495 = vst.msk [vmem:[%s6089_s4 + $0xb0] sm:$0xff] %vm4020_vm4, %v4431_v13 }
 0x8f0   : > { %5606 = vlog2.f32 %v4243_v48  ;;  %4494 = vst.msk [vmem:[%s6089_s4 + $0xa8] sm:$0xff] %vm4020_vm4, %v4430_v58  ;;  %v4179_v48 = vld [vmem:[#allocation2 + $0xd0] sm:$0xff] }
 0x8f1   : > { %5608 = vlog2.f32 %v4244_v43  ;;  %v4180_v43 = vld [vmem:[#allocation2 + $0xd8] sm:$0xff] }
 0x8f2   : > { %5610 = vlog2.f32 %v4245_v16  ;;  %v4181_v16 = vld [vmem:[#allocation2 + $0xe0] sm:$0xff] }
 0x8f3   : > { %5612 = vlog2.f32 %v4246_v52  ;;  %v4182_v52 = vld [vmem:[#allocation2 + $0xe8] sm:$0xff] }
 0x8f4   : > { %5614 = vlog2.f32 %v4247_v36  ;;  %v4183_v36 = vld [vmem:[#allocation2 + $0xf0] sm:$0xff] }
 0x8f5   : > { %5616 = vlog2.f32 %v4248_v44  ;;  %v4184_v44 = vld [vmem:[#allocation2 + $0xf8] sm:$0xff] }
 0x8f6   : > { %5618 = vlog2.f32 %v4249_v54  ;;  %v4185_v54 = vld [vmem:[#allocation2 + $0x100] sm:$0xff] }
 0x8f7   : > { %v5601_v33 = vpop.eup %5600  ;;  %5620 = vlog2.f32 %v4250_v46  ;;  %v4186_v46 = vld [vmem:[#allocation2 + $0x108] sm:$0xff] }
 0x8f8   : > { %v5603_v24 = vpop.eup %5602  ;;  %v4328_v32 = vmul.f32 0.6931472, %v5601_v33  ;;  %5622 = vlog2.f32 %v4251_v59  ;;  %v4187_v59 = vld [vmem:[#allocation2 + $0x110] sm:$0xff]  ;;  %v4265_v33 = vld [vmem:[#allocation3 + $0x180] sm:$0xff] }
 0x8f9   : > { %v5605_v9 = vpop.eup %5604  ;;  %v4330_v34 = vmul.f32 0.6931472, %v5603_v24  ;;  %5624 = vlog2.f32 %v4252_v55  ;;  %v4188_v55 = vld [vmem:[#allocation2 + $0x118] sm:$0xff]  ;;  %v4266_v24 = vld [vmem:[#allocation3 + $0x188] sm:$0xff] }
 0x8fa   : > { %v5607_v14 = vpop.eup %5606  ;;  %v4432_v2 = vadd.f32 %v4328_v32, %v4176_v20  ;;  %v4332_v42 = vmul.f32 0.6931472, %v5605_v9  ;;  %5626 = vlog2.f32 %v4253_v21  ;;  %v4189_v21 = vld [vmem:[#allocation2 + $0x120] sm:$0xff]  ;;  %v4267_v9 = vld [vmem:[#allocation3 + $0x190] sm:$0xff] }
 0x8fb   : > { %v5609_v23 = vpop.eup %5608  ;;  %v4433_v17 = vadd.f32 %v4330_v34, %v4177_v57  ;;  %v4334_v15 = vmul.f32 0.6931472, %v5607_v14  ;;  %5628 = vlog2.f32 %v4254_v0  ;;  %v4190_v0 = vld [vmem:[#allocation2 + $0x128] sm:$0xff]  ;;  %v4268_v14 = vld [vmem:[#allocation3 + $0x198] sm:$0xff] }
 0x8fc   : > { %v5611_v49 = vpop.eup %5610  ;;  %4496 = vst.msk [vmem:[%s6089_s4 + $0xb8] sm:$0xff] %vm4020_vm4, %v4432_v2  ;;  %v4434_v35 = vadd.f32 %v4332_v42, %v4178_v30  ;;  %v4336_v63 = vmul.f32 0.6931472, %v5609_v23  ;;  %5630 = vlog2.f32 %v4255_v60  ;;  %v4191_v60 = vld [vmem:[#allocation2 + $0x130] sm:$0xff]  ;;  %v4269_v23 = vld [vmem:[#allocation3 + $0x1a0] sm:$0xff] }
 0x8fd   : > { %v5613_v27 = vpop.eup %5612  ;;  %4497 = vst.msk [vmem:[%s6089_s4 + $0xc0] sm:$0xff] %vm4020_vm4, %v4433_v17  ;;  %v4435_v53 = vadd.f32 %v4334_v15, %v4179_v48  ;;  %v4338_v40 = vmul.f32 0.6931472, %v5611_v49  ;;  %5632 = vlog2.f32 %v4256_v39  ;;  %v4192_v39 = vld [vmem:[#allocation2 + $0x138] sm:$0xff]  ;;  %v4270_v49 = vld [vmem:[#allocation3 + $0x1a8] sm:$0xff] }
 0x8fe   : > { %v5615_v22 = vpop.eup %5614  ;;  %4498 = vst.msk [vmem:[%s6089_s4 + $0xc8] sm:$0xff] %vm4020_vm4, %v4434_v35  ;;  %v4436_v62 = vadd.f32 %v4336_v63, %v4180_v43  ;;  %v4340_v56 = vmul.f32 0.6931472, %v5613_v27  ;;  %5634 = vlog2.f32 %v4257_v7  ;;  %v4193_v7 = vld [vmem:[#allocation2 + $0x140] sm:$0xff]  ;;  %v4271_v27 = vld [vmem:[#allocation3 + $0x1b0] sm:$0xff] }
 0x8ff   : > { %v5617_v41 = vpop.eup %5616  ;;  %4499 = vst.msk [vmem:[%s6089_s4 + $0xd0] sm:$0xff] %vm4020_vm4, %v4435_v53  ;;  %v4437_v8 = vadd.f32 %v4338_v40, %v4181_v16  ;;  %v4342_v31 = vmul.f32 0.6931472, %v5615_v22  ;;  %5636 = vlog2.f32 %v4258_v4  ;;  %v4194_v4 = vld [vmem:[#allocation2 + $0x148] sm:$0xff]  ;;  %v4272_v22 = vld [vmem:[#allocation3 + $0x1b8] sm:$0xff] }
 0x900   : > { %v5619_v3 = vpop.eup %5618  ;;  %4500 = vst.msk [vmem:[%s6089_s4 + $0xd8] sm:$0xff] %vm4020_vm4, %v4436_v62  ;;  %v4438_v11 = vadd.f32 %v4340_v56, %v4182_v52  ;;  %v4344_v12 = vmul.f32 0.6931472, %v5617_v41  ;;  %5638 = vlog2.f32 %v4259_v47  ;;  %v4195_v47 = vld [vmem:[#allocation2 + $0x150] sm:$0xff]  ;;  %v4273_v41 = vld [vmem:[#allocation3 + $0x1c0] sm:$0xff] }
 0x901   : > { %v5621_v10 = vpop.eup %5620  ;;  %4501 = vst.msk [vmem:[%s6089_s4 + $0xe0] sm:$0xff] %vm4020_vm4, %v4437_v8  ;;  %v4439_v61 = vadd.f32 %v4342_v31, %v4183_v36  ;;  %v4346_v6 = vmul.f32 0.6931472, %v5619_v3  ;;  %5640 = vlog2.f32 %v4260_v37  ;;  %v4196_v37 = vld [vmem:[#allocation2 + $0x158] sm:$0xff]  ;;  %v4274_v3 = vld [vmem:[#allocation3 + $0x1c8] sm:$0xff] }
 0x902   : > { %v5623_v19 = vpop.eup %5622  ;;  %4502 = vst.msk [vmem:[%s6089_s4 + $0xe8] sm:$0xff] %vm4020_vm4, %v4438_v11  ;;  %v4440_v38 = vadd.f32 %v4344_v12, %v4184_v44  ;;  %v4348_v50 = vmul.f32 0.6931472, %v5621_v10  ;;  %5642 = vlog2.f32 %v4261_v25  ;;  %v4197_v25 = vld [vmem:[#allocation2 + $0x160] sm:$0xff]  ;;  %v4275_v10 = vld [vmem:[#allocation3 + $0x1d0] sm:$0xff] }
 0x903   : > { %v5625_v5 = vpop.eup %5624  ;;  %4503 = vst.msk [vmem:[%s6089_s4 + $0xf0] sm:$0xff] %vm4020_vm4, %v4439_v61  ;;  %v4441_v45 = vadd.f32 %v4346_v6, %v4185_v54  ;;  %v4350_v26 = vmul.f32 0.6931472, %v5623_v19  ;;  %5644 = vlog2.f32 %v4262_v51  ;;  %v4198_v51 = vld [vmem:[#allocation2 + $0x168] sm:$0xff]  ;;  %v4276_v19 = vld [vmem:[#allocation3 + $0x1d8] sm:$0xff] }
 0x904   : > { %v5627_v29 = vpop.eup %5626  ;;  %4504 = vst.msk [vmem:[%s6089_s4 + $0xf8] sm:$0xff] %vm4020_vm4, %v4440_v38  ;;  %v4442_v18 = vadd.f32 %v4348_v50, %v4186_v46  ;;  %v4352_v20 = vmul.f32 0.6931472, %v5625_v5  ;;  %5646 = vlog2.f32 %v4263_v1  ;;  %v4199_v1 = vld [vmem:[#allocation2 + $0x170] sm:$0xff]  ;;  %v4277_v5 = vld [vmem:[#allocation3 + $0x1e0] sm:$0xff] }
 0x905   : > { %v5629_v58 = vpop.eup %5628  ;;  %4505 = vst.msk [vmem:[%s6089_s4 + $0x100] sm:$0xff] %vm4020_vm4, %v4441_v45  ;;  %v4443_v32 = vadd.f32 %v4350_v26, %v4187_v59  ;;  %v4354_v57 = vmul.f32 0.6931472, %v5627_v29  ;;  %5648 = vlog2.f32 %v4264_v28  ;;  %v4200_v28 = vld [vmem:[#allocation2 + $0x178] sm:$0xff]  ;;  %v4278_v29 = vld [vmem:[#allocation3 + $0x1e8] sm:$0xff] }
 0x906   : > { %v5631_v13 = vpop.eup %5630  ;;  %4506 = vst.msk [vmem:[%s6089_s4 + $0x108] sm:$0xff] %vm4020_vm4, %v4442_v18  ;;  %v4444_v34 = vadd.f32 %v4352_v20, %v4188_v55  ;;  %v4356_v30 = vmul.f32 0.6931472, %v5629_v58  ;;  %5650 = vlog2.f32 %v4265_v33  ;;  %v4201_v33 = vld [vmem:[#allocation2 + $0x180] sm:$0xff]  ;;  %v4279_v58 = vld [vmem:[#allocation3 + $0x1f0] sm:$0xff] }
 0x907   : > { %v5633_v2 = vpop.eup %5632  ;;  %4507 = vst.msk [vmem:[%s6089_s4 + $0x110] sm:$0xff] %vm4020_vm4, %v4443_v32  ;;  %v4445_v42 = vadd.f32 %v4354_v57, %v4189_v21  ;;  %v4358_v48 = vmul.f32 0.6931472, %v5631_v13  ;;  %5652 = vlog2.f32 %v4266_v24  ;;  %v4202_v24 = vld [vmem:[#allocation2 + $0x188] sm:$0xff]  ;;  %v4280_v13 = vld [vmem:[#allocation3 + $0x1f8] sm:$0xff] }
 0x908   : > { %v5635_v17 = vpop.eup %5634  ;;  %4508 = vst.msk [vmem:[%s6089_s4 + $0x118] sm:$0xff] %vm4020_vm4, %v4444_v34  ;;  %v4446_v15 = vadd.f32 %v4356_v30, %v4190_v0  ;;  %v4360_v43 = vmul.f32 0.6931472, %v5633_v2  ;;  %5654 = vlog2.f32 %v4267_v9  ;;  %v4203_v9 = vld [vmem:[#allocation2 + $0x190] sm:$0xff] }
 0x909   : > { %v5637_v35 = vpop.eup %5636  ;;  %4509 = vst.msk [vmem:[%s6089_s4 + $0x120] sm:$0xff] %vm4020_vm4, %v4445_v42  ;;  %v4447_v63 = vadd.f32 %v4358_v48, %v4191_v60  ;;  %v4362_v16 = vmul.f32 0.6931472, %v5635_v17  ;;  %5656 = vlog2.f32 %v4268_v14  ;;  %v4204_v14 = vld [vmem:[#allocation2 + $0x198] sm:$0xff] }
 0x90a   : > { %v5639_v53 = vpop.eup %5638  ;;  %4510 = vst.msk [vmem:[%s6089_s4 + $0x128] sm:$0xff] %vm4020_vm4, %v4446_v15  ;;  %v4448_v40 = vadd.f32 %v4360_v43, %v4192_v39  ;;  %v4364_v52 = vmul.f32 0.6931472, %v5637_v35  ;;  %5658 = vlog2.f32 %v4269_v23  ;;  %v4205_v39 = vld [vmem:[#allocation2 + $0x1a0] sm:$0xff]  ;;  %v4206_v43 = vld [vmem:[#allocation2 + $0x1a8] sm:$0xff] }
 0x90b   : > { %v5641_v62 = vpop.eup %5640  ;;  %4511 = vst.msk [vmem:[%s6089_s4 + $0x130] sm:$0xff] %vm4020_vm4, %v4447_v63  ;;  %v4449_v56 = vadd.f32 %v4362_v16, %v4193_v7  ;;  %v4366_v36 = vmul.f32 0.6931472, %v5639_v53  ;;  %5660 = vlog2.f32 %v4270_v49  ;;  %v4207_v63 = vld [vmem:[#allocation2 + $0x1b0] sm:$0xff]  ;;  %v4208_v53 = vld [vmem:[#allocation2 + $0x1b8] sm:$0xff] }
 0x90c   : > { %v5643_v8 = vpop.eup %5642  ;;  %4512 = vst.msk [vmem:[%s6089_s4 + $0x138] sm:$0xff] %vm4020_vm4, %v4448_v40  ;;  %v4450_v31 = vadd.f32 %v4364_v52, %v4194_v4  ;;  %v4368_v44 = vmul.f32 0.6931472, %v5641_v62  ;;  %5662 = vlog2.f32 %v4271_v27 }
 0x90d   : > { %v5645_v11 = vpop.eup %5644  ;;  %4513 = vst.msk [vmem:[%s6089_s4 + $0x140] sm:$0xff] %vm4020_vm4, %v4449_v56  ;;  %v4451_v12 = vadd.f32 %v4366_v36, %v4195_v47  ;;  %v4370_v54 = vmul.f32 0.6931472, %v5643_v8  ;;  %5664 = vlog2.f32 %v4272_v22  ;;  %v4209_v22 = vld [vmem:[#allocation2 + $0x1c0] sm:$0xff] }
 0x90e   : > { %v5647_v61 = vpop.eup %5646  ;;  %4514 = vst.msk [vmem:[%s6089_s4 + $0x148] sm:$0xff] %vm4020_vm4, %v4450_v31  ;;  %v4452_v6 = vadd.f32 %v4368_v44, %v4196_v37  ;;  %v4372_v46 = vmul.f32 0.6931472, %v5645_v11  ;;  %5666 = vlog2.f32 %v4273_v41  ;;  %v4210_v37 = vld [vmem:[#allocation2 + $0x1c8] sm:$0xff]  ;;  %v4211_v44 = vld [vmem:[#allocation2 + $0x1d0] sm:$0xff] }
 0x90f   : > { %v5649_v38 = vpop.eup %5648  ;;  %4515 = vst.msk [vmem:[%s6089_s4 + $0x150] sm:$0xff] %vm4020_vm4, %v4451_v12  ;;  %v4453_v50 = vadd.f32 %v4370_v54, %v4197_v25  ;;  %v4374_v59 = vmul.f32 0.6931472, %v5647_v61  ;;  %5668 = vlog2.f32 %v4274_v3  ;;  %v4212_v12 = vld [vmem:[#allocation2 + $0x1d8] sm:$0xff]  ;;  %v4213_v61 = vld [vmem:[#allocation2 + $0x1e0] sm:$0xff] }
 0x910   : > { %v5651_v45 = vpop.eup %5650  ;;  %4516 = vst.msk [vmem:[%s6089_s4 + $0x158] sm:$0xff] %vm4020_vm4, %v4452_v6  ;;  %v4454_v26 = vadd.f32 %v4372_v46, %v4198_v51  ;;  %v4376_v55 = vmul.f32 0.6931472, %v5649_v38  ;;  %5670 = vlog2.f32 %v4275_v10 }
 0x911   : > { %v5653_v18 = vpop.eup %5652  ;;  %4517 = vst.msk [vmem:[%s6089_s4 + $0x160] sm:$0xff] %vm4020_vm4, %v4453_v50  ;;  %v4455_v20 = vadd.f32 %v4374_v59, %v4199_v1  ;;  %v4378_v21 = vmul.f32 0.6931472, %v5651_v45  ;;  %5672 = vlog2.f32 %v4276_v19  ;;  %v4214_v19 = vld [vmem:[#allocation2 + $0x1e8] sm:$0xff] }
 0x912   : > { %v5655_v32 = vpop.eup %5654  ;;  %4518 = vst.msk [vmem:[%s6089_s4 + $0x168] sm:$0xff] %vm4020_vm4, %v4454_v26  ;;  %v4456_v57 = vadd.f32 %v4376_v55, %v4200_v28  ;;  %v4380_v0 = vmul.f32 0.6931472, %v5653_v18  ;;  %5674 = vlog2.f32 %v4277_v5  ;;  %v4215_v28 = vld [vmem:[#allocation2 + $0x1f0] sm:$0xff]  ;;  %v4216_v55 = vld [vmem:[#allocation2 + $0x1f8] sm:$0xff] }
 0x913   : > { %v5657_v34 = vpop.eup %5656  ;;  %4519 = vst.msk [vmem:[%s6089_s4 + $0x170] sm:$0xff] %vm4020_vm4, %v4455_v20  ;;  %v4457_v30 = vadd.f32 %v4378_v21, %v4201_v33  ;;  %v4382_v60 = vmul.f32 0.6931472, %v5655_v32  ;;  %5676 = vlog2.f32 %v4278_v29 }
 0x914   : > { %v5659_v2 = vpop.eup %5658  ;;  %4520 = vst.msk [vmem:[%s6089_s4 + $0x178] sm:$0xff] %vm4020_vm4, %v4456_v57  ;;  %v4458_v42 = vadd.f32 %v4380_v0, %v4202_v24  ;;  %v4384_v48 = vmul.f32 0.6931472, %v5657_v34  ;;  %5678 = vlog2.f32 %v4279_v58 }
 0x915   : > { %v5661_v23 = vpop.eup %5660  ;;  %4521 = vst.msk [vmem:[%s6089_s4 + $0x180] sm:$0xff] %vm4020_vm4, %v4457_v30  ;;  %v4459_v17 = vadd.f32 %v4382_v60, %v4203_v9  ;;  %v4386_v15 = vmul.f32 0.6931472, %v5659_v2  ;;  %5680 = vlog2.f32 %v4280_v13 }
 0x916   : > { %v5663_v7 = vpop.eup %5662  ;;  %4522 = vst.msk [vmem:[%s6089_s4 + $0x188] sm:$0xff] %vm4020_vm4, %v4458_v42  ;;  %v4460_v49 = vadd.f32 %v4384_v48, %v4204_v14  ;;  %v4388_v35 = vmul.f32 0.6931472, %v5661_v23 }
 0x917   : > { %v5665_v16 = vpop.eup %5664  ;;  %4523 = vst.msk [vmem:[%s6089_s4 + $0x190] sm:$0xff] %vm4020_vm4, %v4459_v17  ;;  %v4461_v4 = vadd.f32 %v4386_v15, %v4205_v39  ;;  %v4390_v27 = vmul.f32 0.6931472, %v5663_v7 }
 0x918   : > { %v5667_v40 = vpop.eup %5666  ;;  %4524 = vst.msk [vmem:[%s6089_s4 + $0x198] sm:$0xff] %vm4020_vm4, %v4460_v49  ;;  %v4462_v52 = vadd.f32 %v4388_v35, %v4206_v43  ;;  %v4392_v47 = vmul.f32 0.6931472, %v5665_v16 }
 0x919   : > { %v5669_v62 = vpop.eup %5668  ;;  %4525 = vst.msk [vmem:[%s6089_s4 + $0x1a0] sm:$0xff] %vm4020_vm4, %v4461_v4  ;;  %v4463_v56 = vadd.f32 %v4390_v27, %v4207_v63  ;;  %v4394_v36 = vmul.f32 0.6931472, %v5667_v40 }
 0x91a   : > { %v5671_v41 = vpop.eup %5670  ;;  %4526 = vst.msk [vmem:[%s6089_s4 + $0x1a8] sm:$0xff] %vm4020_vm4, %v4462_v52  ;;  %v4464_v8 = vadd.f32 %v4392_v47, %v4208_v53  ;;  %v4396_v31 = vmul.f32 0.6931472, %v5669_v62 }
 0x91b   : > { %v5673_v25 = vpop.eup %5672  ;;  %4527 = vst.msk [vmem:[%s6089_s4 + $0x1b0] sm:$0xff] %vm4020_vm4, %v4463_v56  ;;  %v4465_v3 = vadd.f32 %v4394_v36, %v4209_v22  ;;  %v4398_v11 = vmul.f32 0.6931472, %v5671_v41 }
 0x91c   : > { %v5675_v54 = vpop.eup %5674  ;;  %4528 = vst.msk [vmem:[%s6089_s4 + $0x1b8] sm:$0xff] %vm4020_vm4, %v4464_v8  ;;  %v4466_v51 = vadd.f32 %v4396_v31, %v4210_v37  ;;  %v4400_v10 = vmul.f32 0.6931472, %v5673_v25 }
 0x91d   : > { %v5677_v6 = vpop.eup %5676  ;;  %4529 = vst.msk [vmem:[%s6089_s4 + $0x1c0] sm:$0xff] %vm4020_vm4, %v4465_v3  ;;  %v4467_v46 = vadd.f32 %v4398_v11, %v4211_v44  ;;  %v4402_v1 = vmul.f32 0.6931472, %v5675_v54 }
 0x91e   : > { %v5679_v38 = vpop.eup %5678  ;;  %4530 = vst.msk [vmem:[%s6089_s4 + $0x1c8] sm:$0xff] %vm4020_vm4, %v4466_v51  ;;  %v4468_v50 = vadd.f32 %v4400_v10, %v4212_v12  ;;  %v4404_v59 = vmul.f32 0.6931472, %v5677_v6 }
 0x91f   : > { %v5681_v5 = vpop.eup %5680  ;;  %4531 = vst.msk [vmem:[%s6089_s4 + $0x1d0] sm:$0xff] %vm4020_vm4, %v4467_v46  ;;  %v4469_v45 = vadd.f32 %v4402_v1, %v4213_v61  ;;  %v4406_v26 = vmul.f32 0.6931472, %v5679_v38 }
 0x920   : > { %4532 = vst.msk [vmem:[%s6089_s4 + $0x1d8] sm:$0xff] %vm4020_vm4, %v4468_v50  ;;  %v4470_v33 = vadd.f32 %v4404_v59, %v4214_v19  ;;  %v4408_v29 = vmul.f32 0.6931472, %v5681_v5 }
 0x921   : > { %4533 = vst.msk [vmem:[%s6089_s4 + $0x1e0] sm:$0xff] %vm4020_vm4, %v4469_v45  ;;  %v4471_v18 = vadd.f32 %v4406_v26, %v4215_v28 }
 0x922   : > { %4534 = vst.msk [vmem:[%s6089_s4 + $0x1e8] sm:$0xff] %vm4020_vm4, %v4470_v33  ;;  %v4472_v20 = vadd.f32 %v4408_v29, %v4216_v55 }
 0x923   : > { %4535 = vst.msk [vmem:[%s6089_s4 + $0x1f0] sm:$0xff] %vm4020_vm4, %v4471_v18 }
 0x924   : > { %4536 = vst.msk [vmem:[%s6089_s4 + $0x1f8] sm:$0xff] %vm4020_vm4, %v4472_v20 }
 0x925 PF: > { %s18_s19 = sadd.s32 1, %s5836_s19   ;;  %s10241_s9 = smov %s5800_s10 }
 0x926   : > { %p15_p11 = scmp.ge.s32.totalorder %s18_s19, 6   ;;  %s10242_s10 = smov %s5804_s11 }
 0x927   : > { %s10243_s11 = smov %s6016_s5  ;;  %s10244_s12 = smov %s5812_s13 }
 0x928   : > { %s10245_s13 = smov %s5816_s14  ;;  %s10246_s14 = smov %s6024_s7 }
 0x929   : > { %s10247_s15 = smov %s5828_s17  ;;  %s10248_s16 = smov %s5832_s18 }
 0x92a   : > { %s10249_s17 = smov %s10252_s20  ;;  %s10250_s18 = smov %s10256_s21 }
 0x92b   :  { %17 = sbr.rel (!%p15_p11) target bundleno = 9 (0x9), region = 89 }
 0x932   :  { %4559 = vsyncpa [#allocation5], 1 }
 0x933   :  { %4561 = vsyncpa [#allocation5 + $0x1], 1 }
 0x934   :  { %4562 = vsyncpa [#allocation7], 1 }
 0x935   :  { %4564 = vsyncpa [#allocation7 + $0x1], 1 }

</bundles_post_ra>
